<compile_context>
chip_gen: v6e
topology: v6e:2x2x1
jax: 0.10.0
libtpu: 0.0.40
codegen_flags: <defaults>
</compile_context>

<pallas_src>
import functools

import jax
import jax.numpy as jnp
import numpy as np
from jax import lax
from jax.experimental import pallas as pl
from jax.experimental.pallas import tpu as pltpu


# --------------------------- fused per-grid-step kernel ---------------------------
def _fused_kernel(x_ref, p_ref, out_ref, *, L, n_pairs, offs):
    """Encoder + attention-relation head for 2*n_pairs samples (supports then queries).

    x_ref  : [1, R, C] slab, R = 2*n_pairs*L rows (length on sublanes, channels on lanes).
    p_ref  : [rows, W] packed parameter buffer (one DMA); `offs[name] = (row0, nrows, ncols)`
             static windows, 8-row aligned.
    out_ref: [1, n_pairs, 1] relation score per query (support-axis broadcast done host-side).
    """
    M = 2 * n_pairs
    R = M * L

    def par(name):                       # static ref window -> single small load
        r0, nr, nc = offs[name]
        return p_ref[r0:r0 + nr, :nc]

    x = x_ref[0]                                              # [R, C] f32
    il = lax.broadcasted_iota(jnp.int32, (R, 1), 0) % L       # within-sample row index

    h = x
    for s, wn, bn in ((1, "w1", "b1"), (2, "w2", "b2"), (4, "w3", "b3")):
        # Conv1d(k=3,pad=1) + BN(folded) + ReLU + MaxPool1d(2) on the dilated slab: live rows
        # sit at within-sample stride s, so the k=3 taps are whole-slab XLU rolls with
        # boundary masks zeroing the wrapped / cross-sample rows, and the pool is roll + max.
        lo = (il >= s).astype(jnp.float32)            # 0 on the first s rows of each sample
        hi = (il < L - s).astype(jnp.float32)         # 0 on the last  s rows of each sample
        hm = pltpu.roll(h, shift=s, axis=0) * lo      # h[i - s] (conv zero padding)
        hp = pltpu.roll(h, shift=R - s, axis=0) * hi  # h[i + s] (R - s == -s mod R)
        # im2col: one tall MXU matmul with contraction 3*Cin instead of 3 small matmuls.
        taps = jnp.concatenate([hm, h, hp], axis=1)   # [R, 3*Cin]
        y = jnp.dot(taps, par(wn), preferred_element_type=jnp.float32) + par(bn)
        y = jnp.maximum(y, 0.0)                       # ReLU (Dropout = identity in eval)
        # MaxPool1d(2): next-block live rows (stride 2s) take max(y[i], y[i+s]); wrapped rows
        # only ever land on non-live rows, so no extra mask is needed here.
        h = jnp.maximum(y, pltpu.roll(y, shift=R - s, axis=0))

    # AdaptiveAvgPool1d(1): mean of the L//8 live rows of each sample via a masked
    # cross-sublane reduce (XLU), no dense selection matrix.
    live = (il % 8 == 0).astype(jnp.float32)
    pooled = (h * live).reshape(M, L, h.shape[1]).sum(axis=1) * (8.0 / L)      # [M, 4H]

    # feature_layer: Linear -> BN(folded) -> ReLU -> Dropout(id), then F.normalize(p=2, dim=1).
    feat = jnp.dot(pooled, par("wf"), preferred_element_type=jnp.float32) + par("bf")
    feat = jnp.maximum(feat, 0.0)
    ssq = jnp.sum(feat * feat, axis=-1, keepdims=True)
    feat = feat * lax.rsqrt(jnp.maximum(ssq, 1e-24))          # == f / max(||f||, 1e-12)

    s_feat = feat[:n_pairs, :]                                # support features
    q_feat = feat[n_pairs:, :]                                # query features (row-aligned)
    # MultiheadAttention with one key/value position -> softmax == 1 exactly, so
    # attn = out_proj(v_proj(s)); that chain + the first relation Linear are folded
    # host-side into (aw, bw, cb):  h1 = relu(q @ aw + s @ bw + cb).
    h1 = (jnp.dot(q_feat, par("aw"), preferred_element_type=jnp.float32)
          + jnp.dot(s_feat, par("bw"), preferred_element_type=jnp.float32) + par("cb"))
    h1 = jnp.maximum(h1, 0.0)
    h2 = jnp.maximum(jnp.dot(h1, par("rw2"), preferred_element_type=jnp.float32)
                     + par("rb2"), 0.0)
    score = jnp.dot(h2, par("rw3"), preferred_element_type=jnp.float32) + par("rb3")
    out_ref[0] = score                                        # [n_pairs, 1]


# ------------------------------ host-side param packing ------------------------------
def _pack_params(p):
    """Fold MHA(v/o-proj) + first relation Linear, then pack ALL weights/biases into one
    flat f32 [rows, W] buffer (single DMA).  Each block starts on an 8-row boundary so the
    in-kernel static slices stay sublane-tile aligned."""
    Fd = p["wf"].shape[1]
    b_vo = p["bv"] @ p["wo"] + p["bo"]                       # [1, F]
    aw = p["rw1"][:Fd, :]                                    # query half of rw1
    bw = p["wv"] @ (p["wo"] @ p["rw1"][Fd:, :])              # support -> v -> o -> rw1
    cb = b_vo @ p["rw1"][Fd:, :] + p["rb1"]

    def conv(w):                                             # [3, Cin, Cout] -> [3*Cin, Cout]
        return w.reshape(-1, w.shape[-1])

    mats = dict(
        w1=conv(p["w1"]), b1=p["b1"], w2=conv(p["w2"]), b2=p["b2"],
        w3=conv(p["w3"]), b3=p["b3"], wf=p["wf"], bf=p["bf"],
        aw=aw, bw=bw, cb=cb, rw2=p["rw2"], rb2=p["rb2"], rw3=p["rw3"], rb3=p["rb3"],
    )
    W = max(int(m.shape[1]) for m in mats.values())
    offs, blocks, r = {}, [], 0
    for name, m in mats.items():
        nr, nc = int(m.shape[0]), int(m.shape[1])
        offs[name] = (r, nr, nc)
        pad_r = (-nr) % 8
        blocks.append(jnp.pad(m.astype(jnp.float32), ((0, pad_r), (0, W - nc))))
        r += nr + pad_r
    return jnp.concatenate(blocks, axis=0), offs


# ------------------------------- full forward pass -------------------------------
def attention_relation_protonet_forward(params, support_images, support_labels, query_images,
                                        *, fold_batch=None):
    # support_labels are unused when distance_type == 'relation' (matches the reference).
    del support_labels
    B, Ns, C, L = support_images.shape
    Nq = query_images.shape[1]
    assert Nq == Ns, "the reference MHA call requires n_query == n_support"
    assert L % 8 == 0, "three MaxPool1d(2) stages assume the length is a multiple of 8"

    if fold_batch is None:
        # Single-TC chips (v5e/v6e): fold the batch into the matmul row axis, grid=(1,).
        # Dual-TC v7x: keep grid=(B,) "parallel" so episodes land on both TensorCores.
        try:
            kind = jax.devices()[0].device_kind.lower()
        except Exception:
            kind = ""
        fold_batch = not ("v7" in kind or "7x" in kind)

    G = 1 if fold_batch else B                  # grid steps
    n_pairs = B * Ns if fold_batch else Ns      # (query, support) row pairs per grid step
    R = 2 * n_pairs * L                         # flattened rows per grid step

    # Pack [supports; queries] per grid step, NCL -> [rows, C] (length on sublanes).
    sup = support_images.reshape(G, n_pairs, C, L)
    qry = query_images.reshape(G, n_pairs, C, L)
    x = jnp.concatenate([sup, qry], axis=1)                              # [G, 2*n_pairs, C, L]
    x = jnp.transpose(x, (0, 1, 3, 2)).astype(jnp.float32).reshape(G, R, C)

    packed, offs = _pack_params(params)

    kernel = functools.partial(_fused_kernel, L=L, n_pairs=n_pairs, offs=offs)
    scores = pl.pallas_call(
        kernel,
        out_shape=jax.ShapeDtypeStruct((G, n_pairs, 1), jnp.float32),
        grid=(G,),
        in_specs=[pl.BlockSpec((1, R, C), lambda b: (b, 0, 0)),
                  pl.BlockSpec(packed.shape, lambda b: (0, 0))],
        out_specs=pl.BlockSpec((1, n_pairs, 1), lambda b: (b, 0, 0)),
        compiler_params=pltpu.CompilerParams(dimension_semantics=("parallel",)),
    )(x, packed)

    # `combined` in the reference does not depend on the support index -> broadcast host-side.
    return jnp.broadcast_to(scores.reshape(B, Nq, 1), (B, Nq, Ns))


# ---------------------------- deterministic parameters ----------------------------
def init_params(key, in_channels, hidden_dim, feature_dim):
    eps = 1e-5
    bn_scale = 1.0 / np.sqrt(1.0 + eps)   # fresh BN (gamma=1, beta=0, mean=0, var=1), eval mode
    ks = jax.random.split(key, 16)
    H, F = hidden_dim, feature_dim

    def conv_w(k, cin, cout):
        # torch Conv1d weight [Cout, Cin, 3] -> packed [3, Cin, Cout], BN folded
        w = jax.random.normal(k, (cout, cin, 3), jnp.float32) * 0.1
        return jnp.transpose(w, (2, 1, 0)) * bn_scale

    def lin_w(k, cin, cout):
        return jax.random.normal(k, (cin, cout), jnp.float32) * 0.1

    def bias(k, cout, scale=1.0):
        return jax.random.normal(k, (1, cout), jnp.float32) * 0.1 * scale

    return dict(
        w1=conv_w(ks[0], in_channels, H),       b1=bias(ks[1], H, bn_scale),
        w2=conv_w(ks[2], H, 2 * H),             b2=bias(ks[3], 2 * H, bn_scale),
        w3=conv_w(ks[4], 2 * H, 4 * H),         b3=bias(ks[5], 4 * H, bn_scale),
        wf=lin_w(ks[6], 4 * H, F) * bn_scale,   bf=bias(ks[7], F, bn_scale),
        wv=lin_w(ks[8], F, F),                  bv=bias(ks[9], F),
        wo=lin_w(ks[10], F, F),                 bo=bias(ks[11], F),
        rw1=lin_w(ks[12], 2 * F, H),            rb1=bias(ks[13], H),
        rw2=lin_w(ks[14], H, H // 2),           rb2=jnp.zeros((1, H // 2), jnp.float32),
        rw3=jax.random.normal(ks[15], (H // 2, 1), jnp.float32) * 0.1,
        rb3=jnp.zeros((1, 1), jnp.float32),
    )


# ------------------------------ pure-JAX reference ------------------------------
def reference_forward(p, support_images, query_images):
    def enc(x_ncl):
        h = jnp.transpose(x_ncl, (0, 2, 1)).astype(jnp.float32)   # [M, L, C]
        for w, b in ((p["w1"], p["b1"]), (p["w2"], p["b2"]), (p["w3"], p["b3"])):
            hp = jnp.pad(h, ((0, 0), (1, 1), (0, 0)))
            y = (jnp.einsum("mlc,cd->mld", hp[:, :-2], w[0])
                 + jnp.einsum("mlc,cd->mld", hp[:, 1:-1], w[1])
                 + jnp.einsum("mlc,cd->mld", hp[:, 2:], w[2]) + b)
            y = jnp.maximum(y, 0.0)
            M, Ly, Cy = y.shape
            h = y.reshape(M, Ly // 2, 2, Cy).max(axis=2)
        h = h.mean(axis=1)
        f = jnp.maximum(h @ p["wf"] + p["bf"], 0.0)
        return f / jnp.maximum(jnp.linalg.norm(f, axis=-1, keepdims=True), 1e-12)

    B, Ns = support_images.shape[:2]
    Nq = query_images.shape[1]
    s = enc(support_images.reshape(B * Ns, *support_images.shape[2:])).reshape(B, Ns, -1)
    q = enc(query_images.reshape(B * Nq, *query_images.shape[2:])).reshape(B, Nq, -1)
    a = (s @ p["wv"] + p["bv"]) @ p["wo"] + p["bo"]
    comb = jnp.concatenate([q, a], axis=-1)
    h1 = jnp.maximum(comb @ p["rw1"] + p["rb1"], 0.0)
    h2 = jnp.maximum(h1 @ p["rw2"] + p["rb2"], 0.0)
    sc = h2 @ p["rw3"] + p["rb3"]
    return jnp.broadcast_to(sc, (B, Nq, Ns))


if __name__ == "__main__":
    key = jax.random.PRNGKey(0)
    kp, ks, kq = jax.random.split(key, 3)
    B, N, C, L = 2, 8, 4, 16          # batch, n_support == n_query, channels, length
    H, F = 8, 16                      # hidden_dim, feature_dim (feature_dim % 4 == 0, 4 heads)
    params = init_params(kp, C, H, F)
    support_images = jax.random.normal(ks, (B, N, C, L), jnp.float32)
    query_images = jax.random.normal(kq, (B, N, C, L), jnp.float32)
    support_labels = jnp.tile(jnp.arange(4), (B, 2)).reshape(B, N)   # unused (relation mode)

    ref = reference_forward(params, support_images, query_images)

    # Test both layouts: folded batch (single-TC v5e/v6e) and per-episode parallel grid (v7x).
    for fold in (True, False):
        out = jax.block_until_ready(
            attention_relation_protonet_forward(params, support_images, support_labels,
                                                query_images, fold_batch=fold))
        np.testing.assert_allclose(np.asarray(out), np.asarray(ref), rtol=1e-5, atol=1e-5)
        assert out.shape == (B, N, N)

    # Default path (auto device-kind selection) exercises one of the two compiled variants.
    out = jax.block_until_ready(
        attention_relation_protonet_forward(params, support_images, support_labels, query_images))
    np.testing.assert_allclose(np.asarray(out), np.asarray(ref), rtol=1e-5, atol=1e-5)

    print("KERNEL_OK")
</pallas_src>

<mosaic_0001>
module attributes {stable_mosaic.version = 11 : i64} {
  func.func @_fused_kernel(%arg0: i32, %arg1: memref<1x512x4xf32, #tpu.memory_space<vmem>>, %arg2: memref<224x32xf32, #tpu.memory_space<vmem>>, %arg3: memref<1x16x1xf32, #tpu.memory_space<vmem>>) attributes {dimension_semantics = [#tpu.dimension_semantics<parallel>], iteration_bounds = array<i64: 1>, scalar_prefetch = 0 : i64, scratch_operands = 0 : i64, tpu.core_type = #tpu.core_type<tc>, window_params = [{transform_indices = @transform_0, window_bounds = array<i64: 1, 512, 4>}, {pipeline_mode = #tpu.pipeline_mode<synchronous>, transform_indices = @transform_1, window_bounds = array<i64: 224, 32>}, {transform_indices = @transform_2, window_bounds = array<i64: 1, 16, 1>}]} {
    %c0 = arith.constant 0 : index
    %c0_0 = arith.constant 0 : index
    %c0_1 = arith.constant 0 : index
    %0 = vector.load %arg1[%c0, %c0_0, %c0_1] : memref<1x512x4xf32, #tpu.memory_space<vmem>>, vector<1x512x4xf32>
    %1 = vector.shape_cast %0 : vector<1x512x4xf32> to vector<512x4xf32>
    %2 = tpu.iota {dimensions = array<i32: 0>} : vector<512x1xi32>
    %c16_i32 = arith.constant 16 : i32
    %c0_i32 = arith.constant 0 : i32
    %3 = arith.cmpi eq, %c16_i32, %c0_i32 : i32
    %c1_i32 = arith.constant 1 : i32
    %4 = arith.select %3, %c1_i32, %c16_i32 : i32
    %5 = vector.broadcast %4 : i32 to vector<512x1xi32>
    %6 = arith.remsi %2, %5 : vector<512x1xi32>
    %c0_i32_2 = arith.constant 0 : i32
    %7 = vector.broadcast %c0_i32_2 : i32 to vector<512x1xi32>
    %8 = arith.cmpi ne, %6, %7 : vector<512x1xi32>
    %c0_i32_3 = arith.constant 0 : i32
    %9 = vector.broadcast %c0_i32_3 : i32 to vector<512x1xi32>
    %10 = arith.cmpi slt, %6, %9 : vector<512x1xi32>
    %c0_i32_4 = arith.constant 0 : i32
    %11 = arith.cmpi slt, %4, %c0_i32_4 : i32
    %12 = vector.broadcast %11 : i1 to vector<512x1xi1>
    %13 = vector.broadcast %12 : vector<512x1xi1> to vector<512x1xi1>
    %14 = arith.xori %10, %13 : vector<512x1xi1>
    %15 = arith.andi %14, %8 : vector<512x1xi1>
    %16 = vector.broadcast %4 : i32 to vector<512x1xi32>
    %17 = arith.addi %6, %16 : vector<512x1xi32>
    %18 = arith.select %15, %17, %6 : vector<512x1xi1>, vector<512x1xi32>
    %c1_i32_5 = arith.constant 1 : i32
    %19 = vector.broadcast %c1_i32_5 : i32 to vector<512x1xi32>
    %20 = arith.cmpi sge, %18, %19 : vector<512x1xi32>
    %21 = arith.extui %20 : vector<512x1xi1> to vector<512x1xi32>
    %22 = arith.sitofp %21 : vector<512x1xi32> to vector<512x1xf32>
    %c15_i32 = arith.constant 15 : i32
    %23 = vector.broadcast %c15_i32 : i32 to vector<512x1xi32>
    %24 = arith.cmpi slt, %18, %23 : vector<512x1xi32>
    %25 = arith.extui %24 : vector<512x1xi1> to vector<512x1xi32>
    %26 = arith.sitofp %25 : vector<512x1xi32> to vector<512x1xf32>
    %c1_i32_6 = arith.constant 1 : i32
    %27 = tpu.dynamic_rotate %1 by %c1_i32_6 dim 0 : vector<512x4xf32>, i32 -> vector<512x4xf32>
    %28 = vector.broadcast %22 : vector<512x1xf32> to vector<512x4xf32>
    %29 = arith.mulf %27, %28 : vector<512x4xf32>
    %c511_i32 = arith.constant 511 : i32
    %30 = tpu.dynamic_rotate %1 by %c511_i32 dim 0 : vector<512x4xf32>, i32 -> vector<512x4xf32>
    %31 = vector.broadcast %26 : vector<512x1xf32> to vector<512x4xf32>
    %32 = arith.mulf %30, %31 : vector<512x4xf32>
    %33 = tpu.concatenate %29, %1, %32 in 1 : vector<512x4xf32>, vector<512x4xf32>, vector<512x4xf32> -> vector<512x12xf32>
    %c0_7 = arith.constant 0 : index
    %c0_8 = arith.constant 0 : index
    %34 = vector.load %arg2[%c0_7, %c0_8] : memref<224x32xf32, #tpu.memory_space<vmem>>, vector<12x8xf32>
    %cst = arith.constant dense<0.000000e+00> : vector<512x8xf32>
    %35 = tpu.matmul %33, %34, %cst {dimension_numbers = #tpu.dot_dimension_numbers<[1], [0], [0], [1], [0, 0, 1, 1], [], []>} : vector<512x12xf32>, vector<12x8xf32>, vector<512x8xf32> -> vector<512x8xf32>
    %c16 = arith.constant 16 : index
    %c0_9 = arith.constant 0 : index
    %36 = vector.load %arg2[%c16, %c0_9] : memref<224x32xf32, #tpu.memory_space<vmem>>, vector<1x8xf32>
    %37 = vector.broadcast %36 : vector<1x8xf32> to vector<512x8xf32>
    %38 = arith.addf %35, %37 : vector<512x8xf32>
    %cst_10 = arith.constant 0.000000e+00 : f32
    %39 = vector.broadcast %cst_10 : f32 to vector<512x8xf32>
    %40 = arith.maximumf %38, %39 : vector<512x8xf32>
    %c511_i32_11 = arith.constant 511 : i32
    %41 = tpu.dynamic_rotate %40 by %c511_i32_11 dim 0 : vector<512x8xf32>, i32 -> vector<512x8xf32>
    %42 = arith.maximumf %40, %41 : vector<512x8xf32>
    %c2_i32 = arith.constant 2 : i32
    %43 = vector.broadcast %c2_i32 : i32 to vector<512x1xi32>
    %44 = arith.cmpi sge, %18, %43 : vector<512x1xi32>
    %45 = arith.extui %44 : vector<512x1xi1> to vector<512x1xi32>
    %46 = arith.sitofp %45 : vector<512x1xi32> to vector<512x1xf32>
    %c14_i32 = arith.constant 14 : i32
    %47 = vector.broadcast %c14_i32 : i32 to vector<512x1xi32>
    %48 = arith.cmpi slt, %18, %47 : vector<512x1xi32>
    %49 = arith.extui %48 : vector<512x1xi1> to vector<512x1xi32>
    %50 = arith.sitofp %49 : vector<512x1xi32> to vector<512x1xf32>
    %c2_i32_12 = arith.constant 2 : i32
    %51 = tpu.dynamic_rotate %42 by %c2_i32_12 dim 0 : vector<512x8xf32>, i32 -> vector<512x8xf32>
    %52 = vector.broadcast %46 : vector<512x1xf32> to vector<512x8xf32>
    %53 = arith.mulf %51, %52 : vector<512x8xf32>
    %c510_i32 = arith.constant 510 : i32
    %54 = tpu.dynamic_rotate %42 by %c510_i32 dim 0 : vector<512x8xf32>, i32 -> vector<512x8xf32>
    %55 = vector.broadcast %50 : vector<512x1xf32> to vector<512x8xf32>
    %56 = arith.mulf %54, %55 : vector<512x8xf32>
    %57 = tpu.concatenate %53, %42, %56 in 1 : vector<512x8xf32>, vector<512x8xf32>, vector<512x8xf32> -> vector<512x24xf32>
    %c24 = arith.constant 24 : index
    %c0_13 = arith.constant 0 : index
    %58 = vector.load %arg2[%c24, %c0_13] : memref<224x32xf32, #tpu.memory_space<vmem>>, vector<24x16xf32>
    %cst_14 = arith.constant dense<0.000000e+00> : vector<512x16xf32>
    %59 = tpu.matmul %57, %58, %cst_14 {dimension_numbers = #tpu.dot_dimension_numbers<[1], [0], [0], [1], [0, 0, 1, 1], [], []>} : vector<512x24xf32>, vector<24x16xf32>, vector<512x16xf32> -> vector<512x16xf32>
    %c48 = arith.constant 48 : index
    %c0_15 = arith.constant 0 : index
    %60 = vector.load %arg2[%c48, %c0_15] : memref<224x32xf32, #tpu.memory_space<vmem>>, vector<1x16xf32>
    %61 = vector.broadcast %60 : vector<1x16xf32> to vector<512x16xf32>
    %62 = arith.addf %59, %61 : vector<512x16xf32>
    %cst_16 = arith.constant 0.000000e+00 : f32
    %63 = vector.broadcast %cst_16 : f32 to vector<512x16xf32>
    %64 = arith.maximumf %62, %63 : vector<512x16xf32>
    %c510_i32_17 = arith.constant 510 : i32
    %65 = tpu.dynamic_rotate %64 by %c510_i32_17 dim 0 : vector<512x16xf32>, i32 -> vector<512x16xf32>
    %66 = arith.maximumf %64, %65 : vector<512x16xf32>
    %c4_i32 = arith.constant 4 : i32
    %67 = vector.broadcast %c4_i32 : i32 to vector<512x1xi32>
    %68 = arith.cmpi sge, %18, %67 : vector<512x1xi32>
    %69 = arith.extui %68 : vector<512x1xi1> to vector<512x1xi32>
    %70 = arith.sitofp %69 : vector<512x1xi32> to vector<512x1xf32>
    %c12_i32 = arith.constant 12 : i32
    %71 = vector.broadcast %c12_i32 : i32 to vector<512x1xi32>
    %72 = arith.cmpi slt, %18, %71 : vector<512x1xi32>
    %73 = arith.extui %72 : vector<512x1xi1> to vector<512x1xi32>
    %74 = arith.sitofp %73 : vector<512x1xi32> to vector<512x1xf32>
    %c4_i32_18 = arith.constant 4 : i32
    %75 = tpu.dynamic_rotate %66 by %c4_i32_18 dim 0 : vector<512x16xf32>, i32 -> vector<512x16xf32>
    %76 = vector.broadcast %70 : vector<512x1xf32> to vector<512x16xf32>
    %77 = arith.mulf %75, %76 : vector<512x16xf32>
    %c508_i32 = arith.constant 508 : i32
    %78 = tpu.dynamic_rotate %66 by %c508_i32 dim 0 : vector<512x16xf32>, i32 -> vector<512x16xf32>
    %79 = vector.broadcast %74 : vector<512x1xf32> to vector<512x16xf32>
    %80 = arith.mulf %78, %79 : vector<512x16xf32>
    %81 = tpu.concatenate %77, %66, %80 in 1 : vector<512x16xf32>, vector<512x16xf32>, vector<512x16xf32> -> vector<512x48xf32>
    %c56 = arith.constant 56 : index
    %c0_19 = arith.constant 0 : index
    %82 = vector.load %arg2[%c56, %c0_19] : memref<224x32xf32, #tpu.memory_space<vmem>>, vector<48x32xf32>
    %cst_20 = arith.constant dense<0.000000e+00> : vector<512x32xf32>
    %83 = tpu.matmul %81, %82, %cst_20 {dimension_numbers = #tpu.dot_dimension_numbers<[1], [0], [0], [1], [0, 0, 1, 1], [], []>} : vector<512x48xf32>, vector<48x32xf32>, vector<512x32xf32> -> vector<512x32xf32>
    %c104 = arith.constant 104 : index
    %c0_21 = arith.constant 0 : index
    %84 = vector.load %arg2[%c104, %c0_21] : memref<224x32xf32, #tpu.memory_space<vmem>>, vector<1x32xf32>
    %85 = vector.broadcast %84 : vector<1x32xf32> to vector<512x32xf32>
    %86 = arith.addf %83, %85 : vector<512x32xf32>
    %cst_22 = arith.constant 0.000000e+00 : f32
    %87 = vector.broadcast %cst_22 : f32 to vector<512x32xf32>
    %88 = arith.maximumf %86, %87 : vector<512x32xf32>
    %c508_i32_23 = arith.constant 508 : i32
    %89 = tpu.dynamic_rotate %88 by %c508_i32_23 dim 0 : vector<512x32xf32>, i32 -> vector<512x32xf32>
    %90 = arith.maximumf %88, %89 : vector<512x32xf32>
    %c8_i32 = arith.constant 8 : i32
    %c0_i32_24 = arith.constant 0 : i32
    %91 = arith.cmpi eq, %c8_i32, %c0_i32_24 : i32
    %c1_i32_25 = arith.constant 1 : i32
    %92 = arith.select %91, %c1_i32_25, %c8_i32 : i32
    %93 = vector.broadcast %92 : i32 to vector<512x1xi32>
    %94 = arith.remsi %18, %93 : vector<512x1xi32>
    %c0_i32_26 = arith.constant 0 : i32
    %95 = vector.broadcast %c0_i32_26 : i32 to vector<512x1xi32>
    %96 = arith.cmpi ne, %94, %95 : vector<512x1xi32>
    %c0_i32_27 = arith.constant 0 : i32
    %97 = vector.broadcast %c0_i32_27 : i32 to vector<512x1xi32>
    %98 = arith.cmpi slt, %94, %97 : vector<512x1xi32>
    %c0_i32_28 = arith.constant 0 : i32
    %99 = arith.cmpi slt, %92, %c0_i32_28 : i32
    %100 = vector.broadcast %99 : i1 to vector<512x1xi1>
    %101 = vector.broadcast %100 : vector<512x1xi1> to vector<512x1xi1>
    %102 = arith.xori %98, %101 : vector<512x1xi1>
    %103 = arith.andi %102, %96 : vector<512x1xi1>
    %104 = vector.broadcast %92 : i32 to vector<512x1xi32>
    %105 = arith.addi %94, %104 : vector<512x1xi32>
    %106 = arith.select %103, %105, %94 : vector<512x1xi1>, vector<512x1xi32>
    %c0_i32_29 = arith.constant 0 : i32
    %107 = vector.broadcast %c0_i32_29 : i32 to vector<512x1xi32>
    %108 = arith.cmpi eq, %106, %107 : vector<512x1xi32>
    %109 = arith.extui %108 : vector<512x1xi1> to vector<512x1xi32>
    %110 = arith.sitofp %109 : vector<512x1xi32> to vector<512x1xf32>
    %111 = vector.broadcast %110 : vector<512x1xf32> to vector<512x32xf32>
    %112 = arith.mulf %90, %111 : vector<512x32xf32>
    %113 = vector.shape_cast %112 : vector<512x32xf32> to vector<32x16x32xf32>
    %cst_30 = arith.constant dense<0.000000e+00> : vector<32x32xf32>
    %114 = vector.multi_reduction <add>, %113, %cst_30 [1] : vector<32x16x32xf32> to vector<32x32xf32>
    %cst_31 = arith.constant 5.000000e-01 : f32
    %115 = vector.broadcast %cst_31 : f32 to vector<32x32xf32>
    %116 = arith.mulf %114, %115 : vector<32x32xf32>
    %c112 = arith.constant 112 : index
    %c0_32 = arith.constant 0 : index
    %117 = vector.load %arg2[%c112, %c0_32] : memref<224x32xf32, #tpu.memory_space<vmem>>, vector<32x16xf32>
    %cst_33 = arith.constant dense<0.000000e+00> : vector<32x16xf32>
    %118 = tpu.matmul %116, %117, %cst_33 {dimension_numbers = #tpu.dot_dimension_numbers<[1], [0], [0], [1], [0, 0, 1, 1], [], []>} : vector<32x32xf32>, vector<32x16xf32>, vector<32x16xf32> -> vector<32x16xf32>
    %c144 = arith.constant 144 : index
    %c0_34 = arith.constant 0 : index
    %119 = vector.load %arg2[%c144, %c0_34] : memref<224x32xf32, #tpu.memory_space<vmem>>, vector<1x16xf32>
    %120 = vector.broadcast %119 : vector<1x16xf32> to vector<32x16xf32>
    %121 = arith.addf %118, %120 : vector<32x16xf32>
    %cst_35 = arith.constant 0.000000e+00 : f32
    %122 = vector.broadcast %cst_35 : f32 to vector<32x16xf32>
    %123 = arith.maximumf %121, %122 : vector<32x16xf32>
    %124 = arith.mulf %123, %123 : vector<32x16xf32>
    %cst_36 = arith.constant dense<0.000000e+00> : vector<32xf32>
    %125 = vector.multi_reduction <add>, %124, %cst_36 [1] : vector<32x16xf32> to vector<32xf32>
    %126 = vector.shape_cast %125 : vector<32xf32> to vector<32x1xf32>
    %cst_37 = arith.constant 1.000000e-24 : f32
    %127 = vector.broadcast %cst_37 : f32 to vector<32x1xf32>
    %128 = arith.maximumf %126, %127 : vector<32x1xf32>
    %129 = math.rsqrt %128 : vector<32x1xf32>
    %130 = vector.broadcast %129 : vector<32x1xf32> to vector<32x16xf32>
    %131 = arith.mulf %123, %130 : vector<32x16xf32>
    %132 = vector.extract_strided_slice %131 {offsets = [0, 0], sizes = [16, 16], strides = [1, 1]} : vector<32x16xf32> to vector<16x16xf32>
    %133 = vector.extract_strided_slice %131 {offsets = [16, 0], sizes = [16, 16], strides = [1, 1]} : vector<32x16xf32> to vector<16x16xf32>
    %c152 = arith.constant 152 : index
    %c0_38 = arith.constant 0 : index
    %134 = vector.load %arg2[%c152, %c0_38] : memref<224x32xf32, #tpu.memory_space<vmem>>, vector<16x8xf32>
    %cst_39 = arith.constant dense<0.000000e+00> : vector<16x8xf32>
    %135 = tpu.matmul %133, %134, %cst_39 {dimension_numbers = #tpu.dot_dimension_numbers<[1], [0], [0], [1], [0, 0, 1, 1], [], []>} : vector<16x16xf32>, vector<16x8xf32>, vector<16x8xf32> -> vector<16x8xf32>
    %c168 = arith.constant 168 : index
    %c0_40 = arith.constant 0 : index
    %136 = vector.load %arg2[%c168, %c0_40] : memref<224x32xf32, #tpu.memory_space<vmem>>, vector<16x8xf32>
    %cst_41 = arith.constant dense<0.000000e+00> : vector<16x8xf32>
    %137 = tpu.matmul %132, %136, %cst_41 {dimension_numbers = #tpu.dot_dimension_numbers<[1], [0], [0], [1], [0, 0, 1, 1], [], []>} : vector<16x16xf32>, vector<16x8xf32>, vector<16x8xf32> -> vector<16x8xf32>
    %138 = arith.addf %135, %137 : vector<16x8xf32>
    %c184 = arith.constant 184 : index
    %c0_42 = arith.constant 0 : index
    %139 = vector.load %arg2[%c184, %c0_42] : memref<224x32xf32, #tpu.memory_space<vmem>>, vector<1x8xf32>
    %140 = vector.broadcast %139 : vector<1x8xf32> to vector<16x8xf32>
    %141 = arith.addf %138, %140 : vector<16x8xf32>
    %cst_43 = arith.constant 0.000000e+00 : f32
    %142 = vector.broadcast %cst_43 : f32 to vector<16x8xf32>
    %143 = arith.maximumf %141, %142 : vector<16x8xf32>
    %c192 = arith.constant 192 : index
    %c0_44 = arith.constant 0 : index
    %144 = vector.load %arg2[%c192, %c0_44] : memref<224x32xf32, #tpu.memory_space<vmem>>, vector<8x4xf32>
    %cst_45 = arith.constant dense<0.000000e+00> : vector<16x4xf32>
    %145 = tpu.matmul %143, %144, %cst_45 {dimension_numbers = #tpu.dot_dimension_numbers<[1], [0], [0], [1], [0, 0, 1, 1], [], []>} : vector<16x8xf32>, vector<8x4xf32>, vector<16x4xf32> -> vector<16x4xf32>
    %c200 = arith.constant 200 : index
    %c0_46 = arith.constant 0 : index
    %146 = vector.load %arg2[%c200, %c0_46] : memref<224x32xf32, #tpu.memory_space<vmem>>, vector<1x4xf32>
    %147 = vector.broadcast %146 : vector<1x4xf32> to vector<16x4xf32>
    %148 = arith.addf %145, %147 : vector<16x4xf32>
    %cst_47 = arith.constant 0.000000e+00 : f32
    %149 = vector.broadcast %cst_47 : f32 to vector<16x4xf32>
    %150 = arith.maximumf %148, %149 : vector<16x4xf32>
    %c208 = arith.constant 208 : index
    %c0_48 = arith.constant 0 : index
    %151 = vector.load %arg2[%c208, %c0_48] : memref<224x32xf32, #tpu.memory_space<vmem>>, vector<4x1xf32>
    %cst_49 = arith.constant dense<0.000000e+00> : vector<16x1xf32>
    %152 = tpu.matmul %150, %151, %cst_49 {dimension_numbers = #tpu.dot_dimension_numbers<[1], [0], [0], [1], [0, 0, 1, 1], [], []>} : vector<16x4xf32>, vector<4x1xf32>, vector<16x1xf32> -> vector<16x1xf32>
    %c216 = arith.constant 216 : index
    %c0_50 = arith.constant 0 : index
    %153 = vector.load %arg2[%c216, %c0_50] : memref<224x32xf32, #tpu.memory_space<vmem>>, vector<1x1xf32>
    %154 = vector.broadcast %153 : vector<1x1xf32> to vector<16x1xf32>
    %155 = arith.addf %152, %154 : vector<16x1xf32>
    %c0_51 = arith.constant 0 : index
    %c0_52 = arith.constant 0 : index
    %c0_53 = arith.constant 0 : index
    %156 = vector.load %arg3[%c0_51, %c0_52, %c0_53] : memref<1x16x1xf32, #tpu.memory_space<vmem>>, vector<1x16x1xf32>
    %157 = vector.shape_cast %156 : vector<1x16x1xf32> to vector<16x1xf32>
    %158 = vector.shape_cast %155 : vector<16x1xf32> to vector<1x16x1xf32>
    tpu.vector_store %arg3[%c0_51, %c0_52, %c0_53], %158 {strides = array<i32>} : memref<1x16x1xf32, #tpu.memory_space<vmem>>, vector<1x16x1xf32>,
    return
  }
  func.func @transform_0(%arg0: i32) -> (i32, i32, i32) {
    %c0_i32 = arith.constant 0 : i32
    %c0_i32_0 = arith.constant 0 : i32
    %c0_i32_1 = arith.constant 0 : i32
    return %arg0, %c0_i32, %c0_i32_0 : i32, i32, i32
  }
  func.func @transform_1(%arg0: i32) -> (i32, i32) {
    %c0_i32 = arith.constant 0 : i32
    %c0_i32_0 = arith.constant 0 : i32
    %c0_i32_1 = arith.constant 0 : i32
    return %c0_i32, %c0_i32_0 : i32, i32
  }
  func.func @transform_2(%arg0: i32) -> (i32, i32, i32) {
    %c0_i32 = arith.constant 0 : i32
    %c0_i32_0 = arith.constant 0 : i32
    %c0_i32_1 = arith.constant 0 : i32
    return %arg0, %c0_i32, %c0_i32_0 : i32, i32, i32
  }
}

</mosaic_0001>

<bundles_post_ra>
// kernel: tpu_custom_call.1
= control target key start
LH: loop header
LB: loop body
LE: loop exit
PB: predicated region body
PF: predicated region fallthrough
CT: control target
= control target key end

     0   :  { %v75_v0 = vlaneseq  ;;  %s10514_s15 = smov 4   ;;  %s10515_s20 = smov 8   ;;  %v16317_v19 = vmov 0.0   ;;  %vm2520_vm3 = vcmask 1043456   ;;  %s16295_s0 = inlined_call_operand.vmem [shape: f32[1,512,4], index: 0, kind: input, shape index: {}]   ;;  %s16296_s1 = inlined_call_operand.vmem [shape: f32[224,32], index: 1, kind: input, shape index: {}]   ;;  %s16297_s2 = inlined_call_operand.vmem [shape: f32[1,16,1], index: 2, kind: output, shape index: {}]  }
   0x1   :  { %v10537_v1 = vld [vmem:[%s16295_s0 + $0x18] sm:$0xff]  ;;  %v10542_v2 = vld [vmem:[%s16295_s0] sm:$0xff]  ;;  %v10547_v3 = vld [vmem:[%s16295_s0 + $0x8] sm:$0xff]  ;;  %s10517_s11 = smov 16   ;;  %s10518_s25 = smov 32  }
   0x2   :  { %1748 = vrot.lane.b32.xlu1 %v10537_v1, %s10514_s15  ;;  %1742 = vrot.lane.b32.xlu0 %v10542_v2, %s10514_s15  ;;  %v16299_v4 = vrot.slane %v10542_v2, 1  ;;  %v10557_v5 = vld [vmem:[%s16295_s0 + $0x10] sm:$0xff]  ;;  %v1486_v6 = vrot.slane %v10547_v3, 1  ;;  %v10560_v7 = vshrl.u32 %v75_v0, 7  ;;  %v10565_v8 = vld [vmem:[%s16295_s0 + $0x20] sm:$0xff]  ;;  %v1488_v12 = vrot.slane %v10537_v1, 1 }
   0x3   :  { %v1487_v9 = vrot.slane %v10557_v5, 1  ;;  %v1489_v14 = vrot.slane %v10565_v8, 1  ;;  %v10600_v25 = vld [vmem:[%s16295_s0 + $0x28] sm:$0xff]  ;;  %v10605_v26 = vld [vmem:[%s16295_s0 + $0x30] sm:$0xff]  ;;  %v2320_v32 = vld [vmem:[%s16296_s1] sm:$0xff]  ;;  %v1295_v56 = vrot.slane %v10537_v1, 7 }
   0x4   :  { %vm1549_vm0 = vcmp.lt.s32.totalorder %v10560_v7, 7  ;;  %v77_v10 = vadd.s32 8, %v10560_v7  ;;  %v79_v11 = vadd.s32 24, %v10560_v7  ;;  %v81_v17 = vadd.s32 40, %v10560_v7  ;;  %v2321_v31 = vld [vmem:[%s16296_s1 + $0x8] sm:$0xf] }
   0x5   :  { %v1612_v13 = vsel %vm1549_vm0, %v16299_v4, %v1486_v6  ;;  %v1611_v18 = vsel %vm1549_vm0, %v1486_v6, %v1487_v9  ;;  %v1609_v22 = vsel %vm1549_vm0, %v1488_v12, %v1489_v14  ;;  %v1610_v24 = vsel %vm1549_vm0, %v1487_v9, %v1488_v12  ;;  %10145 = vmatprep.subr.msk.mxu0 %vm2520_vm3, %v2321_v31  ;;  %v10636_v37 = vld [vmem:[%s16295_s0 + $0x38] sm:$0xff]  ;;  %v10641_v38 = vld [vmem:[%s16295_s0 + $0x40] sm:$0xff]  ;;  %v10678_v50 = vld [vmem:[%s16295_s0 + $0x130] sm:$0xff] }
   0x6   :  { %1744 = vrot.lane.b32.xlu0 %v10547_v3, %s10514_s15  ;;  %1998 = vrot.lane.b32.xlu1 %v1612_v13, %s10515_s20  ;;  %v10580_v15 = vand.u32 15, %v77_v10  ;;  %v10582_v16 = vand.u32 15, %v79_v11  ;;  %v10607_v27 = vand.u32 15, %v81_v17  ;;  %v1490_v29 = vrot.slane %v10600_v25, 1  ;;  %v10663_v47 = vld [vmem:[%s16295_s0 + $0x138] sm:$0xff]  ;;  %v10668_v48 = vld [vmem:[%s16295_s0 + $0x140] sm:$0xff] }
   0x7   :  { %v1491_v30 = vrot.slane %v10605_v26, 1  ;;  %10493 = vmatprep.subr.msk.mxu1 %vm2520_vm3, %v2321_v31  ;;  %v83_v33 = vadd.s32 56, %v10560_v7  ;;  %10146 = vmatpush3.msk.msra.mxu0 %vm2520_vm3, %v2321_v31  ;;  %v1492_v41 = vrot.slane %v10636_v37, 1  ;;  %v1493_v42 = vrot.slane %v10641_v38, 1  ;;  %v10701_v62 = vld [vmem:[%s16295_s0 + $0x48] sm:$0xff]  ;;  %v10706_v63 = vld [vmem:[%s16295_s0 + $0x50] sm:$0xff] }
   0x8   :  { %16557 = vst [vmem:[#allocation2_spill] sm:$0xff] %v10580_v15  ;;  %16558 = vst [vmem:[#allocation3_spill] sm:$0xff] %v10582_v16  ;;  %vm1101_vm1 = vcmp.lt.s32.totalorder %v10580_v15, 15  ;;  %vm1103_vm2 = vcmp.lt.s32.totalorder %v10582_v16, 15  ;;  %vm1105_vm4 = vcmp.lt.s32.totalorder %v10607_v27, 15  ;;  %10495 = vmatpush3.msk.msra.mxu1 %vm2520_vm3, %v2321_v31  ;;  %10147 = vmatprep.subr.mxu0 %v2320_v32  ;;  %v1608_v36 = vsel %vm1549_vm0, %v1489_v14, %v1490_v29 }
   0x9   :  { %v9483_v20 = vsel %vm1101_vm1, 1.0, %v16317_v19  ;;  %v9484_v21 = vsel %vm1103_vm2, 1.0, %v16317_v19  ;;  %16559 = vst [vmem:[#allocation4_spill] sm:$0xff] %v10607_v27  ;;  %v9485_v34 = vsel %vm1105_vm4, 1.0, %v16317_v19  ;;  %v1607_v35 = vsel %vm1549_vm0, %v1490_v29, %v1491_v30  ;;  %10148 = vmatpush3.msra.mxu0 %v2320_v32  ;;  %10494 = vmatprep.subr.mxu1 %v2320_v32 }
   0xa   :  { %1746 = vrot.lane.b32.xlu0 %v10557_v5, %s10514_s15  ;;  %v1615_v23 = vmul.f32 %v9483_v20, %v1611_v18  ;;  %v1617_v28 = vmul.f32 %v9484_v21, %v1609_v22  ;;  %v10643_v39 = vand.u32 15, %v83_v33  ;;  %10496 = vmatpush3.msra.mxu1 %v2320_v32  ;;  %v1619_v40 = vmul.f32 %v9485_v34, %v1607_v35  ;;  %v10744_v18 = vld [vmem:[%s16295_s0 + $0x148] sm:$0xff]  ;;  %v10749_v20 = vld [vmem:[%s16295_s0 + $0x150] sm:$0xff] }
   0xb   :  { %v115_v43 = vadd.s32 312, %v10560_v7  ;;  %v1606_v44 = vsel %vm1549_vm0, %v1491_v30, %v1492_v41  ;;  %v1605_v46 = vsel %vm1549_vm0, %v1492_v41, %v1493_v42  ;;  %v16298_v52 = vrot.slane %v10678_v50, 1 }
   0xc   :  { %2000 = vrot.lane.b32.xlu1 %v1615_v23, %s10515_s20  ;;  %16560 = vst [vmem:[#allocation5_spill] sm:$0xff] %v10643_v39  ;;  %vm1107_vm5 = vcmp.lt.s32.totalorder %v10643_v39, 15  ;;  %v1524_v53 = vrot.slane %v10663_v47, 1  ;;  %v1525_v54 = vrot.slane %v10668_v48, 1  ;;  %v85_v55 = vadd.s32 72, %v10560_v7 }
   0xd   :  { %v9486_v45 = vsel %vm1107_vm5, 1.0, %v16317_v19  ;;  %v10670_v49 = vand.u32 15, %v115_v43  ;;  %v1294_v57 = vrot.slane %v10557_v5, 7  ;;  %v1293_v61 = vrot.slane %v10547_v3, 7 }
   0xe   :  { %2002 = vrot.lane.b32.xlu0 %v1610_v24, %s10515_s20  ;;  %v1621_v51 = vmul.f32 %v9486_v45, %v1605_v46  ;;  %v1574_v58 = vsel %vm1549_vm0, %v16298_v52, %v1524_v53  ;;  %v1573_v60 = vsel %vm1549_vm0, %v1524_v53, %v1525_v54  ;;  %v10708_v0 = vand.u32 15, %v85_v55 }
   0xf   :  { %16561 = vst [vmem:[#allocation6_spill] sm:$0xff] %v10670_v49  ;;  %vm1139_vm6 = vcmp.lt.s32.totalorder %v10670_v49, 15  ;;  %vm1356_vm7 = vcmp.lt.s32.totalorder %v10560_v7, 1  ;;  %v16303_v3 = vrot.slane %v10542_v2, 7  ;;  %v1494_v6 = vrot.slane %v10701_v62, 1  ;;  %v11101_v49 = vld [vmem:[%s16295_s0 + $0x98] sm:$0xff] }
  0x10   :  { %2004 = vrot.lane.b32.xlu1 %v1617_v28, %s10515_s20  ;;  %v9502_v59 = vsel %vm1139_vm6, 1.0, %v16317_v19  ;;  %16562 = vst [vmem:[#allocation7_spill] sm:$0xff] %v10708_v0  ;;  %v10715_v1 = vsel %vm1356_vm7, %v1294_v57, %v1295_v56  ;;  %v1495_v9 = vrot.slane %v10706_v63, 1  ;;  %vm1109_vm8 = vcmp.lt.s32.totalorder %v10708_v0, 15 }
  0x11   :  { %v1653_v5 = vmul.f32 %v9502_v59, %v1573_v60  ;;  %v117_v10 = vadd.s32 328, %v10560_v7  ;;  %v10727_v11 = vsel %vm1356_vm7, %v16303_v3, %v1293_v61  ;;  %v10734_v12 = vsel %vm1356_vm7, %v1293_v61, %v1294_v57  ;;  %v10833_v59 = vld [vmem:[%s16295_s0 + $0x160] sm:$0xff] }
  0x12   :  { %1750 = vrot.lane.b32.xlu0 %v10565_v8, %s10514_s15  ;;  %v1604_v13 = vsel %vm1549_vm0, %v1493_v42, %v1494_v6  ;;  %v9487_v14 = vsel %vm1109_vm8, 1.0, %v16317_v19  ;;  %v1603_v17 = vsel %vm1549_vm0, %v1494_v6, %v1495_v9  ;;  %v1296_v22 = vrot.slane %v10565_v8, 7 }
  0x13   :  { %v10751_v21 = vand.u32 15, %v117_v10  ;;  %v1297_v23 = vrot.slane %v10600_v25, 7  ;;  %v1623_v24 = vmul.f32 %v9487_v14, %v1603_v17  ;;  %v1526_v29 = vrot.slane %v10744_v18, 1 }
  0x14   :  { %1752 = vrot.lane.b32.xlu1 %v10600_v25, %s10514_s15  ;;  %v10760_v28 = vsel %vm1356_vm7, %v1295_v56, %v1296_v22  ;;  %v1527_v30 = vrot.slane %v10749_v20, 1  ;;  %v87_v8 = vadd.s32 88, %v10560_v7  ;;  %v1299_v25 = vrot.slane %v10636_v37, 7 }
  0x15   :  { %16563 = vst [vmem:[#allocation8_spill] sm:$0xff] %v10751_v21  ;;  %vm1141_vm9 = vcmp.lt.s32.totalorder %v10751_v21, 15  ;;  %v10771_v31 = vsel %vm1356_vm7, %v1296_v22, %v1297_v23  ;;  %v1572_v32 = vsel %vm1549_vm0, %v1525_v54, %v1526_v29  ;;  %v1298_v35 = vrot.slane %v10605_v26, 7 }
  0x16   :  { %2006 = vrot.lane.b32.xlu0 %v1608_v36, %s10515_s20  ;;  %v9503_v33 = vsel %vm1141_vm9, 1.0, %v16317_v19  ;;  %v1571_v34 = vsel %vm1549_vm0, %v1526_v29, %v1527_v30  ;;  %v10783_v36 = vld [vmem:[%s16295_s0 + $0x58] sm:$0xff]  ;;  %v1331_v41 = vrot.slane %v10663_v47, 7  ;;  %v1300_v57 = vrot.slane %v10641_v38, 7  ;;  %v10877_v29 = vld [vmem:[%s16295_s0 + $0x70] sm:$0xff] }
  0x17   :  { %v10801_v42 = vsel %vm1356_vm7, %v1298_v35, %v1299_v25  ;;  %v1655_v43 = vmul.f32 %v9503_v33, %v1571_v34  ;;  %v1496_v45 = vrot.slane %v10783_v36, 1  ;;  %v1332_v10 = vrot.slane %v10668_v48, 7 }
  0x18   :  { %2008 = vrot.lane.b32.xlu1 %v1619_v40, %s10515_s20  ;;  %v10790_v40 = vand.u32 15, %v87_v8  ;;  %v10841_v61 = vsel %vm1356_vm7, %v1299_v25, %v1300_v57  ;;  %v1499_v33 = vrot.slane %v10877_v29, 1  ;;  %vm16556_vm5 = vcmask 31744  }
  0x19   :  { %v1602_v54 = vsel %vm1549_vm0, %v1495_v9, %v1496_v45  ;;  %v1529_v9 = vrot.slane %v10833_v59, 1  ;;  %v10858_v14 = vsel %vm1356_vm7, %v1331_v41, %v1332_v10  ;;  %vm2255_vm8 = vcmask 64512  }
  0x1a   :  { %1754 = vrot.lane.b32.xlu0 %v10605_v26, %s10514_s15  ;;  %16564 = vst [vmem:[#allocation9_spill] sm:$0xff] %v10790_v40  ;;  %v10797_v26 = vsel %vm1356_vm7, %v1297_v23, %v1298_v35  ;;  %vm1111_vm10 = vcmp.lt.s32.totalorder %v10790_v40, 15  ;;  %vm2327_vm9 = vcmask 97280   ;;  %v94_v40 = vadd.s32 144, %v10560_v7 }
  0x1b   :  { %v9488_v55 = vsel %vm1111_vm10, 1.0, %v16317_v19 }
  0x1c   :  { %1756 = vrot.lane.b32.xlu1 %v10636_v37, %s10514_s15  ;;  %v10788_v37 = vld [vmem:[%s16295_s0 + $0x60] sm:$0xff] }
  0x1d   :  { %v1497_v46 = vrot.slane %v10788_v37, 1 }
  0x1e   :  { %2010 = vrot.lane.b32.xlu0 %v1606_v44, %s10515_s20  ;;  %v16302_v44 = vrot.slane %v10678_v50, 7 }
  0x1f   :  { %v1601_v56 = vsel %vm1549_vm0, %v1496_v45, %v1497_v46 }
  0x20   :  { %1818 = vrot.lane.b32.xlu1 %v10678_v50, %s10514_s15  ;;  %v10816_v53 = vsel %vm1356_vm7, %v16302_v44, %v1331_v41  ;;  %v1334_v41 = vrot.slane %v10749_v20, 7 }
  0x22   :  { %2012 = vrot.lane.b32.xlu0 %v1621_v51, %s10515_s20  ;;  %v1301_v51 = vrot.slane %v10701_v62, 7 }
  0x24   :  { %1820 = vrot.lane.b32.xlu1 %v10663_v47, %s10514_s15  ;;  %v119_v47 = vadd.s32 344, %v10560_v7 }
  0x26   :  { %2074 = vrot.lane.b32.xlu0 %v1574_v58, %s10515_s20  ;;  %v10828_v58 = vld [vmem:[%s16295_s0 + $0x158] sm:$0xff]  ;;  %v10835_v60 = vand.u32 15, %v119_v47 }
  0x27   :  { %v1528_v6 = vrot.slane %v10828_v58, 1 }
  0x28   :  { %1758 = vrot.lane.b32.xlu1 %v10641_v38, %s10514_s15  ;;  %16565 = vst [vmem:[#allocation10_spill] sm:$0xff] %v10835_v60  ;;  %v10845_v38 = vsel %vm1356_vm7, %v1300_v57, %v1301_v51  ;;  %vm1143_vm11 = vcmp.lt.s32.totalorder %v10835_v60, 15  ;;  %v1304_v57 = vrot.slane %v10788_v37, 7 }
  0x29   :  { %v9504_v22 = vsel %vm1143_vm11, 1.0, %v16317_v19  ;;  %v1569_v23 = vsel %vm1549_vm0, %v1528_v6, %v1529_v9 }
  0x2a   :  { %2076 = vrot.lane.b32.xlu0 %v1653_v5, %s10515_s20  ;;  %v1625_v5 = vmul.f32 %v9488_v55, %v1601_v56  ;;  %v1657_v25 = vmul.f32 %v9504_v22, %v1569_v23  ;;  %v10913_v55 = vld [vmem:[%s16295_s0 + $0x168] sm:$0xff] }
  0x2c   :  { %1760 = vrot.lane.b32.xlu1 %v10701_v62, %s10514_s15  ;;  %v1333_v62 = vrot.slane %v10744_v18, 7 }
  0x2e   :  { %2014 = vrot.lane.b32.xlu0 %v1604_v13, %s10515_s20  ;;  %v89_v13 = vadd.s32 104, %v10560_v7  ;;  %v10863_v17 = vsel %vm1356_vm7, %v1332_v10, %v1333_v62  ;;  %v91_v10 = vadd.s32 120, %v10560_v7 }
  0x30   :  { %1822 = vrot.lane.b32.xlu1 %v10668_v48, %s10514_s15  ;;  %v1570_v48 = vsel %vm1549_vm0, %v1527_v30, %v1528_v6  ;;  %v10879_v8 = vand.u32 15, %v89_v13  ;;  %v1302_v30 = vrot.slane %v10706_v63, 7 }
  0x32   :  { %2016 = vrot.lane.b32.xlu0 %v1623_v24, %s10515_s20  ;;  %v24_v24 = vld [vmem:[%s16295_s0 + $0x68] sm:$0xff]  ;;  %16566 = vst [vmem:[#allocation11_spill] sm:$0xff] %v10879_v8  ;;  %v10888_v34 = vsel %vm1356_vm7, %v1301_v51, %v1302_v30  ;;  %vm1113_vm12 = vcmp.lt.s32.totalorder %v10879_v8, 15  ;;  %v10908_v51 = vsel %vm1356_vm7, %v1333_v62, %v1334_v41  ;;  %v16300_v62 = vrot.slane %v10913_v55, 7 }
  0x33   :  { %v9489_v45 = vsel %vm1113_vm12, 1.0, %v16317_v19 }
  0x34   :  { %1824 = vrot.lane.b32.xlu1 %v10744_v18, %s10514_s15  ;;  %v1303_v18 = vrot.slane %v10783_v36, 7 }
  0x36   :  { %2078 = vrot.lane.b32.xlu0 %v1572_v32, %s10515_s20  ;;  %v1498_v32 = vrot.slane %v24_v24, 1  ;;  %v10892_v35 = vsel %vm1356_vm7, %v1302_v30, %v1303_v18  ;;  %v10936_v13 = vsel %vm1356_vm7, %v1303_v18, %v1304_v57  ;;  %v10959_v30 = vld [vmem:[%s16295_s0 + $0x80] sm:$0xff] }
  0x38   :  { %1762 = vrot.lane.b32.xlu1 %v10706_v63, %s10514_s15  ;;  %v121_v63 = vadd.s32 360, %v10560_v7  ;;  %v1599_v47 = vsel %vm1549_vm0, %v1498_v32, %v1499_v33 }
  0x3a   :  { %2080 = vrot.lane.b32.xlu0 %v1655_v43, %s10515_s20  ;;  %v1600_v43 = vsel %vm1549_vm0, %v1497_v46, %v1498_v32  ;;  %v10920_v46 = vand.u32 15, %v121_v63  ;;  %v16301_v63 = vrot.slane %v10877_v29, 7 }
  0x3c   :  { %1764 = vrot.lane.b32.xlu1 %v10783_v36, %s10514_s15  ;;  %v1335_v36 = vrot.slane %v10828_v58, 7  ;;  %16567 = vst [vmem:[#allocation12_spill] sm:$0xff] %v10920_v46  ;;  %vm1145_vm13 = vcmp.lt.s32.totalorder %v10920_v46, 15 }
  0x3d   :  { %v9505_v23 = vsel %vm1145_vm13, 1.0, %v16317_v19 }
  0x3e   :  { %2018 = vrot.lane.b32.xlu0 %v1602_v54, %s10515_s20  ;;  %v1305_v54 = vrot.slane %v24_v24, 7  ;;  %v10924_v56 = vsel %vm1356_vm7, %v1334_v41, %v1335_v36 }
  0x40   :  { %1826 = vrot.lane.b32.xlu1 %v10749_v20, %s10514_s15  ;;  %v10918_v20 = vld [vmem:[%s16295_s0 + $0x170] sm:$0xff] }
  0x41   :  { %v1531_v6 = vrot.slane %v10918_v20, 1 }
  0x42   :  { %2020 = vrot.lane.b32.xlu0 %v1625_v5, %s10515_s20  ;;  %v1530_v5 = vrot.slane %v10913_v55, 1 }
  0x44   :  { %1828 = vrot.lane.b32.xlu1 %v10828_v58, %s10514_s15  ;;  %v1627_v58 = vmul.f32 %v9489_v45, %v1599_v47  ;;  %v1568_v22 = vsel %vm1549_vm0, %v1529_v9, %v1530_v5  ;;  %v1567_v18 = vsel %vm1549_vm0, %v1530_v5, %v1531_v6  ;;  %v10985_v45 = vsel %vm1356_vm7, %v1305_v54, %v16301_v63  ;;  %v10998_v5 = vld [vmem:[%s16295_s0 + $0x178] sm:$0xff] }
  0x45   :  { %v1659_v32 = vmul.f32 %v9505_v23, %v1567_v18  ;;  %v93_v23 = vadd.s32 136, %v10560_v7  ;;  %v78_v63 = vadd.s32 16, %v10560_v7 }
  0x46   :  { %2082 = vrot.lane.b32.xlu0 %v1570_v48, %s10515_s20  ;;  %v1336_v48 = vrot.slane %v10833_v59, 7 }
  0x48   :  { %1766 = vrot.lane.b32.xlu1 %v10788_v37, %s10514_s15  ;;  %v10940_v37 = vsel %vm1356_vm7, %v1304_v57, %v1305_v54  ;;  %v10971_v9 = vsel %vm1356_vm7, %v1336_v48, %v16300_v62  ;;  %v11003_v54 = vld [vmem:[%s16295_s0 + $0x180] sm:$0xff] }
  0x4a   :  { %2084 = vrot.lane.b32.xlu0 %v1657_v25, %s10515_s20  ;;  %v10961_v25 = vand.u32 15, %v91_v10 }
  0x4c   :  { %1768 = vrot.lane.b32.xlu1 %v24_v24, %s10514_s15  ;;  %v10954_v24 = vld [vmem:[%s16295_s0 + $0x78] sm:$0xff]  ;;  %16568 = vst [vmem:[#allocation13_spill] sm:$0xff] %v10961_v25  ;;  %vm1115_vm14 = vcmp.lt.s32.totalorder %v10961_v25, 15 }
  0x4d   :  { %v1500_v41 = vrot.slane %v10954_v24, 1  ;;  %v9490_v57 = vsel %vm1115_vm14, 1.0, %v16317_v19 }
  0x4e   :  { %2022 = vrot.lane.b32.xlu0 %v1600_v43, %s10515_s20  ;;  %v1501_v43 = vrot.slane %v10959_v30, 1 }
  0x4f   :  { %v1598_v47 = vsel %vm1549_vm0, %v1499_v33, %v1500_v41 }
  0x50   :  { %1830 = vrot.lane.b32.xlu1 %v10833_v59, %s10514_s15  ;;  %v10965_v59 = vsel %vm1356_vm7, %v1335_v36, %v1336_v48  ;;  %v123_v36 = vadd.s32 376, %v10560_v7  ;;  %v1532_v48 = vrot.slane %v10998_v5, 1 }
  0x52   :  { %2024 = vrot.lane.b32.xlu0 %v1627_v58, %s10515_s20  ;;  %v1597_v58 = vsel %vm1549_vm0, %v1500_v41, %v1501_v43  ;;  %v11005_v10 = vand.u32 15, %v123_v36  ;;  %v1566_v18 = vsel %vm1549_vm0, %v1531_v6, %v1532_v48  ;;  %v11025_v36 = vld [vmem:[%s16295_s0 + $0x88] sm:$0xff] }
  0x53   :  { %v1629_v33 = vmul.f32 %v9490_v57, %v1597_v58  ;;  %v11032_v57 = vand.u32 15, %v93_v23  ;;  %v1502_v58 = vrot.slane %v11025_v36, 1 }
  0x54   :  { %1832 = vrot.lane.b32.xlu1 %v10913_v55, %s10514_s15  ;;  %16569 = vst [vmem:[#allocation14_spill] sm:$0xff] %v11005_v10  ;;  %vm1147_vm15 = vcmp.lt.s32.totalorder %v11005_v10, 15  ;;  %v11089_v10 = vand.u32 15, %v78_v63  ;;  %v11106_v63 = vld [vmem:[%s16295_s0 + $0xa0] sm:$0xff] }
  0x55   :  { %16570 = vst [vmem:[#allocation15_spill] sm:$0xff] %v11032_v57  ;;  %vm1117_vm1 = vcmp.lt.s32.totalorder %v11032_v57, 15  ;;  %v1596_v23 = vsel %vm1549_vm0, %v1501_v43, %v1502_v58  ;;  %v11065_v43 = vld [vmem:[%s16295_s0 + $0x190] sm:$0xff] }
  0x56   :  { %2086 = vrot.lane.b32.xlu0 %v1568_v22, %s10515_s20  ;;  %v1533_v22 = vrot.slane %v11003_v54, 1  ;;  %v9491_v52 = vsel %vm1117_vm1, 1.0, %v16317_v19  ;;  %16574 = vst [vmem:[#allocation18_spill] sm:$0xff] %v11089_v10  ;;  %v16575_v46 = vrot.slane %v11065_v43, 1  ;;  %vm910_vm6 = vcmp.ge.s32.totalorder %v11089_v10, 1 }
  0x58   :  { %1770 = vrot.lane.b32.xlu1 %v10877_v29, %s10514_s15  ;;  %v1565_v41 = vsel %vm1549_vm0, %v1532_v48, %v1533_v22  ;;  %v125_v48 = vadd.s32 392, %v10560_v7 }
  0x5a   :  { %2088 = vrot.lane.b32.xlu0 %v1659_v32, %s10515_s20  ;;  %v9506_v32 = vsel %vm1147_vm15, 1.0, %v16317_v19  ;;  %v11067_v4 = vand.u32 15, %v125_v48  ;;  %v95_v48 = vadd.s32 152, %v10560_v7 }
  0x5b   :  { %v1661_v6 = vmul.f32 %v9506_v32, %v1565_v41  ;;  %v11052_v32 = vld [vmem:[%s16295_s0 + $0x1f8] sm:$0xff]  ;;  %v11055_v41 = vand.u32 15, %v10560_v7 }
  0x5c   :  { %1772 = vrot.lane.b32.xlu1 %v10954_v24, %s10514_s15  ;;  %16572 = vst [vmem:[#allocation17_spill] sm:$0xff] %v11067_v4  ;;  %v16316_v62 = vrot.slane %v11052_v32, 7  ;;  %vm1149_vm4 = vcmp.lt.s32.totalorder %v11067_v4, 15 }
  0x5d   :  { %16571 = vst [vmem:[#allocation16_spill] sm:$0xff] %v11055_v41  ;;  %vm908_vm2 = vcmp.ge.s32.totalorder %v11055_v41, 1  ;;  %v9507_v4 = vsel %vm1149_vm4, 1.0, %v16317_v19 }
  0x5e   :  { %2026 = vrot.lane.b32.xlu0 %v1598_v47, %s10515_s20  ;;  %v11030_v47 = vld [vmem:[%s16295_s0 + $0x90] sm:$0xff] }
  0x60   :  { %1834 = vrot.lane.b32.xlu1 %v10918_v20, %s10514_s15 }
  0x62   :  { %2028 = vrot.lane.b32.xlu0 %v1629_v33, %s10515_s20  ;;  %v1503_v33 = vrot.slane %v11030_v47, 1 }
  0x64   :  { %1836 = vrot.lane.b32.xlu1 %v10998_v5, %s10514_s15 }
  0x66   :  { %2090 = vrot.lane.b32.xlu0 %v1566_v18, %s10515_s20  ;;  %v1595_v18 = vsel %vm1549_vm0, %v1502_v58, %v1503_v33 }
  0x67   :  { %v1631_v58 = vmul.f32 %v9491_v52, %v1595_v18  ;;  %v9451_v52 = vsel %vm908_vm2, 1.0, %v16317_v19 }
  0x68   :  { %1774 = vrot.lane.b32.xlu1 %v10959_v30, %s10514_s15 }
  0x6a   :  { %2092 = vrot.lane.b32.xlu0 %v1661_v6, %s10515_s20  ;;  %v11060_v6 = vld [vmem:[%s16295_s0 + $0x188] sm:$0xff] }
  0x6b   :  { %v1534_v44 = vrot.slane %v11060_v6, 1 }
  0x6c   :  { %1776 = vrot.lane.b32.xlu1 %v11025_v36, %s10514_s15 }
  0x6d   :  { %v1564_v3 = vsel %vm1549_vm0, %v1533_v22, %v1534_v44  ;;  %v11108_v22 = vand.u32 15, %v95_v48  ;;  %v127_v48 = vadd.s32 408, %v10560_v7 }
  0x6e   :  { %2030 = vrot.lane.b32.xlu0 %v1596_v23, %s10515_s20  ;;  %v16573_v23 = vrot.slane %v10542_v2, 7 }
  0x6f   :  { %16576 = vst [vmem:[#allocation19_spill] sm:$0xff] %v11108_v22  ;;  %vm1119_vm10 = vcmp.lt.s32.totalorder %v11108_v22, 15 }
  0x70   :  { %1838 = vrot.lane.b32.xlu1 %v11003_v54, %s10514_s15  ;;  %v1420_v18 = vsel %vm1356_vm7, %v16316_v62, %v16573_v23  ;;  %v1504_v62 = vrot.slane %v11101_v49, 1 }
  0x71   :  { %v1421_v23 = vmul.f32 %v9451_v52, %v1420_v18 }
  0x72   :  { %2032 = vrot.lane.b32.xlu0 %v1631_v58, %s10515_s20  ;;  %v1563_v58 = vsel %vm1549_vm0, %v1534_v44, %v16575_v46  ;;  %v80_v46 = vadd.s32 32, %v10560_v7  ;;  %v1594_v19 = vsel %vm1549_vm0, %v1503_v33, %v1504_v62  ;;  %v11146_v33 = vand.u32 15, %v127_v48 }
  0x73   :  { %v1663_v44 = vmul.f32 %v9507_v4, %v1563_v58 }
  0x74   :  { %v1749_v60 = vpop.permute.xlu1 %1748  ;;  %v1743_v21 = vpop.permute.xlu0 %1742  ;;  %1840 = vrot.lane.b32.xlu1 %v11060_v6, %s10514_s15  ;;  %v11125_v10 = vand.u32 15, %v80_v46  ;;  %v11144_v46 = vld [vmem:[%s16295_s0 + $0x1a0] sm:$0xff]  ;;  %16580 = vst [vmem:[#allocation21_spill] sm:$0xff] %v11146_v33  ;;  %vm1151_vm12 = vcmp.lt.s32.totalorder %v11146_v33, 15 }
  0x75   :  { %v2191_v52 = vsel %vm16556_vm5, %v1421_v23, %v1743_v21  ;;  %v16579_v21 = vrot.slane %v11106_v63, 1 }
  0x76   :  { %2094 = vrot.lane.b32.xlu0 %v1564_v3, %s10515_s20  ;;  %v16577_v3 = vmov 0.0   ;;  %16578 = vst [vmem:[#allocation20_spill] sm:$0xff] %v11125_v10  ;;  %vm912_vm11 = vcmp.ge.s32.totalorder %v11125_v10, 1 }
  0x77   :  { %v9452_v18 = vsel %vm910_vm6, 1.0, %v16577_v3  ;;  %v9492_v22 = vsel %vm1119_vm10, 1.0, %v16577_v3  ;;  %v1593_v23 = vsel %vm1549_vm0, %v1504_v62, %v16579_v21 }
  0x78   :  { %v1745_v41 = vpop.permute.xlu0 %1744  ;;  %1778 = vrot.lane.b32.xlu1 %v11030_v47, %s10514_s15  ;;  %v1999_v4 = vpop.permute.xlu1 %1998  ;;  %v1423_v57 = vmul.f32 %v9452_v18, %v10734_v12  ;;  %v1633_v62 = vmul.f32 %v9492_v22, %v1593_v23  ;;  %v82_v12 = vadd.s32 48, %v10560_v7  ;;  %v16582_v23 = vrot.slane %v11065_v43, 1 }
  0x79   :  { %v2256_v58 = vsel %vm2255_vm8, %v2191_v52, %v1999_v4  ;;  %v2192_v52 = vsel %vm16556_vm5, %v10727_v11, %v1745_v41  ;;  %v9453_v11 = vsel %vm912_vm11, 1.0, %v16577_v3 }
  0x7a   :  { %2096 = vrot.lane.b32.xlu0 %v1663_v44, %s10515_s20  ;;  %10149 = vmatprep.mubr.msk.f32.mxu0 %vm2327_vm9, %v2256_v58  ;;  %v11139_v44 = vld [vmem:[%s16295_s0 + $0x198] sm:$0xff]  ;;  %v16331_v58 = vrot.slane %v11144_v46, 1 }
  0x7b   :  { %v1536_v18 = vrot.slane %v11139_v44, 1 }
  0x7c   :  { %v1747_v25 = vpop.permute.xlu0 %1746  ;;  %1780 = vrot.lane.b32.xlu1 %v11101_v49, %s10514_s15 }
  0x7d   :  { %v2193_v48 = vsel %vm16556_vm5, %v1423_v57, %v1747_v25  ;;  %v11168_v25 = vand.u32 15, %v82_v12  ;;  %v2194_v57 = vsel %vm16556_vm5, %v10715_v1, %v1749_v60  ;;  %v1425_v12 = vmul.f32 %v9453_v11, %v10760_v28  ;;  %v11186_v1 = vld [vmem:[%s16295_s0 + $0xa8] sm:$0xff]  ;;  %v11191_v60 = vld [vmem:[%s16295_s0 + $0xb0] sm:$0xff] }
  0x7e   :  { %2034 = vrot.lane.b32.xlu0 %v1594_v19, %s10515_s20  ;;  %v2001_v4 = vpop.permute.xlu1 %2000  ;;  %v97_v19 = vadd.s32 168, %v10560_v7  ;;  %v1506_v11 = vrot.slane %v11186_v1, 1 }
  0x7f   :  { %v2257_v21 = vsel %vm2255_vm8, %v2192_v52, %v2001_v4  ;;  %16581 = vst [vmem:[#allocation22_spill] sm:$0xff] %v11168_v25  ;;  %v9508_v52 = vsel %vm1151_vm12, 1.0, %v16577_v3  ;;  %vm914_vm13 = vcmp.ge.s32.totalorder %v11168_v25, 1 }
  0x80   :  { %v2003_v8 = vpop.permute.xlu0 %2002  ;;  %1842 = vrot.lane.b32.xlu1 %v11065_v43, %s10514_s15  ;;  %10150 = vmatmul.mubr.msk.f32.vlgmr.msra.gmra.mxu0 %vm2327_vm9, %v2257_v21  ;;  %v11193_v21 = vand.u32 15, %v97_v19 }
  0x81   :  { %v2258_v22 = vsel %vm2255_vm8, %v2193_v48, %v2003_v8  ;;  %v1562_v8 = vsel %vm1549_vm0, %v16582_v23, %v1536_v18  ;;  %v129_v23 = vadd.s32 424, %v10560_v7 }
  0x82   :  { %2036 = vrot.lane.b32.xlu0 %v1633_v62, %s10515_s20  ;;  %10152 = vmatprep.mubr.msk.f32.mxu0 %vm2327_vm9, %v2258_v22  ;;  %v2005_v41 = vpop.permute.xlu1 %2004  ;;  %v1561_v62 = vsel %vm1549_vm0, %v1536_v18, %v16331_v58  ;;  %16583 = vst [vmem:[#allocation23_spill] sm:$0xff] %v11193_v21  ;;  %v114_v18 = vadd.s32 304, %v10560_v7  ;;  %vm1121_vm14 = vcmp.lt.s32.totalorder %v11193_v21, 15 }
  0x83   :  { %v2259_v4 = vsel %vm2255_vm8, %v2194_v57, %v2005_v41  ;;  %v1665_v28 = vmul.f32 %v9508_v52, %v1561_v62  ;;  %v16334_v57 = vrot.slane %v11191_v60, 1  ;;  %v11215_v52 = vld [vmem:[%s16295_s0 + $0x128] sm:$0xff] }
  0x84   :  { %v1751_v48 = vpop.permute.xlu0 %1750  ;;  %1844 = vrot.lane.b32.xlu1 %v11139_v44, %s10514_s15  ;;  %10153 = vmatmul.mubr.msk.f32.gmra.mxu0 %vm2327_vm9, %v2259_v4  ;;  %v11217_v62 = vand.u32 15, %v114_v18 }
  0x85   :  { %v2195_v19 = vsel %vm16556_vm5, %v1425_v12, %v1751_v48 }
  0x86   :  { %2098 = vrot.lane.b32.xlu0 %v1562_v8, %s10515_s20  ;;  %v1753_v22 = vpop.permute.xlu1 %1752  ;;  %v9454_v8 = vsel %vm914_vm13, 1.0, %v16577_v3  ;;  %16584 = vst [vmem:[#allocation24_spill] sm:$0xff] %v11217_v62  ;;  %vm946_vm15 = vcmp.ge.s32.totalorder %v11217_v62, 1 }
  0x87   :  { %v2196_v12 = vsel %vm16556_vm5, %v10771_v31, %v1753_v22  ;;  %v1427_v18 = vmul.f32 %v9454_v8, %v10797_v26  ;;  %v11235_v31 = vld [vmem:[%s16295_s0 + $0x1a8] sm:$0xff]  ;;  %v11240_v22 = vld [vmem:[%s16295_s0 + $0x1b0] sm:$0xff]  ;;  %v84_v8 = vadd.s32 64, %v10560_v7 }
  0x88   :  { %v2007_v41 = vpop.permute.xlu0 %2006  ;;  %1782 = vrot.lane.b32.xlu1 %v11106_v63, %s10514_s15 }
  0x89   :  { %v2260_v4 = vsel %vm2255_vm8, %v2195_v19, %v2007_v41  ;;  %v16585_v19 = vrot.slane %v11106_v63, 1 }
  0x8a   :  { %2100 = vrot.lane.b32.xlu0 %v1665_v28, %s10515_s20  ;;  %10155 = vmatprep.mubr.msk.f32.mxu0 %vm2327_vm9, %v2260_v4  ;;  %v2009_v48 = vpop.permute.xlu1 %2008  ;;  %v9493_v28 = vsel %vm1121_vm14, 1.0, %v16577_v3  ;;  %v1591_v4 = vsel %vm1549_vm0, %v1506_v11, %v16334_v57 }
  0x8b   :  { %v1592_v41 = vsel %vm1549_vm0, %v16585_v19, %v1506_v11  ;;  %v2261_v58 = vsel %vm2255_vm8, %v2196_v12, %v2009_v48  ;;  %v11242_v19 = vand.u32 15, %v129_v23  ;;  %v1635_v11 = vmul.f32 %v9493_v28, %v1591_v4 }
  0x8c   :  { %v1755_v33 = vpop.permute.xlu0 %1754  ;;  %1784 = vrot.lane.b32.xlu1 %v11186_v1, %s10514_s15  ;;  %10156 = vmatmul.mubr.msk.f32.gmra.mxu0 %vm2327_vm9, %v2261_v58  ;;  %v1538_v48 = vrot.slane %v11235_v31, 1  ;;  %v99_v58 = vadd.s32 184, %v10560_v7  ;;  %v16587_v28 = vrot.slane %v10678_v50, 7  ;;  %v16588_v4 = vrot.slane %v11215_v52, 7 }
  0x8d   :  { %16586 = vst [vmem:[#allocation25_spill] sm:$0xff] %v11242_v19  ;;  %v2197_v57 = vsel %vm16556_vm5, %v1427_v18, %v1755_v33  ;;  %vm1153_vm1 = vcmp.lt.s32.totalorder %v11242_v19, 15  ;;  %v11268_v33 = vand.u32 15, %v84_v8  ;;  %v16591_v19 = vrot.slane %v11240_v22, 1  ;;  %v11284_v8 = vld [vmem:[%s16295_s0 + $0xb8] sm:$0xff] }
  0x8e   :  { %2038 = vrot.lane.b32.xlu0 %v1592_v41, %s10515_s20  ;;  %v1757_v12 = vpop.permute.xlu1 %1756  ;;  %v9470_v41 = vsel %vm946_vm15, 1.0, %v16577_v3  ;;  %v1382_v23 = vsel %vm1356_vm7, %v16588_v4, %v16587_v28  ;;  %v9509_v62 = vsel %vm1153_vm1, 1.0, %v16577_v3  ;;  %v11289_v4 = vld [vmem:[%s16295_s0 + $0xc0] sm:$0xff] }
  0x8f   :  { %16589 = vst [vmem:[#allocation26_spill] sm:$0xff] %v11268_v33  ;;  %v1559_v10 = vsel %vm1549_vm0, %v1538_v48, %v16591_v19  ;;  %v1459_v28 = vmul.f32 %v9470_v41, %v1382_v23  ;;  %vm916_vm2 = vcmp.ge.s32.totalorder %v11268_v33, 1  ;;  %v116_v19 = vadd.s32 320, %v10560_v7 }
  0x90   :  { %v2011_v25 = vpop.permute.xlu0 %2010  ;;  %1846 = vrot.lane.b32.xlu1 %v11144_v46, %s10514_s15  ;;  %v16347_v23 = vrot.slane %v11289_v4, 1 }
  0x91   :  { %v2262_v26 = vsel %vm2255_vm8, %v2197_v57, %v2011_v25  ;;  %v16590_v25 = vrot.slane %v11144_v46, 1 }
  0x92   :  { %2040 = vrot.lane.b32.xlu0 %v1635_v11, %s10515_s20  ;;  %10158 = vmatprep.mubr.msk.f32.mxu0 %vm2327_vm9, %v2262_v26  ;;  %v1819_v18 = vpop.permute.xlu1 %1818  ;;  %v2198_v11 = vsel %vm16556_vm5, %v10801_v42, %v1757_v12  ;;  %v1667_v42 = vmul.f32 %v9509_v62, %v1559_v10  ;;  %v11311_v62 = vand.u32 15, %v116_v19 }
  0x93   :  { %v1560_v57 = vsel %vm1549_vm0, %v16590_v25, %v1538_v48  ;;  %v11291_v25 = vand.u32 15, %v99_v58  ;;  %v1508_v48 = vrot.slane %v11284_v8, 1  ;;  %v2229_v58 = vsel %vm16556_vm5, %v1459_v28, %v1819_v18 }
  0x94   :  { %v2013_v26 = vpop.permute.xlu0 %2012  ;;  %1848 = vrot.lane.b32.xlu1 %v11235_v31, %s10514_s15  ;;  %16593 = vst [vmem:[#allocation28_spill] sm:$0xff] %v11311_v62  ;;  %v16594_v18 = vrot.slane %v11191_v60, 1  ;;  %vm948_vm6 = vcmp.ge.s32.totalorder %v11311_v62, 1  ;;  %v11372_v62 = vld [vmem:[%s16295_s0 + $0xc8] sm:$0xff] }
  0x95   :  { %16592 = vst [vmem:[#allocation27_spill] sm:$0xff] %v11291_v25  ;;  %v2263_v21 = vsel %vm2255_vm8, %v2198_v11, %v2013_v26  ;;  %vm1123_vm4 = vcmp.lt.s32.totalorder %v11291_v25, 15  ;;  %v131_v11 = vadd.s32 440, %v10560_v7  ;;  %v1339_v25 = vrot.slane %v10998_v5, 7 }
  0x96   :  { %2102 = vrot.lane.b32.xlu0 %v1560_v57, %s10515_s20  ;;  %10159 = vmatmul.mubr.msk.f32.gmra.mxu0 %vm2327_vm9, %v2263_v21  ;;  %v1821_v12 = vpop.permute.xlu1 %1820  ;;  %v9455_v21 = vsel %vm916_vm2, 1.0, %v16577_v3  ;;  %v1590_v28 = vsel %vm1549_vm0, %v16594_v18, %v1508_v48  ;;  %v9494_v26 = vsel %vm1123_vm4, 1.0, %v16577_v3  ;;  %v11333_v18 = vld [vmem:[%s16295_s0 + $0x1c0] sm:$0xff] }
  0x97   :  { %v11335_v33 = vand.u32 15, %v131_v11 }
  0x98   :  { %v2075_v41 = vpop.permute.xlu0 %2074  ;;  %1786 = vrot.lane.b32.xlu1 %v11191_v60, %s10514_s15 }
  0x99   :  { %v2294_v10 = vsel %vm2255_vm8, %v2229_v58, %v2075_v41  ;;  %v1589_v58 = vsel %vm1549_vm0, %v1508_v48, %v16347_v23  ;;  %v1429_v41 = vmul.f32 %v9455_v21, %v10841_v61  ;;  %16595 = vst [vmem:[#allocation29_spill] sm:$0xff] %v11335_v33  ;;  %v86_v61 = vadd.s32 80, %v10560_v7 }
  0x9a   :  { %2104 = vrot.lane.b32.xlu0 %v1667_v42, %s10515_s20  ;;  %10206 = vmatprep.mubr.msk.f32.mxu1 %vm2327_vm9, %v2294_v10  ;;  %v1759_v57 = vpop.permute.xlu1 %1758  ;;  %v2230_v42 = vsel %vm16556_vm5, %v10816_v53, %v1821_v12  ;;  %v11328_v10 = vld [vmem:[%s16295_s0 + $0x1b8] sm:$0xff]  ;;  %v1637_v53 = vmul.f32 %v9494_v26, %v1589_v58  ;;  %vm1155_vm10 = vcmp.lt.s32.totalorder %v11335_v33, 15  ;;  %v9471_v26 = vsel %vm948_vm6, 1.0, %v16577_v3 }
  0x9b   :  { %v1540_v21 = vrot.slane %v11328_v10, 1  ;;  %v2199_v23 = vsel %vm16556_vm5, %v1429_v41, %v1759_v57  ;;  %v11355_v58 = vand.u32 15, %v86_v61  ;;  %v16597_v57 = vrot.slane %v11240_v22, 1 }
  0x9c   :  { %v2077_v19 = vpop.permute.xlu0 %2076  ;;  %1788 = vrot.lane.b32.xlu1 %v11284_v8, %s10514_s15  ;;  %v9510_v11 = vsel %vm1155_vm10, 1.0, %v16577_v3 }
  0x9d   :  { %v2295_v48 = vsel %vm2255_vm8, %v2230_v42, %v2077_v19  ;;  %v101_v19 = vadd.s32 200, %v10560_v7  ;;  %16596 = vst [vmem:[#allocation30_spill] sm:$0xff] %v11355_v58  ;;  %v1558_v41 = vsel %vm1549_vm0, %v16597_v57, %v1540_v21  ;;  %v11377_v57 = vld [vmem:[%s16295_s0 + $0xd0] sm:$0xff]  ;;  %vm918_vm11 = vcmp.ge.s32.totalorder %v11355_v58, 1  ;;  %v11416_v58 = vld [vmem:[%s16295_s0 + $0x1c8] sm:$0xff] }
  0x9e   :  { %2042 = vrot.lane.b32.xlu0 %v1590_v28, %s10515_s20  ;;  %10207 = vmatmul.mubr.msk.f32.vlgmr.msra.gmra.mxu1 %vm2327_vm9, %v2295_v48  ;;  %v1761_v12 = vpop.permute.xlu1 %1760 }
  0x9f   :  { %v11379_v33 = vand.u32 15, %v101_v19 }
  0xa0   :  { %v2015_v42 = vpop.permute.xlu0 %2014  ;;  %1850 = vrot.lane.b32.xlu1 %v11240_v22, %s10514_s15 }
  0xa1   :  { %v2264_v28 = vsel %vm2255_vm8, %v2199_v23, %v2015_v42  ;;  %v16598_v23 = vrot.slane %v11333_v18, 1  ;;  %16599 = vst [vmem:[#allocation31_spill] sm:$0xff] %v11379_v33  ;;  %vm1125_vm12 = vcmp.lt.s32.totalorder %v11379_v33, 15 }
  0xa2   :  { %2044 = vrot.lane.b32.xlu0 %v1637_v53, %s10515_s20  ;;  %10161 = vmatprep.mubr.msk.f32.mxu0 %vm2327_vm9, %v2264_v28  ;;  %v1823_v48 = vpop.permute.xlu1 %1822  ;;  %v2200_v53 = vsel %vm16556_vm5, %v10845_v38, %v1761_v12  ;;  %v1461_v28 = vmul.f32 %v9471_v26, %v10858_v14  ;;  %v118_v14 = vadd.s32 336, %v10560_v7  ;;  %v1510_v26 = vrot.slane %v11372_v62, 1 }
  0xa3   :  { %v1557_v42 = vsel %vm1549_vm0, %v1540_v21, %v16598_v23  ;;  %v9495_v19 = vsel %vm1125_vm12, 1.0, %v16577_v3 }
  0xa4   :  { %v2017_v61 = vpop.permute.xlu0 %2016  ;;  %1852 = vrot.lane.b32.xlu1 %v11328_v10, %s10514_s15  ;;  %v1669_v38 = vmul.f32 %v9510_v11, %v1557_v42  ;;  %v2231_v23 = vsel %vm16556_vm5, %v1461_v28, %v1823_v48  ;;  %v9456_v11 = vsel %vm918_vm11, 1.0, %v16577_v3  ;;  %v11399_v42 = vand.u32 15, %v118_v14 }
  0xa5   :  { %v2265_v21 = vsel %vm2255_vm8, %v2200_v53, %v2017_v61  ;;  %v133_v61 = vadd.s32 456, %v10560_v7  ;;  %v16601_v48 = vrot.slane %v11289_v4, 1 }
  0xa6   :  { %2106 = vrot.lane.b32.xlu0 %v1558_v41, %s10515_s20  ;;  %10162 = vmatmul.mubr.msk.f32.gmra.mxu0 %vm2327_vm9, %v2265_v21  ;;  %v1825_v12 = vpop.permute.xlu1 %1824  ;;  %16600 = vst [vmem:[#allocation32_spill] sm:$0xff] %v11399_v42  ;;  %vm950_vm13 = vcmp.ge.s32.totalorder %v11399_v42, 1  ;;  %v11460_v42 = vld [vmem:[%s16295_s0 + $0xd8] sm:$0xff] }
  0xa7   :  { %v1588_v28 = vsel %vm1549_vm0, %v16601_v48, %v1510_v26  ;;  %v11421_v48 = vld [vmem:[%s16295_s0 + $0x1d0] sm:$0xff]  ;;  %v11423_v33 = vand.u32 15, %v133_v61 }
  0xa8   :  { %v2079_v53 = vpop.permute.xlu0 %2078  ;;  %1790 = vrot.lane.b32.xlu1 %v11289_v4, %s10514_s15 }
  0xa9   :  { %v2296_v41 = vsel %vm2255_vm8, %v2231_v23, %v2079_v53  ;;  %v16602_v23 = vrot.slane %v11377_v57, 1  ;;  %16603 = vst [vmem:[#allocation33_spill] sm:$0xff] %v11423_v33  ;;  %vm1157_vm14 = vcmp.lt.s32.totalorder %v11423_v33, 15 }
  0xaa   :  { %2108 = vrot.lane.b32.xlu0 %v1669_v38, %s10515_s20  ;;  %10209 = vmatprep.mubr.msk.f32.mxu1 %vm2327_vm9, %v2296_v41  ;;  %v1763_v21 = vpop.permute.xlu1 %1762  ;;  %v2232_v38 = vsel %vm16556_vm5, %v10863_v17, %v1825_v12  ;;  %v1431_v41 = vmul.f32 %v9456_v11, %v10888_v34  ;;  %v88_v34 = vadd.s32 96, %v10560_v7  ;;  %v1542_v11 = vrot.slane %v11416_v58, 1 }
  0xab   :  { %v1587_v53 = vsel %vm1549_vm0, %v1510_v26, %v16602_v23  ;;  %v9511_v61 = vsel %vm1157_vm14, 1.0, %v16577_v3 }
  0xac   :  { %v2081_v14 = vpop.permute.xlu0 %2080  ;;  %1792 = vrot.lane.b32.xlu1 %v11372_v62, %s10514_s15  ;;  %v1639_v17 = vmul.f32 %v9495_v19, %v1587_v53  ;;  %v2201_v23 = vsel %vm16556_vm5, %v1431_v41, %v1763_v21  ;;  %v9472_v19 = vsel %vm950_vm13, 1.0, %v16577_v3  ;;  %v11443_v53 = vand.u32 15, %v88_v34 }
  0xad   :  { %v2297_v26 = vsel %vm2255_vm8, %v2232_v38, %v2081_v14  ;;  %v103_v14 = vadd.s32 216, %v10560_v7  ;;  %v16605_v21 = vrot.slane %v11333_v18, 1 }
  0xae   :  { %2046 = vrot.lane.b32.xlu0 %v1588_v28, %s10515_s20  ;;  %10210 = vmatmul.mubr.msk.f32.gmra.mxu1 %vm2327_vm9, %v2297_v26  ;;  %v1765_v12 = vpop.permute.xlu1 %1764  ;;  %16604 = vst [vmem:[#allocation34_spill] sm:$0xff] %v11443_v53  ;;  %vm920_vm15 = vcmp.ge.s32.totalorder %v11443_v53, 1  ;;  %v11504_v53 = vld [vmem:[%s16295_s0 + $0x1d8] sm:$0xff] }
  0xaf   :  { %v1556_v41 = vsel %vm1549_vm0, %v16605_v21, %v1542_v11  ;;  %v11465_v21 = vld [vmem:[%s16295_s0 + $0xe0] sm:$0xff]  ;;  %v11467_v33 = vand.u32 15, %v103_v14 }
  0xb0   :  { %v2019_v38 = vpop.permute.xlu0 %2018  ;;  %1854 = vrot.lane.b32.xlu1 %v11333_v18, %s10514_s15 }
  0xb1   :  { %v2266_v28 = vsel %vm2255_vm8, %v2201_v23, %v2019_v38  ;;  %v16606_v23 = vrot.slane %v11421_v48, 1  ;;  %16607 = vst [vmem:[#allocation35_spill] sm:$0xff] %v11467_v33  ;;  %vm1127_vm1 = vcmp.lt.s32.totalorder %v11467_v33, 15 }
  0xb2   :  { %2048 = vrot.lane.b32.xlu0 %v1639_v17, %s10515_s20  ;;  %10164 = vmatprep.mubr.msk.f32.mxu0 %vm2327_vm9, %v2266_v28  ;;  %v1827_v26 = vpop.permute.xlu1 %1826  ;;  %v2202_v17 = vsel %vm16556_vm5, %v10892_v35, %v1765_v12  ;;  %v1463_v28 = vmul.f32 %v9472_v19, %v10908_v51  ;;  %v120_v51 = vadd.s32 352, %v10560_v7  ;;  %v1512_v19 = vrot.slane %v11460_v42, 1 }
  0xb3   :  { %v1555_v38 = vsel %vm1549_vm0, %v1542_v11, %v16606_v23  ;;  %v9496_v14 = vsel %vm1127_vm1, 1.0, %v16577_v3 }
  0xb4   :  { %v2021_v34 = vpop.permute.xlu0 %2020  ;;  %1856 = vrot.lane.b32.xlu1 %v11416_v58, %s10514_s15  ;;  %v1671_v35 = vmul.f32 %v9511_v61, %v1555_v38  ;;  %v2233_v23 = vsel %vm16556_vm5, %v1463_v28, %v1827_v26  ;;  %v9457_v61 = vsel %vm920_vm15, 1.0, %v16577_v3  ;;  %v11487_v38 = vand.u32 15, %v120_v51 }
  0xb5   :  { %v2267_v11 = vsel %vm2255_vm8, %v2202_v17, %v2021_v34  ;;  %v135_v34 = vadd.s32 472, %v10560_v7  ;;  %v16609_v26 = vrot.slane %v11377_v57, 1 }
  0xb6   :  { %2110 = vrot.lane.b32.xlu0 %v1556_v41, %s10515_s20  ;;  %10165 = vmatmul.mubr.msk.f32.gmra.mxu0 %vm2327_vm9, %v2267_v11  ;;  %v1829_v12 = vpop.permute.xlu1 %1828  ;;  %16608 = vst [vmem:[#allocation36_spill] sm:$0xff] %v11487_v38  ;;  %vm952_vm2 = vcmp.ge.s32.totalorder %v11487_v38, 1  ;;  %v11548_v38 = vld [vmem:[%s16295_s0 + $0xe8] sm:$0xff] }
  0xb7   :  { %v1586_v28 = vsel %vm1549_vm0, %v16609_v26, %v1512_v19  ;;  %v11509_v26 = vld [vmem:[%s16295_s0 + $0x1e0] sm:$0xff]  ;;  %v11511_v33 = vand.u32 15, %v135_v34 }
  0xb8   :  { %v2083_v17 = vpop.permute.xlu0 %2082  ;;  %1794 = vrot.lane.b32.xlu1 %v11377_v57, %s10514_s15 }
  0xb9   :  { %v2298_v41 = vsel %vm2255_vm8, %v2233_v23, %v2083_v17  ;;  %v16610_v23 = vrot.slane %v11465_v21, 1  ;;  %16611 = vst [vmem:[#allocation37_spill] sm:$0xff] %v11511_v33  ;;  %vm1159_vm4 = vcmp.lt.s32.totalorder %v11511_v33, 15 }
  0xba   :  { %2112 = vrot.lane.b32.xlu0 %v1671_v35, %s10515_s20  ;;  %10212 = vmatprep.mubr.msk.f32.mxu1 %vm2327_vm9, %v2298_v41  ;;  %v1767_v11 = vpop.permute.xlu1 %1766  ;;  %v2234_v35 = vsel %vm16556_vm5, %v10924_v56, %v1829_v12  ;;  %v1433_v41 = vmul.f32 %v9457_v61, %v10936_v13  ;;  %v90_v13 = vadd.s32 112, %v10560_v7  ;;  %v1544_v61 = vrot.slane %v11504_v53, 1 }
  0xbb   :  { %v1585_v17 = vsel %vm1549_vm0, %v1512_v19, %v16610_v23  ;;  %v9512_v34 = vsel %vm1159_vm4, 1.0, %v16577_v3 }
  0xbc   :  { %v2085_v51 = vpop.permute.xlu0 %2084  ;;  %1796 = vrot.lane.b32.xlu1 %v11460_v42, %s10514_s15  ;;  %v1641_v56 = vmul.f32 %v9496_v14, %v1585_v17  ;;  %v2203_v23 = vsel %vm16556_vm5, %v1433_v41, %v1767_v11  ;;  %v9473_v14 = vsel %vm952_vm2, 1.0, %v16577_v3  ;;  %v11531_v17 = vand.u32 15, %v90_v13 }
  0xbd   :  { %v2299_v19 = vsel %vm2255_vm8, %v2234_v35, %v2085_v51  ;;  %v105_v51 = vadd.s32 232, %v10560_v7  ;;  %v16613_v11 = vrot.slane %v11421_v48, 1 }
  0xbe   :  { %2050 = vrot.lane.b32.xlu0 %v1586_v28, %s10515_s20  ;;  %10213 = vmatmul.mubr.msk.f32.gmra.mxu1 %vm2327_vm9, %v2299_v19  ;;  %v1769_v12 = vpop.permute.xlu1 %1768  ;;  %16612 = vst [vmem:[#allocation38_spill] sm:$0xff] %v11531_v17  ;;  %vm922_vm6 = vcmp.ge.s32.totalorder %v11531_v17, 1  ;;  %v11592_v17 = vld [vmem:[%s16295_s0 + $0x1e8] sm:$0xff] }
  0xbf   :  { %v1554_v41 = vsel %vm1549_vm0, %v16613_v11, %v1544_v61  ;;  %v11553_v11 = vld [vmem:[%s16295_s0 + $0xf0] sm:$0xff]  ;;  %v11555_v33 = vand.u32 15, %v105_v51 }
  0xc0   :  { %v2023_v35 = vpop.permute.xlu0 %2022  ;;  %1858 = vrot.lane.b32.xlu1 %v11421_v48, %s10514_s15 }
  0xc1   :  { %v2268_v28 = vsel %vm2255_vm8, %v2203_v23, %v2023_v35  ;;  %v16614_v23 = vrot.slane %v11509_v26, 1  ;;  %16615 = vst [vmem:[#allocation39_spill] sm:$0xff] %v11555_v33  ;;  %vm1129_vm10 = vcmp.lt.s32.totalorder %v11555_v33, 15 }
  0xc2   :  { %2052 = vrot.lane.b32.xlu0 %v1641_v56, %s10515_s20  ;;  %10167 = vmatprep.mubr.msk.f32.mxu0 %vm2327_vm9, %v2268_v28  ;;  %v1831_v19 = vpop.permute.xlu1 %1830  ;;  %v2204_v56 = vsel %vm16556_vm5, %v10940_v37, %v1769_v12  ;;  %v1465_v28 = vmul.f32 %v9473_v14, %v10965_v59  ;;  %v122_v59 = vadd.s32 368, %v10560_v7  ;;  %v1514_v14 = vrot.slane %v11548_v38, 1 }
  0xc3   :  { %v1553_v35 = vsel %vm1549_vm0, %v1544_v61, %v16614_v23  ;;  %v9497_v51 = vsel %vm1129_vm10, 1.0, %v16577_v3 }
  0xc4   :  { %v2025_v13 = vpop.permute.xlu0 %2024  ;;  %1860 = vrot.lane.b32.xlu1 %v11504_v53, %s10514_s15  ;;  %v1673_v37 = vmul.f32 %v9512_v34, %v1553_v35  ;;  %v2235_v23 = vsel %vm16556_vm5, %v1465_v28, %v1831_v19  ;;  %v9458_v34 = vsel %vm922_vm6, 1.0, %v16577_v3  ;;  %v11575_v35 = vand.u32 15, %v122_v59 }
  0xc5   :  { %v2269_v61 = vsel %vm2255_vm8, %v2204_v56, %v2025_v13  ;;  %v137_v13 = vadd.s32 488, %v10560_v7  ;;  %v16617_v19 = vrot.slane %v11465_v21, 1 }
  0xc6   :  { %2114 = vrot.lane.b32.xlu0 %v1554_v41, %s10515_s20  ;;  %10168 = vmatmul.mubr.msk.f32.gmra.mxu0 %vm2327_vm9, %v2269_v61  ;;  %v1833_v12 = vpop.permute.xlu1 %1832  ;;  %16616 = vst [vmem:[#allocation40_spill] sm:$0xff] %v11575_v35  ;;  %vm954_vm11 = vcmp.ge.s32.totalorder %v11575_v35, 1 }
  0xc7   :  { %v1584_v28 = vsel %vm1549_vm0, %v16617_v19, %v1514_v14  ;;  %v11597_v19 = vld [vmem:[%s16295_s0 + $0x1f0] sm:$0xff]  ;;  %v11599_v33 = vand.u32 15, %v137_v13 }
  0xc8   :  { %v2087_v56 = vpop.permute.xlu0 %2086  ;;  %1798 = vrot.lane.b32.xlu1 %v11465_v21, %s10514_s15  ;;  %v16624_v35 = vrot.slane %v11597_v19, 1 }
  0xc9   :  { %v2300_v41 = vsel %vm2255_vm8, %v2235_v23, %v2087_v56  ;;  %v16618_v23 = vrot.slane %v11553_v11, 1  ;;  %16619 = vst [vmem:[#allocation41_spill] sm:$0xff] %v11599_v33  ;;  %vm1161_vm12 = vcmp.lt.s32.totalorder %v11599_v33, 15 }
  0xca   :  { %2116 = vrot.lane.b32.xlu0 %v1673_v37, %s10515_s20  ;;  %10215 = vmatprep.mubr.msk.f32.mxu1 %vm2327_vm9, %v2300_v41  ;;  %v1771_v61 = vpop.permute.xlu1 %1770  ;;  %v2236_v37 = vsel %vm16556_vm5, %v10971_v9, %v1833_v12  ;;  %v1435_v41 = vmul.f32 %v9458_v34, %v10985_v45  ;;  %v1338_v9 = vrot.slane %v10918_v20, 7  ;;  %v92_v12 = vadd.s32 128, %v10560_v7 }
  0xcb   :  { %v1583_v56 = vsel %vm1549_vm0, %v1514_v14, %v16618_v23  ;;  %v1307_v14 = vrot.slane %v10954_v24, 7  ;;  %v1546_v34 = vrot.slane %v11592_v17, 1  ;;  %v107_v20 = vadd.s32 248, %v10560_v7 }
  0xcc   :  { %v2089_v59 = vpop.permute.xlu0 %2088  ;;  %1800 = vrot.lane.b32.xlu1 %v11548_v38, %s10514_s15  ;;  %v1643_v45 = vmul.f32 %v9497_v51, %v1583_v56  ;;  %v16621_v24 = vrot.slane %v10913_v55, 7 }
  0xcd   :  { %v2301_v23 = vsel %vm2255_vm8, %v2236_v37, %v2089_v59  ;;  %v2205_v37 = vsel %vm16556_vm5, %v1435_v41, %v1771_v61  ;;  %v1551_v55 = vsel %vm1549_vm0, %v1546_v34, %v16624_v35 }
  0xce   :  { %2054 = vrot.lane.b32.xlu0 %v1584_v28, %s10515_s20  ;;  %10216 = vmatmul.mubr.msk.f32.gmra.mxu1 %vm2327_vm9, %v2301_v23  ;;  %v1773_v13 = vpop.permute.xlu1 %1772  ;;  %v16620_v28 = vrot.slane %v10877_v29, 7  ;;  %v9474_v23 = vsel %vm954_vm11, 1.0, %v16577_v3  ;;  %v1374_v61 = vsel %vm1356_vm7, %v16621_v24, %v1338_v9  ;;  %v11629_v29 = vand.u32 15, %v92_v12  ;;  %v11644_v12 = vld [vmem:[%s16295_s0 + $0xf8] sm:$0xff] }
  0xd0   :  { %v2027_v59 = vpop.permute.xlu0 %2026  ;;  %v1405_v51 = vsel %vm1356_vm7, %v16620_v28, %v1307_v14  ;;  %1862 = vrot.lane.b32.xlu1 %v11509_v26, %s10514_s15  ;;  %16622 = vst [vmem:[#allocation42_spill] sm:$0xff] %v11629_v29  ;;  %v16623_v28 = vrot.slane %v11509_v26, 1  ;;  %vm924_vm13 = vcmp.ge.s32.totalorder %v11629_v29, 1 }
  0xd1   :  { %v2270_v56 = vsel %vm2255_vm8, %v2205_v37, %v2027_v59  ;;  %v9513_v59 = vsel %vm1161_vm12, 1.0, %v16577_v3  ;;  %v2206_v24 = vsel %vm16556_vm5, %v1405_v51, %v1773_v13  ;;  %v1308_v13 = vrot.slane %v10959_v30, 7 }
  0xd2   :  { %2056 = vrot.lane.b32.xlu0 %v1643_v45, %s10515_s20  ;;  %10170 = vmatprep.mubr.msk.f32.mxu0 %vm2327_vm9, %v2270_v56  ;;  %v1835_v41 = vpop.permute.xlu1 %1834  ;;  %v1552_v37 = vsel %vm1549_vm0, %v16623_v28, %v1546_v34  ;;  %v1467_v45 = vmul.f32 %v9474_v23, %v1374_v61  ;;  %v11649_v56 = vld [vmem:[%s16295_s0 + $0x100] sm:$0xff]  ;;  %v11651_v28 = vand.u32 15, %v107_v20  ;;  %v1675_v34 = vmul.f32 %v9513_v59, %v1551_v55 }
  0xd3   :  { %v124_v51 = vadd.s32 384, %v10560_v7  ;;  %v1516_v23 = vrot.slane %v11644_v12, 1  ;;  %v1517_v5 = vrot.slane %v11649_v56, 1  ;;  %v139_v30 = vadd.s32 504, %v10560_v7 }
  0xd4   :  { %v2029_v33 = vpop.permute.xlu0 %2028  ;;  %16625 = vst [vmem:[#allocation43_spill] sm:$0xff] %v11651_v28  ;;  %1864 = vrot.lane.b32.xlu1 %v11592_v17, %s10514_s15  ;;  %vm1131_vm14 = vcmp.lt.s32.totalorder %v11651_v28, 15  ;;  %v9459_v55 = vsel %vm924_vm13, 1.0, %v16577_v3 }
  0xd5   :  { %v2271_v35 = vsel %vm2255_vm8, %v2206_v24, %v2029_v33  ;;  %v2237_v33 = vsel %vm16556_vm5, %v1467_v45, %v1835_v41  ;;  %v1404_v24 = vsel %vm1356_vm7, %v1307_v14, %v1308_v13  ;;  %v11677_v41 = vand.u32 15, %v124_v51 }
  0xd6   :  { %2118 = vrot.lane.b32.xlu0 %v1552_v37, %s10515_s20  ;;  %10171 = vmatmul.mubr.msk.f32.gmra.mxu0 %vm2327_vm9, %v2271_v35  ;;  %v1837_v20 = vpop.permute.xlu1 %1836  ;;  %v1373_v37 = vsel %vm1356_vm7, %v1338_v9, %v1339_v25  ;;  %v16627_v35 = vrot.slane %v11553_v11, 1  ;;  %v1309_v14 = vrot.slane %v11025_v36, 7  ;;  %v11690_v29 = vand.u32 15, %v139_v30 }
  0xd7   :  { %16626 = vst [vmem:[#allocation44_spill] sm:$0xff] %v11677_v41  ;;  %vm956_vm15 = vcmp.ge.s32.totalorder %v11677_v41, 1  ;;  %v109_v30 = vadd.s32 264, %v10560_v7  ;;  %v1311_v41 = vrot.slane %v11101_v49, 7  ;;  %v96_v49 = vadd.s32 160, %v10560_v7 }
  0xd8   :  { %v2091_v61 = vpop.permute.xlu0 %2090  ;;  %1802 = vrot.lane.b32.xlu1 %v11553_v11, %s10514_s15  ;;  %v1582_v9 = vsel %vm1549_vm0, %v16627_v35, %v1516_v23  ;;  %16628 = vst [vmem:[#allocation45_spill] sm:$0xff] %v11690_v29  ;;  %v1340_v35 = vrot.slane %v11003_v54, 7  ;;  %vm1163_vm1 = vcmp.lt.s32.totalorder %v11690_v29, 15  ;;  %v1342_v29 = vrot.slane %v11065_v43, 7 }
  0xd9   :  { %v2302_v59 = vsel %vm2255_vm8, %v2237_v33, %v2091_v61  ;;  %v9498_v33 = vsel %vm1131_vm14, 1.0, %v16577_v3  ;;  %v1581_v61 = vsel %vm1549_vm0, %v1516_v23, %v1517_v5  ;;  %v1548_v23 = vrot.slane %v11052_v32, 1 }
  0xda   :  { %2120 = vrot.lane.b32.xlu0 %v1675_v34, %s10515_s20  ;;  %10218 = vmatprep.mubr.msk.f32.mxu1 %vm2327_vm9, %v2302_v59  ;;  %v1775_v45 = vpop.permute.xlu1 %1774  ;;  %v2238_v34 = vsel %vm16556_vm5, %v1373_v37, %v1837_v20  ;;  %v1437_v59 = vmul.f32 %v9459_v55, %v1404_v24  ;;  %v1645_v36 = vmul.f32 %v9498_v33, %v1581_v61  ;;  %v11712_v33 = vand.u32 15, %v94_v40  ;;  %v11728_v40 = vld [vmem:[%s16295_s0 + $0x108] sm:$0xff] }
  0xdb   :  { %v1403_v55 = vsel %vm1356_vm7, %v1308_v13, %v1309_v14 }
  0xdc   :  { %v2093_v51 = vpop.permute.xlu0 %2092  ;;  %1804 = vrot.lane.b32.xlu1 %v11644_v12, %s10514_s15  ;;  %v2207_v37 = vsel %vm16556_vm5, %v1437_v59, %v1775_v45  ;;  %16629 = vst [vmem:[#allocation46_spill] sm:$0xff] %v11712_v33  ;;  %v16630_v45 = vrot.slane %v11597_v19, 1  ;;  %v16631_v59 = vrot.slane %v10542_v2, 1  ;;  %v1341_v2 = vrot.slane %v11060_v6, 7 }
  0xdd   :  { %v2303_v28 = vsel %vm2255_vm8, %v2238_v34, %v2093_v51  ;;  %v9514_v34 = vsel %vm1163_vm1, 1.0, %v16577_v3  ;;  %vm926_vm2 = vcmp.ge.s32.totalorder %v11712_v33, 1  ;;  %v126_v6 = vadd.s32 400, %v10560_v7 }
  0xde   :  { %2058 = vrot.lane.b32.xlu0 %v1582_v9, %s10515_s20  ;;  %10219 = vmatmul.mubr.msk.f32.gmra.mxu1 %vm2327_vm9, %v2303_v28  ;;  %v1777_v20 = vpop.permute.xlu1 %1776  ;;  %v9475_v28 = vsel %vm956_vm15, 1.0, %v16577_v3  ;;  %v1372_v9 = vsel %vm1356_vm7, %v1339_v25, %v1340_v35  ;;  %v1550_v61 = vsel %vm1549_vm0, %v16630_v45, %v1548_v23  ;;  %v1613_v51 = vsel %vm1549_vm0, %v1548_v23, %v16631_v59  ;;  %v11733_v25 = vld [vmem:[%s16295_s0 + $0x110] sm:$0xff] }
  0xdf   :  { %v1310_v45 = vrot.slane %v11030_v47, 7  ;;  %v1371_v47 = vsel %vm1356_vm7, %v1340_v35, %v1341_v2 }
  0xe0   :  { %v2031_v54 = vpop.permute.xlu0 %2030  ;;  %1866 = vrot.lane.b32.xlu1 %v11597_v19, %s10514_s15 }
  0xe1   :  { %v2272_v24 = vsel %vm2255_vm8, %v2207_v37, %v2031_v54  ;;  %v2208_v37 = vsel %vm16556_vm5, %v1403_v55, %v1777_v20  ;;  %v1469_v54 = vmul.f32 %v9475_v28, %v1372_v9  ;;  %v1518_v20 = vrot.slane %v11728_v40, 1 }
  0xe2   :  { %2060 = vrot.lane.b32.xlu0 %v1645_v36, %s10515_s20  ;;  %10173 = vmatprep.mubr.msk.f32.mxu0 %vm2327_vm9, %v2272_v24  ;;  %v1839_v13 = vpop.permute.xlu1 %1838  ;;  %v11735_v36 = vand.u32 15, %v109_v30  ;;  %v1677_v30 = vmul.f32 %v9514_v34, %v1613_v51  ;;  %v1519_v55 = vrot.slane %v11733_v25, 1  ;;  %v111_v9 = vadd.s32 280, %v10560_v7 }
  0xe3   :  { %v2239_v59 = vsel %vm16556_vm5, %v1469_v54, %v1839_v13  ;;  %v9460_v34 = vsel %vm926_vm2, 1.0, %v16577_v3  ;;  %v1402_v51 = vsel %vm1356_vm7, %v1309_v14, %v1310_v45  ;;  %v11767_v54 = vand.u32 15, %v126_v6  ;;  %v11776_v14 = vld [vmem:[%s16295_s0 + $0x118] sm:$0xff] }
  0xe4   :  { %16632 = vst [vmem:[#allocation47_spill] sm:$0xff] %v11735_v36  ;;  %v2033_v24 = vpop.permute.xlu0 %2032  ;;  %1868 = vrot.lane.b32.xlu1 %v11052_v32, %s10514_s15  ;;  %vm1133_vm4 = vcmp.lt.s32.totalorder %v11735_v36, 15  ;;  %v1579_v35 = vsel %vm1549_vm0, %v1518_v20, %v1519_v55 }
  0xe5   :  { %v2273_v23 = vsel %vm2255_vm8, %v2208_v37, %v2033_v24  ;;  %v9499_v13 = vsel %vm1133_vm4, 1.0, %v16577_v3  ;;  %16633 = vst [vmem:[#allocation48_spill] sm:$0xff] %v11767_v54  ;;  %vm958_vm6 = vcmp.ge.s32.totalorder %v11767_v54, 1  ;;  %v1343_v54 = vrot.slane %v11139_v44, 7 }
  0xe6   :  { %2122 = vrot.lane.b32.xlu0 %v1550_v61, %s10515_s20  ;;  %10174 = vmatmul.mubr.msk.f32.gmra.mxu0 %vm2327_vm9, %v2273_v23  ;;  %v1841_v28 = vpop.permute.xlu1 %1840  ;;  %v1580_v23 = vsel %vm1549_vm0, %v1517_v5, %v1518_v20  ;;  %v1647_v20 = vmul.f32 %v9499_v13, %v1579_v35  ;;  %v1401_v13 = vsel %vm1356_vm7, %v1310_v45, %v1311_v41  ;;  %v11813_v45 = vand.u32 15, %v96_v49 }
  0xe7   :  { %v2240_v6 = vsel %vm16556_vm5, %v1371_v47, %v1841_v28  ;;  %v1520_v28 = vrot.slane %v11776_v14, 1  ;;  %v1312_v49 = vrot.slane %v11106_v63, 7 }
  0xe8   :  { %v2095_v37 = vpop.permute.xlu0 %2094  ;;  %1806 = vrot.lane.b32.xlu1 %v11649_v56, %s10514_s15  ;;  %16635 = vst [vmem:[#allocation50_spill] sm:$0xff] %v11813_v45  ;;  %vm928_vm11 = vcmp.ge.s32.totalorder %v11813_v45, 1 }
  0xe9   :  { %v2304_v61 = vsel %vm2255_vm8, %v2239_v59, %v2095_v37  ;;  %v11783_v59 = vand.u32 15, %v111_v9  ;;  %v1439_v37 = vmul.f32 %v9460_v34, %v1402_v51  ;;  %v113_v34 = vadd.s32 296, %v10560_v7 }
  0xea   :  { %2124 = vrot.lane.b32.xlu0 %v1677_v30, %s10515_s20  ;;  %10221 = vmatprep.mubr.msk.f32.mxu1 %vm2327_vm9, %v2304_v61  ;;  %v1779_v24 = vpop.permute.xlu1 %1778  ;;  %v11781_v30 = vld [vmem:[%s16295_s0 + $0x120] sm:$0xff] }
  0xeb   :  { %16634 = vst [vmem:[#allocation49_spill] sm:$0xff] %v11783_v59  ;;  %v1521_v9 = vrot.slane %v11781_v30, 1  ;;  %vm1135_vm10 = vcmp.lt.s32.totalorder %v11783_v59, 15  ;;  %v2209_v51 = vsel %vm16556_vm5, %v1439_v37, %v1779_v24 }
  0xec   :  { %v2097_v61 = vpop.permute.xlu0 %2096  ;;  %1808 = vrot.lane.b32.xlu1 %v11728_v40, %s10514_s15  ;;  %v9500_v24 = vsel %vm1135_vm10, 1.0, %v16577_v3 }
  0xed   :  { %v2305_v5 = vsel %vm2255_vm8, %v2240_v6, %v2097_v61  ;;  %v1370_v6 = vsel %vm1356_vm7, %v1341_v2, %v1342_v29  ;;  %v1577_v37 = vsel %vm1549_vm0, %v1520_v28, %v1521_v9 }
  0xee   :  { %2062 = vrot.lane.b32.xlu0 %v1580_v23, %s10515_s20  ;;  %10222 = vmatmul.mubr.msk.f32.gmra.mxu1 %vm2327_vm9, %v2305_v5  ;;  %v1781_v47 = vpop.permute.xlu1 %1780  ;;  %v9476_v23 = vsel %vm958_vm6, 1.0, %v16577_v3  ;;  %v1578_v5 = vsel %vm1549_vm0, %v1519_v55, %v1520_v28  ;;  %v1649_v59 = vmul.f32 %v9500_v24, %v1577_v37  ;;  %v1522_v55 = vrot.slane %v11215_v52, 1 }
  0xef   :  { %v2210_v2 = vsel %vm16556_vm5, %v1401_v13, %v1781_v47  ;;  %v128_v28 = vadd.s32 416, %v10560_v7  ;;  %v1369_v13 = vsel %vm1356_vm7, %v1342_v29, %v1343_v54  ;;  %v16637_v37 = vrot.slane %v10678_v50, 1 }
  0xf0   :  { %v2035_v43 = vpop.permute.xlu0 %2034  ;;  %2064 = vrot.lane.b32.xlu1 %v1647_v20, %s10515_s20  ;;  %v11817_v20 = vand.u32 15, %v113_v34 }
  0xf1   :  { %v2274_v35 = vsel %vm2255_vm8, %v2209_v51, %v2035_v43  ;;  %v1471_v51 = vmul.f32 %v9476_v23, %v1370_v6  ;;  %v9461_v23 = vsel %vm928_vm11, 1.0, %v16577_v3  ;;  %v1400_v6 = vsel %vm1356_vm7, %v1311_v41, %v1312_v49 }
  0xf2   :  { %1810 = vrot.lane.b32.xlu0 %v11733_v25, %s10514_s15  ;;  %10176 = vmatprep.mubr.msk.f32.mxu0 %vm2327_vm9, %v2274_v35  ;;  %v1843_v61 = vpop.permute.xlu1 %1842  ;;  %16636 = vst [vmem:[#allocation51_spill] sm:$0xff] %v11817_v20  ;;  %vm1137_vm12 = vcmp.lt.s32.totalorder %v11817_v20, 15  ;;  %v1575_v29 = vsel %vm1549_vm0, %v1522_v55, %v16637_v37 }
  0xf3   :  { %v2241_v44 = vsel %vm16556_vm5, %v1471_v51, %v1843_v61  ;;  %v9501_v24 = vsel %vm1137_vm12, 1.0, %v16577_v3  ;;  %v11847_v61 = vand.u32 15, %v128_v28 }
  0xf4   :  { %v2037_v43 = vpop.permute.xlu0 %2036  ;;  %1812 = vrot.lane.b32.xlu1 %v11776_v14, %s10514_s15  ;;  %v1651_v50 = vmul.f32 %v9501_v24, %v1575_v29 }
  0xf5   :  { %v2275_v35 = vsel %vm2255_vm8, %v2210_v2, %v2037_v43  ;;  %16638 = vst [vmem:[#allocation52_spill] sm:$0xff] %v11847_v61  ;;  %v1441_v2 = vmul.f32 %v9461_v23, %v1400_v6  ;;  %v1313_v43 = vrot.slane %v11186_v1, 7  ;;  %vm960_vm13 = vcmp.ge.s32.totalorder %v11847_v61, 1  ;;  %v4576_v61 = vld [vmem:[%s16296_s1 + $0x18] sm:$0xff] }
  0xf6   :  { %2066 = vrot.lane.b32.xlu0 %v1578_v5, %s10515_s20  ;;  %10177 = vmatmul.mubr.msk.f32.gmra.mxu0 %vm2327_vm9, %v2275_v35  ;;  %v1845_v47 = vpop.permute.xlu1 %1844  ;;  %v1576_v5 = vsel %vm1549_vm0, %v1521_v9, %v1522_v55  ;;  %v98_v9 = vadd.s32 176, %v10560_v7 }
  0xf7   :  { %v2242_v41 = vsel %vm16556_vm5, %v1369_v13, %v1845_v47  ;;  %v1399_v47 = vsel %vm1356_vm7, %v1312_v49, %v1313_v43  ;;  %v1345_v49 = vrot.slane %v11235_v31, 7 }
  0xf8   :  { %v2099_v34 = vpop.permute.xlu0 %2098  ;;  %2068 = vrot.lane.b32.xlu1 %v1649_v59, %s10515_s20 }
  0xf9   :  { %v2306_v63 = vsel %vm2255_vm8, %v2241_v44, %v2099_v34  ;;  %v1344_v44 = vrot.slane %v11144_v46, 7  ;;  %v9477_v46 = vsel %vm960_vm13, 1.0, %v16577_v3 }
  0xfa   :  { %1814 = vrot.lane.b32.xlu0 %v11781_v30, %s10514_s15  ;;  %10224 = vmatprep.mubr.msk.f32.mxu1 %vm2327_vm9, %v2306_v63  ;;  %v1783_v59 = vpop.permute.xlu1 %1782  ;;  %v11870_v63 = vand.u32 15, %v98_v9 }
  0xfb   :  { %v2211_v28 = vsel %vm16556_vm5, %v1441_v2, %v1783_v59  ;;  %v1368_v13 = vsel %vm1356_vm7, %v1343_v54, %v1344_v44  ;;  %v1314_v59 = vrot.slane %v11191_v60, 7  ;;  %v130_v54 = vadd.s32 432, %v10560_v7 }
  0xfc   :  { %v2101_v51 = vpop.permute.xlu0 %2100  ;;  %1816 = vrot.lane.b32.xlu1 %v11215_v52, %s10514_s15  ;;  %16639 = vst [vmem:[#allocation53_spill] sm:$0xff] %v11870_v63  ;;  %v1473_v24 = vmul.f32 %v9477_v46, %v1368_v13  ;;  %vm930_vm14 = vcmp.ge.s32.totalorder %v11870_v63, 1 }
  0xfd   :  { %v2307_v35 = vsel %vm2255_vm8, %v2242_v41, %v2101_v51  ;;  %v1367_v51 = vsel %vm1356_vm7, %v1344_v44, %v1345_v49  ;;  %v9462_v31 = vsel %vm930_vm14, 1.0, %v16577_v3  ;;  %v1398_v60 = vsel %vm1356_vm7, %v1313_v43, %v1314_v59 }
  0xfe   :  { %2070 = vrot.lane.b32.xlu0 %v1576_v5, %s10515_s20  ;;  %10225 = vmatmul.mubr.msk.f32.gmra.mxu1 %vm2327_vm9, %v2307_v35  ;;  %v1785_v55 = vpop.permute.xlu1 %1784  ;;  %v100_v43 = vadd.s32 192, %v10560_v7  ;;  %vm3806_vm14 = vcmp.lt.s32.totalorder %v10560_v7, 6 }
  0xff   :  { %v2212_v6 = vsel %vm16556_vm5, %v1399_v47, %v1785_v55  ;;  %v1315_v47 = vrot.slane %v11284_v8, 7 }
 0x100   :  { %v2039_v1 = vpop.permute.xlu0 %2038  ;;  %2072 = vrot.lane.b32.xlu1 %v1651_v50, %s10515_s20  ;;  %v11887_v50 = vand.u32 15, %v130_v54 }
 0x101   :  { %v2276_v34 = vsel %vm2255_vm8, %v2211_v28, %v2039_v1  ;;  %v1443_v28 = vmul.f32 %v9462_v31, %v1398_v60 }
 0x102   :  { %10179 = vmatprep.mubr.msk.f32.mxu0 %vm2327_vm9, %v2276_v34  ;;  %v1847_v23 = vpop.permute.xlu1 %1846  ;;  %16640 = vst [vmem:[#allocation54_spill] sm:$0xff] %v11887_v50  ;;  %v1346_v34 = vrot.slane %v11240_v22, 7  ;;  %vm962_vm15 = vcmp.ge.s32.totalorder %v11887_v50, 1 }
 0x103   :  { %v2243_v41 = vsel %vm16556_vm5, %v1473_v24, %v1847_v23  ;;  %v9478_v8 = vsel %vm962_vm15, 1.0, %v16577_v3  ;;  %vm3613_vm15 = vcmp.lt.s32.totalorder %v10560_v7, 2 }
 0x104   :  { %v2041_v37 = vpop.permute.xlu0 %2040  ;;  %v1366_v22 = vsel %vm1356_vm7, %v1345_v49, %v1346_v34  ;;  %v132_v49 = vadd.s32 448, %v10560_v7 }
 0x105   :  { %v2277_v29 = vsel %vm2255_vm8, %v2212_v6, %v2041_v37  ;;  %v1397_v6 = vsel %vm1356_vm7, %v1314_v59, %v1315_v47  ;;  %v11904_v37 = vand.u32 15, %v100_v43 }
 0x106   :  { %10180 = vmatmul.mubr.msk.f32.gmra.mxu0 %vm2327_vm9, %v2277_v29  ;;  %v1849_v5 = vpop.permute.xlu1 %1848 }
 0x107   :  { %v2244_v55 = vsel %vm16556_vm5, %v1367_v51, %v1849_v5  ;;  %16641 = vst [vmem:[#allocation55_spill] sm:$0xff] %v11904_v37  ;;  %v1475_v5 = vmul.f32 %v9478_v8, %v1366_v22  ;;  %v1316_v51 = vrot.slane %v11289_v4, 7  ;;  %vm932_vm1 = vcmp.ge.s32.totalorder %v11904_v37, 1 }
 0x108   :  { %v2103_v2 = vpop.permute.xlu0 %2102 }
 0x109   :  { %v2308_v35 = vsel %vm2255_vm8, %v2243_v41, %v2103_v2  ;;  %v1347_v2 = vrot.slane %v11328_v10, 7  ;;  %v9463_v10 = vsel %vm932_vm1, 1.0, %v16577_v3  ;;  %v1396_v4 = vsel %vm1356_vm7, %v1315_v47, %v1316_v51 }
 0x10a   :  { %10227 = vmatprep.mubr.msk.f32.mxu1 %vm2327_vm9, %v2308_v35  ;;  %v1787_v9 = vpop.permute.xlu1 %1786  ;;  %v1445_v43 = vmul.f32 %v9463_v10, %v1396_v4  ;;  %v102_v47 = vadd.s32 208, %v10560_v7  ;;  %vm3358_vm1 = vcmp.lt.s32.totalorder %v10580_v15, 14 }
 0x10b   :  { %v2213_v13 = vsel %vm16556_vm5, %v1443_v28, %v1787_v9  ;;  %v1365_v9 = vsel %vm1356_vm7, %v1346_v34, %v1347_v2  ;;  %v11921_v28 = vand.u32 15, %v132_v49 }
 0x10c   :  { %v2105_v1 = vpop.permute.xlu0 %2104 }
 0x10d   :  { %v2309_v44 = vsel %vm2255_vm8, %v2244_v55, %v2105_v1  ;;  %16642 = vst [vmem:[#allocation56_spill] sm:$0xff] %v11921_v28  ;;  %vm964_vm2 = vcmp.ge.s32.totalorder %v11921_v28, 1  ;;  %v4577_v28 = vld [vmem:[%s16296_s1 + $0x20] sm:$0xff] }
 0x10e   :  { %10228 = vmatmul.mubr.msk.f32.gmra.mxu1 %vm2327_vm9, %v2309_v44  ;;  %v1789_v46 = vpop.permute.xlu1 %1788 }
 0x10f   :  { %v2214_v54 = vsel %vm16556_vm5, %v1397_v6, %v1789_v46 }
 0x110   :  { %v2043_v23 = vpop.permute.xlu0 %2042 }
 0x111   :  { %v2278_v24 = vsel %vm2255_vm8, %v2213_v13, %v2043_v23  ;;  %v1317_v13 = vrot.slane %v11372_v62, 7  ;;  %v1348_v23 = vrot.slane %v11333_v18, 7  ;;  %v9479_v62 = vsel %vm964_vm2, 1.0, %v16577_v3 }
 0x112   :  { %10182 = vmatprep.mubr.msk.f32.mxu0 %vm2327_vm9, %v2278_v24  ;;  %v1851_v29 = vpop.permute.xlu1 %1850 }
 0x113   :  { %v2245_v31 = vsel %vm16556_vm5, %v1475_v5, %v1851_v29  ;;  %v1395_v22 = vsel %vm1356_vm7, %v1316_v51, %v1317_v13  ;;  %v1364_v18 = vsel %vm1356_vm7, %v1347_v2, %v1348_v23  ;;  %v134_v2 = vadd.s32 464, %v10560_v7 }
 0x114   :  { %v2045_v41 = vpop.permute.xlu0 %2044 }
 0x115   :  { %v2279_v59 = vsel %vm2255_vm8, %v2214_v54, %v2045_v41  ;;  %v11938_v54 = vand.u32 15, %v102_v47  ;;  %v1319_v47 = vrot.slane %v11460_v42, 7 }
 0x116   :  { %10183 = vmatmul.mubr.msk.f32.gmra.mxu0 %vm2327_vm9, %v2279_v59  ;;  %v1853_v35 = vpop.permute.xlu1 %1852  ;;  %v1477_v59 = vmul.f32 %v9479_v62, %v1364_v18 }
 0x117   :  { %v2246_v44 = vsel %vm16556_vm5, %v1365_v9, %v1853_v35  ;;  %16643 = vst [vmem:[#allocation57_spill] sm:$0xff] %v11938_v54  ;;  %v1349_v35 = vrot.slane %v11416_v58, 7  ;;  %vm934_vm4 = vcmp.ge.s32.totalorder %v11938_v54, 1  ;;  %v16683_v54 = vld [vmem:[#allocation13_spill] sm:$0xff] }
 0x118   :  { %v2107_v60 = vpop.permute.xlu0 %2106  ;;  %v9464_v58 = vsel %vm934_vm4, 1.0, %v16577_v3 }
 0x119   :  { %v2310_v55 = vsel %vm2255_vm8, %v2245_v31, %v2107_v60  ;;  %v1318_v31 = vrot.slane %v11377_v57, 7  ;;  %v1363_v10 = vsel %vm1356_vm7, %v1348_v23, %v1349_v35 }
 0x11a   :  { %10230 = vmatprep.mubr.msk.f32.mxu1 %vm2327_vm9, %v2310_v55  ;;  %v1791_v1 = vpop.permute.xlu1 %1790 }
 0x11b   :  { %v2215_v24 = vsel %vm16556_vm5, %v1445_v43, %v1791_v1  ;;  %v1394_v57 = vsel %vm1356_vm7, %v1317_v13, %v1318_v31  ;;  %v11955_v1 = vand.u32 15, %v134_v2  ;;  %v104_v13 = vadd.s32 224, %v10560_v7 }
 0x11c   :  { %v2109_v46 = vpop.permute.xlu0 %2108  ;;  %v1320_v2 = vrot.slane %v11465_v21, 7 }
 0x11d   :  { %v2311_v34 = vsel %vm2255_vm8, %v2246_v44, %v2109_v46  ;;  %16644 = vst [vmem:[#allocation58_spill] sm:$0xff] %v11955_v1  ;;  %v1447_v46 = vmul.f32 %v9464_v58, %v1394_v57  ;;  %vm966_vm6 = vcmp.ge.s32.totalorder %v11955_v1, 1  ;;  %v11972_v18 = vand.u32 15, %v104_v13 }
 0x11e   :  { %10231 = vmatmul.mubr.msk.f32.gmra.mxu1 %vm2327_vm9, %v2311_v34  ;;  %v1793_v6 = vpop.permute.xlu1 %1792  ;;  %v9480_v42 = vsel %vm966_vm6, 1.0, %v16577_v3  ;;  %v1392_v21 = vsel %vm1356_vm7, %v1319_v47, %v1320_v2  ;;  %vm3360_vm6 = vcmp.lt.s32.totalorder %v10582_v16, 14 }
 0x11f   :  { %v2216_v41 = vsel %vm16556_vm5, %v1395_v22, %v1793_v6  ;;  %v1350_v6 = vrot.slane %v11421_v48, 7  ;;  %16645 = vst [vmem:[#allocation59_spill] sm:$0xff] %v11972_v18  ;;  %vm936_vm10 = vcmp.ge.s32.totalorder %v11972_v18, 1 }
 0x120   :  { %v2047_v8 = vpop.permute.xlu0 %2046 }
 0x121   :  { %v2280_v29 = vsel %vm2255_vm8, %v2215_v24, %v2047_v8  ;;  %v1362_v48 = vsel %vm1356_vm7, %v1349_v35, %v1350_v6 }
 0x122   :  { %10185 = vmatprep.mubr.msk.f32.mxu0 %vm2327_vm9, %v2280_v29  ;;  %v1855_v5 = vpop.permute.xlu1 %1854  ;;  %v1393_v29 = vsel %vm1356_vm7, %v1318_v31, %v1319_v47 }
 0x123   :  { %v2247_v9 = vsel %vm16556_vm5, %v1477_v59, %v1855_v5 }
 0x124   :  { %v2049_v49 = vpop.permute.xlu0 %2048 }
 0x125   :  { %v2281_v51 = vsel %vm2255_vm8, %v2216_v41, %v2049_v49  ;;  %v1351_v41 = vrot.slane %v11504_v53, 7  ;;  %v1479_v49 = vmul.f32 %v9480_v42, %v1362_v48 }
 0x126   :  { %10186 = vmatmul.mubr.msk.f32.gmra.mxu0 %vm2327_vm9, %v2281_v51  ;;  %v1857_v60 = vpop.permute.xlu1 %1856 }
 0x127   :  { %v2248_v43 = vsel %vm16556_vm5, %v1363_v10, %v1857_v60  ;;  %v136_v60 = vadd.s32 480, %v10560_v7  ;;  %v1361_v53 = vsel %vm1356_vm7, %v1350_v6, %v1351_v41  ;;  %v1321_v6 = vrot.slane %v11548_v38, 7 }
 0x128   :  { %v2111_v55 = vpop.permute.xlu0 %2110 }
 0x129   :  { %v2312_v4 = vsel %vm2255_vm8, %v2247_v9, %v2111_v55  ;;  %v11988_v58 = vand.u32 15, %v136_v60  ;;  %v1391_v42 = vsel %vm1356_vm7, %v1320_v2, %v1321_v6  ;;  %v1322_v60 = vrot.slane %v11553_v11, 7 }
 0x12a   :  { %10233 = vmatprep.mubr.msk.f32.mxu1 %vm2327_vm9, %v2312_v4  ;;  %v1795_v44 = vpop.permute.xlu1 %1794  ;;  %v9465_v4 = vsel %vm936_vm10, 1.0, %v16577_v3 }
 0x12b   :  { %v2217_v8 = vsel %vm16556_vm5, %v1447_v46, %v1795_v44  ;;  %16646 = vst [vmem:[#allocation60_spill] sm:$0xff] %v11988_v58  ;;  %v106_v44 = vadd.s32 240, %v10560_v7  ;;  %v1449_v46 = vmul.f32 %v9465_v4, %v1392_v21  ;;  %vm968_vm11 = vcmp.ge.s32.totalorder %v11988_v58, 1 }
 0x12c   :  { %v2113_v34 = vpop.permute.xlu0 %2112  ;;  %v9481_v38 = vsel %vm968_vm11, 1.0, %v16577_v3  ;;  %vm3362_vm11 = vcmp.lt.s32.totalorder %v10607_v27, 14 }
 0x12d   :  { %v2313_v23 = vsel %vm2255_vm8, %v2248_v43, %v2113_v34 }
 0x12e   :  { %10234 = vmatmul.mubr.msk.f32.gmra.mxu1 %vm2327_vm9, %v2313_v23  ;;  %v1797_v24 = vpop.permute.xlu1 %1796  ;;  %v1352_v23 = vrot.slane %v11509_v26, 7 }
 0x12f   :  { %v2218_v59 = vsel %vm16556_vm5, %v1393_v29, %v1797_v24  ;;  %v12001_v24 = vld [vmem:[%s16296_s1 + $0x10] ss:$0 sm:$0xff] }
 0x130   :  { %v2051_v22 = vpop.permute.xlu0 %2050 }
 0x131   :  { %v2282_v62 = vsel %vm2255_vm8, %v2217_v8, %v2051_v22  ;;  %v12003_v8 = vand.u32 15, %v106_v44  ;;  %v138_v22 = vadd.s32 496, %v10560_v7 }
 0x132   :  { %10188 = vmatprep.mubr.msk.f32.mxu0 %vm2327_vm9, %v2282_v62  ;;  %v1859_v5 = vpop.permute.xlu1 %1858  ;;  %v1360_v62 = vsel %vm1356_vm7, %v1351_v41, %v1352_v23 }
 0x133   :  { %v2249_v9 = vsel %vm16556_vm5, %v1479_v49, %v1859_v5  ;;  %16647 = vst [vmem:[#allocation61_spill] sm:$0xff] %v12003_v8  ;;  %v1481_v49 = vmul.f32 %v9481_v38, %v1360_v62  ;;  %vm938_vm12 = vcmp.ge.s32.totalorder %v12003_v8, 1  ;;  %v1323_v38 = vrot.slane %v11644_v12, 7 }
 0x134   :  { %v2053_v51 = vpop.permute.xlu0 %2052  ;;  %v9466_v11 = vsel %vm938_vm12, 1.0, %v16577_v3 }
 0x135   :  { %v2283_v31 = vsel %vm2255_vm8, %v2218_v59, %v2053_v51 }
 0x136   :  { %10189 = vmatmul.mubr.msk.f32.gmra.mxu0 %vm2327_vm9, %v2283_v31  ;;  %v1861_v35 = vpop.permute.xlu1 %1860 }
 0x137   :  { %v2250_v43 = vsel %vm16556_vm5, %v1361_v53, %v1861_v35  ;;  %v12017_v35 = vand.u32 15, %v138_v22 }
 0x138   :  { %v2115_v55 = vpop.permute.xlu0 %2114 }
 0x139   :  { %v2314_v10 = vsel %vm2255_vm8, %v2249_v9, %v2115_v55  ;;  %16648 = vst [vmem:[#allocation62_spill] sm:$0xff] %v12017_v35  ;;  %v1353_v55 = vrot.slane %v11592_v17, 7  ;;  %vm970_vm13 = vcmp.ge.s32.totalorder %v12017_v35, 1  ;;  %v1354_v17 = vrot.slane %v11597_v19, 7 }
 0x13a   :  { %10236 = vmatprep.mubr.msk.f32.mxu1 %vm2327_vm9, %v2314_v10  ;;  %v1799_v57 = vpop.permute.xlu1 %1798 }
 0x13b   :  { %v2219_v26 = vsel %vm16556_vm5, %v1449_v46, %v1799_v57  ;;  %v1359_v62 = vsel %vm1356_vm7, %v1352_v23, %v1353_v55  ;;  %v1358_v23 = vsel %vm1356_vm7, %v1353_v55, %v1354_v17  ;;  %v1389_v55 = vsel %vm1356_vm7, %v1322_v60, %v1323_v38 }
 0x13c   :  { %v2117_v34 = vpop.permute.xlu0 %2116 }
 0x13d   :  { %v2315_v13 = vsel %vm2255_vm8, %v2250_v43, %v2117_v34  ;;  %v1390_v34 = vsel %vm1356_vm7, %v1321_v6, %v1322_v60 }
 0x13e   :  { %10237 = vmatmul.mubr.msk.f32.gmra.mxu1 %vm2327_vm9, %v2315_v13  ;;  %v1801_v47 = vpop.permute.xlu1 %1800 }
 0x13f   :  { %v2220_v41 = vsel %vm16556_vm5, %v1391_v42, %v1801_v47 }
 0x140   :  { %v2055_v29 = vpop.permute.xlu0 %2054  ;;  %v10151_v5 = vpop.f32.mrf.mxu0 }
 0x141   :  { %v2284_v48 = vsel %vm2255_vm8, %v2219_v26, %v2055_v29  ;;  %v2596_v59 = vadd.f32 %v10151_v5, %v12001_v24 }
 0x142   :  { %10191 = vmatprep.mubr.msk.f32.mxu0 %vm2327_vm9, %v2284_v48  ;;  %v1863_v51 = vpop.permute.xlu1 %1862  ;;  %v2590_v31 = vpop.f32.mrf.mxu0 }
 0x143   :  { %v2910_v9 = vmax.f32 %v2596_v59, 0.0  ;;  %v2591_v2 = vadd.f32 %v12001_v24, %v2590_v31  ;;  %v2251_v44 = vsel %vm16556_vm5, %v1481_v49, %v1863_v51  ;;  %v1451_v59 = vmul.f32 %v9466_v11, %v1390_v34 }
 0x144   :  { %v2057_v53 = vpop.permute.xlu0 %2056  ;;  %v10154_v4 = vpop.f32.mrf.mxu0  ;;  %v9482_v51 = vsel %vm970_vm13, 1.0, %v16577_v3 }
 0x145   :  { %v2285_v10 = vsel %vm2255_vm8, %v2220_v41, %v2057_v53  ;;  %v2909_v21 = vmax.f32 %v2591_v2, 0.0  ;;  %v12024_v57 = vadd.f32 %v10154_v4, %v12001_v24  ;;  %v2974_v13 = vrot.slane %v2910_v9, 1 }
 0x146   :  { %10192 = vmatmul.mubr.msk.f32.gmra.mxu0 %vm2327_vm9, %v2285_v10  ;;  %v1865_v43 = vpop.permute.xlu1 %1864  ;;  %v2600_v46 = vpop.f32.mrf.mxu0  ;;  %v108_v10 = vadd.s32 256, %v10560_v7 }
 0x147   :  { %v12033_v47 = vrot.slane %v2909_v21, 1  ;;  %v2912_v22 = vmax.f32 %v12024_v57, 0.0  ;;  %v2601_v26 = vadd.f32 %v12001_v24, %v2600_v46  ;;  %v2252_v41 = vsel %vm16556_vm5, %v1359_v62, %v1865_v43 }
 0x148   :  { %v2119_v29 = vpop.permute.xlu0 %2118  ;;  %v1483_v46 = vmul.f32 %v9482_v51, %v1358_v23  ;;  %v1325_v57 = vrot.slane %v11728_v40, 7 }
 0x149   :  { %v2316_v42 = vsel %vm2255_vm8, %v2251_v44, %v2119_v29  ;;  %v3099_v6 = vsel %vm1549_vm0, %v12033_v47, %v2974_v13  ;;  %v2911_v48 = vmax.f32 %v2601_v26, 0.0  ;;  %v2976_v31 = vrot.slane %v2912_v22, 1 }
 0x14a   :  { %10239 = vmatprep.mubr.msk.f32.mxu1 %vm2327_vm9, %v2316_v42  ;;  %v12045_v5 = vmax.f32 %v2909_v21, %v3099_v6  ;;  %v1803_v49 = vpop.permute.xlu1 %1802 }
 0x14b   :  { %v2975_v2 = vrot.slane %v2911_v48, 1  ;;  %v2221_v60 = vsel %vm16556_vm5, %v1451_v59, %v1803_v49 }
 0x14c   :  { %16649 = vst [vmem:[#allocation63_spill] sm:$0xff] %v12045_v5  ;;  %v2121_v53 = vpop.permute.xlu0 %2120  ;;  %v10157_v21 = vpop.f32.mrf.mxu0  ;;  %3999 = vrot.lane.b32.xlu0 %v12045_v5, %s10515_s20  ;;  %v16392_v51 = vrot.slane %v12045_v5, 2  ;;  %v16393_v59 = vrot.slane %v12045_v5, 6 }
 0x14d   :  { %v2317_v4 = vsel %vm2255_vm8, %v2252_v41, %v2121_v53  ;;  %v3097_v11 = vsel %vm1549_vm0, %v2975_v2, %v2976_v31  ;;  %v3098_v44 = vsel %vm1549_vm0, %v2974_v13, %v2975_v2  ;;  %v12070_v43 = vadd.f32 %v10157_v21, %v12001_v24 }
 0x14e   :  { %10240 = vmatmul.mubr.msk.f32.gmra.mxu1 %vm2327_vm9, %v2317_v4  ;;  %v12073_v34 = vmax.f32 %v2911_v48, %v3097_v11  ;;  %v1805_v26 = vpop.permute.xlu1 %1804  ;;  %v2610_v29 = vpop.f32.mrf.mxu0  ;;  %v3102_v62 = vmax.f32 %v2910_v9, %v3098_v44  ;;  %v12080_v41 = vand.u32 15, %v108_v10  ;;  %v1324_v21 = vrot.slane %v11649_v56, 7 }
 0x14f   :  { %v16394_v42 = vmax.f32 %v12070_v43, 0.0  ;;  %v2611_v13 = vadd.f32 %v12001_v24, %v2610_v29  ;;  %v2222_v53 = vsel %vm16556_vm5, %v1389_v55, %v1805_v26  ;;  %v110_v11 = vadd.s32 272, %v10560_v7 }
 0x150   :  { %v2059_v6 = vpop.permute.xlu0 %2058  ;;  %16650 = vst [vmem:[#allocation64_spill] sm:$0xff] %v12080_v41  ;;  %v3551_v48 = vrot.slane %v12073_v34, 6  ;;  %4001 = vrot.lane.b32.xlu1 %v3102_v62, %s10515_s20  ;;  %4003 = vrot.lane.b32.xlu0 %v12073_v34, %s10515_s20  ;;  %v3743_v9 = vrot.slane %v3102_v62, 2  ;;  %v3550_v2 = vrot.slane %v3102_v62, 6  ;;  %v3744_v44 = vrot.slane %v12073_v34, 2 }
 0x151   :  { %v2286_v23 = vsel %vm2255_vm8, %v2221_v60, %v2059_v6  ;;  %v2913_v49 = vmax.f32 %v2611_v13, 0.0  ;;  %v12101_v29 = vrot.slane %v16394_v42, 1  ;;  %vm940_vm2 = vcmp.ge.s32.totalorder %v12080_v41, 1 }
 0x152   :  { %10194 = vmatprep.mubr.msk.f32.mxu0 %vm2327_vm9, %v2286_v23  ;;  %v1867_v10 = vpop.permute.xlu1 %1866  ;;  %v3869_v4 = vsel %vm3806_vm14, %v16392_v51, %v3743_v9  ;;  %v12107_v55 = vsel %vm3613_vm15, %v16393_v59, %v3550_v2  ;;  %v12116_v56 = vsel %vm3613_vm15, %v3550_v2, %v3551_v48  ;;  %v12136_v59 = vand.u32 15, %v110_v11 }
 0x153   :  { %v2977_v60 = vrot.slane %v2913_v49, 1  ;;  %v9467_v42 = vsel %vm940_vm2, 1.0, %v16577_v3  ;;  %v16652_v11 = vrot.slane %v11052_v32, 7 }
 0x154   :  { %v2061_v62 = vpop.permute.xlu0 %2060  ;;  %4255 = vrot.lane.b32.xlu0 %v3869_v4, %s10517_s11  ;;  %16651 = vst [vmem:[#allocation65_spill] sm:$0xff] %v12136_v59  ;;  %vm942_vm4 = vcmp.ge.s32.totalorder %v12136_v59, 1 }
 0x155   :  { %v2287_v26 = vsel %vm2255_vm8, %v2222_v53, %v2061_v62  ;;  %v3095_v13 = vsel %vm1549_vm0, %v2977_v60, %v12101_v29  ;;  %v3096_v6 = vsel %vm1549_vm0, %v2976_v31, %v2977_v60  ;;  %v9613_v53 = vsel %vm3358_vm1, 1.0, %v16577_v3 }
 0x156   :  { %v10160_v23 = vpop.f32.mrf.mxu0  ;;  %10195 = vmatmul.mubr.msk.f32.gmra.mxu0 %vm2327_vm9, %v2287_v26  ;;  %v12127_v4 = vmax.f32 %v2913_v49, %v3095_v13  ;;  %v1869_v62 = vpop.permute.xlu1 %1868  ;;  %v12134_v51 = vmax.f32 %v2912_v22, %v3096_v6  ;;  %v2253_v31 = vsel %vm16556_vm5, %v1483_v46, %v1867_v10  ;;  %v1388_v49 = vsel %vm1356_vm7, %v1323_v38, %v1324_v21 }
 0x157   :  { %v12130_v2 = vadd.f32 %v10160_v23, %v12001_v24  ;;  %v3868_v13 = vsel %vm3806_vm14, %v3743_v9, %v3744_v44  ;;  %v1357_v46 = vsel %vm1356_vm7, %v1354_v17, %v16652_v11  ;;  %v1453_v38 = vmul.f32 %v9467_v42, %v1388_v49 }
 0x158   :  { %v2123_v60 = vpop.permute.xlu0 %2122  ;;  %v2620_v26 = vpop.f32.mrf.mxu0  ;;  %v16397_v22 = vrot.slane %v12127_v4, 6  ;;  %4005 = vrot.lane.b32.xlu1 %v12134_v51, %s10515_s20  ;;  %4007 = vrot.lane.b32.xlu0 %v12127_v4, %s10515_s20  ;;  %v3745_v32 = vrot.slane %v12134_v51, 2  ;;  %v3552_v19 = vrot.slane %v12134_v51, 6  ;;  %v3872_v9 = vmul.f32 %v9613_v53, %v3868_v13 }
 0x159   :  { %v2318_v10 = vsel %vm2255_vm8, %v2253_v31, %v2123_v60  ;;  %v16395_v12 = vmax.f32 %v12130_v2, 0.0  ;;  %v2621_v40 = vadd.f32 %v12001_v24, %v2620_v26  ;;  %v16396_v6 = vrot.slane %v11733_v25, 7 }
 0x15a   :  { %10242 = vmatprep.mubr.msk.f32.mxu1 %vm2327_vm9, %v2318_v10  ;;  %v1807_v17 = vpop.permute.xlu1 %1806  ;;  %v2254_v23 = vsel %vm16556_vm5, %v1357_v46, %v1869_v62  ;;  %v3867_v26 = vsel %vm3806_vm14, %v3744_v44, %v3745_v32  ;;  %v112_v11 = vadd.s32 288, %v10560_v7  ;;  %v1327_v10 = vrot.slane %v11776_v14, 7 }
 0x15b   :  { %v2915_v31 = vmax.f32 %v2621_v40, 0.0  ;;  %v12179_v42 = vsel %vm3613_vm15, %v3551_v48, %v3552_v19  ;;  %v12183_v44 = vrot.slane %v16395_v12, 1  ;;  %v1387_v62 = vsel %vm1356_vm7, %v1324_v21, %v1325_v57 }
 0x15c   :  { %v2125_v60 = vpop.permute.xlu0 %2124  ;;  %4257 = vrot.lane.b32.xlu1 %v3872_v9, %s10517_s11  ;;  %4259 = vrot.lane.b32.xlu0 %v3867_v26, %s10517_s11  ;;  %v12192_v34 = vsel %vm3613_vm15, %v3552_v19, %v16397_v22  ;;  %v3746_v48 = vrot.slane %v12127_v4, 2  ;;  %v9468_v46 = vsel %vm942_vm4, 1.0, %v16577_v3  ;;  %v1386_v21 = vsel %vm1356_vm7, %v1325_v57, %v16396_v6 }
 0x15d   :  { %v2319_v51 = vsel %vm2255_vm8, %v2254_v23, %v2125_v60  ;;  %v2979_v53 = vrot.slane %v2915_v31, 1  ;;  %v2223_v9 = vsel %vm16556_vm5, %v1453_v38, %v1807_v17  ;;  %v12212_v26 = vand.u32 15, %v112_v11 }
 0x15e   :  { %v10208_v14 = vpop.f32.mrf.mxu1  ;;  %10243 = vmatmul.mubr.msk.f32.gmra.mxu1 %vm2327_vm9, %v2319_v51  ;;  %v1809_v13 = vpop.permute.xlu1 %1808  ;;  %v16654_v6 = vmax.f32 %v12070_v43, 0.0  ;;  %v9614_v38 = vsel %vm3360_vm6, 1.0, %v16577_v3  ;;  %v1328_v17 = vrot.slane %v11781_v30, 7  ;;  %v3866_v43 = vsel %vm3806_vm14, %v3745_v32, %v3746_v48 }
 0x15f   :  { %v12196_v49 = vadd.f32 %v10208_v14, %v12001_v24  ;;  %v3093_v40 = vsel %vm1549_vm0, %v2979_v53, %v12183_v44  ;;  %v3094_v19 = vsel %vm1549_vm0, %v12101_v29, %v2979_v53  ;;  %16653 = vst [vmem:[#allocation66_spill] sm:$0xff] %v12212_v26  ;;  %v1455_v29 = vmul.f32 %v9468_v46, %v1386_v21 }
 0x160   :  { %v2063_v23 = vpop.permute.xlu0 %2062  ;;  %v2780_v60 = vpop.f32.mrf.mxu1  ;;  %v12214_v51 = vmax.f32 %v2915_v31, %v3093_v40  ;;  %v12222_v22 = vmax.f32 %v16654_v6, %v3094_v19  ;;  %v2224_v11 = vsel %vm16556_vm5, %v1387_v62, %v1809_v13  ;;  %vm944_vm10 = vcmp.ge.s32.totalorder %v12212_v26, 1 }
 0x161   :  { %v16398_v14 = vmax.f32 %v12196_v49, 0.0  ;;  %v2288_v57 = vsel %vm2255_vm8, %v2223_v9, %v2063_v23  ;;  %v2781_v12 = vadd.f32 %v12001_v24, %v2780_v60  ;;  %v3874_v21 = vmul.f32 %v9614_v38, %v3866_v43 }
 0x162   :  { %10197 = vmatprep.mubr.msk.f32.mxu0 %vm2327_vm9, %v2288_v57  ;;  %v16399_v31 = vrot.slane %v12214_v51, 6  ;;  %v2065_v40 = vpop.permute.xlu1 %2064  ;;  %4011 = vrot.lane.b32.xlu0 %v12214_v51, %s10515_s20  ;;  %v3747_v30 = vrot.slane %v12222_v22, 2  ;;  %v3554_v62 = vrot.slane %v12222_v22, 6  ;;  %v16655_v9 = vrot.slane %v12127_v4, 6 }
 0x163   :  { %v2947_v53 = vmax.f32 %v2781_v12, 0.0  ;;  %v2289_v6 = vsel %vm2255_vm8, %v2224_v11, %v2065_v40  ;;  %4009 = vrot.lane.b32.xlu1 %v12222_v22, %s10515_s20  ;;  %v12242_v12 = vrot.slane %v16398_v14, 1  ;;  %v9469_v4 = vsel %vm944_vm10, 1.0, %v16577_v3 }
 0x164   :  { %v1811_v46 = vpop.permute.xlu0 %1810  ;;  %10198 = vmatmul.mubr.msk.f32.gmra.mxu0 %vm2327_vm9, %v2289_v6  ;;  %v3865_v19 = vsel %vm3806_vm14, %v3746_v48, %v3747_v30  ;;  %v12253_v23 = vsel %vm3613_vm15, %v16655_v9, %v3554_v62  ;;  %v12259_v22 = vsel %vm3613_vm15, %v3554_v62, %v16399_v31  ;;  %v1384_v38 = vsel %vm1356_vm7, %v1327_v10, %v1328_v17 }
 0x165   :  { %v12244_v13 = vrot.slane %v2947_v53, 1  ;;  %v2225_v40 = vsel %vm16556_vm5, %v1455_v29, %v1811_v46  ;;  %v16657_v43 = vrot.slane %v11733_v25, 7  ;;  %vm3372_vm1 = vcmp.lt.s32.totalorder %v16683_v54, 14 }
 0x166   :  { %v10163_v32 = vpop.f32.mrf.mxu0  ;;  %v1813_v57 = vpop.permute.xlu1 %1812  ;;  %4263 = vrot.lane.b32.xlu0 %v3865_v19, %s10517_s11 }
 0x167   :  { %v3061_v60 = vsel %vm1549_vm0, %v12244_v13, %v12242_v12  ;;  %v12266_v48 = vadd.f32 %v10163_v32, %v12001_v24  ;;  %v1385_v6 = vsel %vm1356_vm7, %v16657_v43, %v1327_v10  ;;  %4261 = vrot.lane.b32.xlu1 %v3874_v21, %s10517_s11 }
 0x168   :  { %v12272_v11 = vmax.f32 %v2947_v53, %v3061_v60  ;;  %v2067_v62 = vpop.permute.xlu0 %2066  ;;  %v2630_v32 = vpop.f32.mrf.mxu0  ;;  %v1457_v53 = vmul.f32 %v9469_v4, %v1384_v38  ;;  %v2226_v29 = vsel %vm16556_vm5, %v1385_v6, %v1813_v57  ;;  %v3748_v60 = vrot.slane %v12214_v51, 2 }
 0x169   :  { %v16401_v19 = vmax.f32 %v12266_v48, 0.0  ;;  %v2290_v9 = vsel %vm2255_vm8, %v2225_v40, %v2067_v62  ;;  %v2631_v14 = vadd.f32 %v12001_v24, %v2630_v32  ;;  %v16658_v57 = vrot.slane %v11215_v52, 7 }
 0x16a   :  { %16656 = vst [vmem:[#allocation67_spill] sm:$0xff] %v12272_v11  ;;  %10200 = vmatprep.mubr.msk.f32.mxu0 %vm2327_vm9, %v2290_v9  ;;  %v2069_v25 = vpop.permute.xlu1 %2068  ;;  %v16659_v52 = vmax.f32 %v12130_v2, 0.0 }
 0x16b   :  { %v2917_v46 = vmax.f32 %v2631_v14, 0.0  ;;  %v2291_v10 = vsel %vm2255_vm8, %v2226_v29, %v2069_v25  ;;  %v2982_v43 = vrot.slane %v16401_v19, 1  ;;  %v1383_v14 = vsel %vm1356_vm7, %v1328_v17, %v16658_v57 }
 0x16c   :  { %v1815_v21 = vpop.permute.xlu0 %1814  ;;  %10201 = vmatmul.mubr.msk.f32.gmra.mxu0 %vm2327_vm9, %v2291_v10  ;;  %v9615_v17 = vsel %vm3362_vm11, 1.0, %v16577_v3  ;;  %v3864_v10 = vsel %vm3806_vm14, %v3747_v30, %v3748_v60  ;;  %vm3364_vm7 = vcmp.lt.s32.totalorder %v10643_v39, 14 }
 0x16d   :  { %v2981_v31 = vrot.slane %v2917_v46, 1  ;;  %v2227_v40 = vsel %vm16556_vm5, %v1457_v53, %v1815_v21 }
 0x16e   :  { %v10211_v4 = vpop.f32.mrf.mxu1  ;;  %v1817_v32 = vpop.permute.xlu1 %1816 }
 0x16f   :  { %v3091_v38 = vsel %vm1549_vm0, %v2981_v31, %v2982_v43  ;;  %v3092_v6 = vsel %vm1549_vm0, %v12183_v44, %v2981_v31  ;;  %v12302_v62 = vadd.f32 %v10211_v4, %v12001_v24  ;;  %v2228_v44 = vsel %vm16556_vm5, %v1383_v14, %v1817_v32 }
 0x170   :  { %v12304_v9 = vmax.f32 %v2917_v46, %v3091_v38  ;;  %v2071_v53 = vpop.permute.xlu0 %2070  ;;  %v2790_v29 = vpop.f32.mrf.mxu1  ;;  %v3108_v25 = vmax.f32 %v16659_v52, %v3092_v6  ;;  %v3876_v14 = vmul.f32 %v9615_v17, %v3864_v10  ;;  %v16660_v32 = vrot.slane %v12214_v51, 6 }
 0x171   :  { %v16400_v21 = vmax.f32 %v12302_v62, 0.0  ;;  %v2292_v31 = vsel %vm2255_vm8, %v2227_v40, %v2071_v53  ;;  %v2791_v4 = vadd.f32 %v12001_v24, %v2790_v29 }
 0x172   :  { %v3557_v46 = vrot.slane %v12304_v9, 6  ;;  %10203 = vmatprep.mubr.msk.f32.mxu0 %vm2327_vm9, %v2292_v31  ;;  %4013 = vrot.lane.b32.xlu1 %v3108_v25, %s10515_s20  ;;  %v3749_v2 = vrot.slane %v3108_v25, 2  ;;  %v3556_v57 = vrot.slane %v3108_v25, 6  ;;  %v2073_v6 = vpop.permute.xlu1 %2072 }
 0x173   :  { %v2949_v38 = vmax.f32 %v2791_v4, 0.0  ;;  %4015 = vrot.lane.b32.xlu0 %v12304_v9, %s10515_s20  ;;  %v2293_v30 = vsel %vm2255_vm8, %v2228_v44, %v2073_v6  ;;  %v3014_v29 = vrot.slane %v16400_v21, 1  ;;  %v16662_v4 = vmax.f32 %v12196_v49, 0.0 }
 0x174   :  { %v3863_v40 = vsel %vm3806_vm14, %v3748_v60, %v3749_v2  ;;  %v12327_v53 = vsel %vm3613_vm15, %v16660_v32, %v3556_v57  ;;  %10204 = vmatmul.mubr.msk.f32.gmra.mxu0 %vm2327_vm9, %v2293_v30  ;;  %v12334_v25 = vsel %vm3613_vm15, %v3556_v57, %v3557_v46  ;;  %v3750_v32 = vrot.slane %v12304_v9, 2 }
 0x175   :  { %v3013_v52 = vrot.slane %v2949_v38, 1  ;;  %vm3366_vm9 = vcmp.lt.s32.totalorder %v10708_v0, 14 }
 0x176   :  { %v10166_v17 = vpop.f32.mrf.mxu0  ;;  %4265 = vrot.lane.b32.xlu1 %v3876_v14, %s10517_s11 }
 0x177   :  { %v3059_v51 = vsel %vm1549_vm0, %v3013_v52, %v3014_v29  ;;  %v3060_v60 = vsel %vm1549_vm0, %v12242_v12, %v3013_v52  ;;  %v2646_v10 = vadd.f32 %v10166_v17, %v12001_v24  ;;  %4267 = vrot.lane.b32.xlu0 %v3863_v40, %s10517_s11 }
 0x178   :  { %v12344_v44 = vmax.f32 %v2949_v38, %v3059_v51  ;;  %v2640_v31 = vpop.f32.mrf.mxu0  ;;  %v12348_v57 = vmax.f32 %v16662_v4, %v3060_v60  ;;  %v16664_v51 = vmax.f32 %v12266_v48, 0.0  ;;  %v3862_v4 = vsel %vm3806_vm14, %v3749_v2, %v3750_v32 }
 0x179   :  { %v2920_v6 = vmax.f32 %v2646_v10, 0.0  ;;  %v2641_v30 = vadd.f32 %v12001_v24, %v2640_v31  ;;  %v9616_v31 = vsel %vm3364_vm7, 1.0, %v16577_v3 }
 0x17a   :  { %16661 = vst [vmem:[#allocation68_spill] sm:$0xff] %v12344_v44  ;;  %16663 = vst [vmem:[#allocation69_spill] sm:$0xff] %v12348_v57 }
 0x17b   :  { %v2919_v14 = vmax.f32 %v2641_v30, 0.0  ;;  %v2984_v21 = vrot.slane %v2920_v6, 1 }
 0x17d   :  { %v2983_v19 = vrot.slane %v2919_v14, 1 }
 0x17e   :  { %v10214_v12 = vpop.f32.mrf.mxu1 }
 0x17f   :  { %v3089_v38 = vsel %vm1549_vm0, %v2983_v19, %v2984_v21  ;;  %v3090_v40 = vsel %vm1549_vm0, %v2982_v43, %v2983_v19  ;;  %v12358_v49 = vadd.f32 %v10214_v12, %v12001_v24  ;;  %v3878_v12 = vmul.f32 %v9616_v31, %v3862_v4 }
 0x180   :  { %v3111_v52 = vmax.f32 %v2919_v14, %v3089_v38  ;;  %v2800_v17 = vpop.f32.mrf.mxu1  ;;  %v3110_v60 = vmax.f32 %v16664_v51, %v3090_v40 }
 0x181   :  { %v2952_v9 = vmax.f32 %v12358_v49, 0.0  ;;  %v2801_v10 = vadd.f32 %v12001_v24, %v2800_v17 }
 0x182   :  { %v3559_v30 = vrot.slane %v3111_v52, 6  ;;  %4017 = vrot.lane.b32.xlu1 %v3110_v60, %s10515_s20  ;;  %4019 = vrot.lane.b32.xlu0 %v3111_v52, %s10515_s20  ;;  %v3751_v19 = vrot.slane %v3110_v60, 2  ;;  %v3558_v43 = vrot.slane %v3110_v60, 6  ;;  %v16665_v60 = vmax.f32 %v12302_v62, 0.0 }
 0x183   :  { %v2951_v14 = vmax.f32 %v2801_v10, 0.0  ;;  %v3016_v2 = vrot.slane %v2952_v9, 1 }
 0x184   :  { %v3861_v48 = vsel %vm3806_vm14, %v3750_v32, %v3751_v19  ;;  %v12373_v38 = vsel %vm3613_vm15, %v3557_v46, %v3558_v43  ;;  %v12377_v40 = vsel %vm3613_vm15, %v3558_v43, %v3559_v30 }
 0x185   :  { %v3015_v49 = vrot.slane %v2951_v14, 1 }
 0x186   :  { %v10169_v17 = vpop.f32.mrf.mxu0  ;;  %4269 = vrot.lane.b32.xlu1 %v3878_v12, %s10517_s11  ;;  %4271 = vrot.lane.b32.xlu0 %v3861_v48, %s10517_s11  ;;  %v3752_v48 = vrot.slane %v3111_v52, 2 }
 0x187   :  { %v3057_v51 = vsel %vm1549_vm0, %v3015_v49, %v3016_v2  ;;  %v3058_v32 = vsel %vm1549_vm0, %v3014_v29, %v3015_v49  ;;  %v2656_v46 = vadd.f32 %v10169_v17, %v12001_v24 }
 0x188   :  { %v12388_v10 = vmax.f32 %v16665_v60, %v3058_v32  ;;  %v12390_v31 = vmax.f32 %v2951_v14, %v3057_v51  ;;  %v2650_v4 = vpop.f32.mrf.mxu0  ;;  %v3860_v60 = vsel %vm3806_vm14, %v3751_v19, %v3752_v48 }
 0x189   :  { %v2922_v43 = vmax.f32 %v2656_v46, 0.0  ;;  %v2651_v12 = vadd.f32 %v12001_v24, %v2650_v4  ;;  %v9617_v46 = vsel %vm3366_vm9, 1.0, %v16577_v3 }
 0x18a   :  { %16666 = vst [vmem:[#allocation70_spill] sm:$0xff] %v12388_v10  ;;  %16667 = vst [vmem:[#allocation71_spill] sm:$0xff] %v12390_v31 }
 0x18b   :  { %v2921_v35 = vmax.f32 %v2651_v12, 0.0  ;;  %v2986_v39 = vrot.slane %v2922_v43, 1 }
 0x18d   :  { %v2985_v58 = vrot.slane %v2921_v35, 1 }
 0x18e   :  { %v10217_v27 = vpop.f32.mrf.mxu1 }
 0x18f   :  { %v3087_v29 = vsel %vm1549_vm0, %v2985_v58, %v2986_v39  ;;  %v3088_v62 = vsel %vm1549_vm0, %v2984_v21, %v2985_v58  ;;  %v12399_v14 = vadd.f32 %v10217_v27, %v12001_v24 }
 0x190   :  { %v3113_v49 = vmax.f32 %v2921_v35, %v3087_v29  ;;  %v2810_v17 = vpop.f32.mrf.mxu1  ;;  %v3112_v51 = vmax.f32 %v2920_v6, %v3088_v62  ;;  %v3880_v35 = vmul.f32 %v9617_v46, %v3860_v60 }
 0x191   :  { %v16410_v32 = vmax.f32 %v12399_v14, 0.0  ;;  %v2811_v52 = vadd.f32 %v12001_v24, %v2810_v17 }
 0x192   :  { %v3561_v4 = vrot.slane %v3113_v49, 6  ;;  %4021 = vrot.lane.b32.xlu1 %v3112_v51, %s10515_s20  ;;  %4023 = vrot.lane.b32.xlu0 %v3113_v49, %s10515_s20  ;;  %v3753_v58 = vrot.slane %v3112_v51, 2  ;;  %v3560_v27 = vrot.slane %v3112_v51, 6 }
 0x193   :  { %v2953_v21 = vmax.f32 %v2811_v52, 0.0  ;;  %v3018_v19 = vrot.slane %v16410_v32, 1 }
 0x194   :  { %v3859_v6 = vsel %vm3806_vm14, %v3752_v48, %v3753_v58  ;;  %v12412_v12 = vsel %vm3613_vm15, %v3559_v30, %v3560_v27  ;;  %v12416_v29 = vsel %vm3613_vm15, %v3560_v27, %v3561_v4 }
 0x195   :  { %16668 = vst [vmem:[#allocation72_spill] sm:$0xff] %v12412_v12  ;;  %v3017_v62 = vrot.slane %v2953_v21, 1 }
 0x196   :  { %v10172_v17 = vpop.f32.mrf.mxu0  ;;  %4273 = vrot.lane.b32.xlu1 %v3880_v35, %s10517_s11  ;;  %4275 = vrot.lane.b32.xlu0 %v3859_v6, %s10517_s11  ;;  %v4578_v6 = vld [vmem:[%s16296_s1 + $0x28] sm:$0xff] }
 0x197   :  { %v3055_v48 = vsel %vm1549_vm0, %v3017_v62, %v3018_v19  ;;  %v3056_v30 = vsel %vm1549_vm0, %v3016_v2, %v3017_v62  ;;  %v12427_v51 = vadd.f32 %v10172_v17, %v12001_v24  ;;  %10245 = vmatprep.subr.mxu1 %v4578_v6  ;;  %v3754_v2 = vrot.slane %v3113_v49, 2 }
 0x198   :  { %v12429_v52 = vmax.f32 %v2952_v9, %v3056_v30  ;;  %v12431_v46 = vmax.f32 %v2953_v21, %v3055_v48  ;;  %v2660_v60 = vpop.f32.mrf.mxu0  ;;  %10246 = vmatpush3.msra.mxu1 %v4578_v6  ;;  %v16671_v9 = vld [vmem:[#allocation9_spill] sm:$0xff] }
 0x199   :  { %v2924_v27 = vmax.f32 %v12427_v51, 0.0  ;;  %v2661_v35 = vadd.f32 %v12001_v24, %v2660_v60  ;;  %vm3368_vm12 = vcmp.lt.s32.totalorder %v16671_v9, 14  ;;  %v3858_v9 = vsel %vm3806_vm14, %v3753_v58, %v3754_v2  ;;  %10247 = vmatprep.subr.mxu1 %v4577_v28 }
 0x19a   :  { %16669 = vst [vmem:[#allocation73_spill] sm:$0xff] %v12429_v52  ;;  %16670 = vst [vmem:[#allocation74_spill] sm:$0xff] %v12431_v46  ;;  %v9618_v1 = vsel %vm3368_vm12, 1.0, %v16577_v3  ;;  %10248 = vmatpush3.msra.mxu1 %v4577_v28 }
 0x19b   :  { %v2923_v32 = vmax.f32 %v2661_v35, 0.0  ;;  %v2988_v62 = vrot.slane %v2924_v27, 1  ;;  %10249 = vmatprep.subr.mxu1 %v4576_v61 }
 0x19c   :  { %10250 = vmatpush3.msra.mxu1 %v4576_v61 }
 0x19d   :  { %v2987_v17 = vrot.slane %v2923_v32, 1 }
 0x19e   :  { %v10220_v0 = vpop.f32.mrf.mxu1 }
 0x19f   :  { %v3085_v21 = vsel %vm1549_vm0, %v2987_v17, %v2988_v62  ;;  %v3086_v48 = vsel %vm1549_vm0, %v2986_v39, %v2987_v17  ;;  %v12444_v30 = vadd.f32 %v10220_v0, %v12001_v24 }
 0x1a0   :  { %v3115_v51 = vmax.f32 %v2923_v32, %v3085_v21  ;;  %v2820_v60 = vpop.f32.mrf.mxu1  ;;  %v3114_v35 = vmax.f32 %v2922_v43, %v3086_v48  ;;  %v3882_v32 = vmul.f32 %v9618_v1, %v3858_v9  ;;  %v16674_v9 = vmax.f32 %v12399_v14, 0.0 }
 0x1a1   :  { %v16419_v6 = vmax.f32 %v12444_v30, 0.0  ;;  %v2821_v49 = vadd.f32 %v12001_v24, %v2820_v60 }
 0x1a2   :  { %v3563_v16 = vrot.slane %v3115_v51, 6  ;;  %4025 = vrot.lane.b32.xlu1 %v3114_v35, %s10515_s20  ;;  %4027 = vrot.lane.b32.xlu0 %v3115_v51, %s10515_s20  ;;  %v3755_v39 = vrot.slane %v3114_v35, 2  ;;  %v3562_v0 = vrot.slane %v3114_v35, 6 }
 0x1a3   :  { %v2955_v17 = vmax.f32 %v2821_v49, 0.0  ;;  %v3020_v58 = vrot.slane %v16419_v6, 1 }
 0x1a4   :  { %v3857_v43 = vsel %vm3806_vm14, %v3754_v2, %v3755_v39  ;;  %v12457_v21 = vsel %vm3613_vm15, %v3561_v4, %v3562_v0  ;;  %v12461_v48 = vsel %vm3613_vm15, %v3562_v0, %v3563_v16 }
 0x1a5   :  { %16672 = vst [vmem:[#allocation75_spill] sm:$0xff] %v12457_v21  ;;  %16673 = vst [vmem:[#allocation76_spill] sm:$0xff] %v12461_v48  ;;  %v3019_v60 = vrot.slane %v2955_v17, 1  ;;  %v16738_v48 = vld [vmem:[#allocation39_spill] sm:$0xff] }
 0x1a6   :  { %v10175_v15 = vpop.f32.mrf.mxu0  ;;  %4277 = vrot.lane.b32.xlu1 %v3882_v32, %s10517_s11  ;;  %4279 = vrot.lane.b32.xlu0 %v3857_v43, %s10517_s11 }
 0x1a7   :  { %v3053_v1 = vsel %vm1549_vm0, %v3019_v60, %v3020_v58  ;;  %v3054_v4 = vsel %vm1549_vm0, %v3018_v19, %v3019_v60  ;;  %v12472_v2 = vadd.f32 %v10175_v15, %v12001_v24  ;;  %v3756_v19 = vrot.slane %v3115_v51, 2 }
 0x1a8   :  { %v12476_v35 = vmax.f32 %v16674_v9, %v3054_v4  ;;  %v12478_v49 = vmax.f32 %v2955_v17, %v3053_v1  ;;  %v2670_v0 = vpop.f32.mrf.mxu0  ;;  %v16677_v4 = vld [vmem:[#allocation11_spill] sm:$0xff] }
 0x1a9   :  { %v2926_v32 = vmax.f32 %v12472_v2, 0.0  ;;  %v2671_v43 = vadd.f32 %v12001_v24, %v2670_v0  ;;  %vm3370_vm13 = vcmp.lt.s32.totalorder %v16677_v4, 14  ;;  %v3856_v4 = vsel %vm3806_vm14, %v3755_v39, %v3756_v19 }
 0x1aa   :  { %16675 = vst [vmem:[#allocation77_spill] sm:$0xff] %v12476_v35  ;;  %16676 = vst [vmem:[#allocation78_spill] sm:$0xff] %v12478_v49  ;;  %v9619_v28 = vsel %vm3370_vm13, 1.0, %v16577_v3  ;;  %v16689_v49 = vld [vmem:[#allocation15_spill] sm:$0xff] }
 0x1ab   :  { %v2925_v6 = vmax.f32 %v2671_v43, 0.0  ;;  %v2990_v15 = vrot.slane %v2926_v32, 1  ;;  %vm3374_vm2 = vcmp.lt.s32.totalorder %v16689_v49, 14  ;;  %v16694_v35 = vld [vmem:[#allocation19_spill] sm:$0xff] }
 0x1ac   :  { %vm3376_vm4 = vcmp.lt.s32.totalorder %v16694_v35, 14 }
 0x1ad   :  { %v2989_v60 = vrot.slane %v2925_v6, 1 }
 0x1ae   :  { %v10223_v14 = vpop.f32.mrf.mxu1 }
 0x1af   :  { %v3083_v17 = vsel %vm1549_vm0, %v2989_v60, %v2990_v15  ;;  %v3084_v1 = vsel %vm1549_vm0, %v2988_v62, %v2989_v60  ;;  %v12491_v2 = vadd.f32 %v10223_v14, %v12001_v24  ;;  %v3884_v14 = vmul.f32 %v9619_v28, %v3856_v4 }
 0x1b0   :  { %v3117_v9 = vmax.f32 %v2925_v6, %v3083_v17  ;;  %v2830_v0 = vpop.f32.mrf.mxu1  ;;  %v3116_v43 = vmax.f32 %v2924_v27, %v3084_v1  ;;  %v16680_v4 = vmax.f32 %v12444_v30, 0.0 }
 0x1b1   :  { %v16428_v51 = vmax.f32 %v12491_v2, 0.0  ;;  %v2831_v50 = vadd.f32 %v12001_v24, %v2830_v0 }
 0x1b2   :  { %v3565_v62 = vrot.slane %v3117_v9, 6  ;;  %4029 = vrot.lane.b32.xlu1 %v3116_v43, %s10515_s20  ;;  %4031 = vrot.lane.b32.xlu0 %v3117_v9, %s10515_s20  ;;  %v3757_v6 = vrot.slane %v3116_v43, 2  ;;  %v3564_v27 = vrot.slane %v3116_v43, 6 }
 0x1b3   :  { %v2957_v60 = vmax.f32 %v2831_v50, 0.0  ;;  %v3022_v0 = vrot.slane %v16428_v51, 1 }
 0x1b4   :  { %v3855_v17 = vsel %vm3806_vm14, %v3756_v19, %v3757_v6  ;;  %v12507_v39 = vsel %vm3613_vm15, %v3563_v16, %v3564_v27  ;;  %v12511_v1 = vsel %vm3613_vm15, %v3564_v27, %v3565_v62 }
 0x1b5   :  { %16678 = vst [vmem:[#allocation79_spill] sm:$0xff] %v12507_v39  ;;  %16679 = vst [vmem:[#allocation80_spill] sm:$0xff] %v12511_v1  ;;  %v3021_v26 = vrot.slane %v2957_v60, 1  ;;  %v16726_v1 = vld [vmem:[#allocation16_spill] sm:$0xff] }
 0x1b6   :  { %v10178_v43 = vpop.f32.mrf.mxu0  ;;  %4281 = vrot.lane.b32.xlu1 %v3884_v14, %s10517_s11  ;;  %4283 = vrot.lane.b32.xlu0 %v3855_v17, %s10517_s11  ;;  %v3758_v17 = vrot.slane %v3117_v9, 2  ;;  %vm3165_vm9 = vcmp.ge.s32.totalorder %v16726_v1, 2 }
 0x1b7   :  { %v3051_v50 = vsel %vm1549_vm0, %v3021_v26, %v3022_v0  ;;  %v3052_v16 = vsel %vm1549_vm0, %v3020_v58, %v3021_v26  ;;  %v2686_v19 = vadd.f32 %v10178_v43, %v12001_v24 }
 0x1b8   :  { %v12524_v61 = vmax.f32 %v16680_v4, %v3052_v16  ;;  %v12526_v28 = vmax.f32 %v2957_v60, %v3051_v50  ;;  %v2680_v27 = vpop.f32.mrf.mxu0  ;;  %v3854_v4 = vsel %vm3806_vm14, %v3757_v6, %v3758_v17 }
 0x1b9   :  { %v2928_v51 = vmax.f32 %v2686_v19, 0.0  ;;  %v2681_v14 = vadd.f32 %v12001_v24, %v2680_v27  ;;  %v9620_v19 = vsel %vm3372_vm1, 1.0, %v16577_v3 }
 0x1ba   :  { %16681 = vst [vmem:[#allocation81_spill] sm:$0xff] %v12524_v61  ;;  %16682 = vst [vmem:[#allocation82_spill] sm:$0xff] %v12526_v28 }
 0x1bb   :  { %v2927_v59 = vmax.f32 %v2681_v14, 0.0  ;;  %v2992_v41 = vrot.slane %v2928_v51, 1 }
 0x1bd   :  { %v2991_v8 = vrot.slane %v2927_v59, 1 }
 0x1be   :  { %v10226_v18 = vpop.f32.mrf.mxu1 }
 0x1bf   :  { %v3081_v26 = vsel %vm1549_vm0, %v2991_v8, %v2992_v41  ;;  %v3082_v30 = vsel %vm1549_vm0, %v2990_v15, %v2991_v8  ;;  %v12535_v58 = vadd.f32 %v10226_v18, %v12001_v24 }
 0x1c0   :  { %v3119_v60 = vmax.f32 %v2927_v59, %v3081_v26  ;;  %v2840_v43 = vpop.f32.mrf.mxu1  ;;  %v3118_v50 = vmax.f32 %v2926_v32, %v3082_v30  ;;  %v3886_v59 = vmul.f32 %v9620_v19, %v3854_v4 }
 0x1c1   :  { %v2960_v16 = vmax.f32 %v12535_v58, 0.0  ;;  %v2841_v9 = vadd.f32 %v12001_v24, %v2840_v43 }
 0x1c2   :  { %v3567_v27 = vrot.slane %v3119_v60, 6  ;;  %4033 = vrot.lane.b32.xlu1 %v3118_v50, %s10515_s20  ;;  %4035 = vrot.lane.b32.xlu0 %v3119_v60, %s10515_s20  ;;  %v3759_v8 = vrot.slane %v3118_v50, 2  ;;  %v3566_v18 = vrot.slane %v3118_v50, 6 }
 0x1c3   :  { %v2959_v15 = vmax.f32 %v2841_v9, 0.0  ;;  %v3024_v14 = vrot.slane %v2960_v16, 1 }
 0x1c4   :  { %v3853_v32 = vsel %vm3806_vm14, %v3758_v17, %v3759_v8  ;;  %v12548_v30 = vsel %vm3613_vm15, %v3565_v62, %v3566_v18  ;;  %v12552_v6 = vsel %vm3613_vm15, %v3566_v18, %v3567_v27  ;;  %v16686_v62 = vmax.f32 %v12491_v2, 0.0 }
 0x1c5   :  { %v3023_v26 = vrot.slane %v2959_v15, 1  ;;  %16684 = vst [vmem:[#allocation83_spill] sm:$0xff] %v12548_v30  ;;  %16685 = vst [vmem:[#allocation84_spill] sm:$0xff] %v12552_v6 }
 0x1c6   :  { %v10181_v58 = vpop.f32.mrf.mxu0  ;;  %4285 = vrot.lane.b32.xlu1 %v3886_v59, %s10517_s11  ;;  %4287 = vrot.lane.b32.xlu0 %v3853_v32, %s10517_s11  ;;  %v3760_v32 = vrot.slane %v3119_v60, 2 }
 0x1c7   :  { %v3049_v43 = vsel %vm1549_vm0, %v3023_v26, %v3024_v14  ;;  %v3050_v17 = vsel %vm1549_vm0, %v3022_v0, %v3023_v26  ;;  %v2696_v50 = vadd.f32 %v10181_v58, %v12001_v24 }
 0x1c8   :  { %v12563_v9 = vmax.f32 %v16686_v62, %v3050_v17  ;;  %v12565_v19 = vmax.f32 %v2959_v15, %v3049_v43  ;;  %v2690_v4 = vpop.f32.mrf.mxu0  ;;  %v3852_v62 = vsel %vm3806_vm14, %v3759_v8, %v3760_v32 }
 0x1c9   :  { %v2930_v18 = vmax.f32 %v2696_v50, 0.0  ;;  %v2691_v59 = vadd.f32 %v12001_v24, %v2690_v4  ;;  %v9621_v50 = vsel %vm3374_vm2, 1.0, %v16577_v3 }
 0x1ca   :  { %16687 = vst [vmem:[#allocation85_spill] sm:$0xff] %v12563_v9  ;;  %16688 = vst [vmem:[#allocation86_spill] sm:$0xff] %v12565_v19 }
 0x1cb   :  { %v2929_v54 = vmax.f32 %v2691_v59, 0.0  ;;  %v2994_v28 = vrot.slane %v2930_v18, 1 }
 0x1cd   :  { %v2993_v37 = vrot.slane %v2929_v54, 1 }
 0x1ce   :  { %v10229_v61 = vpop.f32.mrf.mxu1 }
 0x1cf   :  { %v3079_v0 = vsel %vm1549_vm0, %v2993_v37, %v2994_v28  ;;  %v3080_v2 = vsel %vm1549_vm0, %v2992_v41, %v2993_v37  ;;  %v12574_v15 = vadd.f32 %v10229_v61, %v12001_v24 }
 0x1d0   :  { %v3121_v26 = vmax.f32 %v2929_v54, %v3079_v0  ;;  %v2850_v58 = vpop.f32.mrf.mxu1  ;;  %v3120_v43 = vmax.f32 %v2928_v51, %v3080_v2  ;;  %v3888_v54 = vmul.f32 %v9621_v50, %v3852_v62 }
 0x1d1   :  { %v16444_v17 = vmax.f32 %v12574_v15, 0.0  ;;  %v2851_v60 = vadd.f32 %v12001_v24, %v2850_v58 }
 0x1d2   :  { %v3569_v4 = vrot.slane %v3121_v26, 6  ;;  %4037 = vrot.lane.b32.xlu1 %v3120_v43, %s10515_s20  ;;  %4039 = vrot.lane.b32.xlu0 %v3121_v26, %s10515_s20  ;;  %v3761_v37 = vrot.slane %v3120_v43, 2  ;;  %v3568_v41 = vrot.slane %v3120_v43, 6 }
 0x1d3   :  { %v2961_v61 = vmax.f32 %v2851_v60, 0.0  ;;  %v3026_v8 = vrot.slane %v16444_v17, 1 }
 0x1d4   :  { %v3851_v51 = vsel %vm3806_vm14, %v3760_v32, %v3761_v37  ;;  %v12587_v59 = vsel %vm3613_vm15, %v3567_v27, %v3568_v41  ;;  %v12591_v0 = vsel %vm3613_vm15, %v3568_v41, %v3569_v4 }
 0x1d5   :  { %16690 = vst [vmem:[#allocation87_spill] sm:$0xff] %v12587_v59  ;;  %16691 = vst [vmem:[#allocation88_spill] sm:$0xff] %v12591_v0  ;;  %v3025_v2 = vrot.slane %v2961_v61, 1 }
 0x1d6   :  { %v10184_v58 = vpop.f32.mrf.mxu0  ;;  %4289 = vrot.lane.b32.xlu1 %v3888_v54, %s10517_s11  ;;  %4291 = vrot.lane.b32.xlu0 %v3851_v51, %s10517_s11  ;;  %v3762_v54 = vrot.slane %v3121_v26, 2 }
 0x1d7   :  { %v3047_v32 = vsel %vm1549_vm0, %v3025_v2, %v3026_v8  ;;  %v3048_v27 = vsel %vm1549_vm0, %v3024_v14, %v3025_v2  ;;  %v2706_v43 = vadd.f32 %v10184_v58, %v12001_v24 }
 0x1d8   :  { %v12602_v60 = vmax.f32 %v2960_v16, %v3048_v27  ;;  %v12604_v50 = vmax.f32 %v2961_v61, %v3047_v32  ;;  %v2700_v62 = vpop.f32.mrf.mxu0  ;;  %v12615_v61 = vld [vmem:[%s16296_s1 + $0x10] ss:$0 sm:$0xff]  ;;  %v9622_v27 = vsel %vm3376_vm4, 1.0, %v16577_v3 }
 0x1d9   :  { %v2932_v41 = vmax.f32 %v2706_v43, 0.0  ;;  %v2701_v17 = vadd.f32 %v12001_v24, %v2700_v62 }
 0x1da   :  { %16692 = vst [vmem:[#allocation89_spill] sm:$0xff] %v12602_v60  ;;  %16693 = vst [vmem:[#allocation90_spill] sm:$0xff] %v12604_v50 }
 0x1db   :  { %v2931_v49 = vmax.f32 %v2701_v17, 0.0  ;;  %v2996_v19 = vrot.slane %v2932_v41, 1 }
 0x1dd   :  { %v2995_v51 = vrot.slane %v2931_v49, 1 }
 0x1de   :  { %v10232_v9 = vpop.f32.mrf.mxu1 }
 0x1df   :  { %v3077_v14 = vsel %vm1549_vm0, %v2995_v51, %v2996_v19  ;;  %v3078_v16 = vsel %vm1549_vm0, %v2994_v28, %v2995_v51  ;;  %v12618_v24 = vadd.f32 %v12615_v61, %v10232_v9  ;;  %v3850_v28 = vsel %vm3806_vm14, %v3761_v37, %v3762_v54  ;;  %v12637_v37 = vpop.permute.xlu0 %3999 }
 0x1e0   :  { %v3123_v26 = vmax.f32 %v2931_v49, %v3077_v14  ;;  %v2860_v17 = vpop.f32.mrf.mxu1  ;;  %v3122_v2 = vmax.f32 %v2930_v18, %v3078_v16  ;;  %v3890_v49 = vmul.f32 %v9622_v27, %v3850_v28  ;;  %v16697_v27 = vmax.f32 %v12574_v15, 0.0 }
 0x1e1   :  { %v16448_v58 = vmax.f32 %v12618_v24, 0.0  ;;  %v2861_v32 = vadd.f32 %v12615_v61, %v2860_v17 }
 0x1e2   :  { %v3571_v43 = vrot.slane %v3123_v26, 6  ;;  %4041 = vrot.lane.b32.xlu1 %v3122_v2, %s10515_s20  ;;  %4043 = vrot.lane.b32.xlu0 %v3123_v26, %s10515_s20  ;;  %v3763_v62 = vrot.slane %v3122_v2, 2  ;;  %v3570_v9 = vrot.slane %v3122_v2, 6 }
 0x1e3   :  { %v2963_v51 = vmax.f32 %v2861_v32, 0.0  ;;  %v3028_v17 = vrot.slane %v16448_v58, 1  ;;  %v12658_v50 = vpop.permute.xlu0 %4003 }
 0x1e4   :  { %v3849_v18 = vsel %vm3806_vm14, %v3762_v54, %v3763_v62  ;;  %v12631_v14 = vsel %vm3613_vm15, %v3569_v4, %v3570_v9  ;;  %v12635_v16 = vsel %vm3613_vm15, %v3570_v9, %v3571_v43 }
 0x1e5   :  { %16695 = vst [vmem:[#allocation91_spill] sm:$0xff] %v12631_v14  ;;  %16696 = vst [vmem:[#allocation92_spill] sm:$0xff] %v12635_v16  ;;  %v3027_v35 = vrot.slane %v2963_v51, 1  ;;  %v3764_v14 = vrot.slane %v3123_v26, 2 }
 0x1e6   :  { %v10187_v2 = vpop.f32.mrf.mxu0  ;;  %4293 = vrot.lane.b32.xlu1 %v3890_v49, %s10517_s11  ;;  %4295 = vrot.lane.b32.xlu0 %v3849_v18, %s10517_s11 }
 0x1e7   :  { %v3045_v54 = vsel %vm1549_vm0, %v3027_v35, %v3028_v17  ;;  %v3046_v4 = vsel %vm1549_vm0, %v3026_v8, %v3027_v35  ;;  %v12648_v32 = vadd.f32 %v12615_v61, %v10187_v2  ;;  %v16700_v2 = vld [vmem:[#allocation23_spill] sm:$0xff] }
 0x1e8   :  { %v12652_v28 = vmax.f32 %v16697_v27, %v3046_v4  ;;  %v12654_v9 = vmax.f32 %v2963_v51, %v3045_v54  ;;  %v2710_v58 = vpop.f32.mrf.mxu0  ;;  %vm3378_vm6 = vcmp.lt.s32.totalorder %v16700_v2, 14  ;;  %v12670_v27 = vpop.permute.xlu0 %4255 }
 0x1e9   :  { %v2934_v49 = vmax.f32 %v12648_v32, 0.0  ;;  %v2711_v18 = vadd.f32 %v12615_v61, %v2710_v58  ;;  %v9623_v2 = vsel %vm3378_vm6, 1.0, %v16577_v3  ;;  %vm4511_vm6 = vcmask 130048  }
 0x1ea   :  { %16698 = vst [vmem:[#allocation93_spill] sm:$0xff] %v12652_v28  ;;  %16699 = vst [vmem:[#allocation94_spill] sm:$0xff] %v12654_v9  ;;  %v3848_v9 = vsel %vm3806_vm14, %v3763_v62, %v3764_v14  ;;  %v12677_v28 = vpop.permute.xlu1 %4001 }
 0x1eb   :  { %v2933_v60 = vmax.f32 %v2711_v18, 0.0  ;;  %v2998_v16 = vrot.slane %v2934_v49, 1 }
 0x1ed   :  { %v2997_v35 = vrot.slane %v2933_v60, 1 }
 0x1ee   :  { %v10235_v8 = vpop.f32.mrf.mxu1  ;;  %v12695_v63 = vpop.permute.xlu1 %4005 }
 0x1ef   :  { %v3075_v15 = vsel %vm1549_vm0, %v2997_v35, %v2998_v16  ;;  %v3076_v51 = vsel %vm1549_vm0, %v2996_v19, %v2997_v35  ;;  %v12666_v54 = vadd.f32 %v12615_v61, %v10235_v8  ;;  %v3892_v8 = vmul.f32 %v9623_v2, %v3848_v9 }
 0x1f0   :  { %v12668_v4 = vmax.f32 %v2933_v60, %v3075_v15  ;;  %v2870_v58 = vpop.f32.mrf.mxu1  ;;  %v3124_v32 = vmax.f32 %v2932_v41, %v3076_v51 }
 0x1f1   :  { %v16456_v26 = vmax.f32 %v12666_v54, 0.0  ;;  %v2871_v18 = vadd.f32 %v12615_v61, %v2870_v58 }
 0x1f2   :  { %v3573_v19 = vrot.slane %v12668_v4, 6  ;;  %4045 = vrot.lane.b32.xlu1 %v3124_v32, %s10515_s20  ;;  %4047 = vrot.lane.b32.xlu0 %v12668_v4, %s10515_s20  ;;  %v3765_v60 = vrot.slane %v3124_v32, 2  ;;  %v3572_v41 = vrot.slane %v3124_v32, 6  ;;  %v12716_v52 = vpop.permute.xlu1 %4257 }
 0x1f3   :  { %v2965_v35 = vmax.f32 %v2871_v18, 0.0  ;;  %v3030_v58 = vrot.slane %v16456_v26, 1  ;;  %v16703_v18 = vmax.f32 %v12618_v24, 0.0  ;;  %v16706_v24 = vld [vmem:[#allocation27_spill] sm:$0xff] }
 0x1f4   :  { %v3847_v15 = vsel %vm3806_vm14, %v3764_v14, %v3765_v60  ;;  %v12687_v51 = vsel %vm3613_vm15, %v3571_v43, %v3572_v41  ;;  %v12691_v62 = vsel %vm3613_vm15, %v3572_v41, %v3573_v19  ;;  %v12699_v14 = vpop.permute.xlu0 %4007  ;;  %vm3380_vm10 = vcmp.lt.s32.totalorder %v16706_v24, 14 }
 0x1f5   :  { %16701 = vst [vmem:[#allocation95_spill] sm:$0xff] %v12687_v51  ;;  %16702 = vst [vmem:[#allocation96_spill] sm:$0xff] %v12691_v62  ;;  %v3029_v46 = vrot.slane %v2965_v35, 1 }
 0x1f6   :  { %v10190_v32 = vpop.f32.mrf.mxu0  ;;  %4297 = vrot.lane.b32.xlu1 %v3892_v8, %s10517_s11  ;;  %4299 = vrot.lane.b32.xlu0 %v3847_v15, %s10517_s11 }
 0x1f7   :  { %v3043_v43 = vsel %vm1549_vm0, %v3029_v46, %v3030_v58  ;;  %v3044_v9 = vsel %vm1549_vm0, %v3028_v17, %v3029_v46  ;;  %v12706_v2 = vadd.f32 %v12615_v61, %v10190_v32  ;;  %v3766_v46 = vrot.slane %v12668_v4, 2 }
 0x1f8   :  { %v12710_v41 = vmax.f32 %v16703_v18, %v3044_v9  ;;  %v12712_v26 = vmax.f32 %v2965_v35, %v3043_v43  ;;  %v2720_v8 = vpop.f32.mrf.mxu0  ;;  %v12718_v31 = vpop.permute.xlu0 %4259 }
 0x1f9   :  { %v2936_v15 = vmax.f32 %v12706_v2, 0.0  ;;  %v2721_v51 = vadd.f32 %v12615_v61, %v2720_v8 }
 0x1fa   :  { %16704 = vst [vmem:[#allocation97_spill] sm:$0xff] %v12710_v41  ;;  %16705 = vst [vmem:[#allocation98_spill] sm:$0xff] %v12712_v26  ;;  %v9624_v41 = vsel %vm3380_vm10, 1.0, %v16577_v3 }
 0x1fb   :  { %v2935_v62 = vmax.f32 %v2721_v51, 0.0  ;;  %v3000_v17 = vrot.slane %v2936_v15, 1  ;;  %v12729_v51 = vpop.permute.xlu1 %4009 }
 0x1fc   :  { %v12733_v8 = vpop.permute.xlu0 %4011 }
 0x1fd   :  { %v2999_v32 = vrot.slane %v2935_v62, 1 }
 0x1fe   :  { %v10238_v59 = vpop.f32.mrf.mxu1 }
 0x1ff   :  { %v3073_v35 = vsel %vm1549_vm0, %v2999_v32, %v3000_v17  ;;  %v3074_v43 = vsel %vm1549_vm0, %v2998_v16, %v2999_v32  ;;  %v12727_v9 = vadd.f32 %v12615_v61, %v10238_v59  ;;  %v3846_v16 = vsel %vm3806_vm14, %v3765_v60, %v3766_v46  ;;  %v12756_v44 = vpop.permute.xlu1 %4261 }
 0x200   :  { %v12731_v2 = vmax.f32 %v2935_v62, %v3073_v35  ;;  %v2880_v18 = vpop.f32.mrf.mxu1  ;;  %v3126_v4 = vmax.f32 %v2934_v49, %v3074_v43  ;;  %v3894_v35 = vmul.f32 %v9624_v41, %v3846_v16  ;;  %v12760_v41 = vpop.permute.xlu0 %4263  ;;  %v16709_v16 = vmax.f32 %v12666_v54, 0.0  ;;  %v16712_v54 = vld [vmem:[#allocation31_spill] sm:$0xff] }
 0x201   :  { %v16463_v26 = vmax.f32 %v12727_v9, 0.0  ;;  %v2881_v24 = vadd.f32 %v12615_v61, %v2880_v18  ;;  %vm3382_vm11 = vcmp.lt.s32.totalorder %v16712_v54, 14 }
 0x202   :  { %v3575_v59 = vrot.slane %v12731_v2, 6  ;;  %4049 = vrot.lane.b32.xlu1 %v3126_v4, %s10515_s20  ;;  %4051 = vrot.lane.b32.xlu0 %v12731_v2, %s10515_s20  ;;  %v3767_v62 = vrot.slane %v3126_v4, 2  ;;  %v3574_v49 = vrot.slane %v3126_v4, 6 }
 0x203   :  { %v2967_v32 = vmax.f32 %v2881_v24, 0.0  ;;  %v3032_v0 = vrot.slane %v16463_v26, 1 }
 0x204   :  { %v3845_v43 = vsel %vm3806_vm14, %v3766_v46, %v3767_v62  ;;  %v12748_v18 = vsel %vm3613_vm15, %v3573_v19, %v3574_v49  ;;  %v12752_v60 = vsel %vm3613_vm15, %v3574_v49, %v3575_v59  ;;  %v12779_v45 = vpop.permute.xlu0 %4015 }
 0x205   :  { %16707 = vst [vmem:[#allocation99_spill] sm:$0xff] %v12748_v18  ;;  %16708 = vst [vmem:[#allocation100_spill] sm:$0xff] %v12752_v60  ;;  %v3031_v10 = vrot.slane %v2967_v32, 1  ;;  %v12777_v60 = vpop.permute.xlu1 %4013 }
 0x206   :  { %v10193_v4 = vpop.f32.mrf.mxu0  ;;  %4301 = vrot.lane.b32.xlu1 %v3894_v35, %s10517_s11  ;;  %4303 = vrot.lane.b32.xlu0 %v3845_v43, %s10517_s11 }
 0x207   :  { %v3041_v19 = vsel %vm1549_vm0, %v3031_v10, %v3032_v0  ;;  %v3042_v46 = vsel %vm1549_vm0, %v3030_v58, %v3031_v10  ;;  %v12767_v24 = vadd.f32 %v12615_v61, %v10193_v4  ;;  %v3768_v10 = vrot.slane %v12731_v2, 2 }
 0x208   :  { %v12771_v49 = vmax.f32 %v16709_v16, %v3042_v46  ;;  %v12773_v26 = vmax.f32 %v2967_v32, %v3041_v19  ;;  %v2730_v35 = vpop.f32.mrf.mxu0  ;;  %v12792_v2 = vpop.permute.xlu0 %4267 }
 0x209   :  { %v2938_v43 = vmax.f32 %v12767_v24, 0.0  ;;  %v2731_v18 = vadd.f32 %v12615_v61, %v2730_v35  ;;  %v12790_v24 = vpop.permute.xlu1 %4265  ;;  %v3844_v6 = vsel %vm3806_vm14, %v3767_v62, %v3768_v10 }
 0x20a   :  { %16710 = vst [vmem:[#allocation101_spill] sm:$0xff] %v12771_v49  ;;  %16711 = vst [vmem:[#allocation102_spill] sm:$0xff] %v12773_v26  ;;  %v9625_v49 = vsel %vm3382_vm11, 1.0, %v16577_v3  ;;  %vm4584_vm11 = vcmask 195584  }
 0x20b   :  { %v2937_v30 = vmax.f32 %v2731_v18, 0.0  ;;  %v3002_v58 = vrot.slane %v2938_v43, 1 }
 0x20c   :  { %v12813_v26 = vpop.permute.xlu0 %4019 }
 0x20d   :  { %v3001_v4 = vrot.slane %v2937_v30, 1 }
 0x20e   :  { %v10241_v57 = vpop.f32.mrf.mxu1 }
 0x20f   :  { %v3071_v32 = vsel %vm1549_vm0, %v3001_v4, %v3002_v58  ;;  %v3072_v19 = vsel %vm1549_vm0, %v3000_v17, %v3001_v4  ;;  %v12788_v46 = vadd.f32 %v12615_v61, %v10241_v57 }
 0x210   :  { %v3129_v16 = vmax.f32 %v2937_v30, %v3071_v32  ;;  %v2890_v18 = vpop.f32.mrf.mxu1  ;;  %v3128_v35 = vmax.f32 %v2936_v15, %v3072_v19  ;;  %v12801_v15 = vpop.permute.xlu1 %4017  ;;  %v3896_v32 = vmul.f32 %v9625_v49, %v3844_v6 }
 0x211   :  { %16713 = vst [vmem:[#allocation103_spill] sm:$0xff] %v12788_v46  ;;  %v2891_v54 = vadd.f32 %v12615_v61, %v2890_v18  ;;  %v16716_v11 = vmax.f32 %v12788_v46, 0.0 }
 0x212   :  { %v3577_v17 = vrot.slane %v3129_v16, 6  ;;  %4053 = vrot.lane.b32.xlu1 %v3128_v35, %s10515_s20  ;;  %4055 = vrot.lane.b32.xlu0 %v3129_v16, %s10515_s20  ;;  %v3769_v57 = vrot.slane %v3128_v35, 2  ;;  %v3576_v30 = vrot.slane %v3128_v35, 6 }
 0x213   :  { %v2969_v4 = vmax.f32 %v2891_v54, 0.0  ;;  %v12817_v35 = vrot.slane %v16716_v11, 1 }
 0x214   :  { %v3843_v19 = vsel %vm3806_vm14, %v3768_v10, %v3769_v57  ;;  %v12807_v18 = vsel %vm3613_vm15, %v3575_v59, %v3576_v30  ;;  %v12811_v62 = vsel %vm3613_vm15, %v3576_v30, %v3577_v17  ;;  %v16718_v10 = vmax.f32 %v12727_v9, 0.0 }
 0x215   :  { %16714 = vst [vmem:[#allocation104_spill] sm:$0xff] %v12807_v18  ;;  %16715 = vst [vmem:[#allocation105_spill] sm:$0xff] %v12811_v62  ;;  %v3033_v54 = vrot.slane %v2969_v4, 1  ;;  %v12837_v18 = vpop.permute.xlu1 %4269 }
 0x216   :  { %16717 = vst [vmem:[#allocation106_spill] sm:$0xff] %v12817_v35  ;;  %v10196_v20 = vpop.f32.mrf.mxu0  ;;  %4305 = vrot.lane.b32.xlu1 %v3896_v32, %s10517_s11  ;;  %4307 = vrot.lane.b32.xlu0 %v3843_v19, %s10517_s11 }
 0x217   :  { %v3039_v6 = vsel %vm1549_vm0, %v3033_v54, %v12817_v35  ;;  %v3040_v59 = vsel %vm1549_vm0, %v3032_v0, %v3033_v54  ;;  %v12827_v49 = vadd.f32 %v12615_v61, %v10196_v20  ;;  %v12839_v35 = vpop.permute.xlu0 %4271  ;;  %v3770_v0 = vrot.slane %v3129_v16, 2 }
 0x218   :  { %v12831_v11 = vmax.f32 %v16718_v10, %v3040_v59  ;;  %v12833_v30 = vmax.f32 %v2969_v4, %v3039_v6  ;;  %v2740_v46 = vpop.f32.mrf.mxu0  ;;  %v16721_v6 = vld [vmem:[#allocation35_spill] sm:$0xff] }
 0x219   :  { %v16474_v32 = vmax.f32 %v12827_v49, 0.0  ;;  %v2741_v19 = vadd.f32 %v12615_v61, %v2740_v46  ;;  %v12845_v54 = vpop.permute.xlu1 %4021  ;;  %vm3384_vm7 = vcmp.lt.s32.totalorder %v16721_v6, 14  ;;  %v3842_v6 = vsel %vm3806_vm14, %v3769_v57, %v3770_v0 }
 0x21a   :  { %16719 = vst [vmem:[#allocation107_spill] sm:$0xff] %v12831_v11  ;;  %16720 = vst [vmem:[#allocation108_spill] sm:$0xff] %v12833_v30  ;;  %v9626_v11 = vsel %vm3384_vm7, 1.0, %v16577_v3  ;;  %vm3386_vm7 = vcmp.lt.s32.totalorder %v16738_v48, 14 }
 0x21b   :  { %v2939_v62 = vmax.f32 %v2741_v19, 0.0  ;;  %v12843_v20 = vrot.slane %v16474_v32, 1  ;;  %v12848_v59 = vpop.permute.xlu0 %4023 }
 0x21c   :  { %16722 = vst [vmem:[#allocation109_spill] sm:$0xff] %v12848_v59 }
 0x21d   :  { %v3003_v9 = vrot.slane %v2939_v62, 1 }
 0x21e   :  { %v10244_v4 = vpop.f32.mrf.mxu1 }
 0x21f   :  { %v3069_v46 = vsel %vm1549_vm0, %v3003_v9, %v12843_v20  ;;  %v3070_v10 = vsel %vm1549_vm0, %v3002_v58, %v3003_v9  ;;  %v2906_v16 = vadd.f32 %v12615_v61, %v10244_v4  ;;  %v12872_v9 = vpop.permute.xlu1 %4273  ;;  %v3898_v4 = vmul.f32 %v9626_v11, %v3842_v6 }
 0x220   :  { %v12856_v19 = vmax.f32 %v2939_v62, %v3069_v46  ;;  %v12858_v32 = vmax.f32 %v2938_v43, %v3070_v10 }
 0x221   :  { %v2972_v30 = vmax.f32 %v2906_v16, 0.0  ;;  %v12888_v16 = vpop.permute.xlu0 %4275 }
 0x222   :  { %v16478_v39 = vrot.slane %v12856_v19, 6  ;;  %4057 = vrot.lane.b32.xlu1 %v12858_v32, %s10515_s20  ;;  %4059 = vrot.lane.b32.xlu0 %v12856_v19, %s10515_s20  ;;  %v16477_v58 = vrot.slane %v12858_v32, 2  ;;  %v3578_v62 = vrot.slane %v12858_v32, 6  ;;  %v3772_v59 = vrot.slane %v12856_v19, 2 }
 0x223   :  { %v12870_v43 = vrot.slane %v2972_v30, 1 }
 0x224   :  { %v3841_v57 = vsel %vm3806_vm14, %v3770_v0, %v16477_v58  ;;  %v12880_v46 = vsel %vm3613_vm15, %v3577_v17, %v3578_v62  ;;  %v12886_v10 = vsel %vm3613_vm15, %v3578_v62, %v16478_v39  ;;  %v10199_v6 = vpop.f32.mrf.mxu0  ;;  %v16727_v0 = vld [vmem:[#allocation18_spill] sm:$0xff]  ;;  %v16728_v17 = vld [vmem:[#allocation20_spill] sm:$0xff] }
 0x225   :  { %16723 = vst [vmem:[#allocation110_spill] sm:$0xff] %v12870_v43  ;;  %16724 = vst [vmem:[#allocation111_spill] sm:$0xff] %v12880_v46  ;;  %v3100_v11 = vsel %vm1549_vm0, %v12870_v43, %v12033_v47  ;;  %vm3167_vm12 = vcmp.ge.s32.totalorder %v16727_v0, 2  ;;  %vm3169_vm13 = vcmp.ge.s32.totalorder %v16728_v17, 2  ;;  %v12900_v46 = vadd.f32 %v12615_v61, %v10199_v6  ;;  %v16730_v62 = vld [vmem:[#allocation22_spill] sm:$0xff] }
 0x226   :  { %16725 = vst [vmem:[#allocation112_spill] sm:$0xff] %v12886_v10  ;;  %v12897_v58 = vmax.f32 %v2972_v30, %v3100_v11  ;;  %4309 = vrot.lane.b32.xlu1 %v3898_v4, %s10517_s11  ;;  %4311 = vrot.lane.b32.xlu0 %v3841_v57, %s10517_s11  ;;  %vm3171_vm1 = vcmp.ge.s32.totalorder %v16730_v62, 2  ;;  %v16731_v39 = vld [vmem:[#allocation26_spill] sm:$0xff]  ;;  %v2750_v1 = vpop.f32.mrf.mxu0  ;;  %v12907_v10 = vpop.permute.xlu1 %4025  ;;  %v9581_v30 = vsel %vm3165_vm9, 1.0, %v16577_v3  ;;  %v9582_v11 = vsel %vm3167_vm12, 1.0, %v16577_v3 }
 0x227   :  { %vm3173_vm2 = vcmp.ge.s32.totalorder %v16731_v39, 2  ;;  %v16732_v47 = vld [vmem:[#allocation30_spill] sm:$0xff]  ;;  %16733 = vst [vmem:[#allocation114_spill] sm:$0xff] %v12907_v10  ;;  %v9583_v6 = vsel %vm3169_vm13, 1.0, %v16577_v3  ;;  %v12913_v4 = vpop.permute.xlu0 %4027  ;;  %v2751_v62 = vadd.f32 %v12615_v61, %v2750_v1  ;;  %v9584_v39 = vsel %vm3171_vm1, 1.0, %v16577_v3 }
 0x228   :  { %16729 = vst [vmem:[#allocation113_spill] sm:$0xff] %v12897_v58  ;;  %vm3175_vm4 = vcmp.ge.s32.totalorder %v16732_v47, 2  ;;  %16734 = vst [vmem:[#allocation115_spill] sm:$0xff] %v12913_v4  ;;  %v9585_v47 = vsel %vm3173_vm2, 1.0, %v16577_v3  ;;  %v16735_v17 = vrot.slane %v12045_v5, 6  ;;  %v16736_v43 = vrot.slane %v12897_v58, 6 }
 0x229   :  { %v12920_v0 = vsel %vm3175_vm4, 1.0, %v16577_v3  ;;  %v16737_v4 = vld [vmem:[#allocation34_spill] sm:$0xff]  ;;  %v2941_v57 = vmax.f32 %v2751_v62, 0.0  ;;  %v3680_v1 = vmul.f32 %v9582_v11, %v12116_v56  ;;  %v3682_v10 = vmul.f32 %v9583_v6, %v12192_v34 }
 0x22a   :  { %v3677_v33 = vsel %vm3613_vm15, %v16736_v43, %v16735_v17  ;;  %vm3177_vm10 = vcmp.ge.s32.totalorder %v16737_v4, 2  ;;  %v16739_v5 = vmax.f32 %v12900_v46, 0.0  ;;  %v12942_v34 = vpop.permute.xlu1 %4277  ;;  %v3684_v11 = vmul.f32 %v9584_v39, %v12259_v22 }
 0x22b   :  { %v3678_v21 = vmul.f32 %v9581_v30, %v3677_v33  ;;  %v3005_v36 = vrot.slane %v2941_v57, 1  ;;  %v4448_v33 = vsel %vm2255_vm8, %v12107_v55, %v12677_v28  ;;  %v4449_v56 = vsel %vm2255_vm8, %v3680_v1, %v12658_v50 }
 0x22c   :  { %v3006_v58 = vrot.slane %v16739_v5, 1  ;;  %v10202_v12 = vpop.f32.mrf.mxu0  ;;  %v4513_v62 = vsel %vm4511_vm6, %v4448_v33, %v12716_v52  ;;  %v16741_v6 = vrot.slane %v12858_v32, 2  ;;  %v4450_v22 = vsel %vm2255_vm8, %v12179_v42, %v12695_v63 }
 0x22d   :  { %v4447_v43 = vsel %vm2255_vm8, %v3678_v21, %v12637_v37  ;;  %v12945_v17 = vadd.f32 %v12615_v61, %v10202_v12  ;;  %v4514_v21 = vsel %vm4511_vm6, %v4449_v56, %v12718_v31  ;;  %v12953_v37 = vpop.permute.xlu0 %4279  ;;  %v3068_v50 = vsel %vm1549_vm0, %v12843_v20, %v3005_v36 }
 0x22e   :  { %v4512_v5 = vsel %vm4511_vm6, %v4447_v43, %v12670_v27  ;;  %v3067_v55 = vsel %vm1549_vm0, %v3005_v36, %v3006_v58  ;;  %v2760_v12 = vpop.f32.mrf.mxu0  ;;  %v16740_v31 = vmax.f32 %v12827_v49, 0.0  ;;  %v12972_v36 = vsel %vm3177_vm10, 1.0, %v16577_v3  ;;  %v12988_v1 = vpop.permute.xlu1 %4029 }
 0x22f   :  { %10251 = vmatprep.mubr.msk.f32.mxu1 %vm4584_vm11, %v4512_v5  ;;  %v12961_v28 = vmax.f32 %v2941_v57, %v3067_v55  ;;  %v2944_v27 = vmax.f32 %v12945_v17, 0.0  ;;  %v2761_v52 = vadd.f32 %v12615_v61, %v2760_v12  ;;  %v9627_v20 = vsel %vm3386_vm7, 1.0, %v16577_v3 }
 0x230   :  { %v3132_v30 = vmax.f32 %v16740_v31, %v3068_v50  ;;  %10252 = vmatmul.mubr.msk.f32.vlgmr.msra.gmra.mxu1 %vm4584_vm11, %v4513_v62  ;;  %v3840_v49 = vsel %vm3806_vm14, %v16741_v6, %v3772_v59  ;;  %v4451_v39 = vsel %vm2255_vm8, %v3682_v10, %v12699_v14  ;;  %v3686_v57 = vmul.f32 %v9585_v47, %v12334_v25 }
 0x231   :  { %10254 = vmatprep.mubr.msk.f32.mxu1 %vm4584_vm11, %v4514_v21  ;;  %v2943_v43 = vmax.f32 %v2761_v52, 0.0  ;;  %4063 = vrot.lane.b32.xlu0 %v12961_v28, %s10515_s20  ;;  %v4515_v32 = vsel %vm4511_vm6, %v4450_v22, %v12756_v44  ;;  %v4516_v33 = vsel %vm4511_vm6, %v4451_v39, %v12760_v41  ;;  %v12997_v63 = vpop.permute.xlu0 %4031  ;;  %v3581_v25 = vrot.slane %v12961_v28, 6 }
 0x232   :  { %4061 = vrot.lane.b32.xlu1 %v3132_v30, %s10515_s20  ;;  %v3773_v42 = vrot.slane %v3132_v30, 2  ;;  %v3580_v14 = vrot.slane %v3132_v30, 6  ;;  %v3008_v10 = vrot.slane %v2944_v27, 1  ;;  %v3900_v56 = vmul.f32 %v9627_v20, %v3840_v49 }
 0x233   :  { %v3007_v47 = vrot.slane %v2943_v43, 1  ;;  %v4452_v44 = vsel %vm2255_vm8, %v12253_v23, %v12729_v51  ;;  %v4453_v41 = vsel %vm2255_vm8, %v3684_v11, %v12733_v8  ;;  %v3774_v5 = vrot.slane %v12961_v28, 2  ;;  %v16742_v23 = vld [vmem:[#allocation43_spill] sm:$0xff]  ;;  %v13036_v11 = vpop.permute.xlu1 %4281 }
 0x234   :  { %10255 = vmatmul.mubr.msk.f32.gmra.mxu1 %vm4584_vm11, %v4515_v32  ;;  %v10205_v62 = vpop.f32.mrf.mxu0  ;;  %v3839_v21 = vsel %vm3806_vm14, %v3772_v59, %v3773_v42  ;;  %vm3388_vm9 = vcmp.lt.s32.totalorder %v16742_v23, 14  ;;  %v4517_v51 = vsel %vm4511_vm6, %v4452_v44, %v12790_v24  ;;  %v16743_v28 = vmax.f32 %v12900_v46, 0.0 }
 0x235   :  { %10257 = vmatprep.mubr.msk.f32.mxu1 %vm4584_vm11, %v4516_v33  ;;  %v3065_v55 = vsel %vm1549_vm0, %v3007_v47, %v3008_v10  ;;  %v3066_v50 = vsel %vm1549_vm0, %v3006_v58, %v3007_v47  ;;  %v2776_v12 = vadd.f32 %v12615_v61, %v10205_v62  ;;  %4315 = vrot.lane.b32.xlu0 %v3839_v21, %s10517_s11  ;;  %v16744_v58 = vrot.slane %v12856_v19, 6  ;;  %v13047_v6 = vpop.permute.xlu0 %4283  ;;  %v16745_v33 = vld [vmem:[#allocation38_spill] sm:$0xff] }
 0x236   :  { %4313 = vrot.lane.b32.xlu1 %v3900_v56, %s10517_s11  ;;  %v13022_v8 = vmax.f32 %v2943_v43, %v3065_v55  ;;  %v2770_v59 = vpop.f32.mrf.mxu0  ;;  %v13026_v52 = vmax.f32 %v16743_v28, %v3066_v50  ;;  %v4518_v30 = vsel %vm4511_vm6, %v4453_v41, %v12792_v2  ;;  %v13042_v46 = vsel %vm3613_vm15, %v3580_v14, %v3581_v25 }
 0x237   :  { %v13032_v31 = vsel %vm3613_vm15, %v16744_v58, %v3580_v14  ;;  %v2946_v20 = vmax.f32 %v2776_v12, 0.0  ;;  %v2771_v24 = vadd.f32 %v12615_v61, %v2770_v59  ;;  %v4454_v19 = vsel %vm2255_vm8, %v12327_v53, %v12777_v60  ;;  %v16748_v12 = vld [vmem:[#allocation47_spill] sm:$0xff] }
 0x238   :  { %10258 = vmatmul.mubr.msk.f32.gmra.mxu1 %vm4584_vm11, %v4517_v51  ;;  %v3583_v49 = vrot.slane %v13022_v8, 6  ;;  %v9628_v61 = vsel %vm3388_vm9, 1.0, %v16577_v3  ;;  %v3838_v2 = vsel %vm3806_vm14, %v3773_v42, %v3774_v5  ;;  %v4455_v22 = vsel %vm2255_vm8, %v3686_v57, %v12779_v45  ;;  %v13072_v42 = vpop.permute.xlu1 %4033 }
 0x239   :  { %10260 = vmatprep.mubr.msk.f32.mxu1 %vm4584_vm11, %v4518_v30  ;;  %v3010_v39 = vrot.slane %v2946_v20, 1  ;;  %v2945_v43 = vmax.f32 %v2771_v24, 0.0  ;;  %4067 = vrot.lane.b32.xlu0 %v13022_v8, %s10515_s20  ;;  %v3775_v53 = vrot.slane %v13026_v52, 2  ;;  %v4519_v60 = vsel %vm4511_vm6, %v4454_v19, %v12837_v18  ;;  %v13081_v44 = vpop.permute.xlu0 %4035  ;;  %v16750_v24 = vld [vmem:[#allocation76_spill] sm:$0xff] }
 0x23a   :  { %4065 = vrot.lane.b32.xlu1 %v13026_v52, %s10515_s20  ;;  %v4520_v32 = vsel %vm4511_vm6, %v4455_v22, %v12839_v35  ;;  %vm3179_vm12 = vcmp.ge.s32.totalorder %v16745_v33, 2  ;;  %v3582_v45 = vrot.slane %v13026_v52, 6  ;;  %v3902_v47 = vmul.f32 %v9628_v61, %v3838_v2  ;;  %v16751_v22 = vld [vmem:[#allocation114_spill] sm:$0xff] }
 0x23b   :  { %v3062_v57 = vsel %vm1549_vm0, %v3010_v39, %v12244_v13  ;;  %v3009_v14 = vrot.slane %v2945_v43, 1  ;;  %v3837_v56 = vsel %vm3806_vm14, %v3774_v5, %v3775_v53  ;;  %v3688_v18 = vmul.f32 %v12920_v0, %v12377_v40  ;;  %v16796_v33 = vld [vmem:[#allocation94_spill] sm:$0xff] }
 0x23c   :  { %10261 = vmatmul.mubr.msk.f32.gmra.mxu1 %vm4584_vm11, %v4519_v60  ;;  %v13079_v35 = vmax.f32 %v2946_v20, %v3062_v57  ;;  %v13086_v13 = vsel %vm3613_vm15, %v3581_v25, %v3582_v45  ;;  %v13090_v41 = vsel %vm3613_vm15, %v3582_v45, %v3583_v49  ;;  %v4456_v5 = vsel %vm2255_vm8, %v12373_v38, %v12801_v15  ;;  %v4286_v50 = vpop.permute.xlu1 %4285 }
 0x23d   :  { %10263 = vmatprep.mubr.msk.f32.mxu1 %vm4584_vm11, %v4520_v32  ;;  %v3063_v40 = vsel %vm1549_vm0, %v3009_v14, %v3010_v39  ;;  %v3064_v0 = vsel %vm1549_vm0, %v3008_v10, %v3009_v14  ;;  %4319 = vrot.lane.b32.xlu0 %v3837_v56, %s10517_s11  ;;  %v4457_v25 = vsel %vm2255_vm8, %v3688_v18, %v12813_v26  ;;  %v9588_v55 = vsel %vm3179_vm12, 1.0, %v16577_v3  ;;  %v16752_v39 = vld [vmem:[#allocation75_spill] sm:$0xff]  ;;  %v16754_v14 = vld [vmem:[#allocation46_spill] sm:$0xff] }
 0x23e   :  { %4317 = vrot.lane.b32.xlu1 %v3902_v47, %s10517_s11  ;;  %v4521_v62 = vsel %vm4511_vm6, %v4456_v5, %v12872_v9  ;;  %v13105_v21 = vmax.f32 %v2945_v43, %v3063_v40  ;;  %v13109_v38 = vmax.f32 %v2944_v27, %v3064_v0  ;;  %v3690_v15 = vmul.f32 %v12972_v36, %v12416_v29  ;;  %v16746_v29 = vld [vmem:[#allocation72_spill] sm:$0xff]  ;;  %v16747_v36 = vld [vmem:[#allocation42_spill] sm:$0xff]  ;;  %v16753_v32 = vld [vmem:[#allocation115_spill] sm:$0xff] }
 0x23f   :  { %v4522_v10 = vsel %vm4511_vm6, %v4457_v25, %v12888_v16  ;;  %v3776_v26 = vrot.slane %v13022_v8, 2  ;;  %v16487_v9 = vrot.slane %v13079_v35, 6  ;;  %v4458_v16 = vsel %vm2255_vm8, %v16746_v29, %v12845_v54  ;;  %v16749_v8 = vld [vmem:[#allocation109_spill] sm:$0xff]  ;;  %v4288_v54 = vpop.permute.xlu0 %4287  ;;  %v16755_v5 = vld [vmem:[#allocation80_spill] sm:$0xff] }
 0x240   :  { %10264 = vmatmul.mubr.msk.f32.gmra.mxu1 %vm4584_vm11, %v4521_v62  ;;  %v3585_v17 = vrot.slane %v13105_v21, 6  ;;  %v3777_v27 = vrot.slane %v13109_v38, 2  ;;  %vm3181_vm13 = vcmp.ge.s32.totalorder %v16747_v36, 2  ;;  %vm3390_vm1 = vcmp.lt.s32.totalorder %v16748_v12, 14 }
 0x241   :  { %10266 = vmatprep.mubr.msk.f32.mxu1 %vm4584_vm11, %v4522_v10  ;;  %4071 = vrot.lane.b32.xlu0 %v13105_v21, %s10515_s20  ;;  %v3584_v51 = vrot.slane %v13109_v38, 6  ;;  %v4459_v59 = vsel %vm2255_vm8, %v3690_v15, %v16749_v8  ;;  %v4523_v28 = vsel %vm4511_vm6, %v4458_v16, %v12942_v34  ;;  %v3692_v19 = vmul.f32 %v9588_v55, %v16750_v24  ;;  %v16763_v24 = vld [vmem:[#allocation50_spill] sm:$0xff] }
 0x242   :  { %4073 = vrot.lane.b32.xlu1 %v13079_v35, %s10515_s20  ;;  %v3835_v52 = vsel %vm3806_vm14, %v3776_v26, %v3777_v27  ;;  %v13146_v58 = vsel %vm3613_vm15, %v3585_v17, %v16487_v9  ;;  %v4524_v30 = vsel %vm4511_vm6, %v4459_v59, %v12953_v37  ;;  %v3778_v61 = vrot.slane %v13105_v21, 2  ;;  %v16758_v21 = vld [vmem:[#allocation67_spill] sm:$0xff]  ;;  %v16760_v59 = vld [vmem:[#allocation69_spill] sm:$0xff] }
 0x243   :  { %v13153_v34 = vsel %vm3613_vm15, %v3584_v51, %v3585_v17  ;;  %v13157_v20 = vsel %vm3613_vm15, %v3583_v49, %v3584_v51  ;;  %v9629_v2 = vsel %vm3390_vm1, 1.0, %v16577_v3  ;;  %v3836_v37 = vsel %vm3806_vm14, %v3775_v53, %v3776_v26 }
 0x244   :  { %10267 = vmatmul.mubr.msk.f32.gmra.mxu1 %vm4584_vm11, %v4523_v28  ;;  %v4460_v43 = vsel %vm2255_vm8, %v16752_v39, %v16751_v22  ;;  %v9589_v49 = vsel %vm3181_vm13, 1.0, %v16577_v3  ;;  %v4038_v60 = vpop.permute.xlu1 %4037  ;;  %v4461_v45 = vsel %vm2255_vm8, %v3692_v19, %v16753_v32  ;;  %v3779_v57 = vrot.slane %v13079_v35, 2  ;;  %v4040_v47 = vpop.permute.xlu0 %4039 }
 0x245   :  { %10269 = vmatprep.mubr.msk.f32.mxu1 %vm4584_vm11, %v4524_v30  ;;  %4323 = vrot.lane.b32.xlu0 %v3835_v52, %s10517_s11  ;;  %v4525_v53 = vsel %vm4511_vm6, %v4460_v43, %v13036_v11  ;;  %vm3183_vm2 = vcmp.ge.s32.totalorder %v16754_v14, 2  ;;  %v4526_v56 = vsel %vm4511_vm6, %v4461_v45, %v13047_v6  ;;  %v3904_v18 = vmul.f32 %v9629_v2, %v3836_v37  ;;  %v16756_v11 = vld [vmem:[#allocation79_spill] sm:$0xff]  ;;  %v16765_v43 = vld [vmem:[#allocation6_spill] sm:$0xff] }
 0x246   :  { %4069 = vrot.lane.b32.xlu1 %v13109_v38, %s10515_s20  ;;  %v3694_v40 = vmul.f32 %v9589_v49, %v16755_v5  ;;  %v3833_v0 = vsel %vm3806_vm14, %v3778_v61, %v3779_v57  ;;  %v4462_v25 = vsel %vm2255_vm8, %v16756_v11, %v12988_v1  ;;  %v9590_v62 = vsel %vm3183_vm2, 1.0, %v16577_v3  ;;  %v16757_v6 = vld [vmem:[#allocation51_spill] sm:$0xff]  ;;  %v16759_v1 = vld [vmem:[#allocation84_spill] sm:$0xff]  ;;  %v16766_v38 = vld [vmem:[#allocation70_spill] sm:$0xff] }
 0x247   :  { %vm3394_vm4 = vcmp.lt.s32.totalorder %v16757_v6, 14  ;;  %v3780_v15 = vrot.slane %v16758_v21, 2  ;;  %v4527_v55 = vsel %vm4511_vm6, %v4462_v25, %v4286_v50  ;;  %v3696_v29 = vmul.f32 %v9590_v62, %v16759_v1  ;;  %v16767_v5 = vld [vmem:[#allocation88_spill] sm:$0xff] }
 0x248   :  { %10270 = vmatmul.mubr.msk.f32.gmra.mxu1 %vm4584_vm11, %v4525_v53  ;;  %v4463_v10 = vsel %vm2255_vm8, %v3694_v40, %v12997_v63  ;;  %v4290_v17 = vpop.permute.xlu1 %4289  ;;  %v4292_v16 = vpop.permute.xlu0 %4291  ;;  %v9631_v51 = vsel %vm3394_vm4, 1.0, %v16577_v3  ;;  %v3781_v28 = vrot.slane %v16760_v59, 2  ;;  %v16761_v63 = vld [vmem:[#allocation83_spill] sm:$0xff]  ;;  %vm3185_vm7 = vcmp.ge.s32.totalorder %v16763_v24, 2  ;;  %v16770_v1 = vld [vmem:[#allocation8_spill] sm:$0xff] }
 0x249   :  { %10272 = vmatprep.mubr.msk.f32.mxu1 %vm4584_vm11, %v4526_v56  ;;  %4327 = vrot.lane.b32.xlu0 %v3833_v0, %s10517_s11  ;;  %v4528_v26 = vsel %vm4511_vm6, %v4463_v10, %v4288_v54  ;;  %v3832_v8 = vsel %vm3806_vm14, %v3779_v57, %v3780_v15  ;;  %v4464_v50 = vsel %vm2255_vm8, %v16761_v63, %v13072_v42  ;;  %v16762_v54 = vld [vmem:[#allocation49_spill] sm:$0xff]  ;;  %v16764_v42 = vld [vmem:[#allocation68_spill] sm:$0xff]  ;;  %vm3396_vm9 = vcmp.lt.s32.totalorder %v16765_v43, 14 }
 0x24a   :  { %4321 = vrot.lane.b32.xlu1 %v3904_v18, %s10517_s11  ;;  %vm3392_vm10 = vcmp.lt.s32.totalorder %v16762_v54, 14  ;;  %v4465_v52 = vsel %vm2255_vm8, %v3696_v29, %v13081_v44  ;;  %v4529_v30 = vsel %vm4511_vm6, %v4464_v50, %v4290_v17  ;;  %v3908_v2 = vmul.f32 %v9631_v51, %v3832_v8  ;;  %v16771_v29 = vld [vmem:[#allocation73_spill] sm:$0xff] }
 0x24b   :  { %v4530_v19 = vsel %vm4511_vm6, %v4465_v52, %v4292_v16  ;;  %v3782_v37 = vrot.slane %v16764_v42, 2  ;;  %v3831_v22 = vsel %vm3806_vm14, %v3780_v15, %v3781_v28  ;;  %v9630_v39 = vsel %vm3392_vm10, 1.0, %v16577_v3  ;;  %v16769_v15 = vld [vmem:[#allocation71_spill] sm:$0xff]  ;;  %v16772_v51 = vld [vmem:[#allocation53_spill] sm:$0xff]  ;;  %v16774_v52 = vld [vmem:[#allocation10_spill] sm:$0xff] }
 0x24c   :  { %10273 = vmatmul.mubr.msk.f32.gmra.mxu1 %vm4584_vm11, %v4527_v55  ;;  %v3834_v44 = vsel %vm3806_vm14, %v3777_v27, %v3778_v61  ;;  %v9591_v49 = vsel %vm3185_vm7, 1.0, %v16577_v3  ;;  %v9632_v57 = vsel %vm3396_vm9, 1.0, %v16577_v3  ;;  %v3783_v18 = vrot.slane %v16766_v38, 2  ;;  %v16768_v61 = vld [vmem:[#allocation87_spill] sm:$0xff] }
 0x24d   :  { %10275 = vmatprep.mubr.msk.f32.mxu1 %vm4584_vm11, %v4528_v26  ;;  %4075 = vrot.lane.b32.xlu0 %v16758_v21, %s10515_s20  ;;  %v3906_v32 = vmul.f32 %v9630_v39, %v3834_v44  ;;  %v3830_v56 = vsel %vm3806_vm14, %v3781_v28, %v3782_v37  ;;  %v3698_v27 = vmul.f32 %v9591_v49, %v16767_v5  ;;  %v3784_v10 = vrot.slane %v16769_v15, 2  ;;  %v16773_v28 = vld [vmem:[#allocation74_spill] sm:$0xff]  ;;  %v16775_v39 = vld [vmem:[#allocation77_spill] sm:$0xff]  ;;  %v16776_v49 = vld [vmem:[#allocation92_spill] sm:$0xff] }
 0x24e   :  { %4077 = vrot.lane.b32.xlu1 %v16760_v59, %s10515_s20  ;;  %v4466_v40 = vsel %vm2255_vm8, %v16768_v61, %v4038_v60  ;;  %v3910_v11 = vmul.f32 %v9632_v57, %v3830_v56  ;;  %v3829_v26 = vsel %vm3806_vm14, %v3782_v37, %v3783_v18  ;;  %vm3398_vm12 = vcmp.lt.s32.totalorder %v16770_v1, 14  ;;  %v16777_v57 = vld [vmem:[#allocation91_spill] sm:$0xff] }
 0x24f   :  { %v4467_v0 = vsel %vm2255_vm8, %v3698_v27, %v4040_v47  ;;  %v9633_v60 = vsel %vm3398_vm12, 1.0, %v16577_v3  ;;  %v3828_v47 = vsel %vm3806_vm14, %v3783_v18, %v3784_v10  ;;  %v3785_v16 = vrot.slane %v16771_v29, 2 }
 0x250   :  { %10276 = vmatmul.mubr.msk.f32.gmra.mxu1 %vm4584_vm11, %v4529_v30  ;;  %vm3187_vm13 = vcmp.ge.s32.totalorder %v16772_v51, 2  ;;  %v3912_v8 = vmul.f32 %v9633_v60, %v3828_v47  ;;  %v3786_v63 = vrot.slane %v16773_v28, 2  ;;  %vm3400_vm1 = vcmp.lt.s32.totalorder %v16774_v52, 14  ;;  %v16782_v47 = vld [vmem:[#allocation82_spill] sm:$0xff] }
 0x251   :  { %10278 = vmatprep.mubr.msk.f32.mxu1 %vm4584_vm11, %v4530_v19  ;;  %4331 = vrot.lane.b32.xlu0 %v3831_v22, %s10517_s11  ;;  %v3827_v50 = vsel %vm3806_vm14, %v3784_v10, %v3785_v16  ;;  %v9592_v30 = vsel %vm3187_vm13, 1.0, %v16577_v3  ;;  %v9634_v37 = vsel %vm3400_vm1, 1.0, %v16577_v3  ;;  %v3787_v44 = vrot.slane %v16775_v39, 2  ;;  %v16779_v10 = vld [vmem:[#allocation12_spill] sm:$0xff] }
 0x252   :  { %4329 = vrot.lane.b32.xlu1 %v3908_v2, %s10517_s11  ;;  %v3826_v22 = vsel %vm3806_vm14, %v3785_v16, %v3786_v63  ;;  %vm3402_vm2 = vcmp.lt.s32.totalorder %v16779_v10, 14  ;;  %v3790_v16 = vrot.slane %v16782_v47, 2 }
 0x253   :  { %v3914_v5 = vmul.f32 %v9634_v37, %v3826_v22 }
 0x254   :  { %v4042_v45 = vpop.permute.xlu1 %4041  ;;  %v4044_v53 = vpop.permute.xlu0 %4043 }
 0x255   :  { %4079 = vrot.lane.b32.xlu0 %v16764_v42, %s10515_s20  ;;  %v4468_v56 = vsel %vm2255_vm8, %v16777_v57, %v4042_v45  ;;  %v9635_v45 = vsel %vm3402_vm2, 1.0, %v16577_v3  ;;  %v16785_v57 = vld [vmem:[#allocation96_spill] sm:$0xff] }
 0x256   :  { %4325 = vrot.lane.b32.xlu1 %v3906_v32, %s10517_s11  ;;  %v3700_v32 = vmul.f32 %v9592_v30, %v16776_v49  ;;  %v16784_v49 = vld [vmem:[#allocation85_spill] sm:$0xff] }
 0x258   :  { %v4294_v25 = vpop.permute.xlu1 %4293  ;;  %v4296_v62 = vpop.permute.xlu0 %4295  ;;  %v4469_v18 = vsel %vm2255_vm8, %v3700_v32, %v4044_v53  ;;  %v3791_v32 = vrot.slane %v16784_v49, 2 }
 0x259   :  { %v4531_v55 = vsel %vm4511_vm6, %v4466_v40, %v4294_v25  ;;  %v4532_v17 = vsel %vm4511_vm6, %v4467_v0, %v4296_v62  ;;  %4335 = vrot.lane.b32.xlu0 %v3829_v26, %s10517_s11  ;;  %v16778_v40 = vld [vmem:[#allocation78_spill] sm:$0xff]  ;;  %v3825_v25 = vsel %vm3806_vm14, %v3786_v63, %v3787_v44 }
 0x25a   :  { %4333 = vrot.lane.b32.xlu1 %v3910_v11, %s10517_s11  ;;  %10279 = vmatmul.mubr.msk.f32.gmra.mxu1 %vm4584_vm11, %v4531_v55  ;;  %v3788_v0 = vrot.slane %v16778_v40, 2  ;;  %v16780_v55 = vld [vmem:[#allocation81_spill] sm:$0xff]  ;;  %v16783_v63 = vld [vmem:[#allocation14_spill] sm:$0xff] }
 0x25b   :  { %10281 = vmatprep.mubr.msk.f32.mxu1 %vm4584_vm11, %v4532_v17  ;;  %v3789_v26 = vrot.slane %v16780_v55, 2  ;;  %v16781_v17 = vld [vmem:[#allocation55_spill] sm:$0xff]  ;;  %vm3404_vm10 = vcmp.lt.s32.totalorder %v16783_v63, 14 }
 0x25c   :  { %v3824_v53 = vsel %vm3806_vm14, %v3787_v44, %v3788_v0  ;;  %vm3189_vm4 = vcmp.ge.s32.totalorder %v16781_v17, 2  ;;  %v9636_v22 = vsel %vm3404_vm10, 1.0, %v16577_v3 }
 0x25d   :  { %4083 = vrot.lane.b32.xlu0 %v16769_v15, %s10515_s20  ;;  %v3916_v60 = vmul.f32 %v9635_v45, %v3824_v53  ;;  %v3822_v44 = vsel %vm3806_vm14, %v3789_v26, %v3790_v16  ;;  %v3821_v53 = vsel %vm3806_vm14, %v3790_v16, %v3791_v32  ;;  %v16790_v16 = vld [vmem:[#allocation57_spill] sm:$0xff] }
 0x25e   :  { %4081 = vrot.lane.b32.xlu1 %v16766_v38, %s10515_s20  ;;  %vm3191_vm9 = vcmp.ge.s32.totalorder %v16790_v16, 2 }
 0x261   :  { %4339 = vrot.lane.b32.xlu0 %v3827_v50, %s10517_s11  ;;  %v9593_v50 = vsel %vm3189_vm4, 1.0, %v16577_v3 }
 0x262   :  { %4337 = vrot.lane.b32.xlu1 %v3912_v8, %s10517_s11  ;;  %v3823_v8 = vsel %vm3806_vm14, %v3788_v0, %v3789_v26 }
 0x264   :  { %v4046_v19 = vpop.permute.xlu1 %4045  ;;  %v4048_v2 = vpop.permute.xlu0 %4047 }
 0x265   :  { %4087 = vrot.lane.b32.xlu0 %v16773_v28, %s10515_s20 }
 0x266   :  { %4085 = vrot.lane.b32.xlu1 %v16771_v29, %s10515_s20 }
 0x268   :  { %v4298_v27 = vpop.permute.xlu1 %4297  ;;  %v4300_v61 = vpop.permute.xlu0 %4299 }
 0x269   :  { %v4533_v11 = vsel %vm4511_vm6, %v4468_v56, %v4298_v27  ;;  %v4534_v62 = vsel %vm4511_vm6, %v4469_v18, %v4300_v61  ;;  %4343 = vrot.lane.b32.xlu0 %v3825_v25, %s10517_s11  ;;  %v3702_v56 = vmul.f32 %v9593_v50, %v16785_v57  ;;  %v16786_v18 = vld [vmem:[#allocation95_spill] sm:$0xff]  ;;  %v3918_v61 = vmul.f32 %v9636_v22, %v3822_v44  ;;  %v16787_v25 = vld [vmem:[#allocation86_spill] sm:$0xff] }
 0x26a   :  { %4341 = vrot.lane.b32.xlu1 %v3914_v5, %s10517_s11  ;;  %10282 = vmatmul.mubr.msk.f32.gmra.mxu1 %vm4584_vm11, %v4533_v11  ;;  %v4470_v5 = vsel %vm2255_vm8, %v16786_v18, %v4046_v19  ;;  %v16791_v44 = vld [vmem:[#allocation90_spill] sm:$0xff]  ;;  %v9594_v18 = vsel %vm3191_vm9, 1.0, %v16577_v3 }
 0x26b   :  { %10284 = vmatprep.mubr.msk.f32.mxu1 %vm4584_vm11, %v4534_v62  ;;  %v4471_v27 = vsel %vm2255_vm8, %v3702_v56, %v4048_v2  ;;  %v3792_v62 = vrot.slane %v16787_v25, 2  ;;  %v3794_v57 = vrot.slane %v16791_v44, 2 }
 0x26d   :  { %4091 = vrot.lane.b32.xlu0 %v16778_v40, %s10515_s20  ;;  %v3820_v2 = vsel %vm3806_vm14, %v3791_v32, %v3792_v62  ;;  %v16792_v32 = vld [vmem:[#allocation21_spill] sm:$0xff] }
 0x26e   :  { %4089 = vrot.lane.b32.xlu1 %v16775_v39, %s10515_s20  ;;  %vm3408_vm12 = vcmp.lt.s32.totalorder %v16792_v32, 14  ;;  %v16797_v32 = vld [vmem:[#allocation25_spill] sm:$0xff] }
 0x26f   :  { %vm3410_vm13 = vcmp.lt.s32.totalorder %v16797_v32, 14 }
 0x271   :  { %4347 = vrot.lane.b32.xlu0 %v3823_v8, %s10517_s11  ;;  %v16789_v8 = vld [vmem:[#allocation89_spill] sm:$0xff] }
 0x272   :  { %4345 = vrot.lane.b32.xlu1 %v3916_v60, %s10517_s11  ;;  %v16788_v60 = vld [vmem:[#allocation17_spill] sm:$0xff]  ;;  %v3793_v50 = vrot.slane %v16789_v8, 2 }
 0x273   :  { %vm3406_vm7 = vcmp.lt.s32.totalorder %v16788_v60, 14  ;;  %v16803_v60 = vld [vmem:[#allocation105_spill] sm:$0xff] }
 0x274   :  { %v4050_v30 = vpop.permute.xlu1 %4049  ;;  %v4052_v37 = vpop.permute.xlu0 %4051  ;;  %v9637_v19 = vsel %vm3406_vm7, 1.0, %v16577_v3  ;;  %v3819_v56 = vsel %vm3806_vm14, %v3792_v62, %v3793_v50  ;;  %v16795_v62 = vld [vmem:[#allocation99_spill] sm:$0xff] }
 0x275   :  { %4095 = vrot.lane.b32.xlu0 %v16782_v47, %s10515_s20  ;;  %v3920_v22 = vmul.f32 %v9637_v19, %v3820_v2  ;;  %v4472_v19 = vsel %vm2255_vm8, %v16795_v62, %v4050_v30  ;;  %v9639_v30 = vsel %vm3410_vm13, 1.0, %v16577_v3 }
 0x276   :  { %4093 = vrot.lane.b32.xlu1 %v16780_v55, %s10515_s20 }
 0x278   :  { %v4302_v0 = vpop.permute.xlu1 %4301  ;;  %v4304_v11 = vpop.permute.xlu0 %4303 }
 0x279   :  { %v4535_v45 = vsel %vm4511_vm6, %v4470_v5, %v4302_v0  ;;  %v4536_v26 = vsel %vm4511_vm6, %v4471_v27, %v4304_v11  ;;  %4351 = vrot.lane.b32.xlu0 %v3821_v53, %s10517_s11  ;;  %v3818_v0 = vsel %vm3806_vm14, %v3793_v50, %v3794_v57  ;;  %v16793_v11 = vld [vmem:[#allocation93_spill] sm:$0xff]  ;;  %v16794_v53 = vld [vmem:[#allocation100_spill] sm:$0xff]  ;;  %v3796_v50 = vrot.slane %v16796_v33, 2 }
 0x27a   :  { %4349 = vrot.lane.b32.xlu1 %v3918_v61, %s10517_s11  ;;  %10285 = vmatmul.mubr.msk.f32.gmra.mxu1 %vm4584_vm11, %v4535_v45  ;;  %v9638_v61 = vsel %vm3408_vm12, 1.0, %v16577_v3  ;;  %v3795_v45 = vrot.slane %v16793_v11, 2 }
 0x27b   :  { %10287 = vmatprep.mubr.msk.f32.mxu1 %vm4584_vm11, %v4536_v26  ;;  %v3704_v26 = vmul.f32 %v9594_v18, %v16794_v53 }
 0x27c   :  { %v3817_v18 = vsel %vm3806_vm14, %v3794_v57, %v3795_v45  ;;  %v16799_v57 = vld [vmem:[#allocation59_spill] sm:$0xff] }
 0x27d   :  { %4099 = vrot.lane.b32.xlu0 %v16787_v25, %s10515_s20  ;;  %v4473_v2 = vsel %vm2255_vm8, %v3704_v26, %v4052_v37  ;;  %v3816_v37 = vsel %vm3806_vm14, %v3795_v45, %v3796_v50  ;;  %vm3193_vm1 = vcmp.ge.s32.totalorder %v16799_v57, 2  ;;  %v10511_v45 = vld [vmem:[%s16296_s1 + $0x10] ss:$0 sm:$0xff] }
 0x27e   :  { %4097 = vrot.lane.b32.xlu1 %v16784_v49, %s10515_s20  ;;  %v3924_v26 = vmul.f32 %v9639_v30, %v3816_v37  ;;  %v16802_v37 = vld [vmem:[#allocation101_spill] sm:$0xff] }
 0x27f   :  { %v3799_v32 = vrot.slane %v16802_v37, 2 }
 0x281   :  { %4355 = vrot.lane.b32.xlu0 %v3819_v56, %s10517_s11 }
 0x282   :  { %4353 = vrot.lane.b32.xlu1 %v3920_v22, %s10517_s11  ;;  %v3922_v22 = vmul.f32 %v9638_v61, %v3818_v0  ;;  %v16798_v61 = vld [vmem:[#allocation97_spill] sm:$0xff] }
 0x283   :  { %v3797_v0 = vrot.slane %v16798_v61, 2 }
 0x284   :  { %v4054_v5 = vpop.permute.xlu1 %4053  ;;  %v4056_v27 = vpop.permute.xlu0 %4055 }
 0x285   :  { %4103 = vrot.lane.b32.xlu0 %v16791_v44, %s10515_s20 }
 0x286   :  { %4101 = vrot.lane.b32.xlu1 %v16789_v8, %s10515_s20 }
 0x288   :  { %v4306_v56 = vpop.permute.xlu1 %4305  ;;  %v4308_v9 = vpop.permute.xlu0 %4307 }
 0x289   :  { %v4537_v4 = vsel %vm4511_vm6, %v4472_v19, %v4306_v56  ;;  %v4538_v53 = vsel %vm4511_vm6, %v4473_v2, %v4308_v9  ;;  %4359 = vrot.lane.b32.xlu0 %v3817_v18, %s10517_s11  ;;  %v2900_v9 = vpop.f32.mrf.mxu1  ;;  %v3815_v19 = vsel %vm3806_vm14, %v3796_v50, %v3797_v0  ;;  %v9595_v56 = vsel %vm3193_vm1, 1.0, %v16577_v3 }
 0x28a   :  { %4357 = vrot.lane.b32.xlu1 %v3922_v22, %s10517_s11  ;;  %10288 = vmatmul.mubr.msk.f32.gmra.mxu1 %vm4584_vm11, %v4537_v4  ;;  %v16800_v4 = vld [vmem:[#allocation98_spill] sm:$0xff]  ;;  %v2901_v2 = vadd.f32 %v10511_v45, %v2900_v9  ;;  %v16801_v22 = vld [vmem:[#allocation29_spill] sm:$0xff]  ;;  %v3706_v9 = vmul.f32 %v9595_v56, %v16803_v60 }
 0x28b   :  { %10290 = vmatprep.mubr.msk.f32.mxu1 %vm4584_vm11, %v4538_v53  ;;  %v3798_v62 = vrot.slane %v16800_v4, 2  ;;  %vm3412_vm2 = vcmp.lt.s32.totalorder %v16801_v22, 14 }
 0x28c   :  { %v9640_v30 = vsel %vm3412_vm2, 1.0, %v16577_v3  ;;  %v2971_v57 = vmax.f32 %v2901_v2, 0.0  ;;  %v4475_v45 = vsel %vm2255_vm8, %v3706_v9, %v4056_v27 }
 0x28d   :  { %4107 = vrot.lane.b32.xlu0 %v16796_v33, %s10515_s20  ;;  %v3814_v50 = vsel %vm3806_vm14, %v3797_v0, %v3798_v62  ;;  %v16805_v0 = vld [vmem:[#allocation102_spill] sm:$0xff]  ;;  %v3813_v60 = vsel %vm3806_vm14, %v3798_v62, %v3799_v32 }
 0x28e   :  { %4105 = vrot.lane.b32.xlu1 %v16793_v11, %s10515_s20  ;;  %v3926_v22 = vmul.f32 %v9640_v30, %v3814_v50  ;;  %v3800_v10 = vrot.slane %v16805_v0, 2  ;;  %v3035_v17 = vrot.slane %v2971_v57, 1  ;;  %v16807_v30 = vld [vmem:[#allocation107_spill] sm:$0xff]  ;;  %v16808_v50 = vld [vmem:[#allocation106_spill] sm:$0xff] }
 0x28f   :  { %v3801_v62 = vrot.slane %v16807_v30, 2 }
 0x291   :  { %4363 = vrot.lane.b32.xlu0 %v3815_v19, %s10517_s11 }
 0x292   :  { %4361 = vrot.lane.b32.xlu1 %v3924_v26, %s10517_s11  ;;  %v16804_v26 = vld [vmem:[#allocation104_spill] sm:$0xff] }
 0x293   :  { %v4474_v19 = vsel %vm2255_vm8, %v16804_v26, %v4054_v5  ;;  %v16806_v5 = vld [vmem:[#allocation33_spill] sm:$0xff]  ;;  %v16810_v26 = vld [vmem:[#allocation108_spill] sm:$0xff] }
 0x294   :  { %v4058_v18 = vpop.permute.xlu1 %4057  ;;  %v4060_v53 = vpop.permute.xlu0 %4059  ;;  %vm3414_vm4 = vcmp.lt.s32.totalorder %v16806_v5, 14  ;;  %v16814_v5 = vld [vmem:[#allocation37_spill] sm:$0xff] }
 0x295   :  { %4111 = vrot.lane.b32.xlu0 %v16800_v4, %s10515_s20  ;;  %v9641_v27 = vsel %vm3414_vm4, 1.0, %v16577_v3  ;;  %vm3416_vm7 = vcmp.lt.s32.totalorder %v16814_v5, 14 }
 0x296   :  { %4109 = vrot.lane.b32.xlu1 %v16798_v61, %s10515_s20 }
 0x298   :  { %v4310_v63 = vpop.permute.xlu1 %4309  ;;  %v4312_v16 = vpop.permute.xlu0 %4311 }
 0x299   :  { %v4539_v2 = vsel %vm4511_vm6, %v4474_v19, %v4310_v63  ;;  %v4540_v56 = vsel %vm4511_vm6, %v4475_v45, %v4312_v16  ;;  %4367 = vrot.lane.b32.xlu0 %v3813_v60, %s10517_s11  ;;  %v3812_v63 = vsel %vm3806_vm14, %v3799_v32, %v3800_v10  ;;  %v3038_v16 = vsel %vm1549_vm0, %v16808_v50, %v3035_v17  ;;  %v16811_v45 = vld [vmem:[#allocation103_spill] sm:$0xff] }
 0x29a   :  { %4365 = vrot.lane.b32.xlu1 %v3926_v22, %s10517_s11  ;;  %10291 = vmatmul.mubr.msk.f32.gmra.mxu1 %vm4584_vm11, %v4539_v2  ;;  %v16809_v22 = vld [vmem:[#allocation61_spill] sm:$0xff]  ;;  %v3928_v9 = vmul.f32 %v9641_v27, %v3812_v63  ;;  %v3802_v19 = vrot.slane %v16810_v26, 2  ;;  %v16812_v2 = vmax.f32 %v16811_v45, 0.0  ;;  %v3811_v60 = vsel %vm3806_vm14, %v3800_v10, %v3801_v62 }
 0x29b   :  { %10293 = vmatprep.mubr.msk.f32.mxu1 %vm4584_vm11, %v4540_v56  ;;  %vm3195_vm10 = vcmp.ge.s32.totalorder %v16809_v22, 2  ;;  %v16813_v56 = vld [vmem:[#allocation110_spill] sm:$0xff] }
 0x29c   :  { %v13424_v32 = vmax.f32 %v16812_v2, %v3038_v16  ;;  %v3037_v50 = vsel %vm1549_vm0, %v3035_v17, %v16813_v56  ;;  %v9596_v27 = vsel %vm3195_vm10, 1.0, %v16577_v3  ;;  %v9642_v16 = vsel %vm3416_vm7, 1.0, %v16577_v3  ;;  %v16815_v17 = vld [vmem:[#allocation112_spill] sm:$0xff] }
 0x29d   :  { %4115 = vrot.lane.b32.xlu0 %v16805_v0, %s10515_s20  ;;  %v13435_v45 = vmax.f32 %v2971_v57, %v3037_v50  ;;  %v3810_v10 = vsel %vm3806_vm14, %v3801_v62, %v3802_v19  ;;  %v3708_v56 = vmul.f32 %v9596_v27, %v16815_v17  ;;  %v16817_v50 = vld [vmem:[#allocation64_spill] sm:$0xff] }
 0x29e   :  { %4113 = vrot.lane.b32.xlu1 %v16802_v37, %s10515_s20  ;;  %v3803_v2 = vrot.slane %v13424_v32, 2  ;;  %vm3197_vm0 = vcmp.ge.s32.totalorder %v16817_v50, 2  ;;  %v3930_v62 = vmul.f32 %v9642_v16, %v3810_v10 }
 0x29f   :  { %v4477_v57 = vsel %vm2255_vm8, %v3708_v56, %v4060_v53  ;;  %v3804_v51 = vrot.slane %v13435_v45, 2  ;;  %v9597_v53 = vsel %vm3197_vm0, 1.0, %v16577_v3 }
 0x2a0   :  { %v3809_v1 = vsel %vm3806_vm14, %v3802_v19, %v3803_v2  ;;  %v3710_v19 = vmul.f32 %v9597_v53, %v13042_v46  ;;  %v16820_v53 = vld [vmem:[#allocation45_spill] sm:$0xff] }
 0x2a1   :  { %4371 = vrot.lane.b32.xlu0 %v3811_v60, %s10517_s11  ;;  %vm3420_vm12 = vcmp.lt.s32.totalorder %v16820_v53, 14 }
 0x2a2   :  { %4369 = vrot.lane.b32.xlu1 %v3928_v9, %s10517_s11  ;;  %v16816_v9 = vld [vmem:[#allocation111_spill] sm:$0xff] }
 0x2a3   :  { %v4064_v22 = vpop.permute.xlu0 %4063  ;;  %v4476_v60 = vsel %vm2255_vm8, %v16816_v9, %v4058_v18  ;;  %v16818_v18 = vld [vmem:[#allocation41_spill] sm:$0xff] }
 0x2a4   :  { %v4062_v63 = vpop.permute.xlu1 %4061  ;;  %vm3418_vm9 = vcmp.lt.s32.totalorder %v16818_v18, 14 }
 0x2a5   :  { %4119 = vrot.lane.b32.xlu0 %v16810_v26, %s10515_s20  ;;  %v4478_v9 = vsel %vm2255_vm8, %v13032_v31, %v4062_v63  ;;  %v16821_v63 = vld [vmem:[#allocation65_spill] sm:$0xff] }
 0x2a6   :  { %4117 = vrot.lane.b32.xlu1 %v16807_v30, %s10515_s20  ;;  %vm3199_vm13 = vcmp.ge.s32.totalorder %v16821_v63, 2  ;;  %v16827_v63 = vld [vmem:[#allocation28_spill] sm:$0xff] }
 0x2a7   :  { %v4316_v52 = vpop.permute.xlu0 %4315  ;;  %vm3205_vm4 = vcmp.ge.s32.totalorder %v16827_v63, 2 }
 0x2a8   :  { %v4314_v5 = vpop.permute.xlu1 %4313  ;;  %v4542_v17 = vsel %vm4511_vm6, %v4477_v57, %v4316_v52  ;;  %v3808_v52 = vsel %vm3806_vm14, %v3803_v2, %v3804_v51 }
 0x2a9   :  { %v4541_v27 = vsel %vm4511_vm6, %v4476_v60, %v4314_v5  ;;  %4375 = vrot.lane.b32.xlu0 %v3809_v1, %s10517_s11  ;;  %v9643_v5 = vsel %vm3418_vm9, 1.0, %v16577_v3  ;;  %v16819_v1 = vld [vmem:[#allocation113_spill] sm:$0xff]  ;;  %v4479_v60 = vsel %vm2255_vm8, %v3710_v19, %v4064_v22 }
 0x2aa   :  { %4373 = vrot.lane.b32.xlu1 %v3930_v62, %s10517_s11  ;;  %10294 = vmatmul.mubr.msk.f32.gmra.mxu1 %vm4584_vm11, %v4541_v27  ;;  %v3805_v56 = vrot.slane %v16819_v1, 2  ;;  %v3932_v27 = vmul.f32 %v9643_v5, %v3808_v52  ;;  %v9644_v5 = vsel %vm3420_vm12, 1.0, %v16577_v3  ;;  %v16822_v52 = vld [vmem:[#allocation63_spill] sm:$0xff] }
 0x2ab   :  { %10296 = vmatprep.mubr.msk.f32.mxu1 %vm4584_vm11, %v4542_v17  ;;  %v4068_v10 = vpop.permute.xlu0 %4067  ;;  %v16823_v19 = vrot.slane %v16822_v52, 2 }
 0x2ac   :  { %v4066_v16 = vpop.permute.xlu1 %4065  ;;  %v3807_v17 = vsel %vm3806_vm14, %v3804_v51, %v3805_v56 }
 0x2ad   :  { %4123 = vrot.lane.b32.xlu0 %v13435_v45, %s10515_s20  ;;  %v3870_v51 = vsel %vm3806_vm14, %v3805_v56, %v16823_v19 }
 0x2ae   :  { %4121 = vrot.lane.b32.xlu1 %v13424_v32, %s10515_s20 }
 0x2af   :  { %v4320_v62 = vpop.permute.xlu0 %4319 }
 0x2b0   :  { %v4318_v57 = vpop.permute.xlu1 %4317  ;;  %v4544_v46 = vsel %vm4511_vm6, %v4479_v60, %v4320_v62  ;;  %v3934_v62 = vmul.f32 %v9644_v5, %v3870_v51 }
 0x2b1   :  { %v4543_v2 = vsel %vm4511_vm6, %v4478_v9, %v4318_v57  ;;  %4379 = vrot.lane.b32.xlu0 %v3807_v17, %s10517_s11  ;;  %v9598_v9 = vsel %vm3199_vm13, 1.0, %v16577_v3 }
 0x2b2   :  { %4377 = vrot.lane.b32.xlu1 %v3932_v27, %s10517_s11  ;;  %10297 = vmatmul.mubr.msk.f32.gmra.mxu1 %vm4584_vm11, %v4543_v2  ;;  %v3712_v27 = vmul.f32 %v9598_v9, %v13090_v41  ;;  %v4480_v2 = vsel %vm2255_vm8, %v13086_v13, %v4066_v16  ;;  %v16825_v16 = vld [vmem:[#allocation24_spill] sm:$0xff] }
 0x2b3   :  { %10299 = vmatprep.mubr.msk.f32.mxu1 %vm4584_vm11, %v4544_v46  ;;  %v4072_v22 = vpop.permute.xlu0 %4071  ;;  %vm3203_vm2 = vcmp.ge.s32.totalorder %v16825_v16, 2 }
 0x2b4   :  { %v4074_v31 = vpop.permute.xlu1 %4073  ;;  %v4481_v52 = vsel %vm2255_vm8, %v3712_v27, %v4068_v10  ;;  %v3587_v10 = vrot.slane %v16758_v21, 6  ;;  %v3589_v27 = vrot.slane %v16764_v42, 6 }
 0x2b6   :  { %4125 = vrot.lane.b32.xlu1 %v16819_v1, %s10515_s20 }
 0x2b7   :  { %v4324_v57 = vpop.permute.xlu0 %4323 }
 0x2b8   :  { %v4070_v60 = vpop.permute.xlu1 %4069  ;;  %v4546_v19 = vsel %vm4511_vm6, %v4481_v52, %v4324_v57  ;;  %v9600_v52 = vsel %vm3203_vm2, 1.0, %v16577_v3 }
 0x2ba   :  { %4381 = vrot.lane.b32.xlu1 %v3934_v62, %s10517_s11  ;;  %v16824_v62 = vld [vmem:[#allocation66_spill] sm:$0xff] }
 0x2bb   :  { %v4328_v17 = vpop.permute.xlu0 %4327  ;;  %vm3201_vm1 = vcmp.ge.s32.totalorder %v16824_v62, 2 }
 0x2bc   :  { %v4322_v46 = vpop.permute.xlu1 %4321  ;;  %v9599_v41 = vsel %vm3201_vm1, 1.0, %v16577_v3 }
 0x2bd   :  { %v4545_v56 = vsel %vm4511_vm6, %v4480_v2, %v4322_v46  ;;  %v3714_v57 = vmul.f32 %v9599_v41, %v13153_v34  ;;  %v4482_v2 = vsel %vm2255_vm8, %v13157_v20, %v4070_v60  ;;  %v3588_v46 = vrot.slane %v16760_v59, 6 }
 0x2be   :  { %10300 = vmatmul.mubr.msk.f32.gmra.mxu1 %vm4584_vm11, %v4545_v56  ;;  %v16826_v56 = vrot.slane %v13079_v35, 6  ;;  %v3591_v20 = vrot.slane %v16769_v15, 6  ;;  %v3590_v35 = vrot.slane %v16766_v38, 6  ;;  %v4484_v60 = vsel %vm2255_vm8, %v13146_v58, %v4074_v31 }
 0x2bf   :  { %10302 = vmatprep.mubr.msk.f32.mxu1 %vm4584_vm11, %v4546_v19  ;;  %v4076_v51 = vpop.permute.xlu0 %4075  ;;  %v4483_v21 = vsel %vm2255_vm8, %v3714_v57, %v4072_v22  ;;  %v9601_v22 = vsel %vm3205_vm4, 1.0, %v16577_v3  ;;  %v3638_v58 = vsel %vm3613_vm15, %v3587_v10, %v3588_v46 }
 0x2c0   :  { %v4078_v5 = vpop.permute.xlu1 %4077  ;;  %v3639_v19 = vsel %vm3613_vm15, %v16826_v56, %v3587_v10  ;;  %v4548_v34 = vsel %vm4511_vm6, %v4483_v21, %v4328_v17  ;;  %v16828_v17 = vld [vmem:[#allocation32_spill] sm:$0xff]  ;;  %v3635_v56 = vsel %vm3613_vm15, %v3590_v35, %v3591_v20  ;;  %v3593_v10 = vrot.slane %v16773_v28, 6 }
 0x2c1   :  { %v3716_v59 = vmul.f32 %v9600_v52, %v3639_v19  ;;  %vm3207_vm10 = vcmp.ge.s32.totalorder %v16828_v17, 2  ;;  %v4486_v19 = vsel %vm2255_vm8, %v3638_v58, %v4078_v5  ;;  %v3592_v5 = vrot.slane %v16771_v29, 6 }
 0x2c2   :  { %v9602_v31 = vsel %vm3207_vm10, 1.0, %v16577_v3  ;;  %v3594_v58 = vrot.slane %v16775_v39, 6  ;;  %vm5866_vm10 = vcmp.lt.s32.totalorder %v10560_v7, 4 }
 0x2c3   :  { %v4332_v13 = vpop.permute.xlu0 %4331  ;;  %v3633_v29 = vsel %vm3613_vm15, %v3592_v5, %v3593_v10 }
 0x2c4   :  { %v4330_v9 = vpop.permute.xlu1 %4329 }
 0x2c5   :  { %v4549_v15 = vsel %vm4511_vm6, %v4484_v60, %v4330_v9 }
 0x2c7   :  { %v4080_v16 = vpop.permute.xlu0 %4079 }
 0x2c8   :  { %v4326_v62 = vpop.permute.xlu1 %4325 }
 0x2c9   :  { %v4547_v42 = vsel %vm4511_vm6, %v4482_v2, %v4326_v62  ;;  %v3637_v62 = vsel %vm3613_vm15, %v3588_v46, %v3589_v27  ;;  %v4485_v2 = vsel %vm2255_vm8, %v3716_v59, %v4076_v51  ;;  %v3636_v46 = vsel %vm3613_vm15, %v3589_v27, %v3590_v35 }
 0x2ca   :  { %10303 = vmatmul.mubr.msk.f32.gmra.mxu1 %vm4584_vm11, %v4547_v42  ;;  %v4550_v52 = vsel %vm4511_vm6, %v4485_v2, %v4332_v13  ;;  %v3718_v38 = vmul.f32 %v9601_v22, %v3637_v62  ;;  %v16829_v62 = vld [vmem:[#allocation36_spill] sm:$0xff] }
 0x2cb   :  { %10305 = vmatprep.mubr.msk.f32.mxu1 %vm4584_vm11, %v4548_v34  ;;  %v4336_v57 = vpop.permute.xlu0 %4335  ;;  %v3720_v34 = vmul.f32 %v9602_v31, %v3635_v56  ;;  %vm3209_vm7 = vcmp.ge.s32.totalorder %v16829_v62, 2 }
 0x2cc   :  { %v4334_v41 = vpop.permute.xlu1 %4333  ;;  %v4487_v9 = vsel %vm2255_vm8, %v3718_v38, %v4080_v16  ;;  %v9603_v28 = vsel %vm3209_vm7, 1.0, %v16577_v3 }
 0x2cd   :  { %v4551_v13 = vsel %vm4511_vm6, %v4486_v19, %v4334_v41  ;;  %v4552_v42 = vsel %vm4511_vm6, %v4487_v9, %v4336_v57  ;;  %v3722_v2 = vmul.f32 %v9603_v28, %v3633_v29 }
 0x2ce   :  { %10306 = vmatmul.mubr.msk.f32.gmra.mxu1 %vm4584_vm11, %v4549_v15  ;;  %v3595_v15 = vrot.slane %v16778_v40, 6 }
 0x2cf   :  { %10308 = vmatprep.mubr.msk.f32.mxu1 %vm4584_vm11, %v4550_v52  ;;  %v4084_v21 = vpop.permute.xlu0 %4083  ;;  %v3634_v52 = vsel %vm3613_vm15, %v3591_v20, %v3592_v5  ;;  %v3596_v5 = vrot.slane %v16780_v55, 6 }
 0x2d0   :  { %v4082_v51 = vpop.permute.xlu1 %4081  ;;  %v4489_v16 = vsel %vm2255_vm8, %v3720_v34, %v4084_v21  ;;  %v3631_v39 = vsel %vm3613_vm15, %v3594_v58, %v3595_v15  ;;  %v3597_v34 = vrot.slane %v16782_v47, 6 }
 0x2d1   :  { %v4488_v59 = vsel %vm2255_vm8, %v3636_v46, %v4082_v51  ;;  %v16830_v51 = vld [vmem:[#allocation40_spill] sm:$0xff]  ;;  %v3632_v46 = vsel %vm3613_vm15, %v3593_v10, %v3594_v58 }
 0x2d2   :  { %10309 = vmatmul.mubr.msk.f32.gmra.mxu1 %vm4584_vm11, %v4551_v13  ;;  %vm3211_vm0 = vcmp.ge.s32.totalorder %v16830_v51, 2  ;;  %v3629_v55 = vsel %vm3613_vm15, %v3596_v5, %v3597_v34 }
 0x2d3   :  { %10311 = vmatprep.mubr.msk.f32.mxu1 %vm4584_vm11, %v4552_v42  ;;  %v4340_v22 = vpop.permute.xlu0 %4339  ;;  %v9604_v40 = vsel %vm3211_vm0, 1.0, %v16577_v3 }
 0x2d4   :  { %v4338_v60 = vpop.permute.xlu1 %4337  ;;  %v4554_v57 = vsel %vm4511_vm6, %v4489_v16, %v4340_v22  ;;  %v3724_v42 = vmul.f32 %v9604_v40, %v3631_v39 }
 0x2d5   :  { %v4553_v41 = vsel %vm4511_vm6, %v4488_v59, %v4338_v60 }
 0x2d6   :  { %10312 = vmatmul.mubr.msk.f32.gmra.mxu1 %vm4584_vm11, %v4553_v41  ;;  %v16831_v41 = vld [vmem:[#allocation44_spill] sm:$0xff] }
 0x2d7   :  { %10314 = vmatprep.mubr.msk.f32.mxu1 %vm4584_vm11, %v4554_v57  ;;  %v4088_v35 = vpop.permute.xlu0 %4087  ;;  %vm3213_vm9 = vcmp.ge.s32.totalorder %v16831_v41, 2  ;;  %v16889_v41 = vld [vmem:[#allocation31_spill] sm:$0xff] }
 0x2d8   :  { %v4086_v27 = vpop.permute.xlu1 %4085  ;;  %v4491_v31 = vsel %vm2255_vm8, %v3722_v2, %v4088_v35  ;;  %v9605_v47 = vsel %vm3213_vm9, 1.0, %v16577_v3  ;;  %v3599_v35 = vrot.slane %v16787_v25, 6  ;;  %v3630_v2 = vsel %vm3613_vm15, %v3595_v15, %v3596_v5  ;;  %v13603_v15 = vld [vmem:[%s16296_s1 + $0x30] ss:$0 sm:$0xff] }
 0x2d9   :  { %v4490_v38 = vsel %vm2255_vm8, %v3634_v52, %v4086_v27  ;;  %v3726_v27 = vmul.f32 %v9605_v47, %v3629_v55  ;;  %v3598_v52 = vrot.slane %v16784_v49, 6  ;;  %v3600_v5 = vrot.slane %v16789_v8, 6 }
 0x2db   :  { %v4344_v19 = vpop.permute.xlu0 %4343  ;;  %v3627_v49 = vsel %vm3613_vm15, %v3598_v52, %v3599_v35 }
 0x2dc   :  { %v4342_v56 = vpop.permute.xlu1 %4341  ;;  %v4556_v9 = vsel %vm4511_vm6, %v4491_v31, %v4344_v19  ;;  %v16832_v19 = vld [vmem:[#allocation48_spill] sm:$0xff] }
 0x2dd   :  { %v4555_v21 = vsel %vm4511_vm6, %v4490_v38, %v4342_v56  ;;  %vm3215_vm12 = vcmp.ge.s32.totalorder %v16832_v19, 2 }
 0x2de   :  { %10315 = vmatmul.mubr.msk.f32.gmra.mxu1 %vm4584_vm11, %v4555_v21  ;;  %v9606_v25 = vsel %vm3215_vm12, 1.0, %v16577_v3 }
 0x2df   :  { %10317 = vmatprep.mubr.msk.f32.mxu1 %vm4584_vm11, %v4556_v9  ;;  %v4092_v13 = vpop.permute.xlu0 %4091 }
 0x2e0   :  { %v4090_v20 = vpop.permute.xlu1 %4089  ;;  %v4493_v16 = vsel %vm2255_vm8, %v3724_v42, %v4092_v13  ;;  %v3601_v13 = vrot.slane %v16791_v44, 6  ;;  %v3728_v42 = vmul.f32 %v9606_v25, %v3627_v49  ;;  %v3604_v44 = vrot.slane %v16798_v61, 6 }
 0x2e1   :  { %v4492_v59 = vsel %vm2255_vm8, %v3632_v46, %v4090_v20 }
 0x2e3   :  { %v4348_v22 = vpop.permute.xlu0 %4347 }
 0x2e4   :  { %v4346_v60 = vpop.permute.xlu1 %4345  ;;  %v4558_v28 = vsel %vm4511_vm6, %v4493_v16, %v4348_v22 }
 0x2e5   :  { %v4557_v57 = vsel %vm4511_vm6, %v4492_v59, %v4346_v60  ;;  %v3628_v59 = vsel %vm3613_vm15, %v3597_v34, %v3598_v52  ;;  %v16833_v60 = vld [vmem:[#allocation52_spill] sm:$0xff] }
 0x2e6   :  { %10318 = vmatmul.mubr.msk.f32.gmra.mxu1 %vm4584_vm11, %v4557_v57  ;;  %vm3217_vm13 = vcmp.ge.s32.totalorder %v16833_v60, 2 }
 0x2e7   :  { %10320 = vmatprep.mubr.msk.f32.mxu1 %vm4584_vm11, %v4558_v28  ;;  %v4096_v29 = vpop.permute.xlu0 %4095  ;;  %v9607_v52 = vsel %vm3217_vm13, 1.0, %v16577_v3 }
 0x2e8   :  { %v4094_v10 = vpop.permute.xlu1 %4093  ;;  %v4495_v38 = vsel %vm2255_vm8, %v3726_v27, %v4096_v29 }
 0x2e9   :  { %v4494_v58 = vsel %vm2255_vm8, %v3630_v2, %v4094_v10 }
 0x2eb   :  { %v4352_v56 = vpop.permute.xlu0 %4351 }
 0x2ec   :  { %v4350_v31 = vpop.permute.xlu1 %4349  ;;  %v4560_v9 = vsel %vm4511_vm6, %v4495_v38, %v4352_v56 }
 0x2ed   :  { %v4559_v21 = vsel %vm4511_vm6, %v4494_v58, %v4350_v31  ;;  %v3625_v58 = vsel %vm3613_vm15, %v3600_v5, %v3601_v13  ;;  %v16834_v31 = vld [vmem:[#allocation54_spill] sm:$0xff] }
 0x2ee   :  { %10321 = vmatmul.mubr.msk.f32.gmra.mxu1 %vm4584_vm11, %v4559_v21  ;;  %vm3219_vm1 = vcmp.ge.s32.totalorder %v16834_v31, 2 }
 0x2ef   :  { %10323 = vmatprep.mubr.msk.f32.mxu1 %vm4584_vm11, %v4560_v9  ;;  %v4100_v39 = vpop.permute.xlu0 %4099 }
 0x2f0   :  { %v4098_v40 = vpop.permute.xlu1 %4097  ;;  %v10253_v20 = vpop.f32.mrf.mxu1  ;;  %v4497_v57 = vsel %vm2255_vm8, %v3728_v42, %v4100_v39  ;;  %v16491_v39 = vrot.slane %v16796_v33, 6 }
 0x2f1   :  { %v13607_v46 = vadd.f32 %v10253_v20, %v13603_v15  ;;  %v4496_v22 = vsel %vm2255_vm8, %v3628_v59, %v4098_v40  ;;  %v3730_v20 = vmul.f32 %v9607_v52, %v3625_v58 }
 0x2f2   :  { %v4843_v16 = vpop.f32.mrf.mxu1 }
 0x2f3   :  { %v5163_v28 = vmax.f32 %v13607_v46, 0.0  ;;  %v4356_v55 = vpop.permute.xlu0 %4355  ;;  %v4844_v10 = vadd.f32 %v13603_v15, %v4843_v16  ;;  %v3602_v46 = vrot.slane %v16793_v11, 6  ;;  %v3626_v16 = vsel %vm3613_vm15, %v3599_v35, %v3600_v5 }
 0x2f4   :  { %v4354_v47 = vpop.permute.xlu1 %4353  ;;  %v4562_v8 = vsel %vm4511_vm6, %v4497_v57, %v4356_v55  ;;  %v10256_v27 = vpop.f32.mrf.mxu1  ;;  %v9608_v11 = vsel %vm3219_vm1, 1.0, %v16577_v3 }
 0x2f5   :  { %v4561_v29 = vsel %vm4511_vm6, %v4496_v22, %v4354_v47  ;;  %v5162_v2 = vmax.f32 %v4844_v10, 0.0  ;;  %v13620_v34 = vadd.f32 %v10256_v27, %v13603_v15  ;;  %v5227_v56 = vrot.slane %v5163_v28, 2 }
 0x2f6   :  { %10324 = vmatmul.mubr.msk.f32.gmra.mxu1 %vm4584_vm11, %v4561_v29  ;;  %v4853_v38 = vpop.f32.mrf.mxu1 }
 0x2f7   :  { %10326 = vmatprep.mubr.msk.f32.mxu1 %vm4584_vm11, %v4562_v8  ;;  %v13630_v21 = vrot.slane %v5162_v2, 2  ;;  %v5165_v9 = vmax.f32 %v13620_v34, 0.0  ;;  %v4104_v49 = vpop.permute.xlu0 %4103  ;;  %v4854_v40 = vadd.f32 %v13603_v15, %v4853_v38 }
 0x2f8   :  { %v4102_v25 = vpop.permute.xlu1 %4101  ;;  %v10259_v42 = vpop.f32.mrf.mxu1  ;;  %v4499_v10 = vsel %vm2255_vm8, %v3730_v20, %v4104_v49  ;;  %v16835_v49 = vld [vmem:[#allocation56_spill] sm:$0xff] }
 0x2f9   :  { %v5352_v59 = vsel %vm3806_vm14, %v13630_v21, %v5227_v56  ;;  %v5164_v22 = vmax.f32 %v4854_v40, 0.0  ;;  %v13642_v57 = vadd.f32 %v10259_v42, %v13603_v15  ;;  %v4498_v55 = vsel %vm2255_vm8, %v3626_v16, %v4102_v25 }
 0x2fa   :  { %v13644_v47 = vmax.f32 %v5162_v2, %v5352_v59  ;;  %v4863_v29 = vpop.f32.mrf.mxu1  ;;  %v5229_v8 = vrot.slane %v5165_v9, 2  ;;  %v3623_v25 = vsel %vm3613_vm15, %v3602_v46, %v16491_v39  ;;  %vm3221_vm2 = vcmp.ge.s32.totalorder %v16835_v49, 2  ;;  %v16836_v59 = vld [vmem:[#allocation2_spill] sm:$0xff] }
 0x2fb   :  { %v5228_v27 = vrot.slane %v5164_v22, 2  ;;  %v16490_v34 = vmax.f32 %v13642_v57, 0.0  ;;  %v4360_v5 = vpop.permute.xlu0 %4359  ;;  %v4864_v52 = vadd.f32 %v13603_v15, %v4863_v29  ;;  %vm5611_vm4 = vcmp.lt.s32.totalorder %v16836_v59, 12 }
 0x2fc   :  { %v4358_v35 = vpop.permute.xlu1 %4357  ;;  %v4564_v58 = vsel %vm4511_vm6, %v4499_v10, %v4360_v5  ;;  %v10262_v38 = vpop.f32.mrf.mxu1  ;;  %6123 = vrot.lane.b32.xlu0 %v13644_v47, %s10517_s11  ;;  %v3624_v10 = vsel %vm3613_vm15, %v3601_v13, %v3602_v46  ;;  %v9742_v13 = vsel %vm5611_vm4, 1.0, %v16577_v3 }
 0x2fd   :  { %v4563_v2 = vsel %vm4511_vm6, %v4498_v55, %v4358_v35  ;;  %v5350_v40 = vsel %vm3806_vm14, %v5228_v27, %v5229_v8  ;;  %v5351_v20 = vsel %vm3806_vm14, %v5227_v56, %v5228_v27  ;;  %v5166_v42 = vmax.f32 %v4864_v52, 0.0 }
 0x2fe   :  { %10327 = vmatmul.mubr.msk.f32.gmra.mxu1 %vm4584_vm11, %v4563_v2  ;;  %v13668_v16 = vmax.f32 %v5164_v22, %v5350_v40  ;;  %v13671_v55 = vadd.f32 %v10262_v38, %v13603_v15  ;;  %v4873_v29 = vpop.f32.mrf.mxu1  ;;  %v5355_v35 = vmax.f32 %v5163_v28, %v5351_v20  ;;  %v5231_v56 = vrot.slane %v16490_v34, 2 }
 0x2ff   :  { %10329 = vmatprep.mubr.msk.f32.mxu1 %vm4584_vm11, %v4564_v58  ;;  %v5230_v27 = vrot.slane %v5166_v42, 2  ;;  %v3732_v52 = vmul.f32 %v9608_v11, %v3623_v25  ;;  %v4108_v22 = vpop.permute.xlu0 %4107  ;;  %v4874_v2 = vadd.f32 %v13603_v15, %v4873_v29 }
 0x300   :  { %v4106_v5 = vpop.permute.xlu1 %4105  ;;  %v10265_v40 = vpop.f32.mrf.mxu1  ;;  %6125 = vrot.lane.b32.xlu1 %v5355_v35, %s10517_s11  ;;  %6127 = vrot.lane.b32.xlu0 %v13668_v16, %s10517_s11  ;;  %v5804_v25 = vrot.slane %v13668_v16, 4  ;;  %v16494_v20 = vmax.f32 %v13671_v55, 0.0  ;;  %v5803_v61 = vrot.slane %v5355_v35, 4  ;;  %v16838_v35 = vrot.slane %v16800_v4, 6 }
 0x301   :  { %v5348_v46 = vsel %vm3806_vm14, %v5230_v27, %v5231_v56  ;;  %v5349_v11 = vsel %vm3806_vm14, %v5229_v8, %v5230_v27  ;;  %v5168_v58 = vmax.f32 %v4874_v2, 0.0  ;;  %v4500_v38 = vsel %vm2255_vm8, %v3624_v10, %v4106_v5 }
 0x302   :  { %v4883_v29 = vpop.f32.mrf.mxu1  ;;  %v5357_v34 = vmax.f32 %v5165_v9, %v5349_v11  ;;  %v13697_v39 = vmax.f32 %v5166_v42, %v5348_v46  ;;  %v4501_v28 = vsel %vm2255_vm8, %v3732_v52, %v4108_v22  ;;  %v16837_v9 = vrot.slane %v13644_v47, 4 }
 0x303   :  { %v5232_v59 = vrot.slane %v5168_v58, 2  ;;  %v4364_v60 = vpop.permute.xlu0 %4363  ;;  %v13704_v16 = vadd.f32 %v13603_v15, %v4883_v29  ;;  %v13722_v10 = vadd.f32 %v10265_v40, %v13603_v15  ;;  %v13731_v52 = vsel %vm5866_vm10, %v5803_v61, %v5804_v25  ;;  %v16839_v40 = vld [vmem:[#allocation3_spill] sm:$0xff] }
 0x304   :  { %v4362_v31 = vpop.permute.xlu1 %4361  ;;  %v4566_v8 = vsel %vm4511_vm6, %v4501_v28, %v4364_v60  ;;  %v10268_v27 = vpop.f32.mrf.mxu1  ;;  %6129 = vrot.lane.b32.xlu1 %v5357_v34, %s10517_s11  ;;  %v13711_v42 = vsel %vm5866_vm10, %v16837_v9, %v5803_v61  ;;  %v9609_v60 = vsel %vm3221_vm2, 1.0, %v16577_v3  ;;  %v5996_v28 = vmul.f32 %v9742_v13, %v13731_v52  ;;  %v16841_v13 = vld [vmem:[#allocation58_spill] sm:$0xff] }
 0x305   :  { %v4565_v19 = vsel %vm4511_vm6, %v4500_v38, %v4362_v31  ;;  %6379 = vrot.lane.b32.xlu0 %v13711_v42, %s10518_s25  ;;  %v5233_v31 = vrot.slane %v16494_v20, 2  ;;  %vm5613_vm7 = vcmp.lt.s32.totalorder %v16839_v40, 12  ;;  %v5347_v11 = vsel %vm3806_vm14, %v5231_v56, %v5232_v59 }
 0x306   :  { %10330 = vmatmul.mubr.msk.f32.gmra.mxu1 %vm4584_vm11, %v4565_v19  ;;  %v3621_v19 = vsel %vm3613_vm15, %v3604_v44, %v16838_v35  ;;  %v4893_v5 = vpop.f32.mrf.mxu1  ;;  %v5170_v29 = vmax.f32 %v13704_v16, 0.0  ;;  %v16840_v9 = vrot.slane %v16796_v33, 6  ;;  %vm3223_vm0 = vcmp.ge.s32.totalorder %v16841_v13, 2 }
 0x307   :  { %10332 = vmatprep.mubr.msk.f32.mxu1 %vm4584_vm11, %v4566_v8  ;;  %v4112_v38 = vpop.permute.xlu0 %4111  ;;  %v5346_v46 = vsel %vm3806_vm14, %v5232_v59, %v5233_v31  ;;  %v5805_v8 = vrot.slane %v5357_v34, 4  ;;  %v3734_v20 = vmul.f32 %v9609_v60, %v3621_v19  ;;  %v13752_v56 = vadd.f32 %v13603_v15, %v4893_v5 }
 0x308   :  { %v4110_v2 = vpop.permute.xlu1 %4109  ;;  %v3622_v35 = vsel %vm3613_vm15, %v16840_v9, %v3604_v44  ;;  %6381 = vrot.lane.b32.xlu1 %v5996_v28, %s10518_s25  ;;  %v3606_v34 = vrot.slane %v16802_v37, 6  ;;  %v9743_v33 = vsel %vm5613_vm7, 1.0, %v16577_v3  ;;  %v13756_v16 = vmax.f32 %v5168_v58, %v5346_v46  ;;  %v10271_v59 = vpop.f32.mrf.mxu1 }
 0x309   :  { %6131 = vrot.lane.b32.xlu0 %v13697_v39, %s10517_s11  ;;  %v4502_v44 = vsel %vm2255_vm8, %v3622_v35, %v4110_v2  ;;  %v4503_v60 = vsel %vm2255_vm8, %v3734_v20, %v4112_v38  ;;  %v16842_v9 = vmax.f32 %v13642_v57, 0.0  ;;  %v5234_v22 = vrot.slane %v5170_v29, 2 }
 0x30a   :  { %v16843_v37 = vrot.slane %v13697_v39, 4  ;;  %v13774_v57 = vsel %vm5866_vm10, %v5804_v25, %v5805_v8  ;;  %v13777_v20 = vadd.f32 %v10268_v27, %v13603_v15  ;;  %v9610_v38 = vsel %vm3223_vm0, 1.0, %v16577_v3 }
 0x30b   :  { %v4368_v28 = vpop.permute.xlu0 %4367  ;;  %v5359_v61 = vmax.f32 %v16842_v9, %v5347_v11  ;;  %v16844_v46 = vrot.slane %v16805_v0, 6  ;;  %v16845_v11 = vmax.f32 %v13722_v10, 0.0  ;;  %v16851_v49 = vrot.slane %v13756_v16, 4 }
 0x30c   :  { %v4366_v19 = vpop.permute.xlu1 %4365  ;;  %v4568_v40 = vsel %vm4511_vm6, %v4503_v60, %v4368_v28  ;;  %v13768_v58 = vsel %vm5866_vm10, %v5805_v8, %v16843_v37  ;;  %v16846_v60 = vld [vmem:[#allocation4_spill] sm:$0xff]  ;;  %v4903_v28 = vpop.f32.mrf.mxu1  ;;  %v3608_v37 = vrot.slane %v16807_v30, 6 }
 0x30d   :  { %v4567_v5 = vsel %vm4511_vm6, %v4502_v44, %v4366_v19  ;;  %6133 = vrot.lane.b32.xlu1 %v5359_v61, %s10517_s11  ;;  %6383 = vrot.lane.b32.xlu0 %v13774_v57, %s10518_s25  ;;  %v3619_v25 = vsel %vm3613_vm15, %v3606_v34, %v16844_v46  ;;  %v5235_v27 = vrot.slane %v16845_v11, 2  ;;  %v5998_v44 = vmul.f32 %v9743_v33, %v13768_v58 }
 0x30e   :  { %10333 = vmatmul.mubr.msk.f32.gmra.mxu1 %vm4584_vm11, %v4567_v5  ;;  %vm5615_vm9 = vcmp.lt.s32.totalorder %v16846_v60, 12  ;;  %v5345_v19 = vsel %vm3806_vm14, %v5233_v31, %v5234_v22  ;;  %v5807_v9 = vrot.slane %v5359_v61, 4  ;;  %v16847_v5 = vld [vmem:[#allocation60_spill] sm:$0xff]  ;;  %v16848_v11 = vrot.slane %v16800_v4, 6  ;;  %v10274_v60 = vpop.f32.mrf.mxu1 }
 0x30f   :  { %10335 = vmatprep.mubr.msk.f32.mxu1 %vm4584_vm11, %v4568_v40  ;;  %v4116_v35 = vpop.permute.xlu0 %4115  ;;  %vm3225_vm12 = vcmp.ge.s32.totalorder %v16847_v5, 2  ;;  %v5344_v46 = vsel %vm3806_vm14, %v5234_v22, %v5235_v27  ;;  %v3736_v2 = vmul.f32 %v9610_v38, %v3619_v25  ;;  %v16849_v31 = vmax.f32 %v13752_v56, 0.0 }
 0x310   :  { %v4114_v8 = vpop.permute.xlu1 %4113  ;;  %v3620_v33 = vsel %vm3613_vm15, %v16848_v11, %v3606_v34  ;;  %v9744_v22 = vsel %vm5615_vm9, 1.0, %v16577_v3  ;;  %v13814_v4 = vadd.f32 %v13603_v15, %v4903_v28  ;;  %v16850_v11 = vmax.f32 %v13671_v55, 0.0 }
 0x311   :  { %6385 = vrot.lane.b32.xlu1 %v5998_v44, %s10518_s25  ;;  %v5236_v61 = vrot.slane %v16849_v31, 2  ;;  %6135 = vrot.lane.b32.xlu0 %v13756_v16, %s10517_s11  ;;  %v4504_v34 = vsel %vm2255_vm8, %v3620_v33, %v4114_v8  ;;  %v4505_v38 = vsel %vm2255_vm8, %v3736_v2, %v4116_v35  ;;  %v13820_v31 = vmax.f32 %v5170_v29, %v5344_v46  ;;  %v16854_v8 = vld [vmem:[#allocation5_spill] sm:$0xff] }
 0x312   :  { %v5361_v40 = vmax.f32 %v16850_v11, %v5345_v19  ;;  %v13828_v28 = vsel %vm5866_vm10, %v5807_v9, %v16851_v49  ;;  %v13831_v2 = vadd.f32 %v10271_v59, %v13603_v15  ;;  %v16852_v55 = vrot.slane %v13697_v39, 4  ;;  %v16856_v11 = vld [vmem:[#allocation62_spill] sm:$0xff] }
 0x313   :  { %v4372_v44 = vpop.permute.xlu0 %4371  ;;  %v9611_v49 = vsel %vm3225_vm12, 1.0, %v16577_v3  ;;  %v16853_v59 = vrot.slane %v16810_v26, 6  ;;  %vm5617_vm13 = vcmp.lt.s32.totalorder %v16854_v8, 12  ;;  %v16855_v39 = vmax.f32 %v13777_v20, 0.0 }
 0x314   :  { %v4370_v25 = vpop.permute.xlu1 %4369  ;;  %v4570_v30 = vsel %vm4511_vm6, %v4505_v38, %v4372_v44  ;;  %v13839_v29 = vsel %vm5866_vm10, %v16852_v55, %v5807_v9  ;;  %v5343_v19 = vsel %vm3806_vm14, %v5235_v27, %v5236_v61  ;;  %v5174_v9 = vmax.f32 %v13814_v4, 0.0 }
 0x315   :  { %v4569_v13 = vsel %vm4511_vm6, %v4504_v34, %v4370_v25  ;;  %6137 = vrot.lane.b32.xlu1 %v5361_v40, %s10517_s11  ;;  %6387 = vrot.lane.b32.xlu0 %v13839_v29, %s10518_s25  ;;  %v5237_v35 = vrot.slane %v16855_v39, 2  ;;  %v6000_v34 = vmul.f32 %v9744_v22, %v13828_v28  ;;  %v16497_v38 = vrot.slane %v13820_v31, 4  ;;  %v4913_v25 = vpop.f32.mrf.mxu1 }
 0x316   :  { %10336 = vmatmul.mubr.msk.f32.gmra.mxu1 %vm4584_vm11, %v4569_v13  ;;  %v3617_v13 = vsel %vm3613_vm15, %v3608_v37, %v16853_v59  ;;  %v5809_v44 = vrot.slane %v5361_v40, 4  ;;  %vm3227_vm1 = vcmp.ge.s32.totalorder %v16856_v11, 2  ;;  %v16857_v59 = vrot.slane %v16805_v0, 6 }
 0x317   :  { %10338 = vmatprep.mubr.msk.f32.mxu1 %vm4584_vm11, %v4570_v30  ;;  %v4120_v33 = vpop.permute.xlu0 %4119  ;;  %v5342_v30 = vsel %vm3806_vm14, %v5236_v61, %v5237_v35  ;;  %v3738_v4 = vmul.f32 %v9611_v49, %v3617_v13  ;;  %v16858_v40 = vmax.f32 %v13722_v10, 0.0  ;;  %v3610_v61 = vrot.slane %v13424_v32, 6 }
 0x318   :  { %v4118_v46 = vpop.permute.xlu1 %4117  ;;  %v3618_v27 = vsel %vm3613_vm15, %v16857_v59, %v3608_v37  ;;  %v9745_v0 = vsel %vm5617_vm13, 1.0, %v16577_v3  ;;  %v5238_v55 = vrot.slane %v5174_v9, 2  ;;  %v13878_v37 = vadd.f32 %v13603_v15, %v4913_v25 }
 0x319   :  { %6389 = vrot.lane.b32.xlu1 %v6000_v34, %s10518_s25  ;;  %6139 = vrot.lane.b32.xlu0 %v13820_v31, %s10517_s11  ;;  %v5363_v39 = vmax.f32 %v16858_v40, %v5343_v19  ;;  %v4506_v49 = vsel %vm2255_vm8, %v3618_v27, %v4118_v46  ;;  %v4507_v13 = vsel %vm2255_vm8, %v3738_v4, %v4120_v33  ;;  %v16859_v22 = vmax.f32 %v13752_v56, 0.0  ;;  %v10277_v33 = vpop.f32.mrf.mxu1 }
 0x31a   :  { %v13892_v25 = vsel %vm5866_vm10, %v5809_v44, %v16497_v38  ;;  %v16861_v46 = vmax.f32 %v13831_v2, 0.0  ;;  %v16862_v56 = vrot.slane %v13756_v16, 4  ;;  %v13905_v4 = vadd.f32 %v10274_v60, %v13603_v15 }
 0x31b   :  { %v4376_v59 = vpop.permute.xlu0 %4375  ;;  %v13884_v10 = vmax.f32 %v16859_v22, %v5342_v30  ;;  %16860 = vst [vmem:[#allocation72_spill] sm:$0xff] %v13892_v25  ;;  %v9612_v22 = vsel %vm3227_vm1, 1.0, %v16577_v3  ;;  %v16864_v40 = vrot.slane %v13435_v45, 6  ;;  %v5176_v60 = vmax.f32 %v13878_v37, 0.0 }
 0x31c   :  { %v4374_v34 = vpop.permute.xlu1 %4373  ;;  %v4572_v19 = vsel %vm4511_vm6, %v4507_v13, %v4376_v59  ;;  %v5239_v27 = vrot.slane %v16861_v46, 2  ;;  %v13902_v30 = vsel %vm5866_vm10, %v16862_v56, %v5809_v44  ;;  %v16865_v59 = vld [vmem:[#allocation7_spill] sm:$0xff]  ;;  %v5811_v46 = vrot.slane %v5363_v39, 4  ;;  %v4923_v56 = vpop.f32.mrf.mxu1 }
 0x31d   :  { %v4571_v32 = vsel %vm4511_vm6, %v4506_v49, %v4374_v34  ;;  %6141 = vrot.lane.b32.xlu1 %v5363_v39, %s10517_s11  ;;  %16863 = vst [vmem:[#allocation109_spill] sm:$0xff] %v13902_v30  ;;  %6391 = vrot.lane.b32.xlu0 %v13902_v30, %s10518_s25  ;;  %v3615_v16 = vsel %vm3613_vm15, %v3610_v61, %v16864_v40  ;;  %vm5619_vm2 = vcmp.lt.s32.totalorder %v16865_v59, 12  ;;  %v5177_v37 = vmax.f32 %v13905_v4, 0.0 }
 0x31e   :  { %10339 = vmatmul.mubr.msk.f32.gmra.mxu1 %vm4584_vm11, %v4571_v32  ;;  %v5340_v44 = vsel %vm3806_vm14, %v5238_v55, %v5239_v27  ;;  %v6002_v34 = vmul.f32 %v9745_v0, %v13892_v25  ;;  %v5812_v32 = vrot.slane %v13884_v10, 4  ;;  %v3740_v38 = vmul.f32 %v9612_v22, %v3615_v16 }
 0x31f   :  { %10341 = vmatprep.mubr.msk.f32.mxu1 %vm4584_vm11, %v4572_v19  ;;  %v4124_v13 = vpop.permute.xlu0 %4123  ;;  %v5341_v19 = vsel %vm3806_vm14, %v5237_v35, %v5238_v55  ;;  %v13926_v40 = vmax.f32 %v5174_v9, %v5340_v44  ;;  %v16866_v8 = vrot.slane %v16810_v26, 6  ;;  %v9746_v59 = vsel %vm5619_vm2, 1.0, %v16577_v3 }
 0x320   :  { %v4122_v49 = vpop.permute.xlu1 %4121  ;;  %v5240_v35 = vrot.slane %v5176_v60, 2  ;;  %v4509_v39 = vsel %vm2255_vm8, %v3740_v38, %v4124_v13  ;;  %v16867_v16 = vmax.f32 %v13777_v20, 0.0  ;;  %v4924_v26 = vadd.f32 %v13603_v15, %v4923_v56 }
 0x321   :  { %6393 = vrot.lane.b32.xlu1 %v6002_v34, %s10518_s25  ;;  %v3616_v0 = vsel %vm3613_vm15, %v16866_v8, %v3610_v61  ;;  %6143 = vrot.lane.b32.xlu0 %v13884_v10, %s10517_s11  ;;  %v13945_v61 = vsel %vm5866_vm10, %v5811_v46, %v5812_v32  ;;  %v10280_v10 = vpop.f32.mrf.mxu1  ;;  %v16869_v38 = vrot.slane %v13820_v31, 4  ;;  %v13958_v13 = vadd.f32 %v10277_v33, %v13603_v15 }
 0x322   :  { %v4508_v55 = vsel %vm2255_vm8, %v3616_v0, %v4122_v49  ;;  %v5365_v44 = vmax.f32 %v16867_v16, %v5341_v19  ;;  %16868 = vst [vmem:[#allocation76_spill] sm:$0xff] %v13945_v61  ;;  %v5241_v49 = vrot.slane %v5177_v37, 2  ;;  %v5814_v19 = vrot.slane %v13926_v40, 4  ;;  %v16871_v0 = vld [vmem:[#allocation9_spill] sm:$0xff] }
 0x323   :  { %v4380_v9 = vpop.permute.xlu0 %4379  ;;  %v13953_v20 = vsel %vm5866_vm10, %v16869_v38, %v5811_v46  ;;  %v6004_v31 = vmul.f32 %v9746_v59, %v13945_v61  ;;  %vm5621_vm4 = vcmp.lt.s32.totalorder %v16871_v0, 12  ;;  %v5178_v33 = vmax.f32 %v4924_v26, 0.0 }
 0x324   :  { %v4378_v22 = vpop.permute.xlu1 %4377  ;;  %v4574_v8 = vsel %vm4511_vm6, %v4509_v39, %v4380_v9  ;;  %16870 = vst [vmem:[#allocation114_spill] sm:$0xff] %v13953_v20  ;;  %v5338_v46 = vsel %vm3806_vm14, %v5240_v35, %v5241_v49  ;;  %v5813_v39 = vrot.slane %v5365_v44, 4  ;;  %v5179_v9 = vmax.f32 %v13958_v13, 0.0 }
 0x325   :  { %v4573_v34 = vsel %vm4511_vm6, %v4508_v55, %v4378_v22  ;;  %6145 = vrot.lane.b32.xlu1 %v5365_v44, %s10517_s11  ;;  %6395 = vrot.lane.b32.xlu0 %v13953_v20, %s10518_s25  ;;  %v5339_v55 = vsel %vm3806_vm14, %v5239_v27, %v5240_v35  ;;  %v4933_v22 = vpop.f32.mrf.mxu1  ;;  %v16872_v16 = vrot.slane %v16819_v1, 6  ;;  %v16874_v44 = vmax.f32 %v13831_v2, 0.0 }
 0x326   :  { %10342 = vmatmul.mubr.msk.f32.gmra.mxu1 %vm4584_vm11, %v4573_v34  ;;  %v16873_v34 = vrot.slane %v13435_v45, 6  ;;  %v9747_v38 = vsel %vm5621_vm4, 1.0, %v16577_v3  ;;  %v5242_v13 = vrot.slane %v5178_v33, 2  ;;  %v4934_v1 = vadd.f32 %v13603_v15, %v4933_v22 }
 0x327   :  { %10344 = vmatprep.mubr.msk.f32.mxu1 %vm4584_vm11, %v4574_v8  ;;  %v5368_v8 = vmax.f32 %v5176_v60, %v5338_v46  ;;  %v5367_v26 = vmax.f32 %v16874_v44, %v5339_v55  ;;  %v13994_v2 = vsel %vm5866_vm10, %v5812_v32, %v5813_v39  ;;  %v5243_v60 = vrot.slane %v5179_v9, 2  ;;  %v16877_v32 = vld [vmem:[#allocation11_spill] sm:$0xff] }
 0x328   :  { %v4126_v56 = vpop.permute.xlu1 %4125  ;;  %v3614_v59 = vsel %vm3613_vm15, %v16873_v34, %v16872_v16  ;;  %16876 = vst [vmem:[#allocation115_spill] sm:$0xff] %v13994_v2  ;;  %v5337_v22 = vsel %vm3806_vm14, %v5241_v49, %v5242_v13  ;;  %v5180_v34 = vmax.f32 %v4934_v1, 0.0  ;;  %vm5623_vm15 = vcmp.lt.s32.totalorder %v16877_v32, 12 }
 0x329   :  { %6397 = vrot.lane.b32.xlu1 %v6004_v31, %s10518_s25  ;;  %6147 = vrot.lane.b32.xlu0 %v13926_v40, %s10517_s11  ;;  %v4510_v27 = vsel %vm2255_vm8, %v3614_v59, %v4126_v56  ;;  %v13988_v31 = vsel %vm5866_vm10, %v5813_v39, %v5814_v19  ;;  %v4939_v40 = vadd.f32 %v10280_v10, %v13603_v15  ;;  %v5816_v56 = vrot.slane %v5368_v8, 4 }
 0x32a   :  { %16875 = vst [vmem:[#allocation75_spill] sm:$0xff] %v13988_v31  ;;  %v10283_v16 = vpop.f32.mrf.mxu1  ;;  %v6006_v46 = vmul.f32 %v9747_v38, %v13988_v31  ;;  %v5336_v55 = vsel %vm3806_vm14, %v5242_v13, %v5243_v60  ;;  %v5815_v59 = vrot.slane %v5367_v26, 4  ;;  %v5244_v44 = vrot.slane %v5180_v34, 2 }
 0x32b   :  { %v5181_v10 = vmax.f32 %v4939_v40, 0.0  ;;  %v5370_v39 = vmax.f32 %v5178_v33, %v5336_v55  ;;  %vm5635_vm13 = vcmp.lt.s32.totalorder %v16889_v41, 12  ;;  %vm5639_vm2 = vcmp.lt.s32.totalorder %v16738_v48, 12 }
 0x32c   :  { %v4382_v35 = vpop.permute.xlu1 %4381  ;;  %v14013_v49 = vsel %vm5866_vm10, %v5815_v59, %v5816_v56  ;;  %v5335_v1 = vsel %vm3806_vm14, %v5243_v60, %v5244_v44  ;;  %v9754_v41 = vsel %vm5635_vm13, 1.0, %v16577_v3  ;;  %vm5641_vm4 = vcmp.lt.s32.totalorder %v16742_v23, 12 }
 0x32d   :  { %v4575_v45 = vsel %vm4511_vm6, %v4510_v27, %v4382_v35  ;;  %6149 = vrot.lane.b32.xlu1 %v5367_v26, %s10517_s11  ;;  %6399 = vrot.lane.b32.xlu0 %v13994_v2, %s10518_s25  ;;  %v4943_v27 = vpop.f32.mrf.mxu1  ;;  %v5369_v35 = vmax.f32 %v5177_v37, %v5337_v22  ;;  %16878 = vst [vmem:[#allocation80_spill] sm:$0xff] %v14013_v49  ;;  %v5818_v4 = vrot.slane %v5370_v39, 4  ;;  %v9757_v23 = vsel %vm5641_vm4, 1.0, %v16577_v3 }
 0x32e   :  { %10345 = vmatmul.mubr.msk.f32.gmra.mxu1 %vm4584_vm11, %v4575_v45  ;;  %v4944_v38 = vadd.f32 %v13603_v15, %v4943_v27  ;;  %v9748_v45 = vsel %vm5623_vm15, 1.0, %v16577_v3  ;;  %v14018_v26 = vsel %vm5866_vm10, %v5814_v19, %v5815_v59  ;;  %v4949_v37 = vadd.f32 %v10283_v16, %v13603_v15  ;;  %v16880_v19 = vld [vmem:[#allocation13_spill] sm:$0xff] }
 0x32f   :  { %16879 = vst [vmem:[#allocation79_spill] sm:$0xff] %v14018_v26  ;;  %v6008_v33 = vmul.f32 %v9748_v45, %v14013_v49  ;;  %vm5625_vm11 = vcmp.lt.s32.totalorder %v16880_v19, 12  ;;  %v5371_v16 = vmax.f32 %v5179_v9, %v5335_v1  ;;  %vm5643_vm15 = vcmp.lt.s32.totalorder %v16748_v12, 12 }
 0x330   :  { %v5182_v40 = vmax.f32 %v4944_v38, 0.0  ;;  %v5183_v59 = vmax.f32 %v4949_v37, 0.0  ;;  %v9749_v32 = vsel %vm5625_vm11, 1.0, %v16577_v3  ;;  %vm5645_vm11 = vcmp.lt.s32.totalorder %v16762_v54, 12 }
 0x331   :  { %6401 = vrot.lane.b32.xlu1 %v6006_v46, %s10518_s25  ;;  %6151 = vrot.lane.b32.xlu0 %v5368_v8, %s10517_s11  ;;  %v5245_v8 = vrot.slane %v5181_v10, 2  ;;  %v5817_v46 = vrot.slane %v5369_v35, 4  ;;  %vm5436_vm13 = vcmp.ge.s32.totalorder %v16754_v14, 4 }
 0x332   :  { %v5246_v27 = vrot.slane %v5182_v40, 2 }
 0x333   :  { %v5334_v13 = vsel %vm3806_vm14, %v5244_v44, %v5245_v8  ;;  %v14034_v0 = vsel %vm5866_vm10, %v5817_v46, %v5818_v4  ;;  %v16882_v44 = vld [vmem:[#allocation15_spill] sm:$0xff] }
 0x334   :  { %v5372_v22 = vmax.f32 %v5180_v34, %v5334_v13  ;;  %v5247_v34 = vrot.slane %v5183_v59, 2  ;;  %vm5627_vm7 = vcmp.lt.s32.totalorder %v16882_v44, 12  ;;  %v5333_v38 = vsel %vm3806_vm14, %v5245_v8, %v5246_v27 }
 0x335   :  { %6153 = vrot.lane.b32.xlu1 %v5369_v35, %s10517_s11  ;;  %6403 = vrot.lane.b32.xlu0 %v14018_v26, %s10518_s25  ;;  %v14040_v35 = vsel %vm5866_vm10, %v5816_v56, %v5817_v46  ;;  %v5819_v13 = vrot.slane %v5371_v16, 4  ;;  %v5373_v1 = vmax.f32 %v5181_v10, %v5333_v38  ;;  %v9750_v46 = vsel %vm5627_vm7, 1.0, %v16577_v3 }
 0x336   :  { %16881 = vst [vmem:[#allocation67_spill] sm:$0xff] %v14040_v35  ;;  %v5820_v9 = vrot.slane %v5372_v22, 4  ;;  %v5332_v56 = vsel %vm3806_vm14, %v5246_v27, %v5247_v34  ;;  %vm5647_vm7 = vcmp.lt.s32.totalorder %v16757_v6, 12 }
 0x337   :  { %v5821_v27 = vrot.slane %v5373_v1, 4 }
 0x338   :  { %v14056_v8 = vsel %vm5866_vm10, %v5819_v13, %v5820_v9 }
 0x339   :  { %6405 = vrot.lane.b32.xlu1 %v6008_v33, %s10518_s25  ;;  %6155 = vrot.lane.b32.xlu0 %v5370_v39, %s10517_s11  ;;  %v6010_v39 = vmul.f32 %v9749_v32, %v14034_v0  ;;  %v5374_v32 = vmax.f32 %v5182_v40, %v5332_v56  ;;  %v6012_v10 = vmul.f32 %v9750_v46, %v14056_v8 }
 0x33a   :  { %v10286_v55 = vpop.f32.mrf.mxu1 }
 0x33b   :  { %v4959_v37 = vadd.f32 %v10286_v55, %v13603_v15  ;;  %v14061_v55 = vsel %vm5866_vm10, %v5818_v4, %v5819_v13  ;;  %v6705_v4 = vld [vmem:[%s16296_s1 + $0x60] sm:$0xff] }
 0x33c   :  { %v4953_v45 = vpop.f32.mrf.mxu1  ;;  %16883 = vst [vmem:[#allocation84_spill] sm:$0xff] %v14061_v55  ;;  %10347 = vmatprep.subr.mxu0 %v6705_v4 }
 0x33d   :  { %v4954_v60 = vadd.f32 %v13603_v15, %v4953_v45  ;;  %6157 = vrot.lane.b32.xlu1 %v5371_v16, %s10517_s11  ;;  %6407 = vrot.lane.b32.xlu0 %v14040_v35, %s10518_s25  ;;  %v5185_v45 = vmax.f32 %v4959_v37, 0.0 }
 0x33e   :  { %10348 = vmatpush3.msra.mxu0 %v6705_v4 }
 0x33f   :  { %v5184_v33 = vmax.f32 %v4954_v60, 0.0  ;;  %v5249_v16 = vrot.slane %v5185_v45, 2  ;;  %v16884_v60 = vld [vmem:[#allocation19_spill] sm:$0xff] }
 0x340   :  { %vm5629_vm0 = vcmp.lt.s32.totalorder %v16884_v60, 12 }
 0x341   :  { %6409 = vrot.lane.b32.xlu1 %v6010_v39, %s10518_s25  ;;  %6159 = vrot.lane.b32.xlu0 %v5372_v22, %s10517_s11  ;;  %v5248_v44 = vrot.slane %v5184_v33, 2  ;;  %v5822_v22 = vrot.slane %v5374_v32, 4  ;;  %v9751_v56 = vsel %vm5629_vm0, 1.0, %v16577_v3  ;;  %vm5434_vm0 = vcmp.ge.s32.totalorder %v16747_v36, 4 }
 0x343   :  { %v5331_v40 = vsel %vm3806_vm14, %v5247_v34, %v5248_v44  ;;  %v5330_v39 = vsel %vm3806_vm14, %v5248_v44, %v5249_v16  ;;  %v14086_v44 = vsel %vm5866_vm10, %v5820_v9, %v5821_v27  ;;  %v6704_v9 = vld [vmem:[%s16296_s1 + $0x58] sm:$0xff] }
 0x344   :  { %v5375_v13 = vmax.f32 %v5183_v59, %v5331_v40  ;;  %v5376_v46 = vmax.f32 %v5184_v33, %v5330_v39  ;;  %v16885_v39 = vld [vmem:[#allocation23_spill] sm:$0xff]  ;;  %10349 = vmatprep.subr.mxu0 %v6704_v9 }
 0x345   :  { %6161 = vrot.lane.b32.xlu1 %v5373_v1, %s10517_s11  ;;  %6411 = vrot.lane.b32.xlu0 %v14061_v55, %s10518_s25  ;;  %v14080_v1 = vsel %vm5866_vm10, %v5821_v27, %v5822_v22  ;;  %vm5631_vm9 = vcmp.lt.s32.totalorder %v16885_v39, 12 }
 0x346   :  { %v6014_v40 = vmul.f32 %v9751_v56, %v14080_v1  ;;  %v5824_v4 = vrot.slane %v5376_v46, 4  ;;  %v5823_v33 = vrot.slane %v5375_v13, 4  ;;  %10350 = vmatpush3.msra.mxu0 %v6704_v9 }
 0x349   :  { %6413 = vrot.lane.b32.xlu1 %v6012_v10, %s10518_s25  ;;  %6163 = vrot.lane.b32.xlu0 %v5374_v32, %s10517_s11 }
 0x34a   :  { %v10289_v38 = vpop.f32.mrf.mxu1 }
 0x34b   :  { %v4969_v37 = vadd.f32 %v10289_v38, %v13603_v15 }
 0x34c   :  { %v4963_v34 = vpop.f32.mrf.mxu1 }
 0x34d   :  { %v4964_v10 = vadd.f32 %v13603_v15, %v4963_v34  ;;  %6165 = vrot.lane.b32.xlu1 %v5375_v13, %s10517_s11  ;;  %6415 = vrot.lane.b32.xlu0 %v14086_v44, %s10518_s25  ;;  %v5187_v59 = vmax.f32 %v4969_v37, 0.0  ;;  %v14103_v13 = vsel %vm5866_vm10, %v5822_v22, %v5823_v33 }
 0x34f   :  { %v5186_v32 = vmax.f32 %v4964_v10, 0.0  ;;  %v5251_v27 = vrot.slane %v5187_v59, 2  ;;  %v14108_v10 = vsel %vm5866_vm10, %v5823_v33, %v5824_v4 }
 0x351   :  { %v5250_v38 = vrot.slane %v5186_v32, 2  ;;  %6417 = vrot.lane.b32.xlu1 %v6014_v40, %s10518_s25  ;;  %6167 = vrot.lane.b32.xlu0 %v5376_v46, %s10517_s11  ;;  %v9752_v46 = vsel %vm5631_vm9, 1.0, %v16577_v3  ;;  %vm5649_vm9 = vcmp.lt.s32.totalorder %v16765_v43, 12 }
 0x353   :  { %v5329_v37 = vsel %vm3806_vm14, %v5249_v16, %v5250_v38  ;;  %v5328_v56 = vsel %vm3806_vm14, %v5250_v38, %v5251_v27  ;;  %v6016_v16 = vmul.f32 %v9752_v46, %v14108_v10 }
 0x354   :  { %v5377_v34 = vmax.f32 %v5185_v45, %v5329_v37  ;;  %v5378_v45 = vmax.f32 %v5186_v32, %v5328_v56 }
 0x355   :  { %6419 = vrot.lane.b32.xlu0 %v14103_v13, %s10518_s25 }
 0x356   :  { %6169 = vrot.lane.b32.xlu1 %v5377_v34, %s10517_s11  ;;  %v5825_v40 = vrot.slane %v5377_v34, 4  ;;  %v5826_v34 = vrot.slane %v5378_v45, 4 }
 0x358   :  { %v14120_v39 = vsel %vm5866_vm10, %v5824_v4, %v5825_v40 }
 0x359   :  { %6171 = vrot.lane.b32.xlu0 %v5378_v45, %s10517_s11  ;;  %16886 = vst [vmem:[#allocation69_spill] sm:$0xff] %v14120_v39 }
 0x35a   :  { %v10292_v38 = vpop.f32.mrf.mxu1  ;;  %6421 = vrot.lane.b32.xlu1 %v6016_v16, %s10518_s25  ;;  %v6703_v16 = vld [vmem:[%s16296_s1 + $0x50] sm:$0xff] }
 0x35b   :  { %v4979_v22 = vadd.f32 %v10292_v38, %v13603_v15  ;;  %v16887_v38 = vld [vmem:[#allocation27_spill] sm:$0xff]  ;;  %10351 = vmatprep.subr.mxu0 %v6703_v16 }
 0x35c   :  { %v4973_v9 = vpop.f32.mrf.mxu1  ;;  %vm5633_vm12 = vcmp.lt.s32.totalorder %v16887_v38, 12  ;;  %10352 = vmatpush3.msra.mxu0 %v6703_v16 }
 0x35d   :  { %v5189_v37 = vmax.f32 %v4979_v22, 0.0  ;;  %v4974_v33 = vadd.f32 %v13603_v15, %v4973_v9  ;;  %6423 = vrot.lane.b32.xlu0 %v14120_v39, %s10518_s25  ;;  %v9753_v45 = vsel %vm5633_vm12, 1.0, %v16577_v3  ;;  %vm5438_vm12 = vcmp.ge.s32.totalorder %v16763_v24, 4 }
 0x35f   :  { %v5188_v32 = vmax.f32 %v4974_v33, 0.0  ;;  %v5253_v56 = vrot.slane %v5189_v37, 2  ;;  %v14135_v33 = vsel %vm5866_vm10, %v5825_v40, %v5826_v34 }
 0x360   :  { %v6018_v19 = vmul.f32 %v9753_v45, %v14135_v33 }
 0x361   :  { %v5252_v46 = vrot.slane %v5188_v32, 2 }
 0x363   :  { %v5326_v22 = vsel %vm3806_vm14, %v5252_v46, %v5253_v56  ;;  %v5327_v4 = vsel %vm3806_vm14, %v5251_v27, %v5252_v46 }
 0x364   :  { %v5380_v9 = vmax.f32 %v5188_v32, %v5326_v22  ;;  %v5379_v60 = vmax.f32 %v5187_v59, %v5327_v4  ;;  %v6702_v59 = vld [vmem:[%s16296_s1 + $0x48] sm:$0xff] }
 0x365   :  { %10353 = vmatprep.subr.mxu0 %v6702_v59 }
 0x366   :  { %6173 = vrot.lane.b32.xlu1 %v5379_v60, %s10517_s11  ;;  %6175 = vrot.lane.b32.xlu0 %v5380_v9, %s10517_s11  ;;  %v5827_v38 = vrot.slane %v5379_v60, 4  ;;  %v5828_v22 = vrot.slane %v5380_v9, 4 }
 0x367   :  { %10354 = vmatpush3.msra.mxu0 %v6702_v59 }
 0x368   :  { %v14142_v11 = vsel %vm5866_vm10, %v5826_v34, %v5827_v38  ;;  %v14171_v63 = vsel %vm5866_vm10, %v5827_v38, %v5828_v22 }
 0x369   :  { %16888 = vst [vmem:[#allocation83_spill] sm:$0xff] %v14142_v11 }
 0x36a   :  { %v10295_v27 = vpop.f32.mrf.mxu1  ;;  %6425 = vrot.lane.b32.xlu1 %v6018_v19, %s10518_s25  ;;  %6427 = vrot.lane.b32.xlu0 %v14142_v11, %s10518_s25 }
 0x36b   :  { %v4989_v40 = vadd.f32 %v10295_v27, %v13603_v15 }
 0x36c   :  { %v4983_v60 = vpop.f32.mrf.mxu1 }
 0x36d   :  { %v5191_v32 = vmax.f32 %v4989_v40, 0.0  ;;  %v4984_v46 = vadd.f32 %v13603_v15, %v4983_v60 }
 0x36e   :  { %v14152_v34 = vpop.permute.xlu0 %6123 }
 0x36f   :  { %v5190_v16 = vmax.f32 %v4984_v46, 0.0  ;;  %v5255_v19 = vrot.slane %v5191_v32, 2 }
 0x371   :  { %v5254_v4 = vrot.slane %v5190_v16, 2 }
 0x372   :  { %v10298_v45 = vpop.f32.mrf.mxu1  ;;  %v14154_v5 = vpop.permute.xlu1 %6125 }
 0x373   :  { %v5324_v27 = vsel %vm3806_vm14, %v5254_v4, %v5255_v19  ;;  %v5325_v59 = vsel %vm3806_vm14, %v5253_v56, %v5254_v4  ;;  %v14162_v40 = vadd.f32 %v10298_v45, %v13603_v15  ;;  %v14164_v60 = vpop.permute.xlu0 %6127 }
 0x374   :  { %v5382_v46 = vmax.f32 %v5190_v16, %v5324_v27  ;;  %v4993_v9 = vpop.f32.mrf.mxu1  ;;  %v5381_v51 = vmax.f32 %v5189_v37, %v5325_v59  ;;  %v6020_v37 = vmul.f32 %v9754_v41, %v14171_v63 }
 0x375   :  { %v5193_v62 = vmax.f32 %v14162_v40, 0.0  ;;  %v4994_v17 = vadd.f32 %v13603_v15, %v4993_v9  ;;  %v6701_v9 = vld [vmem:[%s16296_s1 + $0x40] sm:$0xff] }
 0x376   :  { %6177 = vrot.lane.b32.xlu1 %v5381_v51, %s10517_s11  ;;  %6179 = vrot.lane.b32.xlu0 %v5382_v46, %s10517_s11  ;;  %v14175_v56 = vpop.permute.xlu1 %6129  ;;  %v5829_v4 = vrot.slane %v5381_v51, 4  ;;  %v5830_v59 = vrot.slane %v5382_v46, 4 }
 0x377   :  { %v5192_v16 = vmax.f32 %v4994_v17, 0.0  ;;  %v14177_v45 = vpop.permute.xlu0 %6379  ;;  %v5257_v40 = vrot.slane %v5193_v62, 2  ;;  %v16891_v17 = vld [vmem:[#allocation35_spill] sm:$0xff]  ;;  %10355 = vmatprep.subr.mxu0 %v6701_v9 }
 0x378   :  { %v14182_v27 = vsel %vm5866_vm10, %v5828_v22, %v5829_v4  ;;  %vm5637_vm1 = vcmp.lt.s32.totalorder %v16891_v17, 12  ;;  %10356 = vmatpush3.msra.mxu0 %v6701_v9  ;;  %v14205_v39 = vsel %vm5866_vm10, %v5829_v4, %v5830_v59 }
 0x379   :  { %16890 = vst [vmem:[#allocation68_spill] sm:$0xff] %v14182_v27  ;;  %v5256_v38 = vrot.slane %v5192_v16, 2  ;;  %v9755_v17 = vsel %vm5637_vm1, 1.0, %v16577_v3  ;;  %vm6635_vm1 = vcmask 261120  }
 0x37a   :  { %6429 = vrot.lane.b32.xlu1 %v6020_v37, %s10518_s25  ;;  %6431 = vrot.lane.b32.xlu0 %v14182_v27, %s10518_s25  ;;  %v14195_v22 = vpop.permute.xlu1 %6381  ;;  %v6700_v37 = vld [vmem:[%s16296_s1 + $0x38] sm:$0xff]  ;;  %v6022_v4 = vmul.f32 %v9755_v17, %v14205_v39 }
 0x37b   :  { %v5322_v51 = vsel %vm3806_vm14, %v5256_v38, %v5257_v40  ;;  %v5323_v41 = vsel %vm3806_vm14, %v5255_v19, %v5256_v38  ;;  %v14197_v46 = vpop.permute.xlu0 %6131  ;;  %10357 = vmatprep.subr.mxu0 %v6700_v37 }
 0x37c   :  { %v5384_v50 = vmax.f32 %v5192_v16, %v5322_v51  ;;  %v5383_v11 = vmax.f32 %v5191_v32, %v5323_v41  ;;  %10358 = vmatpush3.msra.mxu0 %v6700_v37 }
 0x37e   :  { %v10301_v27 = vpop.f32.mrf.mxu1  ;;  %6181 = vrot.lane.b32.xlu1 %v5383_v11, %s10517_s11  ;;  %6183 = vrot.lane.b32.xlu0 %v5384_v50, %s10517_s11  ;;  %v5831_v32 = vrot.slane %v5383_v11, 4  ;;  %v5832_v37 = vrot.slane %v5384_v50, 4  ;;  %v9756_v50 = vsel %vm5639_vm2, 1.0, %v16577_v3 }
 0x37f   :  { %v14208_v19 = vadd.f32 %v10301_v27, %v13603_v15  ;;  %v14212_v38 = vpop.permute.xlu1 %6133  ;;  %v14216_v41 = vpop.permute.xlu0 %6383 }
 0x380   :  { %v5003_v16 = vpop.f32.mrf.mxu1  ;;  %v14221_v27 = vsel %vm5866_vm10, %v5830_v59, %v5831_v32  ;;  %v14242_v26 = vsel %vm5866_vm10, %v5831_v32, %v5832_v37 }
 0x381   :  { %v5195_v9 = vmax.f32 %v14208_v19, 0.0  ;;  %v5004_v51 = vadd.f32 %v13603_v15, %v5003_v16  ;;  %16892 = vst [vmem:[#allocation70_spill] sm:$0xff] %v14221_v27  ;;  %16894 = vst [vmem:[#allocation87_spill] sm:$0xff] %v14242_v26 }
 0x382   :  { %6433 = vrot.lane.b32.xlu1 %v6022_v4, %s10518_s25  ;;  %6435 = vrot.lane.b32.xlu0 %v14221_v27, %s10518_s25 }
 0x383   :  { %v5194_v55 = vmax.f32 %v5004_v51, 0.0  ;;  %v14226_v11 = vpop.permute.xlu1 %6385  ;;  %v5259_v19 = vrot.slane %v5195_v9, 2  ;;  %v14228_v15 = vpop.permute.xlu0 %6135 }
 0x385   :  { %v5258_v35 = vrot.slane %v5194_v55, 2 }
 0x387   :  { %v5320_v17 = vsel %vm3806_vm14, %v5258_v35, %v5259_v19  ;;  %v5321_v59 = vsel %vm3806_vm14, %v5257_v40, %v5258_v35  ;;  %v14235_v51 = vpop.permute.xlu1 %6137  ;;  %v14237_v27 = vpop.permute.xlu0 %6387  ;;  %v14249_v35 = vld [vmem:[%s16296_s1 + $0x30] ss:$0 sm:$0xff] }
 0x388   :  { %v5386_v16 = vmax.f32 %v5194_v55, %v5320_v17  ;;  %16893 = vst [vmem:[#allocation88_spill] sm:$0xff] %v14235_v51  ;;  %v5385_v4 = vmax.f32 %v5193_v62, %v5321_v59  ;;  %v6024_v17 = vmul.f32 %v9756_v50, %v14242_v26 }
 0x38a   :  { %v10304_v49 = vpop.f32.mrf.mxu1  ;;  %6185 = vrot.lane.b32.xlu1 %v5385_v4, %s10517_s11  ;;  %6187 = vrot.lane.b32.xlu0 %v5386_v16, %s10517_s11  ;;  %v5833_v48 = vrot.slane %v5385_v4, 4 }
 0x38b   :  { %v5019_v62 = vadd.f32 %v14249_v35, %v10304_v49  ;;  %v14252_v40 = vpop.permute.xlu1 %6389  ;;  %v14260_v4 = vpop.permute.xlu0 %6139 }
 0x38c   :  { %v5013_v55 = vpop.f32.mrf.mxu1  ;;  %16895 = vst [vmem:[#allocation71_spill] sm:$0xff] %v14252_v40  ;;  %v14257_v32 = vsel %vm5866_vm10, %v5832_v37, %v5833_v48  ;;  %16897 = vst [vmem:[#allocation74_spill] sm:$0xff] %v14260_v4  ;;  %v5834_v37 = vrot.slane %v5386_v16, 4 }
 0x38d   :  { %16896 = vst [vmem:[#allocation73_spill] sm:$0xff] %v14257_v32  ;;  %v5197_v59 = vmax.f32 %v5019_v62, 0.0  ;;  %v5014_v2 = vadd.f32 %v14249_v35, %v5013_v55 }
 0x38e   :  { %v10307_v31 = vpop.f32.mrf.mxu1  ;;  %6437 = vrot.lane.b32.xlu1 %v6024_v17, %s10518_s25  ;;  %6439 = vrot.lane.b32.xlu0 %v14257_v32, %s10518_s25  ;;  %v14287_v25 = vsel %vm5866_vm10, %v5833_v48, %v5834_v37 }
 0x38f   :  { %v5196_v49 = vmax.f32 %v5014_v2, 0.0  ;;  %v14266_v53 = vadd.f32 %v14249_v35, %v10307_v31  ;;  %v14268_v26 = vpop.permute.xlu1 %6141  ;;  %v5261_v20 = vrot.slane %v5197_v59, 2  ;;  %v14271_v61 = vpop.permute.xlu0 %6391  ;;  %16902 = vst [vmem:[#allocation81_spill] sm:$0xff] %v14287_v25  ;;  %v6026_v48 = vmul.f32 %v9757_v23, %v14287_v25 }
 0x390   :  { %v5023_v50 = vpop.f32.mrf.mxu1  ;;  %16898 = vst [vmem:[#allocation77_spill] sm:$0xff] %v14268_v26  ;;  %16899 = vst [vmem:[#allocation92_spill] sm:$0xff] %v14271_v61 }
 0x391   :  { %v5260_v62 = vrot.slane %v5196_v49, 2  ;;  %v5024_v55 = vadd.f32 %v14249_v35, %v5023_v50  ;;  %v5199_v2 = vmax.f32 %v14266_v53, 0.0 }
 0x392   :  { %v10310_v4 = vpop.f32.mrf.mxu1 }
 0x393   :  { %v5318_v17 = vsel %vm3806_vm14, %v5260_v62, %v5261_v20  ;;  %v5319_v31 = vsel %vm3806_vm14, %v5259_v19, %v5260_v62  ;;  %v5198_v32 = vmax.f32 %v5024_v55, 0.0  ;;  %v14279_v18 = vpop.permute.xlu1 %6393  ;;  %v14282_v61 = vpop.permute.xlu0 %6143  ;;  %v14294_v62 = vadd.f32 %v14249_v35, %v10310_v4 }
 0x394   :  { %v5388_v26 = vmax.f32 %v5196_v49, %v5318_v17  ;;  %v5033_v16 = vpop.f32.mrf.mxu1  ;;  %16900 = vst [vmem:[#allocation91_spill] sm:$0xff] %v14279_v18  ;;  %v5387_v30 = vmax.f32 %v5195_v9, %v5319_v31  ;;  %16901 = vst [vmem:[#allocation78_spill] sm:$0xff] %v14282_v61  ;;  %v5263_v49 = vrot.slane %v5199_v2, 2 }
 0x395   :  { %v5262_v50 = vrot.slane %v5198_v32, 2  ;;  %v5034_v51 = vadd.f32 %v14249_v35, %v5033_v16  ;;  %v5201_v23 = vmax.f32 %v14294_v62, 0.0 }
 0x396   :  { %v10313_v19 = vpop.f32.mrf.mxu1  ;;  %6189 = vrot.lane.b32.xlu1 %v5387_v30, %s10517_s11  ;;  %6191 = vrot.lane.b32.xlu0 %v5388_v26, %s10517_s11  ;;  %v5835_v53 = vrot.slane %v5387_v30, 4  ;;  %v5836_v61 = vrot.slane %v5388_v26, 4 }
 0x397   :  { %v5317_v9 = vsel %vm3806_vm14, %v5261_v20, %v5262_v50  ;;  %v5200_v55 = vmax.f32 %v5034_v51, 0.0  ;;  %v14296_v31 = vpop.permute.xlu1 %6145  ;;  %v5316_v30 = vsel %vm3806_vm14, %v5262_v50, %v5263_v49  ;;  %v14305_v18 = vpop.permute.xlu0 %6395  ;;  %v9758_v50 = vsel %vm5643_vm15, 1.0, %v16577_v3 }
 0x398   :  { %v5043_v17 = vpop.f32.mrf.mxu1  ;;  %16903 = vst [vmem:[#allocation82_spill] sm:$0xff] %v14296_v31  ;;  %v14301_v16 = vsel %vm5866_vm10, %v5834_v37, %v5835_v53  ;;  %v5389_v20 = vmax.f32 %v5197_v59, %v5317_v9  ;;  %v5390_v51 = vmax.f32 %v5198_v32, %v5316_v30  ;;  %v14320_v59 = vsel %vm5866_vm10, %v5835_v53, %v5836_v61 }
 0x399   :  { %16904 = vst [vmem:[#allocation85_spill] sm:$0xff] %v14301_v16  ;;  %v5264_v40 = vrot.slane %v5200_v55, 2  ;;  %v5044_v4 = vadd.f32 %v14249_v35, %v5043_v17  ;;  %16906 = vst [vmem:[#allocation95_spill] sm:$0xff] %v14320_v59  ;;  %v5265_v32 = vrot.slane %v5201_v23, 2  ;;  %v14327_v62 = vadd.f32 %v14249_v35, %v10313_v19 }
 0x39a   :  { %6441 = vrot.lane.b32.xlu1 %v6026_v48, %s10518_s25  ;;  %6443 = vrot.lane.b32.xlu0 %v14301_v16, %s10518_s25  ;;  %v5837_v9 = vrot.slane %v5389_v20, 4  ;;  %v6028_v53 = vmul.f32 %v9758_v50, %v14320_v59  ;;  %v5838_v25 = vrot.slane %v5390_v51, 4 }
 0x39b   :  { %v14313_v26 = vpop.permute.xlu1 %6397  ;;  %v14315_v37 = vpop.permute.xlu0 %6147  ;;  %v5315_v17 = vsel %vm3806_vm14, %v5263_v49, %v5264_v40  ;;  %v5202_v48 = vmax.f32 %v5044_v4, 0.0 }
 0x39c   :  { %16905 = vst [vmem:[#allocation96_spill] sm:$0xff] %v14315_v37  ;;  %v5314_v37 = vsel %vm3806_vm14, %v5264_v40, %v5265_v32  ;;  %v5391_v4 = vmax.f32 %v5199_v2, %v5315_v17  ;;  %v14353_v2 = vsel %vm5866_vm10, %v5837_v9, %v5838_v25 }
 0x39d   :  { %v5266_v31 = vrot.slane %v5202_v48, 2  ;;  %v5392_v40 = vmax.f32 %v5200_v55, %v5314_v37  ;;  %16911 = vst [vmem:[#allocation100_spill] sm:$0xff] %v14353_v2 }
 0x39e   :  { %v10316_v16 = vpop.f32.mrf.mxu1  ;;  %6193 = vrot.lane.b32.xlu1 %v5389_v20, %s10517_s11  ;;  %6195 = vrot.lane.b32.xlu0 %v5390_v51, %s10517_s11  ;;  %v14338_v20 = vsel %vm5866_vm10, %v5836_v61, %v5837_v9  ;;  %v5203_v51 = vmax.f32 %v14327_v62, 0.0  ;;  %v9759_v61 = vsel %vm5645_vm11, 1.0, %v16577_v3  ;;  %v5839_v17 = vrot.slane %v5391_v4, 4 }
 0x39f   :  { %v14329_v12 = vpop.permute.xlu1 %6149  ;;  %v14334_v49 = vpop.permute.xlu0 %6399  ;;  %16908 = vst [vmem:[#allocation89_spill] sm:$0xff] %v14338_v20  ;;  %v14360_v37 = vadd.f32 %v14249_v35, %v10316_v16  ;;  %v6030_v9 = vmul.f32 %v9759_v61, %v14353_v2 }
 0x3a0   :  { %v5053_v30 = vpop.f32.mrf.mxu1  ;;  %16907 = vst [vmem:[#allocation86_spill] sm:$0xff] %v14329_v12  ;;  %v5267_v55 = vrot.slane %v5203_v51, 2 }
 0x3a1   :  { %v5054_v19 = vadd.f32 %v14249_v35, %v5053_v30  ;;  %v5313_v30 = vsel %vm3806_vm14, %v5265_v32, %v5266_v31 }
 0x3a2   :  { %6445 = vrot.lane.b32.xlu1 %v6028_v53, %s10518_s25  ;;  %6447 = vrot.lane.b32.xlu0 %v14338_v20, %s10518_s25  ;;  %v5312_v12 = vsel %vm3806_vm14, %v5266_v31, %v5267_v55  ;;  %v5205_v31 = vmax.f32 %v14360_v37, 0.0 }
 0x3a3   :  { %v14346_v50 = vpop.permute.xlu1 %6401  ;;  %v14348_v59 = vpop.permute.xlu0 %6151  ;;  %v5204_v53 = vmax.f32 %v5054_v19, 0.0  ;;  %v5393_v19 = vmax.f32 %v5201_v23, %v5313_v30 }
 0x3a4   :  { %16909 = vst [vmem:[#allocation90_spill] sm:$0xff] %v14346_v50  ;;  %16910 = vst [vmem:[#allocation93_spill] sm:$0xff] %v14348_v59  ;;  %v5840_v59 = vrot.slane %v5392_v40, 4 }
 0x3a5   :  { %v5268_v50 = vrot.slane %v5204_v53, 2  ;;  %v5841_v30 = vrot.slane %v5393_v19, 4 }
 0x3a6   :  { %v10319_v20 = vpop.f32.mrf.mxu1  ;;  %6197 = vrot.lane.b32.xlu1 %v5391_v4, %s10517_s11  ;;  %6199 = vrot.lane.b32.xlu0 %v5392_v40, %s10517_s11  ;;  %v14371_v4 = vsel %vm5866_vm10, %v5838_v25, %v5839_v17  ;;  %v5394_v40 = vmax.f32 %v5202_v48, %v5312_v12  ;;  %v9760_v25 = vsel %vm5647_vm7, 1.0, %v16577_v3  ;;  %v14386_v23 = vsel %vm5866_vm10, %v5839_v17, %v5840_v59 }
 0x3a7   :  { %v14362_v54 = vpop.permute.xlu1 %6153  ;;  %v14367_v32 = vpop.permute.xlu0 %6403  ;;  %16914 = vst [vmem:[#allocation97_spill] sm:$0xff] %v14371_v4  ;;  %16916 = vst [vmem:[#allocation101_spill] sm:$0xff] %v14386_v23  ;;  %v5269_v12 = vrot.slane %v5205_v31, 2  ;;  %v14394_v48 = vadd.f32 %v14249_v35, %v10319_v20  ;;  %v6032_v6 = vmul.f32 %v9760_v25, %v14386_v23  ;;  %v9720_v23 = vsel %vm5438_vm12, 1.0, %v16577_v3 }
 0x3a8   :  { %v5063_v62 = vpop.f32.mrf.mxu1  ;;  %16912 = vst [vmem:[#allocation99_spill] sm:$0xff] %v14362_v54  ;;  %16913 = vst [vmem:[#allocation94_spill] sm:$0xff] %v14367_v32  ;;  %v5842_v54 = vrot.slane %v5394_v40, 4 }
 0x3a9   :  { %v14374_v16 = vadd.f32 %v14249_v35, %v5063_v62  ;;  %v5311_v62 = vsel %vm3806_vm14, %v5267_v55, %v5268_v50  ;;  %v5310_v55 = vsel %vm3806_vm14, %v5268_v50, %v5269_v12  ;;  %v16922_v43 = vmax.f32 %v14394_v48, 0.0 }
 0x3aa   :  { %6449 = vrot.lane.b32.xlu1 %v6030_v9, %s10518_s25  ;;  %6451 = vrot.lane.b32.xlu0 %v14371_v4, %s10518_s25 }
 0x3ab   :  { %v14381_v61 = vpop.permute.xlu1 %6405  ;;  %v6156_v2 = vpop.permute.xlu0 %6155  ;;  %v5206_v9 = vmax.f32 %v14374_v16, 0.0  ;;  %v5271_v36 = vrot.slane %v16922_v43, 2 }
 0x3ac   :  { %16915 = vst [vmem:[#allocation98_spill] sm:$0xff] %v14381_v61  ;;  %v5395_v61 = vmax.f32 %v5203_v51, %v5311_v62  ;;  %v9761_v62 = vsel %vm5649_vm9, 1.0, %v16577_v3 }
 0x3ad   :  { %v5270_v20 = vrot.slane %v5206_v9, 2 }
 0x3ae   :  { %v10322_v4 = vpop.f32.mrf.mxu1  ;;  %6201 = vrot.lane.b32.xlu1 %v5393_v19, %s10517_s11  ;;  %6203 = vrot.lane.b32.xlu0 %v5394_v40, %s10517_s11  ;;  %v14406_v19 = vsel %vm5866_vm10, %v5840_v59, %v5841_v30  ;;  %v14416_v40 = vmax.f32 %v5204_v53, %v5310_v55  ;;  %v9718_v59 = vsel %vm5434_vm0, 1.0, %v16577_v3 }
 0x3af   :  { %v14397_v17 = vpop.permute.xlu1 %6157  ;;  %v14402_v16 = vpop.permute.xlu0 %6407  ;;  %16919 = vst [vmem:[#allocation102_spill] sm:$0xff] %v14406_v19  ;;  %v5309_v53 = vsel %vm3806_vm14, %v5269_v12, %v5270_v20 }
 0x3b0   :  { %v5073_v37 = vpop.f32.mrf.mxu1  ;;  %16917 = vst [vmem:[#allocation105_spill] sm:$0xff] %v14397_v17  ;;  %16918 = vst [vmem:[#allocation104_spill] sm:$0xff] %v14402_v16  ;;  %v5844_v12 = vrot.slane %v14416_v40, 4  ;;  %v5308_v17 = vsel %vm3806_vm14, %v5270_v20, %v5271_v36  ;;  %v16924_v20 = vld [vmem:[#allocation8_spill] sm:$0xff] }
 0x3b1   :  { %v14409_v32 = vadd.f32 %v14249_v35, %v5073_v37  ;;  %v5843_v37 = vrot.slane %v5395_v61, 4  ;;  %vm5651_vm2 = vcmp.lt.s32.totalorder %v16924_v20, 12 }
 0x3b2   :  { %6453 = vrot.lane.b32.xlu1 %v6032_v6, %s10518_s25  ;;  %6455 = vrot.lane.b32.xlu0 %v14406_v19, %s10518_s25  ;;  %v14426_v6 = vsel %vm5866_vm10, %v5841_v30, %v5842_v54  ;;  %v5947_v30 = vmul.f32 %v9718_v59, %v14034_v0  ;;  %v14439_v19 = vadd.f32 %v14249_v35, %v10322_v4 }
 0x3b3   :  { %v14421_v51 = vpop.permute.xlu1 %6409  ;;  %v6160_v25 = vpop.permute.xlu0 %6159  ;;  %16921 = vst [vmem:[#allocation106_spill] sm:$0xff] %v14426_v6  ;;  %v5208_v55 = vmax.f32 %v14409_v32, 0.0  ;;  %v14450_v4 = vsel %vm5866_vm10, %v5842_v54, %v5843_v37  ;;  %v5397_v59 = vmax.f32 %v5205_v31, %v5309_v53  ;;  %v9719_v54 = vsel %vm5436_vm13, 1.0, %v16577_v3 }
 0x3b4   :  { %16920 = vst [vmem:[#allocation107_spill] sm:$0xff] %v14421_v51  ;;  %v6587_v43 = vsel %vm4511_vm6, %v5947_v30, %v6156_v2  ;;  %16923 = vst [vmem:[#allocation108_spill] sm:$0xff] %v14450_v4  ;;  %v5951_v53 = vmul.f32 %v9720_v23, %v14080_v1  ;;  %v16927_v1 = vmax.f32 %v14439_v19, 0.0 }
 0x3b5   :  { %v5272_v51 = vrot.slane %v5208_v55, 2 }
 0x3b6   :  { %v10325_v50 = vpop.f32.mrf.mxu1  ;;  %6205 = vrot.lane.b32.xlu1 %v5395_v61, %s10517_s11  ;;  %6207 = vrot.lane.b32.xlu0 %v14416_v40, %s10517_s11  ;;  %v6034_v61 = vmul.f32 %v9761_v62, %v14426_v6  ;;  %v5398_v62 = vmax.f32 %v5206_v9, %v5308_v17  ;;  %v5273_v23 = vrot.slane %v16927_v1, 2 }
 0x3b7   :  { %v6162_v24 = vpop.permute.xlu1 %6161  ;;  %v6412_v0 = vpop.permute.xlu0 %6411  ;;  %v5307_v9 = vsel %vm3806_vm14, %v5271_v36, %v5272_v51  ;;  %v14485_v14 = vadd.f32 %v14249_v35, %v10325_v50 }
 0x3b8   :  { %v5083_v32 = vpop.f32.mrf.mxu1  ;;  %v14456_v16 = vsel %vm6635_vm1, %v6587_v43, %v6412_v0  ;;  %v5845_v43 = vrot.slane %v5397_v59, 4  ;;  %v16926_v0 = vld [vmem:[#allocation53_spill] sm:$0xff] }
 0x3b9   :  { %v14453_v40 = vadd.f32 %v14249_v35, %v5083_v32  ;;  %v9762_v32 = vsel %vm5651_vm2, 1.0, %v16577_v3  ;;  %vm5440_vm4 = vcmp.ge.s32.totalorder %v16926_v0, 4  ;;  %v5846_v0 = vrot.slane %v5398_v62, 4 }
 0x3ba   :  { %6457 = vrot.lane.b32.xlu1 %v6034_v61, %s10518_s25  ;;  %6459 = vrot.lane.b32.xlu0 %v14450_v4, %s10518_s25  ;;  %v14472_v61 = vsel %vm5866_vm10, %v5843_v37, %v5844_v12  ;;  %v5949_v37 = vmul.f32 %v9719_v54, %v14056_v8  ;;  %v14494_v1 = vsel %vm5866_vm10, %v5844_v12, %v5845_v43  ;;  %v16929_v8 = vmax.f32 %v14394_v48, 0.0 }
 0x3bb   :  { %v14466_v31 = vpop.permute.xlu1 %6413  ;;  %v6164_v30 = vpop.permute.xlu0 %6163  ;;  %16925 = vst [vmem:[#allocation103_spill] sm:$0xff] %v14472_v61  ;;  %v5210_v17 = vmax.f32 %v14453_v40, 0.0  ;;  %v6036_v40 = vmul.f32 %v9762_v32, %v14472_v61  ;;  %16928 = vst [vmem:[#allocation110_spill] sm:$0xff] %v14494_v1  ;;  %v6590_v48 = vsel %vm4511_vm6, %v14086_v44, %v6162_v24 }
 0x3bc   :  { %v6591_v2 = vsel %vm4511_vm6, %v5951_v53, %v6164_v30  ;;  %v9721_v53 = vsel %vm5440_vm4, 1.0, %v16577_v3  ;;  %v6589_v30 = vsel %vm4511_vm6, %v5949_v37, %v6160_v25  ;;  %v5399_v50 = vmax.f32 %v16929_v8, %v5307_v9  ;;  %v16931_v37 = vld [vmem:[#allocation55_spill] sm:$0xff] }
 0x3bd   :  { %v5211_v25 = vmax.f32 %v14485_v14, 0.0  ;;  %vm5442_vm11 = vcmp.ge.s32.totalorder %v16931_v37, 4  ;;  %v14519_v8 = vsel %vm5866_vm10, %v5845_v43, %v5846_v0 }
 0x3be   :  { %v10328_v20 = vpop.f32.mrf.mxu1  ;;  %6209 = vrot.lane.b32.xlu1 %v5397_v59, %s10517_s11  ;;  %6211 = vrot.lane.b32.xlu0 %v5398_v62, %s10517_s11  ;;  %v5306_v59 = vsel %vm3806_vm14, %v5272_v51, %v5273_v23  ;;  %v5274_v62 = vrot.slane %v5210_v17, 2  ;;  %v16930_v51 = vld [vmem:[#allocation10_spill] sm:$0xff]  ;;  %16932 = vst [vmem:[#allocation112_spill] sm:$0xff] %v14519_v8  ;;  %v5847_v14 = vrot.slane %v5399_v50, 4 }
 0x3bf   :  { %v6166_v36 = vpop.permute.xlu1 %6165  ;;  %v6416_v6 = vpop.permute.xlu0 %6415  ;;  %vm5653_vm15 = vcmp.lt.s32.totalorder %v16930_v51, 12  ;;  %v5400_v12 = vmax.f32 %v5208_v55, %v5306_v59  ;;  %v14528_v59 = vadd.f32 %v14249_v35, %v10328_v20  ;;  %v16934_v20 = vmax.f32 %v14439_v19, 0.0 }
 0x3c0   :  { %v5093_v4 = vpop.f32.mrf.mxu1  ;;  %v14502_v32 = vsel %vm6635_vm1, %v6589_v30, %v6416_v6  ;;  %v9763_v30 = vsel %vm5653_vm15, 1.0, %v16577_v3  ;;  %v5305_v55 = vsel %vm3806_vm14, %v5273_v23, %v5274_v62  ;;  %v9722_v23 = vsel %vm5442_vm11, 1.0, %v16577_v3 }
 0x3c1   :  { %v14499_v54 = vadd.f32 %v14249_v35, %v5093_v4  ;;  %v5953_v4 = vmul.f32 %v9721_v53, %v14108_v10  ;;  %v5275_v53 = vrot.slane %v5211_v25, 2  ;;  %v6038_v43 = vmul.f32 %v9763_v30, %v14519_v8 }
 0x3c2   :  { %6461 = vrot.lane.b32.xlu1 %v6036_v40, %s10518_s25  ;;  %6463 = vrot.lane.b32.xlu0 %v14494_v1, %s10518_s25  ;;  %v5401_v51 = vmax.f32 %v16934_v20, %v5305_v55  ;;  %v5955_v19 = vmul.f32 %v9722_v23, %v14135_v33  ;;  %v6592_v55 = vsel %vm4511_vm6, %v14103_v13, %v6166_v36 }
 0x3c3   :  { %v6418_v9 = vpop.permute.xlu1 %6417  ;;  %v6168_v40 = vpop.permute.xlu0 %6167  ;;  %v5212_v24 = vmax.f32 %v14499_v54, 0.0  ;;  %v5304_v54 = vsel %vm3806_vm14, %v5274_v62, %v5275_v53  ;;  %v16935_v62 = vld [vmem:[#allocation12_spill] sm:$0xff] }
 0x3c4   :  { %v14514_v6 = vsel %vm6635_vm1, %v6590_v48, %v6418_v9  ;;  %v6593_v44 = vsel %vm4511_vm6, %v5953_v4, %v6168_v40  ;;  %v5848_v9 = vrot.slane %v5400_v12, 4  ;;  %vm5655_vm7 = vcmp.lt.s32.totalorder %v16935_v62, 12 }
 0x3c5   :  { %v5276_v1 = vrot.slane %v5212_v24, 2 }
 0x3c6   :  { %v10331_v10 = vpop.f32.mrf.mxu1  ;;  %6213 = vrot.lane.b32.xlu1 %v5399_v50, %s10517_s11  ;;  %6215 = vrot.lane.b32.xlu0 %v5400_v12, %s10517_s11  ;;  %v14540_v50 = vsel %vm5866_vm10, %v5846_v0, %v5847_v14  ;;  %v5213_v0 = vmax.f32 %v14528_v59, 0.0  ;;  %v5402_v12 = vmax.f32 %v5210_v17, %v5304_v54 }
 0x3c7   :  { %v6420_v4 = vpop.permute.xlu0 %6419  ;;  %16933 = vst [vmem:[#allocation111_spill] sm:$0xff] %v14540_v50  ;;  %v5303_v62 = vsel %vm3806_vm14, %v5275_v53, %v5276_v1  ;;  %v16937_v53 = vld [vmem:[#allocation57_spill] sm:$0xff] }
 0x3c8   :  { %v5103_v48 = vpop.f32.mrf.mxu1  ;;  %v14536_v40 = vpop.permute.xlu1 %6169  ;;  %v14548_v37 = vsel %vm6635_vm1, %v6591_v2, %v6420_v4  ;;  %v9764_v2 = vsel %vm5655_vm7, 1.0, %v16577_v3  ;;  %v5849_v4 = vrot.slane %v5401_v51, 4  ;;  %v5277_v36 = vrot.slane %v5213_v0, 2 }
 0x3c9   :  { %v14545_v30 = vadd.f32 %v14249_v35, %v5103_v48  ;;  %vm5444_vm0 = vcmp.ge.s32.totalorder %v16937_v53, 4 }
 0x3ca   :  { %6465 = vrot.lane.b32.xlu1 %v6038_v43, %s10518_s25  ;;  %6467 = vrot.lane.b32.xlu0 %v14540_v50, %s10518_s25  ;;  %v14561_v43 = vsel %vm5866_vm10, %v5847_v14, %v5848_v9  ;;  %v5109_v14 = vadd.f32 %v14249_v35, %v10331_v10 }
 0x3cb   :  { %v6172_v48 = vpop.permute.xlu0 %6171  ;;  %16936 = vst [vmem:[#allocation113_spill] sm:$0xff] %v14561_v43  ;;  %v5214_v59 = vmax.f32 %v14545_v30, 0.0  ;;  %v6040_v54 = vmul.f32 %v9764_v2, %v14561_v43  ;;  %v5850_v30 = vrot.slane %v5402_v12, 4 }
 0x3cc   :  { %v6422_v20 = vpop.permute.xlu1 %6421  ;;  %v14567_v17 = vsel %vm4511_vm6, %v5955_v19, %v6172_v48  ;;  %v5302_v19 = vsel %vm3806_vm14, %v5276_v1, %v5277_v36  ;;  %v5215_v1 = vmax.f32 %v5109_v14, 0.0 }
 0x3cd   :  { %v14571_v13 = vsel %vm6635_vm1, %v6592_v55, %v6422_v20  ;;  %v5403_v55 = vmax.f32 %v5211_v25, %v5303_v62  ;;  %v5278_v20 = vrot.slane %v5214_v59, 2  ;;  %v5404_v2 = vmax.f32 %v5212_v24, %v5302_v19 }
 0x3ce   :  { %v10334_v33 = vpop.f32.mrf.mxu1  ;;  %6217 = vrot.lane.b32.xlu1 %v5401_v51, %s10517_s11  ;;  %6219 = vrot.lane.b32.xlu0 %v5402_v12, %s10517_s11  ;;  %v14581_v51 = vsel %vm5866_vm10, %v5848_v9, %v5849_v4  ;;  %v16939_v12 = vld [vmem:[#allocation14_spill] sm:$0xff]  ;;  %v14594_v25 = vsel %vm5866_vm10, %v5849_v4, %v5850_v30  ;;  %v5279_v24 = vrot.slane %v5215_v1, 2 }
 0x3cf   :  { %v6424_v48 = vpop.permute.xlu0 %6423  ;;  %16938 = vst [vmem:[#allocation63_spill] sm:$0xff] %v14581_v51  ;;  %vm5657_vm9 = vcmp.lt.s32.totalorder %v16939_v12, 12  ;;  %16940 = vst [vmem:[#allocation116_spill] sm:$0xff] %v14594_v25  ;;  %v5851_v9 = vrot.slane %v5403_v55, 4  ;;  %v5301_v62 = vsel %vm3806_vm14, %v5277_v36, %v5278_v20  ;;  %v14604_v14 = vadd.f32 %v14249_v35, %v10334_v33 }
 0x3d0   :  { %v5113_v23 = vpop.f32.mrf.mxu1  ;;  %v14585_v10 = vsel %vm6635_vm1, %v6593_v44, %v6424_v48  ;;  %v9765_v43 = vsel %vm5657_vm9, 1.0, %v16577_v3  ;;  %v9723_v44 = vsel %vm5444_vm0, 1.0, %v16577_v3  ;;  %v5852_v12 = vrot.slane %v5404_v2, 4 }
 0x3d1   :  { %v5114_v50 = vadd.f32 %v14249_v35, %v5113_v23  ;;  %v6042_v19 = vmul.f32 %v9765_v43, %v14594_v25  ;;  %v5957_v48 = vmul.f32 %v9723_v44, %v14171_v63  ;;  %v5300_v53 = vsel %vm3806_vm14, %v5278_v20, %v5279_v24  ;;  %v16943_v43 = vld [vmem:[#allocation17_spill] sm:$0xff] }
 0x3d2   :  { %6469 = vrot.lane.b32.xlu1 %v6040_v54, %s10518_s25  ;;  %6471 = vrot.lane.b32.xlu0 %v14581_v51, %s10518_s25  ;;  %vm5659_vm12 = vcmp.lt.s32.totalorder %v16943_v43, 12  ;;  %v5217_v33 = vmax.f32 %v14604_v14, 0.0  ;;  %v5406_v20 = vmax.f32 %v5214_v59, %v5300_v53 }
 0x3d3   :  { %v5216_v23 = vmax.f32 %v5114_v50, 0.0  ;;  %v14612_v50 = vsel %vm5866_vm10, %v5850_v30, %v5851_v9  ;;  %v9766_v30 = vsel %vm5659_vm12, 1.0, %v16577_v3  ;;  %vm6711_vm12 = vcmask 392192  }
 0x3d4   :  { %16941 = vst [vmem:[#allocation117_spill] sm:$0xff] %v14612_v50 }
 0x3d5   :  { %v5280_v51 = vrot.slane %v5216_v23, 2 }
 0x3d6   :  { %v10337_v54 = vpop.f32.mrf.mxu1  ;;  %6221 = vrot.lane.b32.xlu1 %v5403_v55, %s10517_s11  ;;  %6223 = vrot.lane.b32.xlu0 %v5404_v2, %s10517_s11  ;;  %v5405_v55 = vmax.f32 %v5213_v0, %v5301_v62  ;;  %v14626_v0 = vsel %vm5866_vm10, %v5851_v9, %v5852_v12 }
 0x3d7   :  { %16944 = vst [vmem:[#allocation119_spill] sm:$0xff] %v14626_v0  ;;  %v5299_v44 = vsel %vm3806_vm14, %v5279_v24, %v5280_v51  ;;  %v14633_v14 = vadd.f32 %v14249_v35, %v10337_v54  ;;  %v6044_v9 = vmul.f32 %v9766_v30, %v14626_v0  ;;  %v16947_v54 = vld [vmem:[#allocation59_spill] sm:$0xff] }
 0x3d8   :  { %v5123_v4 = vpop.f32.mrf.mxu1  ;;  %v6176_v36 = vpop.permute.xlu0 %6175  ;;  %v5853_v2 = vrot.slane %v5405_v55, 4  ;;  %v5407_v24 = vmax.f32 %v5215_v1, %v5299_v44  ;;  %vm5446_vm13 = vcmp.ge.s32.totalorder %v16947_v54, 4 }
 0x3d9   :  { %v5124_v8 = vadd.f32 %v14249_v35, %v5123_v4  ;;  %v14619_v63 = vsel %vm4511_vm6, %v5957_v48, %v6176_v36  ;;  %v14635_v59 = vpop.permute.xlu1 %6173  ;;  %v5854_v48 = vrot.slane %v5406_v20, 4  ;;  %v9724_v1 = vsel %vm5446_vm13, 1.0, %v16577_v3 }
 0x3da   :  { %6473 = vrot.lane.b32.xlu1 %v6042_v19, %s10518_s25  ;;  %6475 = vrot.lane.b32.xlu0 %v14612_v50, %s10518_s25  ;;  %16942 = vst [vmem:[#allocation118_spill] sm:$0xff] %v14619_v63  ;;  %v5281_v19 = vrot.slane %v5217_v33, 2  ;;  %16945 = vst [vmem:[#allocation120_spill] sm:$0xff] %v14635_v59  ;;  %v5959_v0 = vmul.f32 %v9724_v1, %v14205_v39 }
 0x3db   :  { %v5218_v62 = vmax.f32 %v5124_v8, 0.0  ;;  %v14642_v8 = vsel %vm5866_vm10, %v5852_v12, %v5853_v2 }
 0x3dc   :  { %v5298_v36 = vsel %vm3806_vm14, %v5280_v51, %v5281_v19  ;;  %16946 = vst [vmem:[#allocation121_spill] sm:$0xff] %v14642_v8  ;;  %v5219_v51 = vmax.f32 %v14633_v14, 0.0  ;;  %v14655_v12 = vpop.permute.xlu0 %6427 }
 0x3dd   :  { %v5408_v30 = vmax.f32 %v5216_v23, %v5298_v36  ;;  %v14653_v50 = vpop.permute.xlu1 %6425 }
 0x3de   :  { %v10340_v4 = vpop.f32.mrf.mxu1  ;;  %6225 = vrot.lane.b32.xlu1 %v5405_v55, %s10517_s11  ;;  %6227 = vrot.lane.b32.xlu0 %v5406_v20, %s10517_s11  ;;  %v5282_v55 = vrot.slane %v5218_v62, 2  ;;  %v16948_v20 = vld [vmem:[#allocation21_spill] sm:$0xff]  ;;  %v5283_v23 = vrot.slane %v5219_v51, 2 }
 0x3df   :  { %vm5661_vm2 = vcmp.lt.s32.totalorder %v16948_v20, 12  ;;  %v14669_v36 = vadd.f32 %v14249_v35, %v10340_v4  ;;  %v5856_v25 = vrot.slane %v5408_v30, 4 }
 0x3e0   :  { %v5133_v53 = vpop.f32.mrf.mxu1  ;;  %v9767_v44 = vsel %vm5661_vm2, 1.0, %v16577_v3  ;;  %v5297_v54 = vsel %vm3806_vm14, %v5281_v19, %v5282_v55  ;;  %v5296_v19 = vsel %vm3806_vm14, %v5282_v55, %v5283_v23  ;;  %v16953_v55 = vld [vmem:[#allocation25_spill] sm:$0xff] }
 0x3e1   :  { %v14645_v43 = vadd.f32 %v14249_v35, %v5133_v53  ;;  %v14661_v53 = vsel %vm5866_vm10, %v5853_v2, %v5854_v48  ;;  %v5409_v63 = vmax.f32 %v5217_v33, %v5297_v54  ;;  %vm5663_vm4 = vcmp.lt.s32.totalorder %v16953_v55, 12 }
 0x3e2   :  { %6477 = vrot.lane.b32.xlu1 %v6044_v9, %s10518_s25  ;;  %6479 = vrot.lane.b32.xlu0 %v14642_v8, %s10518_s25  ;;  %16949 = vst [vmem:[#allocation122_spill] sm:$0xff] %v14661_v53  ;;  %v5855_v9 = vrot.slane %v5407_v24, 4  ;;  %v6046_v2 = vmul.f32 %v9767_v44, %v14661_v53  ;;  %v5410_v1 = vmax.f32 %v5218_v62, %v5296_v19  ;;  %v9768_v33 = vsel %vm5663_vm4, 1.0, %v16577_v3 }
 0x3e3   :  { %v5220_v20 = vmax.f32 %v14645_v43, 0.0 }
 0x3e4   :  { %v5858_v19 = vrot.slane %v5410_v1, 4 }
 0x3e5   :  { %v5284_v59 = vrot.slane %v5220_v20, 2 }
 0x3e6   :  { %v10343_v14 = vpop.f32.mrf.mxu1  ;;  %6229 = vrot.lane.b32.xlu1 %v5407_v24, %s10517_s11  ;;  %6231 = vrot.lane.b32.xlu0 %v5408_v30, %s10517_s11  ;;  %v14679_v24 = vsel %vm5866_vm10, %v5854_v48, %v5855_v9  ;;  %v5221_v30 = vmax.f32 %v14669_v36, 0.0 }
 0x3e7   :  { %16951 = vst [vmem:[#allocation124_spill] sm:$0xff] %v14679_v24  ;;  %v5295_v54 = vsel %vm3806_vm14, %v5283_v23, %v5284_v59  ;;  %v14707_v36 = vadd.f32 %v14249_v35, %v10343_v14  ;;  %v16954_v23 = vld [vmem:[#allocation29_spill] sm:$0xff] }
 0x3e8   :  { %v5143_v8 = vpop.f32.mrf.mxu1  ;;  %v14675_v61 = vpop.permute.xlu1 %6177  ;;  %v5285_v62 = vrot.slane %v5221_v30, 2  ;;  %vm5665_vm15 = vcmp.lt.s32.totalorder %v16954_v23, 12 }
 0x3e9   :  { %16950 = vst [vmem:[#allocation123_spill] sm:$0xff] %v14675_v61  ;;  %v6180_v43 = vpop.permute.xlu0 %6179  ;;  %v14682_v4 = vadd.f32 %v14249_v35, %v5143_v8  ;;  %v14697_v8 = vsel %vm5866_vm10, %v5855_v9, %v5856_v25 }
 0x3ea   :  { %v14685_v39 = vsel %vm4511_vm6, %v5959_v0, %v6180_v43  ;;  %6481 = vrot.lane.b32.xlu1 %v6046_v2, %s10518_s25  ;;  %6483 = vrot.lane.b32.xlu0 %v14679_v24, %s10518_s25  ;;  %v5857_v0 = vrot.slane %v5409_v63, 4  ;;  %v6048_v24 = vmul.f32 %v9768_v33, %v14697_v8 }
 0x3eb   :  { %16952 = vst [vmem:[#allocation125_spill] sm:$0xff] %v14685_v39  ;;  %v5222_v44 = vmax.f32 %v14682_v4, 0.0  ;;  %v5294_v4 = vsel %vm3806_vm14, %v5284_v59, %v5285_v62  ;;  %v5411_v39 = vmax.f32 %v5219_v51, %v5295_v54  ;;  %v9769_v51 = vsel %vm5665_vm15, 1.0, %v16577_v3  ;;  %v16958_v54 = vld [vmem:[#allocation16_spill] sm:$0xff] }
 0x3ec   :  { %v14692_v48 = vpop.permute.xlu1 %6429  ;;  %v5412_v59 = vmax.f32 %v5220_v20, %v5294_v4  ;;  %vm5418_vm7 = vcmp.ge.s32.totalorder %v16958_v54, 4 }
 0x3ed   :  { %v14702_v2 = vpop.permute.xlu0 %6431  ;;  %v5286_v61 = vrot.slane %v5222_v44, 2  ;;  %v9710_v54 = vsel %vm5418_vm7, 1.0, %v16577_v3 }
 0x3ee   :  { %v10346_v43 = vpop.f32.mrf.mxu1  ;;  %6233 = vrot.lane.b32.xlu1 %v5409_v63, %s10517_s11  ;;  %6235 = vrot.lane.b32.xlu0 %v5410_v1, %s10517_s11  ;;  %v14716_v63 = vsel %vm5866_vm10, %v5856_v25, %v5857_v0  ;;  %v5223_v1 = vmax.f32 %v14707_v36, 0.0 }
 0x3ef   :  { %v5159_v9 = vadd.f32 %v14249_v35, %v10346_v43  ;;  %16955 = vst [vmem:[#allocation126_spill] sm:$0xff] %v14716_v63  ;;  %v16956_v43 = vld [vmem:[#allocation18_spill] sm:$0xff]  ;;  %v5293_v20 = vsel %vm3806_vm14, %v5285_v62, %v5286_v61 }
 0x3f0   :  { %v5153_v55 = vpop.f32.mrf.mxu1  ;;  %vm5420_vm11 = vcmp.ge.s32.totalorder %v16956_v43, 4  ;;  %v5287_v23 = vrot.slane %v5223_v1, 2 }
 0x3f1   :  { %v5225_v53 = vmax.f32 %v5159_v9, 0.0  ;;  %v14719_v14 = vadd.f32 %v14249_v35, %v5153_v55  ;;  %v14726_v9 = vpop.permute.xlu1 %6181  ;;  %v14728_v25 = vpop.permute.xlu0 %6183  ;;  %v5859_v55 = vrot.slane %v5411_v39, 4 }
 0x3f2   :  { %6485 = vrot.lane.b32.xlu1 %v6048_v24, %s10518_s25  ;;  %6487 = vrot.lane.b32.xlu0 %v14716_v63, %s10518_s25  ;;  %v14736_v24 = vsel %vm5866_vm10, %v5857_v0, %v5858_v19  ;;  %v5860_v63 = vrot.slane %v5412_v59, 4 }
 0x3f3   :  { %v5289_v33 = vrot.slane %v5225_v53, 2  ;;  %16957 = vst [vmem:[#allocation127_spill] sm:$0xff] %v14736_v24  ;;  %v5224_v4 = vmax.f32 %v14719_v14, 0.0  ;;  %v6050_v43 = vmul.f32 %v9769_v51, %v14736_v24  ;;  %v14754_v62 = vsel %vm5866_vm10, %v5858_v19, %v5859_v55 }
 0x3f4   :  { %16959 = vst [vmem:[#allocation128_spill] sm:$0xff] %v14754_v62  ;;  %v16960_v14 = vrot.slane %v13644_v47, 4 }
 0x3f5   :  { %v5353_v35 = vsel %vm3806_vm14, %v5289_v33, %v13630_v21  ;;  %v9711_v21 = vsel %vm5420_vm11, 1.0, %v16577_v3  ;;  %v5288_v51 = vrot.slane %v5224_v4, 2  ;;  %v14766_v24 = vpop.permute.xlu1 %6433 }
 0x3f6   :  { %v14741_v36 = vmax.f32 %v5225_v53, %v5353_v35  ;;  %6237 = vrot.lane.b32.xlu1 %v5411_v39, %s10517_s11  ;;  %6239 = vrot.lane.b32.xlu0 %v5412_v59, %s10517_s11  ;;  %v5292_v53 = vsel %vm3806_vm14, %v5286_v61, %v5287_v23  ;;  %v14756_v39 = vmax.f32 %v5221_v30, %v5293_v20  ;;  %v14768_v59 = vpop.permute.xlu0 %6435  ;;  %v16961_v61 = vld [vmem:[#allocation33_spill] sm:$0xff]  ;;  %v16962_v30 = vld [vmem:[#allocation20_spill] sm:$0xff] }
 0x3f7   :  { %vm5667_vm0 = vcmp.lt.s32.totalorder %v16961_v61, 12  ;;  %vm5422_vm9 = vcmp.ge.s32.totalorder %v16962_v30, 4  ;;  %v5933_v19 = vmul.f32 %v9711_v21, %v13731_v52  ;;  %v5414_v20 = vmax.f32 %v5222_v44, %v5292_v53  ;;  %v16963_v21 = vld [vmem:[#allocation22_spill] sm:$0xff] }
 0x3f8   :  { %v16552_v0 = vrot.slane %v14741_v36, 4  ;;  %v6572_v61 = vsel %vm4511_vm6, %v13711_v42, %v14154_v5  ;;  %v5291_v52 = vsel %vm3806_vm14, %v5287_v23, %v5288_v51  ;;  %vm5424_vm13 = vcmp.ge.s32.totalorder %v16963_v21, 4 }
 0x3f9   :  { %v6573_v42 = vsel %vm4511_vm6, %v5933_v19, %v14164_v60  ;;  %v6637_v5 = vsel %vm6635_vm1, %v6572_v61, %v14195_v22  ;;  %v5415_v22 = vmax.f32 %v5223_v1, %v5291_v52  ;;  %v9713_v61 = vsel %vm5424_vm13, 1.0, %v16577_v3 }
 0x3fa   :  { %v14764_v35 = vsel %vm5866_vm10, %v16552_v0, %v16960_v14  ;;  %6489 = vrot.lane.b32.xlu1 %v6050_v43, %s10518_s25  ;;  %6491 = vrot.lane.b32.xlu0 %v14754_v62, %s10518_s25  ;;  %v9770_v0 = vsel %vm5667_vm0, 1.0, %v16577_v3  ;;  %v14782_v43 = vsel %vm5866_vm10, %v5859_v55, %v5860_v63  ;;  %v5861_v62 = vrot.slane %v14756_v39, 4 }
 0x3fb   :  { %v5931_v47 = vmul.f32 %v9710_v54, %v14764_v35  ;;  %v9712_v54 = vsel %vm5422_vm9, 1.0, %v16577_v3  ;;  %v6638_v23 = vsel %vm6635_vm1, %v6573_v42, %v14216_v41  ;;  %v6052_v53 = vmul.f32 %v9770_v0, %v14782_v43 }
 0x3fc   :  { %v14791_v44 = vpop.permute.xlu1 %6185  ;;  %v14816_v60 = vsel %vm5866_vm10, %v5860_v63, %v5861_v62  ;;  %v6574_v41 = vsel %vm4511_vm6, %v13774_v57, %v14175_v56  ;;  %v5937_v0 = vmul.f32 %v9713_v61, %v13828_v28  ;;  %v5862_v19 = vrot.slane %v5414_v20, 4 }
 0x3fd   :  { %v6571_v14 = vsel %vm4511_vm6, %v5931_v47, %v14152_v34  ;;  %v14793_v34 = vpop.permute.xlu0 %6187  ;;  %v16964_v47 = vld [vmem:[#allocation26_spill] sm:$0xff]  ;;  %v6639_v63 = vsel %vm6635_vm1, %v6574_v41, %v14226_v11  ;;  %v6576_v11 = vsel %vm4511_vm6, %v13839_v29, %v14212_v38 }
 0x3fe   :  { %6241 = vrot.lane.b32.xlu1 %v14756_v39, %s10517_s11  ;;  %6243 = vrot.lane.b32.xlu0 %v5414_v20, %s10517_s11  ;;  %v6636_v55 = vsel %vm6635_vm1, %v6571_v14, %v14177_v45  ;;  %v5935_v39 = vmul.f32 %v9712_v54, %v13768_v58  ;;  %v5290_v45 = vsel %vm3806_vm14, %v5288_v51, %v5289_v33  ;;  %vm5426_vm2 = vcmp.ge.s32.totalorder %v16964_v47, 4  ;;  %v16967_v14 = vld [vmem:[#allocation30_spill] sm:$0xff]  ;;  %v16968_v54 = vld [vmem:[#allocation72_spill] sm:$0xff] }
 0x3ff   :  { %10359 = vmatprep.mubr.msk.f32.mxu0 %vm6711_vm12, %v6636_v55  ;;  %v5416_v33 = vmax.f32 %v5224_v4, %v5290_v45  ;;  %v9714_v51 = vsel %vm5426_vm2, 1.0, %v16577_v3  ;;  %v6577_v28 = vsel %vm4511_vm6, %v5937_v0, %v14228_v15  ;;  %v16966_v4 = vld [vmem:[#allocation71_spill] sm:$0xff]  ;;  %vm5428_vm4 = vcmp.ge.s32.totalorder %v16967_v14, 4  ;;  %v16969_v55 = vld [vmem:[#allocation92_spill] sm:$0xff]  ;;  %v16971_v45 = vld [vmem:[#allocation109_spill] sm:$0xff] }
 0x400   :  { %10360 = vmatmul.mubr.msk.f32.vlgmr.msra.gmra.mxu0 %vm6711_vm12, %v6637_v5  ;;  %v6575_v58 = vsel %vm4511_vm6, %v5935_v39, %v14197_v46  ;;  %v14832_v57 = vpop.permute.xlu1 %6437  ;;  %v5863_v46 = vrot.slane %v5415_v22, 4  ;;  %v6641_v20 = vsel %vm6635_vm1, %v6576_v11, %v16966_v4  ;;  %v5939_v52 = vmul.f32 %v9714_v51, %v16968_v54  ;;  %v16970_v39 = vld [vmem:[#allocation88_spill] sm:$0xff]  ;;  %v16975_v0 = vld [vmem:[#allocation34_spill] sm:$0xff] }
 0x401   :  { %10362 = vmatprep.mubr.msk.f32.mxu0 %vm6711_vm12, %v6638_v23  ;;  %v6640_v1 = vsel %vm6635_vm1, %v6575_v58, %v14237_v27  ;;  %v14834_v56 = vpop.permute.xlu0 %6439  ;;  %v16965_v27 = vld [vmem:[#allocation37_spill] sm:$0xff]  ;;  %v6642_v29 = vsel %vm6635_vm1, %v6577_v28, %v16969_v55  ;;  %v5864_v5 = vrot.slane %v5416_v33, 4  ;;  %v6578_v41 = vsel %vm4511_vm6, %v16971_v45, %v16970_v39  ;;  %v16976_v28 = vld [vmem:[#allocation76_spill] sm:$0xff]  ;;  %v16981_v45 = vld [vmem:[#allocation78_spill] sm:$0xff] }
 0x402   :  { %6493 = vrot.lane.b32.xlu1 %v6052_v53, %s10518_s25  ;;  %6495 = vrot.lane.b32.xlu0 %v14816_v60, %s10518_s25  ;;  %vm5669_vm14 = vcmp.lt.s32.totalorder %v16965_v27, 12  ;;  %v14863_v15 = vsel %vm5866_vm10, %v5862_v19, %v5863_v46  ;;  %v14868_v53 = vsel %vm5866_vm10, %v5861_v62, %v5862_v19  ;;  %v9715_v61 = vsel %vm5428_vm4, 1.0, %v16577_v3  ;;  %v16972_v58 = vld [vmem:[#allocation41_spill] sm:$0xff] }
 0x403   :  { %v9771_v23 = vsel %vm5669_vm14, 1.0, %v16577_v3  ;;  %vm5671_vm15 = vcmp.lt.s32.totalorder %v16972_v58, 12  ;;  %vm5430_vm11 = vcmp.ge.s32.totalorder %v16975_v0, 4  ;;  %v5941_v4 = vmul.f32 %v9715_v61, %v16976_v28  ;;  %v16978_v55 = vld [vmem:[#allocation77_spill] sm:$0xff]  ;;  %v16985_v28 = vld [vmem:[#allocation115_spill] sm:$0xff] }
 0x404   :  { %10363 = vmatmul.mubr.msk.f32.gmra.mxu0 %vm6711_vm12, %v6639_v63  ;;  %v16973_v63 = vld [vmem:[#allocation74_spill] sm:$0xff]  ;;  %v9716_v39 = vsel %vm5430_vm11, 1.0, %v16577_v3 }
 0x405   :  { %10365 = vmatprep.mubr.msk.f32.mxu0 %vm6711_vm12, %v6640_v1  ;;  %v6579_v1 = vsel %vm4511_vm6, %v5939_v52, %v16973_v63  ;;  %v14902_v52 = vsel %vm5866_vm10, %v5863_v46, %v5864_v5 }
 0x406   :  { %6249 = vrot.lane.b32.xlu1 %v14741_v36, %s10517_s11  ;;  %6247 = vrot.lane.b32.xlu0 %v5416_v33, %s10517_s11  ;;  %v16974_v33 = vld [vmem:[#allocation91_spill] sm:$0xff]  ;;  %v6644_v51 = vsel %vm6635_vm1, %v6579_v1, %v14305_v18  ;;  %v9772_v18 = vsel %vm5671_vm15, 1.0, %v16577_v3 }
 0x407   :  { %v6643_v62 = vsel %vm6635_vm1, %v6578_v41, %v16974_v33  ;;  %v6581_v41 = vsel %vm4511_vm6, %v5941_v4, %v16981_v45  ;;  %v6056_v33 = vmul.f32 %v9772_v18, %v14902_v52 }
 0x408   :  { %v14855_v38 = vpop.permute.xlu1 %6189  ;;  %v14857_v42 = vpop.permute.xlu0 %6191  ;;  %10366 = vmatmul.mubr.msk.f32.gmra.mxu0 %vm6711_vm12, %v6641_v20  ;;  %v16977_v20 = vrot.slane %v14741_v36, 4  ;;  %v16980_v36 = vld [vmem:[#allocation45_spill] sm:$0xff]  ;;  %v6646_v61 = vsel %vm6635_vm1, %v6581_v41, %v14334_v49 }
 0x409   :  { %10368 = vmatprep.mubr.msk.f32.mxu0 %vm6711_vm12, %v6642_v29  ;;  %v16979_v29 = vld [vmem:[#allocation114_spill] sm:$0xff]  ;;  %vm5673_vm7 = vcmp.lt.s32.totalorder %v16980_v36, 12 }
 0x40a   :  { %6245 = vrot.lane.b32.xlu1 %v5415_v22, %s10517_s11  ;;  %6499 = vrot.lane.b32.xlu0 %v14863_v15, %s10518_s25  ;;  %v6054_v22 = vmul.f32 %v9771_v23, %v14868_v53  ;;  %v14897_v54 = vsel %vm5866_vm10, %v5864_v5, %v16977_v20  ;;  %v6580_v23 = vsel %vm4511_vm6, %v16979_v29, %v16978_v55  ;;  %v16982_v5 = vld [vmem:[#allocation38_spill] sm:$0xff]  ;;  %v16986_v20 = vld [vmem:[#allocation96_spill] sm:$0xff] }
 0x40b   :  { %v6645_v46 = vsel %vm6635_vm1, %v6580_v23, %v14313_v26  ;;  %vm5432_vm0 = vcmp.ge.s32.totalorder %v16982_v5, 4  ;;  %v16984_v26 = vld [vmem:[#allocation82_spill] sm:$0xff] }
 0x40c   :  { %v14885_v19 = vpop.permute.xlu1 %6441  ;;  %v14887_v11 = vpop.permute.xlu0 %6443  ;;  %10369 = vmatmul.mubr.msk.f32.gmra.mxu0 %vm6711_vm12, %v6643_v62  ;;  %v16983_v62 = vld [vmem:[#allocation75_spill] sm:$0xff]  ;;  %v6582_v4 = vsel %vm4511_vm6, %v16985_v28, %v16984_v26  ;;  %v9717_v49 = vsel %vm5432_vm0, 1.0, %v16577_v3  ;;  %v16987_v29 = vld [vmem:[#allocation90_spill] sm:$0xff]  ;;  %v16992_v28 = vld [vmem:[#allocation93_spill] sm:$0xff] }
 0x40d   :  { %10371 = vmatprep.mubr.msk.f32.mxu0 %vm6711_vm12, %v6644_v51  ;;  %v5943_v51 = vmul.f32 %v9716_v39, %v16983_v62  ;;  %v6647_v18 = vsel %vm6635_vm1, %v6582_v4, %v16987_v29  ;;  %v16988_v23 = vld [vmem:[#allocation94_spill] sm:$0xff]  ;;  %v16994_v29 = vld [vmem:[#allocation104_spill] sm:$0xff] }
 0x40e   :  { %6497 = vrot.lane.b32.xlu1 %v6054_v22, %s10518_s25  ;;  %6503 = vrot.lane.b32.xlu0 %v14897_v54, %s10518_s25  ;;  %v9773_v22 = vsel %vm5673_vm7, 1.0, %v16577_v3 }
 0x40f   :  { %v6583_v55 = vsel %vm4511_vm6, %v5943_v51, %v16986_v20  ;;  %v16991_v51 = vld [vmem:[#allocation79_spill] sm:$0xff]  ;;  %v16993_v20 = vld [vmem:[#allocation98_spill] sm:$0xff] }
 0x410   :  { %v14919_v63 = vpop.permute.xlu1 %6193  ;;  %v14921_v1 = vpop.permute.xlu0 %6195  ;;  %10372 = vmatmul.mubr.msk.f32.gmra.mxu0 %vm6711_vm12, %v6645_v46  ;;  %v6648_v39 = vsel %vm6635_vm1, %v6583_v55, %v16988_v23  ;;  %v6058_v46 = vmul.f32 %v9773_v22, %v14764_v35  ;;  %v16996_v23 = vld [vmem:[#allocation67_spill] sm:$0xff] }
 0x411   :  { %10374 = vmatprep.mubr.msk.f32.mxu0 %vm6711_vm12, %v6646_v61  ;;  %v16989_v61 = vld [vmem:[#allocation80_spill] sm:$0xff] }
 0x412   :  { %6501 = vrot.lane.b32.xlu1 %v6056_v33, %s10518_s25  ;;  %v5945_v62 = vmul.f32 %v9717_v49, %v16989_v61  ;;  %v16990_v33 = vld [vmem:[#allocation86_spill] sm:$0xff]  ;;  %v16995_v49 = vld [vmem:[#allocation99_spill] sm:$0xff] }
 0x413   :  { %v6584_v26 = vsel %vm4511_vm6, %v16991_v51, %v16990_v33  ;;  %v16998_v51 = vld [vmem:[#allocation105_spill] sm:$0xff] }
 0x414   :  { %v14939_v45 = vpop.permute.xlu1 %6445  ;;  %v14941_v41 = vpop.permute.xlu0 %6447  ;;  %10375 = vmatmul.mubr.msk.f32.gmra.mxu0 %vm6711_vm12, %v6647_v18  ;;  %v6585_v4 = vsel %vm4511_vm6, %v5945_v62, %v16992_v28  ;;  %v6649_v55 = vsel %vm6635_vm1, %v6584_v26, %v16993_v20  ;;  %v16999_v26 = vld [vmem:[#allocation84_spill] sm:$0xff] }
 0x415   :  { %10377 = vmatprep.mubr.msk.f32.mxu0 %vm6711_vm12, %v6648_v39  ;;  %v6650_v18 = vsel %vm6635_vm1, %v6585_v4, %v16994_v29  ;;  %v6586_v39 = vsel %vm4511_vm6, %v16996_v23, %v16995_v49  ;;  %v6588_v28 = vsel %vm4511_vm6, %v16999_v26, %v16998_v51  ;;  %v17005_v26 = vld [vmem:[#allocation123_spill] sm:$0xff] }
 0x416   :  { %6505 = vrot.lane.b32.xlu1 %v6058_v46, %s10518_s25  ;;  %v16997_v46 = vld [vmem:[#allocation107_spill] sm:$0xff]  ;;  %v6653_v4 = vsel %vm6635_vm1, %v6588_v28, %v14466_v31  ;;  %v17006_v28 = vld [vmem:[#allocation68_spill] sm:$0xff] }
 0x417   :  { %v6651_v61 = vsel %vm6635_vm1, %v6586_v39, %v16997_v46 }
 0x418   :  { %v14957_v35 = vpop.permute.xlu1 %6197  ;;  %v14959_v22 = vpop.permute.xlu0 %6199  ;;  %10378 = vmatmul.mubr.msk.f32.gmra.mxu0 %vm6711_vm12, %v6649_v55 }
 0x419   :  { %10380 = vmatprep.mubr.msk.f32.mxu0 %vm6711_vm12, %v6650_v18 }
 0x41c   :  { %v14968_v62 = vpop.permute.xlu1 %6449  ;;  %v14970_v33 = vpop.permute.xlu0 %6451  ;;  %10381 = vmatmul.mubr.msk.f32.gmra.mxu0 %vm6711_vm12, %v6651_v61  ;;  %v17004_v61 = vld [vmem:[#allocation118_spill] sm:$0xff] }
 0x41d   :  { %10383 = vmatprep.mubr.msk.f32.mxu0 %vm6711_vm12, %v14456_v16 }
 0x420   :  { %v14980_v20 = vpop.permute.xlu1 %6201  ;;  %v14982_v55 = vpop.permute.xlu0 %6203  ;;  %10384 = vmatmul.mubr.msk.f32.gmra.mxu0 %vm6711_vm12, %v6653_v4  ;;  %v6598_v4 = vsel %vm4511_vm6, %v17006_v28, %v17005_v26  ;;  %v17011_v26 = vld [vmem:[#allocation65_spill] sm:$0xff] }
 0x421   :  { %10386 = vmatprep.mubr.msk.f32.mxu0 %vm6711_vm12, %v14502_v32  ;;  %v17000_v32 = vld [vmem:[#allocation69_spill] sm:$0xff]  ;;  %vm5452_vm2 = vcmp.ge.s32.totalorder %v17011_v26, 4 }
 0x422   :  { %v6594_v49 = vsel %vm4511_vm6, %v17000_v32, %v14536_v40  ;;  %v6663_v32 = vsel %vm6635_vm1, %v6598_v4, %v14766_v24 }
 0x424   :  { %v14987_v29 = vpop.permute.xlu1 %6453  ;;  %v14989_v18 = vpop.permute.xlu0 %6455  ;;  %10387 = vmatmul.mubr.msk.f32.gmra.mxu0 %vm6711_vm12, %v14514_v6  ;;  %v6659_v6 = vsel %vm6635_vm1, %v6594_v49, %v14653_v50  ;;  %v17003_v50 = vld [vmem:[#allocation61_spill] sm:$0xff]  ;;  %v17007_v49 = vld [vmem:[#allocation64_spill] sm:$0xff] }
 0x425   :  { %10389 = vmatprep.mubr.msk.f32.mxu0 %vm6711_vm12, %v14548_v37  ;;  %v6660_v37 = vsel %vm6635_vm1, %v14567_v17, %v14655_v12  ;;  %vm5448_vm9 = vcmp.ge.s32.totalorder %v17003_v50, 4  ;;  %v6662_v17 = vsel %vm6635_vm1, %v17004_v61, %v14702_v2  ;;  %vm5450_vm13 = vcmp.ge.s32.totalorder %v17007_v49, 4  ;;  %v17008_v2 = vld [vmem:[#allocation125_spill] sm:$0xff] }
 0x426   :  { %v9726_v61 = vsel %vm5450_vm13, 1.0, %v16577_v3 }
 0x428   :  { %v14995_v16 = vpop.permute.xlu1 %6205  ;;  %v14997_v31 = vpop.permute.xlu0 %6207  ;;  %10390 = vmatmul.mubr.msk.f32.gmra.mxu0 %vm6711_vm12, %v14571_v13  ;;  %v17001_v13 = vld [vmem:[#allocation120_spill] sm:$0xff] }
 0x429   :  { %10392 = vmatprep.mubr.msk.f32.mxu0 %vm6711_vm12, %v14585_v10  ;;  %v17002_v10 = vld [vmem:[#allocation83_spill] sm:$0xff] }
 0x42a   :  { %v6596_v46 = vsel %vm4511_vm6, %v17002_v10, %v17001_v13  ;;  %v17009_v10 = vld [vmem:[#allocation87_spill] sm:$0xff] }
 0x42b   :  { %v6661_v40 = vsel %vm6635_vm1, %v6596_v46, %v14692_v48  ;;  %v9725_v48 = vsel %vm5448_vm9, 1.0, %v16577_v3 }
 0x42c   :  { %v15011_v23 = vpop.permute.xlu1 %6457  ;;  %v15013_v39 = vpop.permute.xlu0 %6459  ;;  %10393 = vmatmul.mubr.msk.f32.gmra.mxu0 %vm6711_vm12, %v6659_v6  ;;  %v6664_v6 = vsel %vm6635_vm1, %v17008_v2, %v14768_v59  ;;  %v5961_v46 = vmul.f32 %v9725_v48, %v17009_v10  ;;  %v17014_v10 = vld [vmem:[#allocation66_spill] sm:$0xff] }
 0x42d   :  { %10395 = vmatprep.mubr.msk.f32.mxu0 %vm6711_vm12, %v6660_v37  ;;  %vm5454_vm14 = vcmp.ge.s32.totalorder %v17014_v10, 4 }
 0x430   :  { %v15026_v12 = vpop.permute.xlu1 %6209  ;;  %v15028_v51 = vpop.permute.xlu0 %6211  ;;  %10396 = vmatmul.mubr.msk.f32.gmra.mxu0 %vm6711_vm12, %v6661_v40  ;;  %v17010_v40 = vld [vmem:[#allocation70_spill] sm:$0xff] }
 0x431   :  { %10398 = vmatprep.mubr.msk.f32.mxu0 %vm6711_vm12, %v6662_v17  ;;  %v6600_v24 = vsel %vm4511_vm6, %v17010_v40, %v14726_v9  ;;  %v6601_v17 = vsel %vm4511_vm6, %v5961_v46, %v14728_v25  ;;  %v17012_v9 = vld [vmem:[#allocation81_spill] sm:$0xff] }
 0x432   :  { %v6665_v59 = vsel %vm6635_vm1, %v6600_v24, %v14832_v57  ;;  %v6666_v28 = vsel %vm6635_vm1, %v6601_v17, %v14834_v56  ;;  %v17013_v25 = vld [vmem:[#allocation73_spill] sm:$0xff]  ;;  %v9727_v57 = vsel %vm5452_vm2, 1.0, %v16577_v3 }
 0x433   :  { %v6602_v2 = vsel %vm4511_vm6, %v17013_v25, %v14791_v44  ;;  %v17015_v44 = vld [vmem:[#allocation95_spill] sm:$0xff] }
 0x434   :  { %v15042_v37 = vpop.permute.xlu1 %6461  ;;  %v15044_v13 = vpop.permute.xlu0 %6463  ;;  %10399 = vmatmul.mubr.msk.f32.gmra.mxu0 %vm6711_vm12, %v6663_v32  ;;  %v5963_v32 = vmul.f32 %v9726_v61, %v17012_v9  ;;  %v6667_v56 = vsel %vm6635_vm1, %v6602_v2, %v14885_v19  ;;  %v5965_v61 = vmul.f32 %v9727_v57, %v17015_v44  ;;  %v9728_v19 = vsel %vm5454_vm14, 1.0, %v16577_v3 }
 0x435   :  { %10401 = vmatprep.mubr.msk.f32.mxu0 %vm6711_vm12, %v6664_v6 }
 0x436   :  { %v6603_v6 = vsel %vm4511_vm6, %v5963_v32, %v14793_v34  ;;  %v17016_v34 = vld [vmem:[#allocation85_spill] sm:$0xff] }
 0x437   :  { %v6668_v46 = vsel %vm6635_vm1, %v6603_v6, %v14887_v11  ;;  %v6604_v17 = vsel %vm4511_vm6, %v17016_v34, %v14855_v38  ;;  %v17018_v38 = vld [vmem:[#allocation100_spill] sm:$0xff]  ;;  %v17021_v34 = vld [vmem:[#allocation101_spill] sm:$0xff] }
 0x438   :  { %v15060_v4 = vpop.permute.xlu1 %6213  ;;  %v15062_v48 = vpop.permute.xlu0 %6215  ;;  %10402 = vmatmul.mubr.msk.f32.gmra.mxu0 %vm6711_vm12, %v6665_v59  ;;  %v6605_v59 = vsel %vm4511_vm6, %v5965_v61, %v14857_v42  ;;  %v6669_v11 = vsel %vm6635_vm1, %v6604_v17, %v14939_v45  ;;  %v5967_v2 = vmul.f32 %v9728_v19, %v17018_v38  ;;  %v17019_v42 = vld [vmem:[#allocation89_spill] sm:$0xff] }
 0x439   :  { %10404 = vmatprep.mubr.msk.f32.mxu0 %vm6711_vm12, %v6666_v28  ;;  %v17017_v28 = vld [vmem:[#allocation24_spill] sm:$0xff]  ;;  %v6670_v9 = vsel %vm6635_vm1, %v6605_v59, %v14941_v41  ;;  %v6606_v57 = vsel %vm4511_vm6, %v17019_v42, %v14919_v63  ;;  %v17022_v63 = vld [vmem:[#allocation97_spill] sm:$0xff] }
 0x43a   :  { %vm5456_vm4 = vcmp.ge.s32.totalorder %v17017_v28, 4  ;;  %v6607_v6 = vsel %vm4511_vm6, %v5967_v2, %v14921_v1  ;;  %v6671_v41 = vsel %vm6635_vm1, %v6606_v57, %v14968_v62  ;;  %v6608_v1 = vsel %vm4511_vm6, %v17022_v63, %v14957_v35  ;;  %v17023_v59 = vld [vmem:[#allocation32_spill] sm:$0xff]  ;;  %v17024_v2 = vld [vmem:[#allocation106_spill] sm:$0xff] }
 0x43b   :  { %v9729_v45 = vsel %vm5456_vm4, 1.0, %v16577_v3  ;;  %vm5460_vm11 = vcmp.ge.s32.totalorder %v17023_v59, 4  ;;  %v17025_v35 = vld [vmem:[#allocation102_spill] sm:$0xff] }
 0x43c   :  { %v15078_v40 = vpop.permute.xlu1 %6465  ;;  %v15080_v24 = vpop.permute.xlu0 %6467  ;;  %10405 = vmatmul.mubr.msk.f32.gmra.mxu0 %vm6711_vm12, %v6667_v56  ;;  %v17020_v56 = vld [vmem:[#allocation28_spill] sm:$0xff]  ;;  %v5969_v17 = vmul.f32 %v9729_v45, %v17021_v34  ;;  %v9731_v57 = vsel %vm5460_vm11, 1.0, %v16577_v3  ;;  %v17027_v34 = vld [vmem:[#allocation103_spill] sm:$0xff] }
 0x43d   :  { %10407 = vmatprep.mubr.msk.f32.mxu0 %vm6711_vm12, %v6668_v46  ;;  %vm5458_vm15 = vcmp.ge.s32.totalorder %v17020_v56, 4  ;;  %v6672_v46 = vsel %vm6635_vm1, %v6607_v6, %v14970_v33  ;;  %v6673_v33 = vsel %vm6635_vm1, %v6608_v1, %v14987_v29  ;;  %v17026_v45 = vld [vmem:[#allocation36_spill] sm:$0xff] }
 0x43e   :  { %v9730_v19 = vsel %vm5458_vm15, 1.0, %v16577_v3  ;;  %v6609_v62 = vsel %vm4511_vm6, %v5969_v17, %v14959_v22  ;;  %v6610_v22 = vsel %vm4511_vm6, %v17025_v35, %v14980_v20  ;;  %vm5462_vm7 = vcmp.ge.s32.totalorder %v17026_v45, 4  ;;  %v17028_v20 = vld [vmem:[#allocation108_spill] sm:$0xff] }
 0x43f   :  { %v5971_v42 = vmul.f32 %v9730_v19, %v17024_v2  ;;  %v5973_v17 = vmul.f32 %v9731_v57, %v17027_v34  ;;  %v9732_v63 = vsel %vm5462_vm7, 1.0, %v16577_v3  ;;  %v17029_v1 = vld [vmem:[#allocation40_spill] sm:$0xff] }
 0x440   :  { %v15096_v32 = vpop.permute.xlu1 %6217  ;;  %v15098_v25 = vpop.permute.xlu0 %6219  ;;  %10408 = vmatmul.mubr.msk.f32.gmra.mxu0 %vm6711_vm12, %v6669_v11  ;;  %v6674_v11 = vsel %vm6635_vm1, %v6609_v62, %v14989_v18  ;;  %v6675_v18 = vsel %vm6635_vm1, %v6610_v22, %v15011_v23  ;;  %vm5464_vm0 = vcmp.ge.s32.totalorder %v17029_v1, 4  ;;  %v17032_v35 = vld [vmem:[#allocation44_spill] sm:$0xff] }
 0x441   :  { %10410 = vmatprep.mubr.msk.f32.mxu0 %vm6711_vm12, %v6670_v9  ;;  %v6611_v29 = vsel %vm4511_vm6, %v5971_v42, %v14982_v55  ;;  %v6612_v55 = vsel %vm4511_vm6, %v17028_v20, %v14995_v16  ;;  %v6613_v23 = vsel %vm4511_vm6, %v5973_v17, %v14997_v31  ;;  %v17031_v16 = vld [vmem:[#allocation110_spill] sm:$0xff]  ;;  %v9733_v42 = vsel %vm5464_vm0, 1.0, %v16577_v3 }
 0x442   :  { %v6676_v6 = vsel %vm6635_vm1, %v6611_v29, %v15013_v39  ;;  %v6677_v39 = vsel %vm6635_vm1, %v6612_v55, %v15042_v37  ;;  %v6678_v19 = vsel %vm6635_vm1, %v6613_v23, %v15044_v13  ;;  %v6614_v31 = vsel %vm4511_vm6, %v17031_v16, %v15026_v12  ;;  %v17034_v12 = vld [vmem:[#allocation111_spill] sm:$0xff]  ;;  %v17036_v23 = vld [vmem:[#allocation116_spill] sm:$0xff] }
 0x443   :  { %v6679_v13 = vsel %vm6635_vm1, %v6614_v31, %v15078_v40  ;;  %vm5466_vm9 = vcmp.ge.s32.totalorder %v17032_v35, 4 }
 0x444   :  { %v6470_v44 = vpop.permute.xlu1 %6469  ;;  %v6472_v61 = vpop.permute.xlu0 %6471  ;;  %10411 = vmatmul.mubr.msk.f32.gmra.mxu0 %vm6711_vm12, %v6671_v41  ;;  %v9734_v34 = vsel %vm5466_vm9, 1.0, %v16577_v3 }
 0x445   :  { %10413 = vmatprep.mubr.msk.f32.mxu0 %vm6711_vm12, %v6672_v46 }
 0x448   :  { %v6222_v9 = vpop.permute.xlu1 %6221  ;;  %v6224_v38 = vpop.permute.xlu0 %6223  ;;  %10414 = vmatmul.mubr.msk.f32.gmra.mxu0 %vm6711_vm12, %v6673_v33 }
 0x449   :  { %10416 = vmatprep.mubr.msk.f32.mxu0 %vm6711_vm12, %v6674_v11  ;;  %v17030_v11 = vld [vmem:[#allocation112_spill] sm:$0xff] }
 0x44a   :  { %v5975_v2 = vmul.f32 %v9732_v63, %v17030_v11 }
 0x44c   :  { %v6474_v41 = vpop.permute.xlu1 %6473  ;;  %v6476_v46 = vpop.permute.xlu0 %6475  ;;  %10417 = vmatmul.mubr.msk.f32.gmra.mxu0 %vm6711_vm12, %v6675_v18  ;;  %v6615_v37 = vsel %vm4511_vm6, %v5975_v2, %v15028_v51  ;;  %v17033_v18 = vld [vmem:[#allocation113_spill] sm:$0xff]  ;;  %v6616_v51 = vsel %vm4511_vm6, %v17034_v12, %v15060_v4  ;;  %v17037_v4 = vld [vmem:[#allocation63_spill] sm:$0xff] }
 0x44d   :  { %10419 = vmatprep.mubr.msk.f32.mxu0 %vm6711_vm12, %v6676_v6  ;;  %v6680_v22 = vsel %vm6635_vm1, %v6615_v37, %v15080_v24  ;;  %v5977_v6 = vmul.f32 %v9733_v42, %v17033_v18  ;;  %v6681_v17 = vsel %vm6635_vm1, %v6616_v51, %v6470_v44  ;;  %v17035_v24 = vld [vmem:[#allocation48_spill] sm:$0xff]  ;;  %v17039_v42 = vld [vmem:[#allocation119_spill] sm:$0xff]  ;;  %v17041_v18 = vld [vmem:[#allocation54_spill] sm:$0xff] }
 0x44e   :  { %vm5468_vm13 = vcmp.ge.s32.totalorder %v17035_v24, 4  ;;  %vm5472_vm14 = vcmp.ge.s32.totalorder %v17041_v18, 4  ;;  %v17042_v51 = vld [vmem:[#allocation122_spill] sm:$0xff] }
 0x44f   :  { %v6617_v40 = vsel %vm4511_vm6, %v5977_v6, %v15062_v48  ;;  %v9735_v48 = vsel %vm5468_vm13, 1.0, %v16577_v3 }
 0x450   :  { %v6226_v62 = vpop.permute.xlu1 %6225  ;;  %v6228_v33 = vpop.permute.xlu0 %6227  ;;  %10420 = vmatmul.mubr.msk.f32.gmra.mxu0 %vm6711_vm12, %v6677_v39  ;;  %v6682_v20 = vsel %vm6635_vm1, %v6617_v40, %v6472_v61  ;;  %v5979_v39 = vmul.f32 %v9734_v34, %v17036_v23  ;;  %v17038_v61 = vld [vmem:[#allocation52_spill] sm:$0xff]  ;;  %v5981_v37 = vmul.f32 %v9735_v48, %v17039_v42  ;;  %v17043_v40 = vld [vmem:[#allocation121_spill] sm:$0xff]  ;;  %v17047_v42 = vld [vmem:[#allocation126_spill] sm:$0xff] }
 0x451   :  { %10422 = vmatprep.mubr.msk.f32.mxu0 %vm6711_vm12, %v6678_v19  ;;  %v6618_v19 = vsel %vm4511_vm6, %v17037_v4, %v15096_v32  ;;  %vm5470_vm2 = vcmp.ge.s32.totalorder %v17038_v61, 4  ;;  %v17040_v32 = vld [vmem:[#allocation117_spill] sm:$0xff] }
 0x452   :  { %v6619_v44 = vsel %vm4511_vm6, %v5979_v39, %v15098_v25  ;;  %v6683_v11 = vsel %vm6635_vm1, %v6618_v19, %v6474_v41  ;;  %v6621_v25 = vsel %vm4511_vm6, %v5981_v37, %v6224_v38  ;;  %v17045_v19 = vld [vmem:[#allocation124_spill] sm:$0xff] }
 0x453   :  { %v6684_v2 = vsel %vm6635_vm1, %v6619_v44, %v6476_v46 }
 0x454   :  { %v6478_v57 = vpop.permute.xlu1 %6477  ;;  %v6480_v29 = vpop.permute.xlu0 %6479  ;;  %10423 = vmatmul.mubr.msk.f32.gmra.mxu0 %vm6711_vm12, %v6679_v13  ;;  %v6620_v13 = vsel %vm4511_vm6, %v17040_v32, %v6222_v9  ;;  %v6622_v9 = vsel %vm4511_vm6, %v17043_v40, %v6226_v62 }
 0x455   :  { %10425 = vmatprep.mubr.msk.f32.mxu0 %vm6711_vm12, %v6680_v22  ;;  %v9736_v22 = vsel %vm5470_vm2, 1.0, %v16577_v3  ;;  %v6685_v41 = vsel %vm6635_vm1, %v6620_v13, %v6478_v57  ;;  %v6686_v46 = vsel %vm6635_vm1, %v6621_v25, %v6480_v29  ;;  %v17044_v29 = vld [vmem:[#allocation56_spill] sm:$0xff] }
 0x456   :  { %v5983_v34 = vmul.f32 %v9736_v22, %v17042_v51  ;;  %vm5474_vm4 = vcmp.ge.s32.totalorder %v17044_v29, 4 }
 0x458   :  { %v6230_v55 = vpop.permute.xlu1 %6229  ;;  %v6232_v63 = vpop.permute.xlu0 %6231  ;;  %10426 = vmatmul.mubr.msk.f32.gmra.mxu0 %vm6711_vm12, %v6681_v17  ;;  %v9737_v17 = vsel %vm5472_vm14, 1.0, %v16577_v3  ;;  %v6623_v38 = vsel %vm4511_vm6, %v5983_v34, %v6228_v33  ;;  %v9738_v33 = vsel %vm5474_vm4, 1.0, %v16577_v3  ;;  %v17049_v34 = vld [vmem:[#allocation128_spill] sm:$0xff] }
 0x459   :  { %10428 = vmatprep.mubr.msk.f32.mxu0 %vm6711_vm12, %v6682_v20  ;;  %v5985_v4 = vmul.f32 %v9737_v17, %v14697_v8  ;;  %v6624_v62 = vsel %vm4511_vm6, %v17045_v19, %v6230_v55  ;;  %v17046_v8 = vld [vmem:[#allocation127_spill] sm:$0xff]  ;;  %v17051_v19 = vld [vmem:[#allocation62_spill] sm:$0xff] }
 0x45a   :  { %vm5480_vm7 = vcmp.ge.s32.totalorder %v17051_v19, 4 }
 0x45b   :  { %v6625_v48 = vsel %vm4511_vm6, %v5985_v4, %v6232_v63  ;;  %v17048_v63 = vld [vmem:[#allocation58_spill] sm:$0xff] }
 0x45c   :  { %v6482_v16 = vpop.permute.xlu1 %6481  ;;  %v6484_v31 = vpop.permute.xlu0 %6483  ;;  %10429 = vmatmul.mubr.msk.f32.gmra.mxu0 %vm6711_vm12, %v6683_v11  ;;  %vm5476_vm15 = vcmp.ge.s32.totalorder %v17048_v63, 4 }
 0x45d   :  { %10431 = vmatprep.mubr.msk.f32.mxu0 %vm6711_vm12, %v6684_v2  ;;  %v6687_v57 = vsel %vm6635_vm1, %v6622_v9, %v6482_v16  ;;  %v6688_v20 = vsel %vm6635_vm1, %v6623_v38, %v6484_v31  ;;  %v5987_v31 = vmul.f32 %v9738_v33, %v17046_v8 }
 0x460   :  { %v6234_v6 = vpop.permute.xlu1 %6233  ;;  %v6236_v12 = vpop.permute.xlu0 %6235  ;;  %10432 = vmatmul.mubr.msk.f32.gmra.mxu0 %vm6711_vm12, %v6685_v41  ;;  %v9739_v41 = vsel %vm5476_vm15, 1.0, %v16577_v3 }
 0x461   :  { %10434 = vmatprep.mubr.msk.f32.mxu0 %vm6711_vm12, %v6686_v46  ;;  %v6626_v37 = vsel %vm4511_vm6, %v17047_v42, %v6234_v6  ;;  %v6627_v55 = vsel %vm4511_vm6, %v5987_v31, %v6236_v12  ;;  %v5989_v6 = vmul.f32 %v9739_v41, %v14782_v43 }
 0x464   :  { %v6486_v23 = vpop.permute.xlu1 %6485  ;;  %v6488_v39 = vpop.permute.xlu0 %6487  ;;  %10435 = vmatmul.mubr.msk.f32.gmra.mxu0 %vm6711_vm12, %v6687_v57 }
 0x465   :  { %10437 = vmatprep.mubr.msk.f32.mxu0 %vm6711_vm12, %v6688_v20  ;;  %v6689_v44 = vsel %vm6635_vm1, %v6624_v62, %v6486_v23  ;;  %v6690_v11 = vsel %vm6635_vm1, %v6625_v48, %v6488_v39  ;;  %v17050_v39 = vld [vmem:[#allocation60_spill] sm:$0xff] }
 0x466   :  { %vm5478_vm11 = vcmp.ge.s32.totalorder %v17050_v39, 4  ;;  %v7829_v39 = vand.u32 7, %v17020_v56 }
 0x467   :  { %v9740_v43 = vsel %vm5478_vm11, 1.0, %v16577_v3 }
 0x468   :  { %v6238_v2 = vpop.permute.xlu1 %6237  ;;  %v6240_v16 = vpop.permute.xlu0 %6239  ;;  %10438 = vmatmul.mubr.msk.f32.gmra.mxu0 %vm6711_vm12, %v6689_v44  ;;  %v5991_v48 = vmul.f32 %v9740_v43, %v14868_v53  ;;  %v9741_v44 = vsel %vm5480_vm7, 1.0, %v16577_v3 }
 0x469   :  { %10440 = vmatprep.mubr.msk.f32.mxu0 %vm6711_vm12, %v6690_v11  ;;  %v6628_v12 = vsel %vm4511_vm6, %v17049_v34, %v6238_v2  ;;  %v6629_v40 = vsel %vm4511_vm6, %v5989_v6, %v6240_v16  ;;  %v5993_v31 = vmul.f32 %v9741_v44, %v14902_v52  ;;  %v17054_v6 = vld [vmem:[#allocation18_spill] sm:$0xff]  ;;  %v7633_v44 = vand.u32 7, %v16975_v0 }
 0x46a   :  { %v7563_v34 = vand.u32 7, %v17054_v6  ;;  %v17070_v6 = vld [vmem:[#allocation50_spill] sm:$0xff] }
 0x46c   :  { %v6490_v32 = vpop.permute.xlu1 %6489  ;;  %v6492_v13 = vpop.permute.xlu0 %6491  ;;  %vm8315_vm9 = vcmp.eq.s32.totalorder %v7563_v34, 0  ;;  %v7689_v34 = vand.u32 7, %v17070_v6 }
 0x46d   :  { %v6691_v22 = vsel %vm6635_vm1, %v6626_v37, %v6490_v32  ;;  %v6692_v25 = vsel %vm6635_vm1, %v6627_v55, %v6492_v13 }
 0x46e   :  { %10441 = vmatmul.mubr.msk.f32.gmra.mxu0 %vm6711_vm12, %v6691_v22  ;;  %v8892_v22 = vld [vmem:[%s16296_s1 + $0x88] sm:$0xff] }
 0x46f   :  { %10443 = vmatprep.mubr.msk.f32.mxu0 %vm6711_vm12, %v6692_v25  ;;  %10455 = vmatprep.subr.mxu1 %v8892_v22  ;;  %v17052_v25 = vld [vmem:[#allocation16_spill] sm:$0xff] }
 0x470   :  { %v6242_v46 = vpop.permute.xlu1 %6241  ;;  %v6244_v51 = vpop.permute.xlu0 %6243  ;;  %10456 = vmatpush3.msra.mxu1 %v8892_v22  ;;  %v7549_v41 = vand.u32 7, %v17052_v25 }
 0x471   :  { %v6630_v33 = vsel %vm4511_vm6, %v14816_v60, %v6242_v46  ;;  %v6631_v2 = vsel %vm4511_vm6, %v5991_v48, %v6244_v51  ;;  %v17053_v46 = vld [vmem:[#allocation2_spill] sm:$0xff]  ;;  %v17063_v48 = vld [vmem:[#allocation9_spill] sm:$0xff] }
 0x472   :  { %vm8313_vm0 = vcmp.eq.s32.totalorder %v7549_v41, 0  ;;  %v7556_v51 = vand.u32 7, %v17053_v46  ;;  %v17069_v41 = vld [vmem:[#allocation19_spill] sm:$0xff] }
 0x473   :  { %v15280_v43 = vsel %vm8313_vm0, 1.0, %v16577_v3  ;;  %v7682_v46 = vand.u32 7, %v17069_v41 }
 0x474   :  { %v6494_v9 = vpop.permute.xlu1 %6493  ;;  %v6496_v17 = vpop.permute.xlu0 %6495 }
 0x475   :  { %v6693_v38 = vsel %vm6635_vm1, %v6628_v12, %v6494_v9  ;;  %v6694_v57 = vsel %vm6635_vm1, %v6629_v40, %v6496_v17  ;;  %v17055_v12 = vld [vmem:[#allocation3_spill] sm:$0xff]  ;;  %v7577_v40 = vand.u32 7, %v16962_v30  ;;  %v17056_v9 = vld [vmem:[#allocation4_spill] sm:$0xff] }
 0x476   :  { %10444 = vmatmul.mubr.msk.f32.gmra.mxu0 %vm6711_vm12, %v6693_v38  ;;  %v7584_v17 = vand.u32 7, %v17056_v9  ;;  %v7591_v38 = vand.u32 7, %v16963_v21  ;;  %v17062_v21 = vld [vmem:[#allocation7_spill] sm:$0xff] }
 0x477   :  { %10446 = vmatprep.mubr.msk.f32.mxu0 %vm6711_vm12, %v6694_v57  ;;  %v17057_v57 = vld [vmem:[#allocation5_spill] sm:$0xff]  ;;  %vm8317_vm2 = vcmp.eq.s32.totalorder %v7577_v40, 0 }
 0x478   :  { %v6250_v20 = vpop.permute.xlu1 %6249  ;;  %v6248_v23 = vpop.permute.xlu0 %6247  ;;  %vm8318_vm14 = vcmp.eq.s32.totalorder %v7584_v17, 0  ;;  %vm8319_vm4 = vcmp.eq.s32.totalorder %v7591_v38, 0  ;;  %v17072_v38 = vld [vmem:[#allocation53_spill] sm:$0xff] }
 0x479   :  { %v6633_v37 = vsel %vm4511_vm6, %v5993_v31, %v6248_v23  ;;  %v6634_v52 = vsel %vm4511_vm6, %v14897_v54, %v6250_v20  ;;  %v7570_v54 = vand.u32 7, %v17055_v12  ;;  %v7598_v20 = vand.u32 7, %v17057_v57  ;;  %v17071_v12 = vld [vmem:[#allocation23_spill] sm:$0xff] }
 0x47a   :  { %v7605_v23 = vand.u32 7, %v16964_v47  ;;  %v7619_v47 = vand.u32 7, %v16967_v14  ;;  %v15300_v31 = vsel %vm8315_vm9, 1.0, %v16577_v3  ;;  %v15307_v14 = vsel %vm8317_vm2, 1.0, %v16577_v3 }
 0x47b   :  { %vm8316_vm13 = vcmp.eq.s32.totalorder %v7570_v54, 0  ;;  %vm15282_vm15 = vcmp.eq.s32.totalorder %v7598_v20, 0  ;;  %v15310_v0 = vsel %vm8318_vm14, 1.0, %v16577_v3  ;;  %vm8325_vm9 = vcmp.eq.s32.totalorder %v7633_v44, 0  ;;  %v8891_v20 = vld [vmem:[%s16296_s1 + $0x80] sm:$0xff]  ;;  %v17075_v44 = vld [vmem:[#allocation31_spill] sm:$0xff] }
 0x47c   :  { %v6246_v4 = vpop.permute.xlu1 %6245  ;;  %v6500_v62 = vpop.permute.xlu0 %6499  ;;  %vm15286_vm11 = vcmp.eq.s32.totalorder %v7605_v23, 0  ;;  %vm8323_vm0 = vcmp.eq.s32.totalorder %v7619_v47, 0  ;;  %v7696_v54 = vand.u32 7, %v17071_v12  ;;  %v15341_v17 = vsel %vm8325_vm9, 1.0, %v16577_v3  ;;  %10457 = vmatprep.subr.mxu1 %v8891_v20 }
 0x47d   :  { %v6696_v8 = vsel %vm6635_vm1, %v6631_v2, %v6500_v62  ;;  %v6632_v53 = vsel %vm4511_vm6, %v14863_v15, %v6246_v4  ;;  %v7612_v62 = vand.u32 7, %v17062_v21  ;;  %v15335_v40 = vsel %vm8323_vm0, 1.0, %v16577_v3  ;;  %v17073_v21 = vld [vmem:[#allocation27_spill] sm:$0xff]  ;;  %10458 = vmatpush3.msra.mxu1 %v8891_v20 }
 0x47e   :  { %v7703_v57 = vand.u32 7, %v17072_v38  ;;  %vm8333_vm0 = vcmp.eq.s32.totalorder %v7689_v34, 0 }
 0x47f   :  { %vm8322_vm7 = vcmp.eq.s32.totalorder %v7612_v62, 0  ;;  %v7710_v62 = vand.u32 7, %v17073_v21  ;;  %v15377_v6 = vsel %vm8333_vm0, 1.0, %v16577_v3 }
 0x480   :  { %v6498_v11 = vpop.permute.xlu1 %6497  ;;  %v6504_v42 = vpop.permute.xlu0 %6503  ;;  %vm8335_vm9 = vcmp.eq.s32.totalorder %v7703_v57, 0 }
 0x481   :  { %v6695_v16 = vsel %vm6635_vm1, %v6630_v33, %v6498_v11  ;;  %v6698_v32 = vsel %vm6635_vm1, %v6633_v37, %v6504_v42  ;;  %v7626_v33 = vand.u32 7, %v17063_v48  ;;  %v17064_v11 = vld [vmem:[#allocation11_spill] sm:$0xff]  ;;  %v15303_v42 = vsel %vm8316_vm13, 1.0, %v16577_v3 }
 0x482   :  { %10447 = vmatmul.mubr.msk.f32.gmra.mxu0 %vm6711_vm12, %v6695_v16  ;;  %v7640_v2 = vand.u32 7, %v17064_v11  ;;  %v7647_v16 = vand.u32 7, %v16982_v5  ;;  %v15313_v37 = vsel %vm8319_vm4, 1.0, %v16577_v3  ;;  %v17066_v5 = vld [vmem:[#allocation42_spill] sm:$0xff]  ;;  %v17074_v48 = vld [vmem:[#allocation55_spill] sm:$0xff]  ;;  %v7724_v11 = vand.u32 7, %v17075_v44 }
 0x483   :  { %10449 = vmatprep.mubr.msk.f32.mxu0 %vm6711_vm12, %v6696_v8  ;;  %v15383_v12 = vsel %vm8335_vm9, 1.0, %v16577_v3  ;;  %v17089_v44 = vld [vmem:[#allocation47_spill] sm:$0xff] }
 0x484   :  { %v6502_v60 = vpop.permute.xlu1 %6501  ;;  %vm8326_vm13 = vcmp.eq.s32.totalorder %v7640_v2, 0  ;;  %vm8327_vm2 = vcmp.eq.s32.totalorder %v7647_v16, 0  ;;  %v17076_v2 = vld [vmem:[#allocation57_spill] sm:$0xff] }
 0x485   :  { %v6697_v55 = vsel %vm6635_vm1, %v6632_v53, %v6502_v60  ;;  %v17065_v53 = vld [vmem:[#allocation13_spill] sm:$0xff]  ;;  %v15348_v23 = vsel %vm8326_vm13, 1.0, %v16577_v3  ;;  %v15351_v4 = vsel %vm8327_vm2, 1.0, %v16577_v3  ;;  %v7731_v16 = vand.u32 7, %v17076_v2 }
 0x486   :  { %10450 = vmatmul.mubr.msk.f32.gmra.mxu0 %vm6711_vm12, %v6697_v55  ;;  %v7654_v60 = vand.u32 7, %v17065_v53  ;;  %v7661_v55 = vand.u32 7, %v17066_v5  ;;  %v17077_v53 = vld [vmem:[#allocation35_spill] sm:$0xff]  ;;  %vm8336_vm13 = vcmp.eq.s32.totalorder %v7710_v62, 0 }
 0x487   :  { %10452 = vmatprep.mubr.msk.f32.mxu0 %vm6711_vm12, %v6698_v32  ;;  %v15319_v32 = vsel %vm15282_vm15, 1.0, %v16577_v3  ;;  %v17078_v5 = vld [vmem:[#allocation59_spill] sm:$0xff]  ;;  %v15392_v57 = vsel %vm8336_vm13, 1.0, %v16577_v3 }
 0x488   :  { %v6506_v13 = vpop.permute.xlu1 %6505  ;;  %vm8328_vm14 = vcmp.eq.s32.totalorder %v7654_v60, 0  ;;  %vm8329_vm4 = vcmp.eq.s32.totalorder %v7661_v55, 0  ;;  %v7738_v60 = vand.u32 7, %v17077_v53  ;;  %v7745_v55 = vand.u32 7, %v17078_v5  ;;  %v17090_v5 = vld [vmem:[#allocation49_spill] sm:$0xff] }
 0x489   :  { %v6699_v15 = vsel %vm6635_vm1, %v6634_v52, %v6506_v13  ;;  %v15324_v52 = vsel %vm15286_vm11, 1.0, %v16577_v3  ;;  %v17067_v13 = vld [vmem:[#allocation15_spill] sm:$0xff]  ;;  %v15354_v30 = vsel %vm8328_vm14, 1.0, %v16577_v3  ;;  %v15358_v47 = vsel %vm8329_vm4, 1.0, %v16577_v3 }
 0x48a   :  { %10453 = vmatmul.mubr.msk.f32.gmra.mxu0 %vm6711_vm12, %v6699_v15  ;;  %vm8314_vm12 = vcmp.eq.s32.totalorder %v7556_v51, 0  ;;  %v7668_v22 = vand.u32 7, %v17067_v13  ;;  %v17068_v15 = vld [vmem:[#allocation46_spill] sm:$0xff]  ;;  %v15330_v51 = vsel %vm8322_vm7, 1.0, %v16577_v3  ;;  %vm8332_vm7 = vcmp.eq.s32.totalorder %v7682_v46, 0 }
 0x48b   :  { %v15297_v8 = vsel %vm8314_vm12, 1.0, %v16577_v3  ;;  %vm8324_vm12 = vcmp.eq.s32.totalorder %v7626_v33, 0  ;;  %v7675_v25 = vand.u32 7, %v17068_v15  ;;  %v7717_v33 = vand.u32 7, %v17074_v48  ;;  %v17097_v48 = vld [vmem:[#allocation51_spill] sm:$0xff] }
 0x48c   :  { %v15338_v9 = vsel %vm8324_vm12, 1.0, %v16577_v3  ;;  %vm8330_vm15 = vcmp.eq.s32.totalorder %v7668_v22, 0  ;;  %vm8334_vm12 = vcmp.eq.s32.totalorder %v7696_v54, 0  ;;  %v17079_v22 = vld [vmem:[#allocation39_spill] sm:$0xff]  ;;  %v15374_v46 = vsel %vm8332_vm7, 1.0, %v16577_v3 }
 0x48d   :  { %vm8331_vm11 = vcmp.eq.s32.totalorder %v7675_v25, 0  ;;  %v15366_v13 = vsel %vm8330_vm15, 1.0, %v16577_v3  ;;  %v7752_v15 = vand.u32 7, %v17079_v22  ;;  %v7759_v25 = vand.u32 7, %v17003_v50  ;;  %v17080_v54 = vld [vmem:[#allocation43_spill] sm:$0xff] }
 0x48e   :  { %v15371_v41 = vsel %vm8331_vm11, 1.0, %v16577_v3  ;;  %v15380_v34 = vsel %vm8334_vm12, 1.0, %v16577_v3  ;;  %vm8337_vm2 = vcmp.eq.s32.totalorder %v7717_v33, 0  ;;  %vm8338_vm14 = vcmp.eq.s32.totalorder %v7724_v11, 0  ;;  %v15389_v50 = vld [vmem:[%s16296_s1 + $0x68] ss:$0 sm:$0xff] }
 0x48f   :  { %v7766_v38 = vand.u32 7, %v17080_v54  ;;  %vm8339_vm4 = vcmp.eq.s32.totalorder %v7731_v16, 0  ;;  %vm15394_vm15 = vcmp.eq.s32.totalorder %v7738_v60, 0  ;;  %vm15398_vm11 = vcmp.eq.s32.totalorder %v7745_v55, 0 }
 0x490   :  { %vm15402_vm7 = vcmp.eq.s32.totalorder %v7752_v15, 0  ;;  %vm15406_vm0 = vcmp.eq.s32.totalorder %v7759_v25, 0  ;;  %v7773_v33 = vand.u32 7, %v17007_v49  ;;  %v7780_v11 = vand.u32 7, %v17089_v44 }
 0x491   :  { %v15413_v16 = vsel %vm8337_vm2, 1.0, %v16577_v3  ;;  %v15416_v53 = vsel %vm8338_vm14, 1.0, %v16577_v3  ;;  %v7787_v60 = vand.u32 7, %v17011_v26  ;;  %v7794_v55 = vand.u32 7, %v17090_v5 }
 0x492   :  { %v15424_v15 = vsel %vm8339_vm4, 1.0, %v16577_v3  ;;  %vm8344_vm12 = vcmp.eq.s32.totalorder %v7766_v38, 0  ;;  %v7801_v49 = vand.u32 7, %v17014_v10  ;;  %v15430_v54 = vsel %vm15394_vm15, 1.0, %v16577_v3 }
 0x493   :  { %v15435_v26 = vsel %vm15398_vm11, 1.0, %v16577_v3  ;;  %v15440_v44 = vsel %vm15402_vm7, 1.0, %v16577_v3  ;;  %v15445_v10 = vsel %vm15406_vm0, 1.0, %v16577_v3  ;;  %vm8345_vm9 = vcmp.eq.s32.totalorder %v7773_v33, 0 }
 0x494   :  { %17091 = vst [vmem:[#allocation20_spill] sm:$0xff] %v15445_v10  ;;  %vm8346_vm13 = vcmp.eq.s32.totalorder %v7780_v11, 0  ;;  %v15450_v21 = vsel %vm8344_vm12, 1.0, %v16577_v3  ;;  %vm15452_vm2 = vcmp.eq.s32.totalorder %v7787_v60, 0  ;;  %vm15456_vm14 = vcmp.eq.s32.totalorder %v7794_v55, 0  ;;  %v17098_v55 = vld [vmem:[#allocation6_spill] sm:$0xff] }
 0x495   :  { %17092 = vst [vmem:[#allocation22_spill] sm:$0xff] %v15450_v21  ;;  %v7808_v19 = vand.u32 7, %v17097_v48  ;;  %vm8349_vm4 = vcmp.eq.s32.totalorder %v7801_v49, 0  ;;  %v7815_v33 = vand.u32 7, %v17017_v28  ;;  %v15469_v60 = vsel %vm8346_vm13, 1.0, %v16577_v3  ;;  %v8890_v28 = vld [vmem:[%s16296_s1 + $0x78] sm:$0xff] }
 0x496   :  { %v7822_v36 = vand.u32 7, %v17098_v55  ;;  %v15483_v63 = vsel %vm15452_vm2, 1.0, %v16577_v3  ;;  %v15488_v56 = vsel %vm15456_vm14, 1.0, %v16577_v3  ;;  %v15491_v55 = vsel %vm8349_vm4, 1.0, %v16577_v3  ;;  %10459 = vmatprep.subr.mxu1 %v8890_v28 }
 0x497   :  { %17100 = vst [vmem:[#allocation71_spill] sm:$0xff] %v15483_v63  ;;  %17101 = vst [vmem:[#allocation30_spill] sm:$0xff] %v15488_v56  ;;  %vm15493_vm15 = vcmp.eq.s32.totalorder %v7808_v19, 0  ;;  %vm15503_vm11 = vcmp.eq.s32.totalorder %v7815_v33, 0  ;;  %10460 = vmatpush3.msra.mxu1 %v8890_v28  ;;  %vm15511_vm0 = vcmp.eq.s32.totalorder %v7829_v39, 0  ;;  %v8889_v33 = vld [vmem:[%s16296_s1 + $0x70] sm:$0xff] }
 0x498   :  { %17102 = vst [vmem:[#allocation72_spill] sm:$0xff] %v15491_v55  ;;  %vm15507_vm7 = vcmp.eq.s32.totalorder %v7822_v36, 0  ;;  %10461 = vmatprep.subr.mxu1 %v8889_v33  ;;  %v15525_v39 = vsel %vm15493_vm15, 1.0, %v16577_v3  ;;  %v7843_v56 = vand.u32 7, %v17023_v59  ;;  %v15548_v59 = vsel %vm15511_vm0, 1.0, %v16577_v3 }
 0x499   :  { %17112 = vst [vmem:[#allocation92_spill] sm:$0xff] %v15525_v39  ;;  %10462 = vmatpush3.msra.mxu1 %v8889_v33  ;;  %17115 = vst [vmem:[#allocation74_spill] sm:$0xff] %v15548_v59  ;;  %vm8930_vm15 = vcmask 1041409   ;;  %vm8936_vm0 = vcmask 1044484  }
 0x4c0   :  { %v10361_v2 = vpop.f32.mrf.mxu0 }
 0x4c1   :  { %v15421_v22 = vadd.f32 %v10361_v2, %v15389_v50 }
 0x4c2   :  { %v6970_v25 = vpop.f32.mrf.mxu0 }
 0x4c3   :  { %v7290_v38 = vmax.f32 %v15421_v22, 0.0  ;;  %v6971_v20 = vadd.f32 %v15389_v50, %v6970_v25  ;;  %v15466_v25 = vsel %vm8345_vm9, 1.0, %v16577_v3  ;;  %vm15568_vm9 = vcmp.eq.s32.totalorder %v7843_v56, 0 }
 0x4c4   :  { %v10364_v2 = vpop.f32.mrf.mxu0 }
 0x4c5   :  { %v7289_v58 = vmax.f32 %v6971_v20, 0.0  ;;  %v15462_v22 = vadd.f32 %v10364_v2, %v15389_v50  ;;  %v7354_v27 = vrot.slane %v7290_v38, 4 }
 0x4c6   :  { %v6980_v11 = vpop.f32.mrf.mxu0 }
 0x4c7   :  { %v15473_v48 = vrot.slane %v7289_v58, 4  ;;  %v7292_v20 = vmax.f32 %v15462_v22, 0.0  ;;  %v6981_v49 = vadd.f32 %v15389_v50, %v6980_v11 }
 0x4c8   :  { %v10367_v2 = vpop.f32.mrf.mxu0 }
 0x4c9   :  { %17099 = vst [vmem:[#allocation26_spill] sm:$0xff] %v15473_v48  ;;  %v7479_v11 = vsel %vm5866_vm10, %v15473_v48, %v7354_v27  ;;  %v7291_v5 = vmax.f32 %v6981_v49, 0.0  ;;  %v15501_v29 = vadd.f32 %v10367_v2, %v15389_v50  ;;  %v17111_v48 = vld [vmem:[#allocation8_spill] sm:$0xff]  ;;  %v7356_v2 = vrot.slane %v7292_v20, 4 }
 0x4ca   :  { %v7481_v18 = vmax.f32 %v7289_v58, %v7479_v11  ;;  %v6990_v61 = vpop.f32.mrf.mxu0  ;;  %v7836_v49 = vand.u32 7, %v17111_v48  ;;  %v15530_v48 = vsel %vm15503_vm11, 1.0, %v16577_v3  ;;  %vm8932_vm11 = vcmask 1042434  }
 0x4cb   :  { %v7355_v55 = vrot.slane %v7291_v5, 4  ;;  %v7294_v28 = vmax.f32 %v15501_v29, 0.0  ;;  %v6991_v58 = vadd.f32 %v15389_v50, %v6990_v61  ;;  %17113 = vst [vmem:[#allocation88_spill] sm:$0xff] %v15530_v48 }
 0x4cc   :  { %v8505_v36 = vmul.f32 %v15280_v43, %v7481_v18  ;;  %v10370_v11 = vpop.f32.mrf.mxu0  ;;  %v15540_v43 = vsel %vm15507_vm7, 1.0, %v16577_v3  ;;  %vm15551_vm12 = vcmp.eq.s32.totalorder %v7836_v49, 0  ;;  %vm8934_vm7 = vcmask 1043459  }
 0x4cd   :  { %v7477_v61 = vsel %vm5866_vm10, %v7355_v55, %v7356_v2  ;;  %v7478_v18 = vsel %vm5866_vm10, %v7354_v27, %v7355_v55  ;;  %v7293_v29 = vmax.f32 %v6991_v58, 0.0  ;;  %17114 = vst [vmem:[#allocation109_spill] sm:$0xff] %v15540_v43  ;;  %v15543_v62 = vadd.f32 %v10370_v11, %v15389_v50  ;;  %v17118_v11 = vld [vmem:[#allocation10_spill] sm:$0xff] }
 0x4ce   :  { %v7482_v22 = vmax.f32 %v7290_v38, %v7478_v18  ;;  %v7483_v39 = vmax.f32 %v7291_v5, %v7477_v61  ;;  %v7000_v48 = vpop.f32.mrf.mxu0  ;;  %v7358_v33 = vrot.slane %v7294_v28, 4  ;;  %v8569_v38 = vsel %vm6635_vm1, %v8505_v36, 0.0 }
 0x4cf   :  { %v7357_v63 = vrot.slane %v7293_v29, 4  ;;  %v7001_v27 = vadd.f32 %v15389_v50, %v7000_v48  ;;  %v7296_v19 = vmax.f32 %v15543_v62, 0.0  ;;  %v7850_v61 = vand.u32 7, %v17118_v11 }
 0x4d0   :  { %v8506_v5 = vmul.f32 %v15297_v8, %v7482_v22  ;;  %v10373_v58 = vpop.f32.mrf.mxu0  ;;  %v8507_v59 = vmul.f32 %v15300_v31, %v7483_v39  ;;  %v15578_v31 = vsel %vm15551_vm12, 1.0, %v16577_v3  ;;  %vm8938_vm12 = vcmask 1045509  }
 0x4d1   :  { %v7475_v24 = vsel %vm5866_vm10, %v7357_v63, %v7358_v33  ;;  %v7476_v18 = vsel %vm5866_vm10, %v7356_v2, %v7357_v63  ;;  %v7295_v48 = vmax.f32 %v7001_v27, 0.0  ;;  %v15564_v49 = vadd.f32 %v10373_v58, %v15389_v50  ;;  %17121 = vst [vmem:[#allocation91_spill] sm:$0xff] %v15578_v31 }
 0x4d2   :  { %v8570_v36 = vsel %vm6635_vm1, %v8506_v5, 0.0  ;;  %v7484_v8 = vmax.f32 %v7292_v20, %v7476_v18  ;;  %v7485_v22 = vmax.f32 %v7293_v29, %v7475_v24  ;;  %v7010_v62 = vpop.f32.mrf.mxu0  ;;  %v7360_v21 = vrot.slane %v7296_v19, 4 }
 0x4d3   :  { %v8571_v11 = vadd.f32 %v8570_v36, %v8569_v38  ;;  %v7359_v10 = vrot.slane %v7295_v48, 4  ;;  %v7857_v63 = vand.u32 7, %v17026_v45  ;;  %v7011_v27 = vadd.f32 %v15389_v50, %v7010_v62 }
 0x4d4   :  { %v8508_v2 = vmul.f32 %v15303_v42, %v7484_v8  ;;  %v10376_v58 = vpop.f32.mrf.mxu0  ;;  %vm15580_vm13 = vcmp.eq.s32.totalorder %v7850_v61, 0  ;;  %v7298_v42 = vmax.f32 %v15564_v49, 0.0  ;;  %v8578_v29 = vsel %vm6635_vm1, %v8507_v59, 0.0 }
 0x4d5   :  { %v8572_v56 = vrot.slane %v8571_v11, 4  ;;  %v7473_v39 = vsel %vm5866_vm10, %v7359_v10, %v7360_v21  ;;  %v7474_v45 = vsel %vm5866_vm10, %v7358_v33, %v7359_v10  ;;  %v8509_v38 = vmul.f32 %v15307_v14, %v7485_v22  ;;  %v17126_v14 = vld [vmem:[#allocation12_spill] sm:$0xff] }
 0x4d6   :  { %v8579_v55 = vsel %vm6635_vm1, %v8508_v2, 0.0  ;;  %v7486_v5 = vmax.f32 %v7294_v28, %v7474_v45  ;;  %v7020_v61 = vpop.f32.mrf.mxu0  ;;  %v7297_v18 = vmax.f32 %v7011_v27, 0.0  ;;  %v15593_v36 = vadd.f32 %v10376_v58, %v15389_v50 }
 0x4d7   :  { %v8580_v24 = vadd.f32 %v8579_v55, %v8578_v29  ;;  %vm15595_vm2 = vcmp.eq.s32.totalorder %v7857_v63, 0  ;;  %v7487_v10 = vmax.f32 %v7295_v48, %v7473_v39  ;;  %v7021_v59 = vadd.f32 %v15389_v50, %v7020_v61 }
 0x4d8   :  { %v8510_v33 = vmul.f32 %v15310_v0, %v7486_v5  ;;  %v10379_v49 = vpop.f32.mrf.mxu0  ;;  %v7864_v22 = vand.u32 7, %v17126_v14  ;;  %v8573_v62 = vadd.f32 %v8572_v56, %v8571_v11  ;;  %v7362_v2 = vrot.slane %v7298_v42, 4 }
 0x4d9   :  { %v8581_v28 = vrot.slane %v8580_v24, 4  ;;  %v7361_v45 = vrot.slane %v7297_v18, 4  ;;  %v8587_v27 = vsel %vm6635_vm1, %v8509_v38, 0.0  ;;  %v7299_v63 = vmax.f32 %v7021_v59, 0.0 }
 0x4da   :  { %v8588_v58 = vsel %vm6635_vm1, %v8510_v33, 0.0  ;;  %v7030_v29 = vpop.f32.mrf.mxu0  ;;  %v7871_v55 = vand.u32 7, %v17029_v1  ;;  %v7300_v5 = vmax.f32 %v15593_v36, 0.0  ;;  %v8511_v11 = vmul.f32 %v15313_v37, %v7487_v10 }
 0x4db   :  { %v8582_v48 = vadd.f32 %v8581_v28, %v8580_v24  ;;  %v8589_v39 = vadd.f32 %v8588_v58, %v8587_v27  ;;  %v7471_v0 = vsel %vm5866_vm10, %v7361_v45, %v7362_v2  ;;  %v7472_v56 = vsel %vm5866_vm10, %v7360_v21, %v7361_v45 }
 0x4dc   :  { %v7489_v61 = vmax.f32 %v7297_v18, %v7471_v0  ;;  %v7363_v38 = vrot.slane %v7299_v63, 4  ;;  %v10382_v14 = vpop.f32.mrf.mxu0  ;;  %v8574_v33 = vrot.slane %v8573_v62, 2  ;;  %v7488_v59 = vmax.f32 %v7296_v19, %v7472_v56 }
 0x4dd   :  { %v15612_v31 = vadd.f32 %v10379_v49, %v15389_v50  ;;  %v15617_v1 = vsel %vm15568_vm9, 1.0, %v16577_v3  ;;  %v8583_v24 = vrot.slane %v8582_v48, 2  ;;  %v15624_v21 = vsel %vm15580_vm13, 1.0, %v16577_v3 }
 0x4de   :  { %17127 = vst [vmem:[#allocation34_spill] sm:$0xff] %v15617_v1  ;;  %v7470_v37 = vsel %vm5866_vm10, %v7362_v2, %v7363_v38  ;;  %v7040_v36 = vpop.f32.mrf.mxu0  ;;  %17128 = vst [vmem:[#allocation76_spill] sm:$0xff] %v15624_v21  ;;  %v15629_v19 = vsel %vm15595_vm2, 1.0, %v16577_v3  ;;  %v8590_v18 = vrot.slane %v8589_v39, 4  ;;  %v8512_v43 = vmul.f32 %v15319_v32, %v7488_v59 }
 0x4df   :  { %17129 = vst [vmem:[#allocation77_spill] sm:$0xff] %v15629_v19  ;;  %v7364_v10 = vrot.slane %v7300_v5, 4  ;;  %vm15632_vm14 = vcmp.eq.s32.totalorder %v7864_v22, 0  ;;  %v8596_v28 = vsel %vm6635_vm1, %v8511_v11, 0.0  ;;  %v8513_v2 = vmul.f32 %v15324_v52, %v7489_v61 }
 0x4e0   :  { %v7490_v20 = vmax.f32 %v7298_v42, %v7470_v37  ;;  %v10385_v45 = vpop.f32.mrf.mxu0  ;;  %vm15638_vm4 = vcmp.eq.s32.totalorder %v7871_v55, 0  ;;  %v8575_v8 = vadd.f32 %v8574_v33, %v8573_v62  ;;  %v8597_v58 = vsel %vm6635_vm1, %v8512_v43, 0.0 }
 0x4e1   :  { %v7469_v32 = vsel %vm5866_vm10, %v7363_v38, %v7364_v10  ;;  %v7302_v22 = vmax.f32 %v15612_v31, 0.0  ;;  %v8584_v0 = vadd.f32 %v8583_v24, %v8582_v48  ;;  %v8598_v56 = vadd.f32 %v8597_v58, %v8596_v28 }
 0x4e2   :  { %v8514_v11 = vmul.f32 %v15330_v51, %v7490_v20  ;;  %v7031_v52 = vadd.f32 %v15389_v50, %v7030_v29  ;;  %v7050_v42 = vpop.f32.mrf.mxu0  ;;  %v8591_v61 = vadd.f32 %v8590_v18, %v8589_v39  ;;  %v15649_v55 = vadd.f32 %v10382_v14, %v15389_v50 }
 0x4e3   :  { %v15652_v62 = vadd.f32 %v15389_v50, %v7040_v36  ;;  %v15657_v38 = vsel %vm15632_vm14, 1.0, %v16577_v3  ;;  %v8599_v31 = vrot.slane %v8598_v56, 4  ;;  %v8605_v48 = vsel %vm6635_vm1, %v8513_v2, 0.0 }
 0x4e4   :  { %17134 = vst [vmem:[#allocation114_spill] sm:$0xff] %v15657_v38  ;;  %v8606_v51 = vsel %vm6635_vm1, %v8514_v11, 0.0  ;;  %v7301_v33 = vmax.f32 %v7031_v52, 0.0  ;;  %v10388_v29 = vpop.f32.mrf.mxu0  ;;  %v8576_v59 = vrot.slane %v8575_v8, 1  ;;  %v7491_v39 = vmax.f32 %v7299_v63, %v7469_v32 }
 0x4e5   :  { %v8607_v24 = vadd.f32 %v8606_v51, %v8605_v48  ;;  %v7366_v14 = vrot.slane %v7302_v22, 4  ;;  %v8585_v37 = vrot.slane %v8584_v0, 1  ;;  %v7303_v36 = vmax.f32 %v15652_v62, 0.0 }
 0x4e6   :  { %v7365_v18 = vrot.slane %v7301_v33, 4  ;;  %v15663_v43 = vadd.f32 %v10385_v45, %v15389_v50  ;;  %v7060_v49 = vpop.f32.mrf.mxu0  ;;  %v8592_v28 = vrot.slane %v8591_v61, 2  ;;  %v8600_v20 = vadd.f32 %v8599_v31, %v8598_v56  ;;  %v17135_v31 = vld [vmem:[#allocation14_spill] sm:$0xff] }
 0x4e7   :  { %v7051_v58 = vadd.f32 %v15389_v50, %v7050_v42  ;;  %v7367_v32 = vrot.slane %v7303_v36, 4  ;;  %v15674_v45 = vsel %vm15638_vm4, 1.0, %v16577_v3  ;;  %v8608_v62 = vrot.slane %v8607_v24, 4 }
 0x4e8   :  { %v7467_v11 = vsel %vm5866_vm10, %v7365_v18, %v7366_v14  ;;  %v7468_v63 = vsel %vm5866_vm10, %v7364_v10, %v7365_v18  ;;  %v10391_v52 = vpop.f32.mrf.mxu0  ;;  %v7306_v56 = vmax.f32 %v15663_v43, 0.0  ;;  %v8577_v42 = vadd.f32 %v8576_v59, %v8575_v8 }
 0x4e9   :  { %v7492_v48 = vmax.f32 %v7300_v5, %v7468_v63  ;;  %v8515_v2 = vmul.f32 %v15335_v40, %v7491_v39  ;;  %v7493_v38 = vmax.f32 %v7301_v33, %v7467_v11  ;;  %v7305_v21 = vmax.f32 %v7051_v58, 0.0 }
 0x4ea   :  { %v7070_v19 = vpop.f32.mrf.mxu0  ;;  %v8586_v10 = vadd.f32 %v8585_v37, %v8584_v0  ;;  %v15679_v18 = vadd.f32 %v8592_v28, %v8591_v61  ;;  %v8601_v1 = vrot.slane %v8600_v20, 2  ;;  %v17136_v27 = vmax.f32 %v15649_v55, 0.0 }
 0x4eb   :  { %v7466_v5 = vsel %vm5866_vm10, %v7366_v14, %v7367_v32  ;;  %v7370_v63 = vrot.slane %v7306_v56, 4  ;;  %v7369_v43 = vrot.slane %v7305_v21, 4  ;;  %v7066_v51 = vadd.f32 %v10388_v29, %v15389_v50 }
 0x4ec   :  { %v7368_v3 = vrot.slane %v17136_v27, 4  ;;  %v10394_v8 = vpop.f32.mrf.mxu0  ;;  %v15686_v59 = vadd.f32 %v8608_v62, %v8607_v24  ;;  %v8516_v40 = vmul.f32 %v15338_v9, %v7492_v48  ;;  %v7061_v0 = vadd.f32 %v15389_v50, %v7060_v49 }
 0x4ed   :  { %v15691_v33 = vmul.f32 0.5, %v8577_v42  ;;  %v8517_v39 = vmul.f32 %v15341_v17, %v7493_v38  ;;  %v7463_v37 = vsel %vm5866_vm10, %v7369_v43, %v7370_v63  ;;  %v8614_v24 = vsel %vm6635_vm1, %v8515_v2, 0.0 }
 0x4ee   :  { %v7465_v14 = vsel %vm5866_vm10, %v7367_v32, %v7368_v3  ;;  %v7080_v29 = vpop.f32.mrf.mxu0  ;;  %v7494_v28 = vmax.f32 %v7302_v22, %v7466_v5  ;;  %v7497_v58 = vmax.f32 %v7305_v21, %v7463_v37  ;;  %v7308_v9 = vmax.f32 %v7066_v51, 0.0 }
 0x4ef   :  { %v15699_v11 = vmul.f32 0.5, %v8586_v10  ;;  %v8594_v49 = vrot.slane %v15679_v18, 1  ;;  %v15702_v62 = vadd.f32 %v8601_v1, %v8600_v20  ;;  %v7307_v48 = vmax.f32 %v7061_v0, 0.0 }
 0x4f0   :  { %v10397_v17 = vpop.f32.mrf.mxu0  ;;  %v8610_v38 = vrot.slane %v15686_v59, 2  ;;  %v8615_v32 = vsel %vm6635_vm1, %v8516_v40, 0.0  ;;  %v7495_v42 = vmax.f32 %v7303_v36, %v7465_v14  ;;  %v7076_v27 = vadd.f32 %v10391_v52, %v15389_v50 }
 0x4f1   :  { %v15708_v2 = vsel %vm6635_vm1, %v8517_v39, 0.0  ;;  %v7372_v21 = vrot.slane %v7308_v9, 4  ;;  %v7371_v22 = vrot.slane %v7307_v48, 4  ;;  %v7071_v51 = vadd.f32 %v15389_v50, %v7070_v19 }
 0x4f2   :  { %v7090_v10 = vpop.f32.mrf.mxu0  ;;  %v15712_v1 = vmul.f32 %v15348_v23, %v7494_v28  ;;  %v8521_v20 = vmul.f32 %v15358_v47, %v7497_v58  ;;  %v7310_v5 = vmax.f32 %v7076_v27, 0.0  ;;  %v7086_v0 = vadd.f32 %v10394_v8, %v15389_v50 }
 0x4f3   :  { %v15716_v40 = vadd.f32 %v8615_v32, %v8614_v24  ;;  %v7461_v36 = vsel %vm5866_vm10, %v7371_v22, %v7372_v21  ;;  %v7462_v52 = vsel %vm5866_vm10, %v7370_v63, %v7371_v22  ;;  %v7309_v39 = vmax.f32 %v7071_v51, 0.0 }
 0x4f4   :  { %v10400_v14 = vpop.f32.mrf.mxu0  ;;  %v7498_v19 = vmax.f32 %v7306_v56, %v7462_v52  ;;  %v7499_v37 = vmax.f32 %v7307_v48, %v7461_v36  ;;  %v7374_v61 = vrot.slane %v7310_v5, 4  ;;  %v7312_v23 = vmax.f32 %v7086_v0, 0.0 }
 0x4f5   :  { %v7373_v28 = vrot.slane %v7309_v39, 4  ;;  %v7081_v47 = vadd.f32 %v15389_v50, %v7080_v29  ;;  %v15724_v58 = vadd.f32 %v10397_v17, %v15389_v50  ;;  %v7091_v8 = vadd.f32 %v15389_v50, %v7090_v10 }
 0x4f6   :  { %v7100_v24 = vpop.f32.mrf.mxu0  ;;  %v7464_v32 = vsel %vm5866_vm10, %v7368_v3, %v7369_v43  ;;  %v8641_v63 = vsel %vm6635_vm1, %v8521_v20, 0.0  ;;  %v8522_v27 = vmul.f32 %v15366_v13, %v7498_v19  ;;  %v8523_v56 = vmul.f32 %v15371_v41, %v7499_v37 }
 0x4f7   :  { %v7459_v48 = vsel %vm5866_vm10, %v7373_v28, %v7374_v61  ;;  %v7460_v29 = vsel %vm5866_vm10, %v7372_v21, %v7373_v28  ;;  %v7311_v17 = vmax.f32 %v7081_v47, 0.0  ;;  %v7314_v22 = vmax.f32 %v15724_v58, 0.0 }
 0x4f8   :  { %v10403_v51 = vpop.f32.mrf.mxu0  ;;  %v8642_v10 = vsel %vm6635_vm1, %v8522_v27, 0.0  ;;  %v7500_v0 = vmax.f32 %v7308_v9, %v7460_v29  ;;  %v7501_v3 = vmax.f32 %v7309_v39, %v7459_v48  ;;  %v7376_v43 = vrot.slane %v7312_v23, 4 }
 0x4f9   :  { %v8643_v20 = vadd.f32 %v8642_v10, %v8641_v63  ;;  %v7375_v36 = vrot.slane %v7311_v17, 4  ;;  %v7313_v13 = vmax.f32 %v7091_v8, 0.0  ;;  %v15739_v41 = vadd.f32 %v10400_v14, %v15389_v50 }
 0x4fa   :  { %v7110_v52 = vpop.f32.mrf.mxu0  ;;  %v8650_v19 = vsel %vm6635_vm1, %v8523_v56, 0.0  ;;  %v8524_v21 = vmul.f32 %v15374_v46, %v7500_v0  ;;  %v7378_v37 = vrot.slane %v7314_v22, 4  ;;  %v7101_v28 = vadd.f32 %v15389_v50, %v7100_v24 }
 0x4fb   :  { %v8644_v47 = vrot.slane %v8643_v20, 4  ;;  %v7457_v9 = vsel %vm5866_vm10, %v7375_v36, %v7376_v43  ;;  %v7458_v39 = vsel %vm5866_vm10, %v7374_v61, %v7375_v36  ;;  %v7377_v8 = vrot.slane %v7313_v13, 4 }
 0x4fc   :  { %v15750_v14 = vpop.f32.mrf.mxu0  ;;  %v8525_v63 = vmul.f32 %v15377_v6, %v7501_v3  ;;  %v8651_v27 = vsel %vm6635_vm1, %v8524_v21, 0.0  ;;  %v7502_v46 = vmax.f32 %v7310_v5, %v7458_v39  ;;  %v7503_v56 = vmax.f32 %v7311_v17, %v7457_v9 }
 0x4fd   :  { %v8645_v48 = vadd.f32 %v8644_v47, %v8643_v20  ;;  %v8652_v29 = vadd.f32 %v8651_v27, %v8650_v19  ;;  %v7455_v24 = vsel %vm5866_vm10, %v7377_v8, %v7378_v37  ;;  %v7456_v10 = vsel %vm5866_vm10, %v7376_v43, %v7377_v8 }
 0x4fe   :  { %v15758_v0 = vpop.f32.mrf.mxu0  ;;  %v8519_v61 = vmul.f32 %v15351_v4, %v7495_v42  ;;  %v8526_v36 = vmul.f32 %v15380_v34, %v7502_v46  ;;  %v8527_v6 = vmul.f32 %v15383_v12, %v7503_v56  ;;  %v7504_v3 = vmax.f32 %v7312_v23, %v7456_v10 }
 0x4ff   :  { %v17137_v5 = vmax.f32 %v15649_v55, 0.0  ;;  %v8653_v20 = vrot.slane %v8652_v29, 4  ;;  %v7316_v19 = vmax.f32 %v15739_v41, 0.0  ;;  %v7315_v21 = vmax.f32 %v7101_v28, 0.0 }
 0x500   :  { %v15766_v47 = vpop.f32.mrf.mxu0  ;;  %v8659_v43 = vsel %vm6635_vm1, %v8525_v63, 0.0  ;;  %v8660_v9 = vsel %vm6635_vm1, %v8526_v36, 0.0  ;;  %v7505_v39 = vmax.f32 %v7313_v13, %v7455_v24  ;;  %v8528_v4 = vmul.f32 %v15392_v57, %v7504_v3 }
 0x501   :  { %v7496_v17 = vmax.f32 %v17137_v5, %v7464_v32  ;;  %v8646_v34 = vrot.slane %v8645_v48, 2  ;;  %v8654_v42 = vadd.f32 %v8653_v20, %v8652_v29  ;;  %v8661_v12 = vadd.f32 %v8660_v9, %v8659_v43 }
 0x502   :  { %v7379_v23 = vrot.slane %v7315_v21, 4  ;;  %v15771_v8 = vpop.f32.mrf.mxu0  ;;  %v8668_v55 = vsel %vm6635_vm1, %v8527_v6, 0.0  ;;  %v8669_v32 = vsel %vm6635_vm1, %v8528_v4, 0.0  ;;  %v15776_v41 = vadd.f32 %v10403_v51, %v15389_v50 }
 0x503   :  { %v7111_v28 = vadd.f32 %v15389_v50, %v7110_v52  ;;  %v8655_v63 = vrot.slane %v8654_v42, 2  ;;  %v8662_v27 = vrot.slane %v8661_v12, 4  ;;  %v8670_v13 = vadd.f32 %v8669_v32, %v8668_v55 }
 0x504   :  { %v7380_v46 = vrot.slane %v7316_v19, 4  ;;  %v15779_v57 = vpop.f32.mrf.mxu0  ;;  %v8624_v56 = vsel %vm6635_vm1, %v15712_v1, 0.0  ;;  %v7454_v29 = vsel %vm5866_vm10, %v7378_v37, %v7379_v23  ;;  %v7318_v24 = vmax.f32 %v15776_v41, 0.0 }
 0x505   :  { %v7317_v10 = vmax.f32 %v7111_v28, 0.0  ;;  %v8647_v36 = vadd.f32 %v8646_v34, %v8645_v48  ;;  %v8663_v51 = vadd.f32 %v8662_v27, %v8661_v12  ;;  %v8671_v6 = vrot.slane %v8670_v13, 4 }
 0x506   :  { %v7453_v52 = vsel %vm5866_vm10, %v7379_v23, %v7380_v46  ;;  %v15788_v3 = vpop.f32.mrf.mxu0  ;;  %v8656_v5 = vadd.f32 %v8655_v63, %v8654_v42  ;;  %v8529_v20 = vmul.f32 %v15413_v16, %v7505_v39  ;;  %v7506_v1 = vmax.f32 %v7314_v22, %v7454_v29 }
 0x507   :  { %v7381_v43 = vrot.slane %v7317_v10, 4  ;;  %v8617_v37 = vrot.slane %v15716_v40, 4  ;;  %v8520_v9 = vmul.f32 %v15354_v30, %v7496_v17  ;;  %v8664_v4 = vrot.slane %v8663_v51, 2 }
 0x508   :  { %v8672_v48 = vadd.f32 %v8671_v6, %v8670_v13  ;;  %v15795_v34 = vpop.f32.mrf.mxu0  ;;  %v7507_v12 = vmax.f32 %v7315_v21, %v7453_v52  ;;  %v8530_v23 = vmul.f32 %v15416_v53, %v7506_v1  ;;  %v7382_v42 = vrot.slane %v7318_v24, 4 }
 0x509   :  { %v7452_v16 = vsel %vm5866_vm10, %v7380_v46, %v7381_v43  ;;  %v8625_v58 = vadd.f32 %v8624_v56, %v15708_v2  ;;  %v8632_v22 = vsel %vm6635_vm1, %v8519_v61, 0.0  ;;  %v8648_v39 = vrot.slane %v8647_v36, 1 }
 0x50a   :  { %v7508_v55 = vmax.f32 %v7316_v19, %v7452_v16  ;;  %v15804_v30 = vpop.f32.mrf.mxu0  ;;  %v8657_v17 = vrot.slane %v8656_v5, 1  ;;  %v8677_v32 = vsel %vm6635_vm1, %v8529_v20, 0.0  ;;  %v8678_v21 = vsel %vm6635_vm1, %v8530_v23, 0.0 }
 0x50b   :  { %v7451_v53 = vsel %vm5866_vm10, %v7381_v43, %v7382_v42  ;;  %v8665_v28 = vadd.f32 %v8664_v4, %v8663_v51  ;;  %v8673_v63 = vrot.slane %v8672_v48, 2  ;;  %v8679_v27 = vadd.f32 %v8678_v21, %v8677_v32 }
 0x50c   :  { %v15812_v2 = vadd.f32 %v15750_v14, %v15389_v50  ;;  %v8633_v61 = vsel %vm6635_vm1, %v8520_v9, 0.0  ;;  %v8531_v19 = vmul.f32 %v15424_v15, %v7507_v12  ;;  %v8532_v13 = vmul.f32 %v15430_v54, %v7508_v55  ;;  %v15822_v52 = vpop.f32.mrf.mxu0 }
 0x50d   :  { %v15819_v46 = vadd.f32 %v15389_v50, %v15758_v0  ;;  %v8618_v56 = vadd.f32 %v8617_v37, %v15716_v40  ;;  %v8626_v29 = vrot.slane %v8625_v58, 4  ;;  %v8649_v51 = vadd.f32 %v8648_v39, %v8647_v36 }
 0x50e   :  { %v8680_v6 = vrot.slane %v8679_v27, 4  ;;  %v8658_v20 = vadd.f32 %v8657_v17, %v8656_v5  ;;  %v7509_v14 = vmax.f32 %v7317_v10, %v7451_v53  ;;  %v8687_v1 = vsel %vm6635_vm1, %v8532_v13, 0.0  ;;  %v15838_v23 = vpop.f32.mrf.mxu0 }
 0x50f   :  { %v7319_v43 = vmax.f32 %v15819_v46, 0.0  ;;  %v8634_v15 = vadd.f32 %v8633_v61, %v8632_v22  ;;  %v8666_v9 = vrot.slane %v8665_v28, 1  ;;  %v8674_v54 = vadd.f32 %v8673_v63, %v8672_v48 }
 0x510   :  { %v7320_v4 = vmax.f32 %v15812_v2, 0.0  ;;  %v8686_v0 = vsel %vm6635_vm1, %v8531_v19, 0.0  ;;  %v15832_v36 = vadd.f32 %v15766_v47, %v15389_v50  ;;  %v8611_v10 = vadd.f32 %v8610_v38, %v15686_v59 }
 0x511   :  { %v7383_v40 = vrot.slane %v7319_v43, 4  ;;  %v8681_v5 = vadd.f32 %v8680_v6, %v8679_v27  ;;  %v8688_v37 = vadd.f32 %v8687_v1, %v8686_v0  ;;  %v8603_v12 = vrot.slane %v15702_v62, 1  ;;  %v15856_v27 = vpop.f32.mrf.mxu0 }
 0x512   :  { %v8619_v48 = vrot.slane %v8618_v56, 2  ;;  %v8595_v16 = vadd.f32 %v8594_v49, %v15679_v18  ;;  %v15843_v22 = vmul.f32 0.5, %v8649_v51  ;;  %v15845_v47 = vmul.f32 0.5, %v8658_v20 }
 0x513   :  { %v8533_v39 = vmul.f32 %v15435_v26, %v7509_v14  ;;  %v8667_v59 = vadd.f32 %v8666_v9, %v8665_v28  ;;  %v8675_v38 = vrot.slane %v8674_v54, 1  ;;  %v15850_v55 = vrot.slane %v7320_v4, 4  ;;  %v15874_v9 = vpop.f32.mrf.mxu0 }
 0x514   :  { %v7450_v17 = vsel %vm5866_vm10, %v7382_v42, %v7383_v40  ;;  %v8612_v32 = vrot.slane %v8611_v10, 1  ;;  %v8620_v21 = vadd.f32 %v8619_v48, %v8618_v56  ;;  %v8627_v18 = vadd.f32 %v8626_v29, %v8625_v58 }
 0x515   :  { %v8635_v49 = vrot.slane %v8634_v15, 4  ;;  %v8682_v53 = vrot.slane %v8681_v5, 2  ;;  %v8689_v63 = vrot.slane %v8688_v37, 4  ;;  %v7322_v26 = vmax.f32 %v15832_v36, 0.0 }
 0x516   :  { %v8604_v28 = vadd.f32 %v8603_v12, %v15702_v62  ;;  %v7510_v61 = vmax.f32 %v7318_v24, %v7450_v17  ;;  %v8621_v19 = vrot.slane %v8620_v21, 1  ;;  %v8628_v42 = vrot.slane %v8627_v18, 2 }
 0x517   :  { %v8636_v13 = vadd.f32 %v8635_v49, %v8634_v15  ;;  %vm8940_vm9 = vcmask 1046534   ;;  %v15860_v56 = vmul.f32 0.5, %v8667_v59  ;;  %v15862_v58 = vadd.f32 %v8675_v38, %v8674_v54 }
 0x518   :  { %v15865_v29 = vsel %vm6635_vm1, %v8533_v39, 0.0  ;;  %v8613_v51 = vadd.f32 %v8612_v32, %v8611_v10  ;;  %vm8942_vm13 = vcmask 1047559   ;;  %v7449_v62 = vsel %vm5866_vm10, %v7383_v40, %v15850_v55  ;;  %v15890_v32 = vpop.f32.mrf.mxu0 }
 0x519   :  { %v8622_v6 = vadd.f32 %v8621_v19, %v8620_v21  ;;  %v8629_v41 = vadd.f32 %v8628_v42, %v8627_v18  ;;  %v8637_v24 = vrot.slane %v8636_v13, 2  ;;  %v15870_v20 = vadd.f32 %v8682_v53, %v8681_v5 }
 0x51a   :  { %v15872_v14 = vadd.f32 %v8689_v63, %v8688_v37  ;;  %v7386_v1 = vrot.slane %v7322_v26, 4  ;;  %v8859_v15 = vmul.f32 0.5, %v8595_v16  ;;  %v8534_v54 = vmul.f32 %v15440_v44, %v7510_v61 }
 0x51b   :  { %v8630_v0 = vrot.slane %v8629_v41, 1  ;;  %v8638_v36 = vadd.f32 %v8637_v24, %v8636_v13  ;;  %v8860_v10 = vmul.f32 0.5, %v8604_v28  ;;  %v8861_v12 = vmul.f32 0.5, %v8613_v51  ;;  %v15908_v51 = vpop.f32.mrf.mxu0 }
 0x51c   :  { %v7131_v40 = vadd.f32 %v15389_v50, %v15771_v8  ;;  %v15881_v48 = vadd.f32 %v15779_v57, %v15389_v50  ;;  %v7141_v5 = vadd.f32 %v15389_v50, %v15788_v3  ;;  %v8862_v39 = vmul.f32 0.5, %v8622_v6 }
 0x51d   :  { %v8631_v37 = vadd.f32 %v8630_v0, %v8629_v41  ;;  %v8639_v16 = vrot.slane %v8638_v36, 1  ;;  %v8931_v44 = vsel %vm8930_vm15, %v15699_v11, %v15691_v33  ;;  %v7511_v57 = vmax.f32 %v7319_v43, %v7449_v62 }
 0x51e   :  { %v8933_v59 = vsel %vm8932_vm11, %v8859_v15, %v8931_v44  ;;  %v7321_v38 = vmax.f32 %v7131_v40, 0.0  ;;  %v7324_v17 = vmax.f32 %v15881_v48, 0.0  ;;  %v7323_v8 = vmax.f32 %v7141_v5, 0.0  ;;  %v10427_v48 = vpop.f32.mrf.mxu0 }
 0x51f   :  { %v8640_v21 = vadd.f32 %v8639_v16, %v8638_v36  ;;  %v8863_v3 = vmul.f32 0.5, %v8631_v37  ;;  %v8935_v18 = vsel %vm8934_vm7, %v8860_v10, %v8933_v59  ;;  %v8696_v49 = vsel %vm6635_vm1, %v8534_v54, 0.0  ;;  %v17138_v10 = vld [vmem:[#allocation20_spill] sm:$0xff]  ;;  %v17139_v16 = vld [vmem:[#allocation22_spill] sm:$0xff] }
 0x520   :  { %v8937_v53 = vsel %vm8936_vm0, %v8861_v12, %v8935_v18  ;;  %v7385_v33 = vrot.slane %v7321_v38, 4  ;;  %v7387_v11 = vrot.slane %v7323_v8, 4  ;;  %v7388_v61 = vrot.slane %v7324_v17, 4 }
 0x521   :  { %v8864_v63 = vmul.f32 0.5, %v8640_v21  ;;  %v8939_v28 = vsel %vm8938_vm12, %v8862_v39, %v8937_v53  ;;  %v7156_v19 = vadd.f32 %v15795_v34, %v15389_v50  ;;  %v8684_v54 = vrot.slane %v15870_v20, 1 }
 0x522   :  { %v8941_v46 = vsel %vm8940_vm9, %v8863_v3, %v8939_v28  ;;  %v7447_v43 = vsel %vm5866_vm10, %v7385_v33, %v7386_v1  ;;  %v7448_v42 = vsel %vm5866_vm10, %v15850_v55, %v7385_v33  ;;  %v7446_v13 = vsel %vm5866_vm10, %v7386_v1, %v7387_v11 }
 0x523   :  { %v8943_v62 = vsel %vm8942_vm13, %v8864_v63, %v8941_v46  ;;  %v7513_v6 = vmax.f32 %v7321_v38, %v7447_v43  ;;  %v7445_v34 = vsel %vm5866_vm10, %v7387_v11, %v7388_v61  ;;  %v7514_v41 = vmax.f32 %v7322_v26, %v7446_v13  ;;  %v17142_v43 = vld [vmem:[#allocation72_spill] sm:$0xff] }
 0x524   :  { %10463 = vmatprep.mubr.msk.f32.mxu1 %vm6635_vm1, %v8943_v62  ;;  %v7512_v24 = vmax.f32 %v7320_v4, %v7448_v42  ;;  %v7326_v15 = vmax.f32 %v7156_v19, 0.0  ;;  %v7151_v55 = vadd.f32 %v15389_v50, %v15804_v30  ;;  %v7166_v1 = vadd.f32 %v15822_v52, %v15389_v50  ;;  %v17141_v19 = vld [vmem:[#allocation30_spill] sm:$0xff] }
 0x525   :  { %v8537_v0 = vmul.f32 %v15466_v25, %v7513_v6  ;;  %v8538_v36 = vmul.f32 %v15469_v60, %v7514_v41  ;;  %v7161_v26 = vadd.f32 %v15389_v50, %v15838_v23  ;;  %v8535_v12 = vmul.f32 %v17138_v10, %v7511_v57  ;;  %v17143_v6 = vld [vmem:[#allocation92_spill] sm:$0xff]  ;;  %v15954_v41 = vld [vmem:[%s16296_s1 + $0x68] ss:$0 sm:$0xff] }
 0x526   :  { %v7515_v2 = vmax.f32 %v7323_v8, %v7445_v34  ;;  %v7325_v4 = vmax.f32 %v7151_v55, 0.0  ;;  %v7328_v40 = vmax.f32 %v7166_v1, 0.0  ;;  %v8697_v30 = vadd.f32 %v8696_v49, %v15865_v29  ;;  %v17140_v29 = vld [vmem:[#allocation71_spill] sm:$0xff]  ;;  %v7190_v49 = vpop.f32.mrf.mxu0 }
 0x527   :  { %v8713_v5 = vsel %vm6635_vm1, %v8537_v0, 0.0  ;;  %v8714_v52 = vsel %vm6635_vm1, %v8538_v36, 0.0  ;;  %v7327_v37 = vmax.f32 %v7161_v26, 0.0  ;;  %v8536_v25 = vmul.f32 %v17139_v16, %v7512_v24 }
 0x528   :  { %v8715_v39 = vadd.f32 %v8714_v52, %v8713_v5  ;;  %v7390_v60 = vrot.slane %v7326_v15, 4  ;;  %v7389_v44 = vrot.slane %v7325_v4, 4  ;;  %v7392_v59 = vrot.slane %v7328_v40, 4 }
 0x529   :  { %v7391_v23 = vrot.slane %v7327_v37, 4  ;;  %v15932_v38 = vadd.f32 %v15856_v27, %v15389_v50  ;;  %v7171_v8 = vadd.f32 %v15389_v50, %v15874_v9  ;;  %v8539_v57 = vmul.f32 %v17140_v29, %v7515_v2 }
 0x52a   :  { %v8716_v21 = vrot.slane %v8715_v39, 4  ;;  %v7443_v3 = vsel %vm5866_vm10, %v7389_v44, %v7390_v60  ;;  %v7444_v18 = vsel %vm5866_vm10, %v7388_v61, %v7389_v44  ;;  %v8691_v50 = vrot.slane %v15872_v14, 2 }
 0x52b   :  { %v7516_v53 = vmax.f32 %v7324_v17, %v7444_v18  ;;  %v7517_v33 = vmax.f32 %v7325_v4, %v7443_v3  ;;  %v7441_v11 = vsel %vm5866_vm10, %v7391_v23, %v7392_v59  ;;  %v7442_v27 = vsel %vm5866_vm10, %v7390_v60, %v7391_v23  ;;  %v17144_v4 = vld [vmem:[#allocation88_spill] sm:$0xff] }
 0x52c   :  { %v8717_v9 = vadd.f32 %v8716_v21, %v8715_v39  ;;  %v7518_v63 = vmax.f32 %v7326_v15, %v7442_v27  ;;  %v7519_v28 = vmax.f32 %v7327_v37, %v7441_v11  ;;  %v7330_v61 = vmax.f32 %v15932_v38, 0.0  ;;  %v10430_v15 = vpop.f32.mrf.mxu0 }
 0x52d   :  { %v8540_v46 = vmul.f32 %v17141_v19, %v7516_v53  ;;  %v8541_v42 = vmul.f32 %v17142_v43, %v7517_v33  ;;  %v7329_v13 = vmax.f32 %v7171_v8, 0.0  ;;  %v8698_v17 = vrot.slane %v8697_v30, 4 }
 0x52e   :  { %v8704_v62 = vsel %vm6635_vm1, %v8535_v12, 0.0  ;;  %v8542_v34 = vmul.f32 %v17143_v6, %v7518_v63  ;;  %v15958_v24 = vadd.f32 %v15954_v41, %v15890_v32  ;;  %v8705_v55 = vsel %vm6635_vm1, %v8536_v25, 0.0  ;;  %v7200_v44 = vpop.f32.mrf.mxu0 }
 0x52f   :  { %v8722_v1 = vsel %vm6635_vm1, %v8539_v57, 0.0  ;;  %v8723_v0 = vsel %vm6635_vm1, %v8540_v46, 0.0  ;;  %v7393_v36 = vrot.slane %v7329_v13, 4  ;;  %v8718_v26 = vrot.slane %v8717_v9, 2 }
 0x530   :  { %v8724_v10 = vadd.f32 %v8723_v0, %v8722_v1  ;;  %v8731_v12 = vsel %vm6635_vm1, %v8541_v42, 0.0  ;;  %v8732_v2 = vsel %vm6635_vm1, %v8542_v34, 0.0  ;;  %v8543_v5 = vmul.f32 %v17144_v4, %v7519_v28  ;;  %v10433_v28 = vpop.f32.mrf.mxu0  ;;  %v17147_v4 = vld [vmem:[#allocation91_spill] sm:$0xff] }
 0x531   :  { %v8733_v52 = vadd.f32 %v8732_v2, %v8731_v12  ;;  %v7394_v37 = vrot.slane %v7330_v61, 4  ;;  %v7440_v32 = vsel %vm5866_vm10, %v7392_v59, %v7393_v36  ;;  %v8699_v16 = vadd.f32 %v8698_v17, %v8697_v30  ;;  %v17145_v59 = vld [vmem:[#allocation109_spill] sm:$0xff] }
 0x532   :  { %v8725_v25 = vrot.slane %v8724_v10, 4  ;;  %v7520_v39 = vmax.f32 %v7328_v40, %v7440_v32  ;;  %v7332_v60 = vmax.f32 %v15958_v24, 0.0  ;;  %v7181_v8 = vadd.f32 %v15954_v41, %v15908_v51  ;;  %v17146_v24 = vld [vmem:[#allocation74_spill] sm:$0xff] }
 0x533   :  { %v8734_v23 = vrot.slane %v8733_v52, 4  ;;  %v7439_v38 = vsel %vm5866_vm10, %v7393_v36, %v7394_v37  ;;  %v15974_v29 = vadd.f32 %v15954_v41, %v10427_v48  ;;  %v8706_v57 = vadd.f32 %v8705_v55, %v8704_v62 }
 0x534   :  { %v8719_v21 = vadd.f32 %v8718_v26, %v8717_v9  ;;  %v8726_v3 = vadd.f32 %v8725_v25, %v8724_v10  ;;  %v8544_v30 = vmul.f32 %v17145_v59, %v7520_v39  ;;  %v8740_v40 = vsel %vm6635_vm1, %v8543_v5, 0.0  ;;  %v7210_v26 = vpop.f32.mrf.mxu0 }
 0x535   :  { %v8735_v18 = vadd.f32 %v8734_v23, %v8733_v52  ;;  %v7331_v53 = vmax.f32 %v7181_v8, 0.0  ;;  %v7191_v33 = vadd.f32 %v15954_v41, %v7190_v49  ;;  %v7521_v11 = vmax.f32 %v7329_v13, %v7439_v38 }
 0x536   :  { %v8741_v27 = vsel %vm6635_vm1, %v8544_v30, 0.0  ;;  %v7396_v63 = vrot.slane %v7332_v60, 4  ;;  %v7334_v51 = vmax.f32 %v15974_v29, 0.0  ;;  %v8727_v48 = vrot.slane %v8726_v3, 2 }
 0x537   :  { %v8736_v19 = vrot.slane %v8735_v18, 2  ;;  %v8742_v46 = vadd.f32 %v8741_v27, %v8740_v40  ;;  %v7395_v9 = vrot.slane %v7331_v53, 4  ;;  %v8692_v43 = vadd.f32 %v8691_v50, %v15872_v14 }
 0x538   :  { %v8700_v42 = vrot.slane %v8699_v16, 2  ;;  %v8707_v17 = vrot.slane %v8706_v57, 4  ;;  %v7333_v62 = vmax.f32 %v7191_v33, 0.0  ;;  %v8720_v6 = vrot.slane %v8719_v21, 1 }
 0x539   :  { %v8743_v34 = vrot.slane %v8742_v46, 4  ;;  %v7437_v49 = vsel %vm5866_vm10, %v7395_v9, %v7396_v63  ;;  %v7438_v13 = vsel %vm5866_vm10, %v7394_v37, %v7395_v9  ;;  %v8545_v55 = vmul.f32 %v17146_v24, %v7521_v11  ;;  %v17149_v11 = vld [vmem:[#allocation77_spill] sm:$0xff] }
 0x53a   :  { %v7522_v1 = vmax.f32 %v7330_v61, %v7438_v13  ;;  %v7398_v0 = vrot.slane %v7334_v51, 4  ;;  %v7397_v36 = vrot.slane %v7333_v62, 4  ;;  %v8728_v14 = vadd.f32 %v8727_v48, %v8726_v3  ;;  %v10436_v3 = vpop.f32.mrf.mxu0 }
 0x53b   :  { %v8737_v50 = vadd.f32 %v8736_v19, %v8735_v18  ;;  %v7523_v10 = vmax.f32 %v7331_v53, %v7437_v49  ;;  %v15990_v12 = vadd.f32 %v15954_v41, %v7200_v44  ;;  %v8744_v2 = vadd.f32 %v8743_v34, %v8742_v46  ;;  %v17148_v18 = vld [vmem:[#allocation34_spill] sm:$0xff]  ;;  %v17150_v46 = vld [vmem:[#allocation76_spill] sm:$0xff] }
 0x53c   :  { %v8546_v5 = vmul.f32 %v17147_v4, %v7522_v1  ;;  %v7435_v52 = vsel %vm5866_vm10, %v7397_v36, %v7398_v0  ;;  %v15996_v37 = vadd.f32 %v15954_v41, %v10430_v15  ;;  %v8701_v61 = vadd.f32 %v8700_v42, %v8699_v16 }
 0x53d   :  { %v8708_v32 = vadd.f32 %v8707_v17, %v8706_v57  ;;  %v7436_v25 = vsel %vm5866_vm10, %v7396_v63, %v7397_v36  ;;  %v7525_v39 = vmax.f32 %v7333_v62, %v7435_v52  ;;  %v8693_v23 = vrot.slane %v8692_v43, 1  ;;  %v7220_v17 = vpop.f32.mrf.mxu0 }
 0x53e   :  { %v8721_v38 = vadd.f32 %v8720_v6, %v8719_v21  ;;  %v8750_v44 = vsel %vm6635_vm1, %v8546_v5, 0.0  ;;  %v7524_v8 = vmax.f32 %v7332_v60, %v7436_v25  ;;  %v8729_v59 = vrot.slane %v8728_v14, 1 }
 0x53f   :  { %v8738_v30 = vrot.slane %v8737_v50, 1  ;;  %v8547_v40 = vmul.f32 %v17148_v18, %v7523_v10  ;;  %v7335_v53 = vmax.f32 %v15990_v12, 0.0  ;;  %v8685_v15 = vadd.f32 %v8684_v54, %v15870_v20  ;;  %v17163_v12 = vld [vmem:[#allocation21_spill] sm:$0xff] }
 0x540   :  { %v8745_v16 = vrot.slane %v8744_v2, 2  ;;  %v8749_v57 = vsel %vm6635_vm1, %v8545_v55, 0.0  ;;  %v7336_v33 = vmax.f32 %v15996_v37, 0.0  ;;  %v8549_v27 = vmul.f32 %v17149_v11, %v7525_v39  ;;  %v17158_v11 = vld [vmem:[#allocation48_spill] sm:$0xff] }
 0x541   :  { %v8751_v21 = vadd.f32 %v8750_v44, %v8749_v57  ;;  %v8702_v60 = vrot.slane %v8701_v61, 1  ;;  %v8709_v63 = vrot.slane %v8708_v32, 2  ;;  %v8868_v48 = vmul.f32 0.5, %v15862_v58 }
 0x542   :  { %v16010_v19 = vmul.f32 0.5, %v8721_v38  ;;  %v8548_v9 = vmul.f32 %v17150_v46, %v7524_v8  ;;  %v8694_v42 = vadd.f32 %v8693_v23, %v8692_v43  ;;  %v16013_v62 = vadd.f32 %v8729_v59, %v8728_v14 }
 0x543   :  { %v16015_v20 = vadd.f32 %v8738_v30, %v8737_v50  ;;  %v8758_v54 = vsel %vm6635_vm1, %v8547_v40, 0.0  ;;  %v7399_v6 = vrot.slane %v7335_v53, 4  ;;  %v16020_v34 = vadd.f32 %v8745_v16, %v8744_v2 }
 0x544   :  { %v16023_v49 = vadd.f32 %v15954_v41, %v10433_v28  ;;  %v8703_v58 = vadd.f32 %v8702_v60, %v8701_v61  ;;  %v8710_v13 = vadd.f32 %v8709_v63, %v8708_v32  ;;  %v8752_v24 = vrot.slane %v8751_v21, 4  ;;  %v10439_v28 = vpop.f32.mrf.mxu0 }
 0x545   :  { %v16026_v43 = vsel %vm6635_vm1, %v8549_v27, 0.0  ;;  %v7400_v55 = vrot.slane %v7336_v33, 4  ;;  %v8869_v1 = vmul.f32 0.5, %v8685_v15  ;;  %v8759_v36 = vsel %vm6635_vm1, %v8548_v9, 0.0 }
 0x546   :  { %v8711_v14 = vrot.slane %v8710_v13, 1  ;;  %v8870_v50 = vmul.f32 0.5, %v8694_v42  ;;  %v8944_v10 = vsel %vm8930_vm15, %v15845_v47, %v15843_v22  ;;  %v7434_v4 = vsel %vm5866_vm10, %v7398_v0, %v7399_v6  ;;  %v7230_v30 = vpop.f32.mrf.mxu0 }
 0x547   :  { %v7433_v2 = vsel %vm5866_vm10, %v7399_v6, %v7400_v55  ;;  %v8871_v5 = vmul.f32 0.5, %v8703_v58  ;;  %v8945_v52 = vsel %vm8932_vm11, %v15860_v56, %v8944_v10  ;;  %v17151_v61 = vand.u32 7, %v17032_v35 }
 0x548   :  { %v7338_v25 = vmax.f32 %v16023_v49, 0.0  ;;  %v8712_v22 = vadd.f32 %v8711_v14, %v8710_v13  ;;  %v8946_v47 = vsel %vm8934_vm7, %v8868_v48, %v8945_v52  ;;  %v7211_v39 = vadd.f32 %v15954_v41, %v7210_v26  ;;  %v10442_v13 = vpop.f32.mrf.mxu0 }
 0x549   :  { %vm16042_vm2 = vcmp.eq.s32.totalorder %v17151_v61, 0  ;;  %v16049_v23 = vadd.f32 %v8752_v24, %v8751_v21  ;;  %v8760_v0 = vadd.f32 %v8759_v36, %v8758_v54  ;;  %v8947_v38 = vsel %vm8936_vm0, %v8869_v1, %v8946_v47  ;;  %v17167_v24 = vld [vmem:[#allocation29_spill] sm:$0xff] }
 0x54a   :  { %v7226_v56 = vadd.f32 %v15954_v41, %v10436_v3  ;;  %v7526_v35 = vmax.f32 %v7334_v51, %v7434_v4  ;;  %v8872_v44 = vmul.f32 0.5, %v8712_v22  ;;  %v8948_v8 = vsel %vm8938_vm12, %v8870_v50, %v8947_v38  ;;  %v17157_v3 = vld [vmem:[#allocation17_spill] sm:$0xff] }
 0x54b   :  { %v7337_v59 = vmax.f32 %v7211_v39, 0.0  ;;  %v8949_v18 = vsel %vm8940_vm9, %v8871_v5, %v8948_v8  ;;  %v17154_v40 = vand.u32 7, %v17135_v31  ;;  %v7221_v16 = vadd.f32 %v15954_v41, %v7220_v17  ;;  %v17159_v17 = vld [vmem:[#allocation114_spill] sm:$0xff]  ;;  %v7240_v39 = vpop.f32.mrf.mxu0 }
 0x54c   :  { %v7340_v15 = vmax.f32 %v7226_v56, 0.0  ;;  %v7892_v57 = vand.u32 7, %v17157_v3  ;;  %v7402_v29 = vrot.slane %v7338_v25, 4  ;;  %v8950_v51 = vsel %vm8942_vm13, %v8872_v44, %v8949_v18 }
 0x54d   :  { %vm16059_vm14 = vcmp.eq.s32.totalorder %v17154_v40, 0  ;;  %v7401_v21 = vrot.slane %v7337_v59, 4  ;;  %v7899_v27 = vand.u32 7, %v17158_v11  ;;  %10464 = vmatmul.mubr.msk.f32.vlgmr.msra.gmra.mxu1 %vm6635_vm1, %v8950_v51  ;;  %v7339_v60 = vmax.f32 %v7221_v16, 0.0 }
 0x54e   :  { %vm8362_vm4 = vcmp.eq.s32.totalorder %v7892_v57, 0  ;;  %v16069_v31 = vadd.f32 %v15954_v41, %v10439_v28  ;;  %v7231_v63 = vadd.f32 %v15954_v41, %v7230_v30  ;;  %v8754_v48 = vrot.slane %v16049_v23, 2  ;;  %v17165_v57 = vld [vmem:[#allocation25_spill] sm:$0xff] }
 0x54f   :  { %v8761_v46 = vrot.slane %v8760_v0, 4  ;;  %v7527_v9 = vmax.f32 %v7335_v53, %v7433_v2  ;;  %v7431_v42 = vsel %vm5866_vm10, %v7401_v21, %v7402_v29  ;;  %v8550_v54 = vmul.f32 %v17159_v17, %v7526_v35  ;;  %v17164_v35 = vld [vmem:[#allocation52_spill] sm:$0xff] }
 0x550   :  { %v7432_v6 = vsel %vm5866_vm10, %v7400_v55, %v7401_v21  ;;  %v7404_v49 = vrot.slane %v7340_v15, 4  ;;  %v7403_v58 = vrot.slane %v7339_v60, 4  ;;  %vm16080_vm5 = vcmp.eq.s32.totalorder %v7899_v27, 0 }
 0x551   :  { %v17162_v1 = vmov 0.0   ;;  %v7341_v14 = vmax.f32 %v7231_v63, 0.0  ;;  %v7906_v53 = vand.u32 7, %v17163_v12  ;;  %v7529_v50 = vmax.f32 %v7337_v59, %v7431_v42  ;;  %v10445_v59 = vpop.f32.mrf.mxu0 }
 0x552   :  { %v9888_v36 = vsel %vm8362_vm4, 1.0, %v17162_v1  ;;  %v7429_v10 = vsel %vm5866_vm10, %v7403_v58, %v7404_v49  ;;  %v7430_v28 = vsel %vm5866_vm10, %v7402_v29, %v7403_v58  ;;  %v7342_v55 = vmax.f32 %v16069_v31, 0.0 }
 0x553   :  { %v8551_v2 = vmul.f32 %v15674_v45, %v7527_v9  ;;  %v9887_v4 = vsel %vm16042_vm2, 1.0, %v17162_v1  ;;  %v7530_v5 = vmax.f32 %v7338_v25, %v7430_v28  ;;  %v7405_v52 = vrot.slane %v7341_v14, 4 }
 0x554   :  { %v16095_v61 = vadd.f32 %v8761_v46, %v8760_v0  ;;  %v8768_v22 = vsel %vm6635_vm1, %v8550_v54, 0.0  ;;  %v7531_v47 = vmax.f32 %v7339_v60, %v7429_v10  ;;  %vm8364_vm4 = vcmp.eq.s32.totalorder %v7906_v53, 0  ;;  %v7250_v60 = vpop.f32.mrf.mxu0  ;;  %v17166_v46 = vld [vmem:[#allocation54_spill] sm:$0xff] }
 0x555   :  { %v7528_v38 = vmax.f32 %v7336_v33, %v7432_v6  ;;  %v9889_v45 = vsel %vm16080_vm5, 1.0, %v17162_v1  ;;  %v8554_v56 = vmul.f32 %v9888_v36, %v7530_v5  ;;  %v7913_v32 = vand.u32 7, %v17164_v35 }
 0x556   :  { %v8553_v44 = vmul.f32 %v9887_v4, %v7529_v50  ;;  %v7406_v25 = vrot.slane %v7342_v55, 4  ;;  %v7428_v0 = vsel %vm5866_vm10, %v7404_v49, %v7405_v52  ;;  %v9890_v8 = vsel %vm8364_vm4, 1.0, %v17162_v1 }
 0x557   :  { %v16108_v30 = vadd.f32 %v8768_v22, %v16026_v43  ;;  %v9886_v37 = vsel %vm16059_vm14, 1.0, %v17162_v1  ;;  %v7532_v33 = vmax.f32 %v7340_v15, %v7428_v0  ;;  %v7246_v18 = vadd.f32 %v15954_v41, %v10442_v13 }
 0x558   :  { %v8555_v40 = vmul.f32 %v9889_v45, %v7531_v47  ;;  %v7427_v16 = vsel %vm5866_vm10, %v7405_v52, %v7406_v25  ;;  %v7241_v3 = vadd.f32 %v15954_v41, %v7240_v39  ;;  %v7920_v29 = vand.u32 7, %v17165_v57 }
 0x559   :  { %v8786_v51 = vsel %vm6635_vm1, %v8554_v56, 0.0  ;;  %vm8365_vm5 = vcmp.eq.s32.totalorder %v7913_v32, 0  ;;  %v8556_v43 = vmul.f32 %v9890_v8, %v7532_v33  ;;  %v7344_v21 = vmax.f32 %v7246_v18, 0.0 }
 0x55a   :  { %v8552_v11 = vmul.f32 %v9886_v37, %v7528_v38  ;;  %v8785_v26 = vsel %vm6635_vm1, %v8553_v44, 0.0  ;;  %v7343_v27 = vmax.f32 %v7241_v3, 0.0  ;;  %v16121_v15 = vadd.f32 %v15954_v41, %v10445_v59  ;;  %v10448_v59 = vpop.f32.mrf.mxu0 }
 0x55b   :  { %v7533_v31 = vmax.f32 %v7341_v14, %v7427_v16  ;;  %v8795_v63 = vsel %vm6635_vm1, %v8556_v43, 0.0  ;;  %v7927_v9 = vand.u32 7, %v17166_v46  ;;  %vm8366_vm2 = vcmp.eq.s32.totalorder %v7920_v29, 0 }
 0x55c   :  { %v8787_v42 = vadd.f32 %v8786_v51, %v8785_v26  ;;  %v8794_v17 = vsel %vm6635_vm1, %v8555_v40, 0.0  ;;  %v9891_v54 = vsel %vm8365_vm5, 1.0, %v17162_v1  ;;  %v7407_v6 = vrot.slane %v7343_v27, 4 }
 0x55d   :  { %v8796_v49 = vadd.f32 %v8795_v63, %v8794_v17  ;;  %v7408_v58 = vrot.slane %v7344_v21, 4  ;;  %v7251_v13 = vadd.f32 %v15954_v41, %v7250_v60  ;;  %v7934_v36 = vand.u32 7, %v17167_v24 }
 0x55e   :  { %v8776_v12 = vsel %vm6635_vm1, %v8551_v2, 0.0  ;;  %v7426_v14 = vsel %vm5866_vm10, %v7406_v25, %v7407_v6  ;;  %v9892_v53 = vsel %vm8366_vm2, 1.0, %v17162_v1  ;;  %v7346_v50 = vmax.f32 %v16121_v15, 0.0 }
 0x55f   :  { %v7425_v10 = vsel %vm5866_vm10, %v7407_v6, %v7408_v58  ;;  %v7534_v28 = vmax.f32 %v7342_v55, %v7426_v14  ;;  %vm8367_vm14 = vcmp.eq.s32.totalorder %v7927_v9, 0  ;;  %v7345_v4 = vmax.f32 %v7251_v13, 0.0  ;;  %v17168_v55 = vld [vmem:[#allocation56_spill] sm:$0xff] }
 0x560   :  { %v8770_v5 = vrot.slane %v16108_v30, 4  ;;  %v8788_v52 = vrot.slane %v8787_v42, 4  ;;  %v8557_v22 = vmul.f32 %v9891_v54, %v7533_v31  ;;  %vm8368_vm4 = vcmp.eq.s32.totalorder %v7934_v36, 0  ;;  %v7260_v31 = vpop.f32.mrf.mxu0 }
 0x561   :  { %v8777_v2 = vsel %vm6635_vm1, %v8552_v11, 0.0  ;;  %v8797_v47 = vrot.slane %v8796_v49, 4  ;;  %v8558_v39 = vmul.f32 %v9892_v53, %v7534_v28  ;;  %v7409_v38 = vrot.slane %v7345_v4, 4 }
 0x562   :  { %v7535_v45 = vmax.f32 %v7343_v27, %v7425_v10  ;;  %v9893_v56 = vsel %vm8367_vm14, 1.0, %v17162_v1  ;;  %v16141_v35 = vrot.slane %v7346_v50, 4  ;;  %v7941_v32 = vand.u32 7, %v17168_v55  ;;  %v10451_v24 = vpop.f32.mrf.mxu0 }
 0x563   :  { %v8804_v44 = vsel %vm6635_vm1, %v8558_v39, 0.0  ;;  %v7424_v25 = vsel %vm5866_vm10, %v7408_v58, %v7409_v38  ;;  %v9894_v0 = vsel %vm8368_vm4, 1.0, %v17162_v1  ;;  %v8747_v8 = vrot.slane %v16020_v34, 1 }
 0x564   :  { %v8778_v37 = vadd.f32 %v8777_v2, %v8776_v12  ;;  %v16149_v33 = vadd.f32 %v8788_v52, %v8787_v42  ;;  %v8803_v18 = vsel %vm6635_vm1, %v8557_v22, 0.0  ;;  %v7536_v40 = vmax.f32 %v7344_v21, %v7424_v25 }
 0x565   :  { %v8798_v16 = vadd.f32 %v8797_v47, %v8796_v49  ;;  %v7423_v3 = vsel %vm5866_vm10, %v7409_v38, %v16141_v35  ;;  %v8755_v57 = vadd.f32 %v8754_v48, %v16049_v23  ;;  %v8763_v29 = vrot.slane %v16095_v61, 2 }
 0x566   :  { %v8559_v51 = vmul.f32 %v9893_v56, %v7535_v45  ;;  %v8805_v43 = vadd.f32 %v8804_v44, %v8803_v18  ;;  %vm8369_vm5 = vcmp.eq.s32.totalorder %v7941_v32, 0  ;;  %v8560_v11 = vmul.f32 %v9894_v0, %v7536_v40  ;;  %v7270_v56 = vpop.f32.mrf.mxu0  ;;  %v17169_v40 = vld [vmem:[#allocation33_spill] sm:$0xff] }
 0x567   :  { %v8748_v26 = vadd.f32 %v8747_v8, %v16020_v34  ;;  %v8756_v27 = vrot.slane %v8755_v57, 1  ;;  %v8764_v21 = vadd.f32 %v8763_v29, %v16095_v61  ;;  %v8771_v60 = vadd.f32 %v8770_v5, %v16108_v30 }
 0x568   :  { %v8874_v63 = vmul.f32 0.5, %v16013_v62  ;;  %v8790_v46 = vrot.slane %v16149_v33, 2  ;;  %v7537_v9 = vmax.f32 %v7345_v4, %v7423_v3  ;;  %v8779_v23 = vrot.slane %v8778_v37, 4  ;;  %v17170_v3 = vld [vmem:[#allocation58_spill] sm:$0xff] }
 0x569   :  { %v8799_v48 = vrot.slane %v8798_v16, 2  ;;  %v9895_v42 = vsel %vm8369_vm5, 1.0, %v17162_v1  ;;  %v8757_v17 = vadd.f32 %v8756_v27, %v8755_v57  ;;  %v8765_v54 = vrot.slane %v8764_v21, 1  ;;  %v10454_v27 = vpop.f32.mrf.mxu0 }
 0x56a   :  { %v8812_v6 = vsel %vm6635_vm1, %v8559_v51, 0.0  ;;  %v8813_v34 = vsel %vm6635_vm1, %v8560_v11, 0.0  ;;  %v8772_v49 = vrot.slane %v8771_v60, 2  ;;  %v8780_v61 = vadd.f32 %v8779_v23, %v8778_v37  ;;  %v17171_v11 = vld [vmem:[#allocation37_spill] sm:$0xff] }
 0x56b   :  { %v8806_v58 = vrot.slane %v8805_v43, 4  ;;  %v8766_v30 = vadd.f32 %v8765_v54, %v8764_v21  ;;  %v8875_v13 = vmul.f32 0.5, %v16015_v20  ;;  %v8876_v62 = vmul.f32 0.5, %v8748_v26 }
 0x56c   :  { %v8561_v36 = vmul.f32 %v9895_v42, %v7537_v9  ;;  %v8773_v12 = vadd.f32 %v8772_v49, %v8771_v60  ;;  %v8781_v14 = vrot.slane %v8780_v61, 2  ;;  %v8877_v53 = vmul.f32 0.5, %v8757_v17 }
 0x56d   :  { %v8814_v10 = vadd.f32 %v8813_v34, %v8812_v6  ;;  %v8878_v28 = vmul.f32 0.5, %v8766_v30  ;;  %v8951_v4 = vsel %vm8930_vm15, %v8874_v63, %v16010_v19  ;;  %v7266_v5 = vadd.f32 %v15954_v41, %v10448_v59  ;;  %v17172_v34 = vld [vmem:[#allocation60_spill] sm:$0xff] }
 0x56e   :  { %v16171_v52 = vadd.f32 %v8799_v48, %v8798_v16  ;;  %v8774_v22 = vrot.slane %v8773_v12, 1  ;;  %v8782_v2 = vadd.f32 %v8781_v14, %v8780_v61  ;;  %v8952_v47 = vsel %vm8932_vm11, %v8875_v13, %v8951_v4  ;;  %v7280_v61 = vpop.f32.mrf.mxu0 }
 0x56f   :  { %v16174_v20 = vadd.f32 %v8806_v58, %v8805_v43  ;;  %v8953_v39 = vsel %vm8934_vm7, %v8876_v62, %v8952_v47  ;;  %v7348_v38 = vmax.f32 %v7266_v5, 0.0  ;;  %v7261_v45 = vadd.f32 %v15954_v41, %v7260_v31 }
 0x570   :  { %v8821_v55 = vsel %vm6635_vm1, %v8561_v36, 0.0  ;;  %v8775_v32 = vadd.f32 %v8774_v22, %v8773_v12  ;;  %v8783_v19 = vrot.slane %v8782_v2, 1  ;;  %v8954_v44 = vsel %vm8936_vm0, %v8877_v53, %v8953_v39  ;;  %v17173_v36 = vld [vmem:[#allocation45_spill] sm:$0xff] }
 0x571   :  { %v8815_v25 = vrot.slane %v8814_v10, 4  ;;  %v8955_v0 = vsel %vm8938_vm12, %v8878_v28, %v8954_v44  ;;  %v7412_v8 = vrot.slane %v7348_v38, 4  ;;  %v7347_v59 = vmax.f32 %v7261_v45, 0.0 }
 0x572   :  { %v8784_v37 = vadd.f32 %v8783_v19, %v8782_v2  ;;  %v8879_v18 = vmul.f32 0.5, %v8775_v32  ;;  %v7948_v16 = vand.u32 7, %v17169_v40  ;;  %v7955_v57 = vand.u32 7, %v17170_v3  ;;  %v17174_v32 = vld [vmem:[#allocation26_spill] sm:$0xff] }
 0x573   :  { %v7411_v29 = vrot.slane %v7347_v59, 4  ;;  %v16184_v51 = vadd.f32 %v15954_v41, %v10451_v24  ;;  %v7271_v43 = vadd.f32 %v15954_v41, %v7270_v56  ;;  %v7962_v26 = vand.u32 7, %v17171_v11 }
 0x574   :  { %v8880_v21 = vmul.f32 0.5, %v8784_v37  ;;  %v8956_v60 = vsel %vm8940_vm9, %v8879_v18, %v8955_v0  ;;  %vm8370_vm2 = vcmp.eq.s32.totalorder %v7948_v16, 0  ;;  %vm8371_vm14 = vcmp.eq.s32.totalorder %v7955_v57, 0 }
 0x575   :  { %v7421_v31 = vsel %vm5866_vm10, %v7411_v29, %v7412_v8  ;;  %v7422_v63 = vsel %vm5866_vm10, %v16141_v35, %v7411_v29  ;;  %v9896_v9 = vsel %vm8370_vm2, 1.0, %v17162_v1  ;;  %v9897_v23 = vsel %vm8371_vm14, 1.0, %v17162_v1 }
 0x576   :  { %v8957_v48 = vsel %vm8942_vm13, %v8880_v21, %v8956_v60  ;;  %v7538_v42 = vmax.f32 %v7346_v50, %v7422_v63  ;;  %v7539_v17 = vmax.f32 %v7347_v59, %v7421_v31  ;;  %v7350_v54 = vmax.f32 %v16184_v51, 0.0 }
 0x577   :  { %10466 = vmatprep.mubr.msk.f32.mxu1 %vm6635_vm1, %v8957_v48  ;;  %v7349_v6 = vmax.f32 %v7271_v43, 0.0  ;;  %v7969_v49 = vand.u32 7, %v17172_v34  ;;  %vm8372_vm4 = vcmp.eq.s32.totalorder %v7962_v26, 0  ;;  %v7286_v35 = vadd.f32 %v15954_v41, %v10454_v27 }
 0x578   :  { %v8808_v58 = vrot.slane %v16174_v20, 2  ;;  %v8816_v30 = vadd.f32 %v8815_v25, %v8814_v10  ;;  %v8562_v13 = vmul.f32 %v9896_v9, %v7538_v42  ;;  %v8563_v62 = vmul.f32 %v9897_v23, %v7539_v17 }
 0x579   :  { %v7414_v24 = vrot.slane %v7350_v54, 4  ;;  %v7413_v15 = vrot.slane %v7349_v6, 4  ;;  %v7352_v50 = vmax.f32 %v7286_v35, 0.0  ;;  %v7990_v12 = vand.u32 7, %v17173_v36 }
 0x57a   :  { %v8822_v14 = vsel %vm6635_vm1, %v8562_v13, 0.0  ;;  %vm8373_vm5 = vcmp.eq.s32.totalorder %v7969_v49, 0  ;;  %v9898_v53 = vsel %vm8372_vm4, 1.0, %v17162_v1  ;;  %v7281_v28 = vadd.f32 %v15954_v41, %v7280_v61  ;;  %v17175_v41 = vld [vmem:[#allocation41_spill] sm:$0xff] }
 0x57b   :  { %v8823_v4 = vadd.f32 %v8822_v14, %v8821_v55  ;;  %v7419_v5 = vsel %vm5866_vm10, %v7413_v15, %v7414_v24  ;;  %v7420_v10 = vsel %vm5866_vm10, %v7412_v8, %v7413_v15  ;;  %v7416_v22 = vrot.slane %v7352_v50, 4 }
 0x57c   :  { %v7540_v2 = vmax.f32 %v7348_v38, %v7420_v10  ;;  %v7541_v47 = vmax.f32 %v7349_v6, %v7419_v5  ;;  %vm8376_vm2 = vcmp.eq.s32.totalorder %v7990_v12, 0  ;;  %v7351_v39 = vmax.f32 %v7281_v28, 0.0  ;;  %v17176_v38 = vld [vmem:[#allocation62_spill] sm:$0xff] }
 0x57d   :  { %v8824_v45 = vrot.slane %v8823_v4, 4  ;;  %v9899_v56 = vsel %vm8373_vm5, 1.0, %v17162_v1  ;;  %v7480_v19 = vsel %vm5866_vm10, %v7416_v22, %v17174_v32  ;;  %v7976_v55 = vand.u32 7, %v17175_v41 }
 0x57e   :  { %v8817_v44 = vrot.slane %v8816_v30, 2  ;;  %v8564_v25 = vmul.f32 %v9898_v53, %v7540_v2  ;;  %v7544_v0 = vmax.f32 %v7352_v50, %v7480_v19  ;;  %v7415_v59 = vrot.slane %v7351_v39, 4 }
 0x57f   :  { %v8825_v37 = vadd.f32 %v8824_v45, %v8823_v4  ;;  %v9902_v8 = vsel %vm8376_vm2, 1.0, %v17162_v1  ;;  %v7983_v18 = vand.u32 7, %v17176_v38  ;;  %vm8374_vm14 = vcmp.eq.s32.totalorder %v7976_v55, 0 }
 0x580   :  { %v8830_v40 = vsel %vm6635_vm1, %v8563_v62, 0.0  ;;  %v8565_v16 = vmul.f32 %v9899_v56, %v7541_v47  ;;  %v8831_v3 = vsel %vm6635_vm1, %v8564_v25, 0.0  ;;  %v7417_v57 = vsel %vm5866_vm10, %v7415_v59, %v7416_v22 }
 0x581   :  { %v8826_v29 = vrot.slane %v8825_v37, 2  ;;  %v8832_v51 = vadd.f32 %v8831_v3, %v8830_v40  ;;  %v7418_v43 = vsel %vm5866_vm10, %v7414_v24, %v7415_v59  ;;  %v7543_v11 = vmax.f32 %v7351_v39, %v7417_v57  ;;  %v9903_v57 = vld [vmem:[%s16296_s1 + $0x90] ss:$0 sm:$0xff] }
 0x582   :  { %v8568_v26 = vmul.f32 %v9902_v8, %v7544_v0  ;;  %v7542_v27 = vmax.f32 %v7350_v54, %v7418_v43  ;;  %vm8375_vm4 = vcmp.eq.s32.totalorder %v7983_v18, 0  ;;  %v9900_v21 = vsel %vm8374_vm14, 1.0, %v17162_v1 }
 0x583   :  { %v8809_v60 = vadd.f32 %v8808_v58, %v16174_v20  ;;  %v8833_v31 = vrot.slane %v8832_v51, 4  ;;  %v9901_v63 = vsel %vm8375_vm4, 1.0, %v17162_v1  ;;  %v8791_v9 = vadd.f32 %v8790_v46, %v16149_v33 }
 0x584   :  { %v8818_v23 = vadd.f32 %v8817_v44, %v8816_v30  ;;  %v8566_v48 = vmul.f32 %v9900_v21, %v7542_v27  ;;  %v8567_v42 = vmul.f32 %v9901_v63, %v7543_v11  ;;  %v8801_v7 = vrot.slane %v16171_v52, 1 }
 0x585   :  { %v8834_v17 = vadd.f32 %v8833_v31, %v8832_v51  ;;  %v8827_v6 = vadd.f32 %v8826_v29, %v8825_v37  ;;  %v8839_v54 = vsel %vm6635_vm1, %v8565_v16, 0.0  ;;  %v8849_v34 = vsel %vm6635_vm1, %v8568_v26, 0.0 }
 0x586   :  { %v8840_v20 = vsel %vm6635_vm1, %v8566_v48, 0.0  ;;  %v8848_v49 = vsel %vm6635_vm1, %v8567_v42, 0.0  ;;  %v8810_v1 = vrot.slane %v8809_v60, 1  ;;  %v8792_v33 = vrot.slane %v8791_v9, 1 }
 0x587   :  { %v8841_v35 = vadd.f32 %v8840_v20, %v8839_v54  ;;  %v8850_v61 = vadd.f32 %v8849_v34, %v8848_v49  ;;  %v8835_v58 = vrot.slane %v8834_v17, 2  ;;  %v8819_v46 = vrot.slane %v8818_v23, 1 }
 0x588   :  { %v8828_v62 = vrot.slane %v8827_v6, 1  ;;  %v8802_v15 = vadd.f32 %v8801_v7, %v16171_v52  ;;  %v8811_v50 = vadd.f32 %v8810_v1, %v8809_v60  ;;  %v8793_v53 = vadd.f32 %v8792_v33, %v8791_v9  ;;  %v9093_v9 = vld [vmem:[%s16296_s1 + $0xb0] sm:$0xff] }
 0x589   :  { %v8842_v30 = vrot.slane %v8841_v35, 4  ;;  %v8851_v13 = vrot.slane %v8850_v61, 4  ;;  %v8836_v24 = vadd.f32 %v8835_v58, %v8834_v17  ;;  %v8820_v28 = vadd.f32 %v8819_v46, %v8818_v23  ;;  %v9092_v23 = vld [vmem:[%s16296_s1 + $0xa8] sm:$0xff]  ;;  %10469 = vmatprep.subr.mxu1 %v9093_v9 }
 0x58a   :  { %v8829_v5 = vadd.f32 %v8828_v62, %v8827_v6  ;;  %v8882_v22 = vmul.f32 0.5, %v8802_v15  ;;  %v8883_v45 = vmul.f32 0.5, %v8811_v50  ;;  %v8881_v56 = vmul.f32 0.5, %v8793_v53  ;;  %10470 = vmatpush3.msra.mxu1 %v9093_v9  ;;  %v9090_v15 = vld [vmem:[%s16296_s1 + $0x98] sm:$0xff] }
 0x58b   :  { %v8852_v36 = vadd.f32 %v8851_v13, %v8850_v61  ;;  %v8837_v12 = vrot.slane %v8836_v24, 1  ;;  %v8843_v14 = vadd.f32 %v8842_v30, %v8841_v35  ;;  %v8884_v32 = vmul.f32 0.5, %v8820_v28  ;;  %10471 = vmatprep.subr.mxu1 %v9092_v23  ;;  %v9091_v35 = vld [vmem:[%s16296_s1 + $0xa0] sm:$0xff] }
 0x58c   :  { %v8885_v55 = vmul.f32 0.5, %v8829_v5  ;;  %v8958_v44 = vsel %vm8930_vm15, %v8882_v22, %v8881_v56  ;;  %10472 = vmatpush3.msra.mxu1 %v9092_v23 }
 0x58d   :  { %v8853_v4 = vrot.slane %v8852_v36, 2  ;;  %v8844_v10 = vrot.slane %v8843_v14, 2  ;;  %v8838_v2 = vadd.f32 %v8837_v12, %v8836_v24  ;;  %v8959_v59 = vsel %vm8932_vm11, %v8883_v45, %v8958_v44  ;;  %10476 = vmatprep.subr.mxu1 %v9091_v35  ;;  %v9912_v45 = vld [vmem:[%s16296_s1 + $0xb8] ss:$0 sm:$0xff]  ;;  %v9354_v44 = vld [vmem:[%s16296_s1 + $0xd0] sm:$0xf] }
 0x58e   :  { %v8960_v37 = vsel %vm8934_vm7, %v8884_v32, %v8959_v59 }
 0x58f   :  { %v8845_v47 = vadd.f32 %v8844_v10, %v8843_v14  ;;  %v8854_v39 = vadd.f32 %v8853_v4, %v8852_v36  ;;  %v8886_v52 = vmul.f32 0.5, %v8838_v2  ;;  %v8961_v18 = vsel %vm8936_vm0, %v8885_v55, %v8960_v37  ;;  %v9265_v10 = vld [vmem:[%s16296_s1 + $0xc0] sm:$0xff] }
 0x591   :  { %v8846_v19 = vrot.slane %v8845_v47, 1  ;;  %v8855_v41 = vrot.slane %v8854_v39, 1  ;;  %v8962_v40 = vsel %vm8938_vm12, %v8886_v52, %v8961_v18 }
 0x593   :  { %v8847_v25 = vadd.f32 %v8846_v19, %v8845_v47  ;;  %v8856_v0 = vadd.f32 %v8855_v41, %v8854_v39 }
 0x595   :  { %v8887_v8 = vmul.f32 0.5, %v8847_v25  ;;  %v8888_v38 = vmul.f32 0.5, %v8856_v0  ;;  %v9913_v25 = vld [vmem:[%s16296_s1 + $0xc8] ss:$0 sm:$0xff] }
 0x597   :  { %v8963_v16 = vsel %vm8940_vm9, %v8887_v8, %v8962_v40  ;;  %v9916_v40 = vld [vmem:[%s16296_s1 + $0xd8] ss:$0 sm:$0xff] }
 0x598   :  { %v8964_v3 = vsel %vm8942_vm13, %v8888_v38, %v8963_v16 }
 0x599   :  { %10467 = vmatmul.mubr.msk.f32.gmra.mxu1 %vm6635_vm1, %v8964_v3 }
 0x60d   :  { %v10465_v29 = vpop.f32.mrf.mxu1 }
 0x60e   :  { %v9045_v51 = vadd.f32 %v10465_v29, %v9903_v57 }
 0x60f   :  { %v9039_v43 = vpop.f32.mrf.mxu1 }
 0x610   :  { %v9059_v11 = vmax.f32 %v9045_v51, 0.0  ;;  %v9040_v26 = vadd.f32 %v9903_v57, %v9039_v43 }
 0x612   :  { %v9063_v27 = vmul.f32 %v9059_v11, %v9059_v11  ;;  %v9058_v21 = vmax.f32 %v9040_v26, 0.0 }
 0x614   :  { %v9062_v60 = vmul.f32 %v9058_v21, %v9058_v21  ;;  %v9069_v31 = vsel %vm4511_vm6, %v9063_v27, 0.0 }
 0x615   :  { %9070 = vadd.xlane.f32.xlu1 %v9069_v31 }
 0x616   :  { %v9066_v63 = vsel %vm4511_vm6, %v9062_v60, 0.0 }
 0x617   :  { %9067 = vadd.xlane.f32.xlu0 %v9066_v63 }
 0x659   :  { %v10468_v48 = vpop.f32.mrf.mxu1 }
 0x65a   :  { %v9055_v42 = vadd.f32 %v10468_v48, %v9903_v57 }
 0x65b   :  { %v9049_v7 = vpop.f32.mrf.mxu1 }
 0x65c   :  { %v9050_v17 = vadd.f32 %v9903_v57, %v9049_v7  ;;  %v9061_v6 = vmax.f32 %v9055_v42, 0.0 }
 0x65e   :  { %v9060_v54 = vmax.f32 %v9050_v17, 0.0  ;;  %v9065_v20 = vmul.f32 %v9061_v6, %v9061_v6 }
 0x660   :  { %v9064_v34 = vmul.f32 %v9060_v54, %v9060_v54  ;;  %v9075_v1 = vsel %vm4511_vm6, %v9065_v20, 0.0 }
 0x662   :  { %v9072_v49 = vsel %vm4511_vm6, %v9064_v34, 0.0 }
 0x663   :  { %9073 = vadd.xlane.f32.xlu0 %v9072_v49 }
 0x667   :  { %9076 = vadd.xlane.f32.xlu0 %v9075_v1 }
 0x69e   :  { %v9071_v61 = vpop.xlane.xlu1 %9070 }
 0x69f   :  { %v9079_v58 = vmax.f32 %v9071_v61, 1e-24 }
 0x6a0   :  { %v9068_v33 = vpop.xlane.xlu0 %9067 }
 0x6a1   :  { %v9078_v46 = vmax.f32 %v9068_v33, 1e-24  ;;  %10502 = vrsqrt.f32 %v9079_v58 }
 0x6a3   :  { %10504 = vrsqrt.f32 %v9078_v46 }
 0x6ae   :  { %v10503_v30 = vpop.eup %10502 }
 0x6af   :  { %v9087_v24 = vmul.f32 %v10503_v30, %v9059_v11 }
 0x6b0   :  { %v10505_v13 = vpop.eup %10504 }
 0x6b1   :  { %v9086_v62 = vmul.f32 %v10505_v13, %v9058_v21 }
 0x6b3   :  { %10473 = vmatprep.mubr.msk.f32.mxu1 %vm4511_vm6, %v9086_v62 }
 0x6b4   :  { %10474 = vmatmul.mubr.msk.f32.vlgmr.msra.gmra.mxu1 %vm4511_vm6, %v9087_v24 }
 0x6b5   :  { %10477 = vmatpush3.msra.mxu1 %v9091_v35 }
 0x6b6   :  { %10478 = vmatprep.subr.mxu1 %v9090_v15 }
 0x6b7   :  { %10479 = vmatpush3.msra.mxu1 %v9090_v15 }
 0x6b8   :  { %10483 = vmatprep.subr.mxu1 %v9265_v10 }
 0x6ec   :  { %v9074_v50 = vpop.xlane.xlu0 %9073 }
 0x6ed   :  { %v9080_v36 = vmax.f32 %v9074_v50, 1e-24 }
 0x6ef   :  { %10506 = vrsqrt.f32 %v9080_v36 }
 0x6f0   :  { %v9077_v12 = vpop.xlane.xlu0 %9076 }
 0x6f1   :  { %v9081_v14 = vmax.f32 %v9077_v12, 1e-24 }
 0x6f3   :  { %10508 = vrsqrt.f32 %v9081_v14 }
 0x6fc   :  { %v10507_v53 = vpop.eup %10506 }
 0x6fd   :  { %v9088_v28 = vmul.f32 %v10507_v53, %v9060_v54 }
 0x6ff   :  { %10480 = vmatprep.mubr.msk.f32.mxu1 %vm4511_vm6, %v9088_v28 }
 0x700   :  { %v10509_v4 = vpop.eup %10508 }
 0x701   :  { %v9089_v5 = vmul.f32 %v10509_v4, %v9061_v6 }
 0x703   :  { %10481 = vmatmul.mubr.msk.f32.vlgmr.msra.gmra.mxu1 %vm4511_vm6, %v9089_v5  ;;  %vm17177_vm6 = vcmask 31744  }
 0x704   :  { %10484 = vmatpush3.msra.mxu1 %v9265_v10 }
 0x705   :  { %10488 = vmatprep.subr.msk.mxu1 %vm2520_vm3, %v9354_v44 }
 0x774   :  { %v10475_v22 = vpop.f32.mrf.mxu1 }
 0x776   :  { %v9166_v2 = vpop.f32.mrf.mxu1 }
 0x7c3   :  { %v10482_v47 = vpop.f32.mrf.mxu1 }
 0x7c4   :  { %v9253_v39 = vadd.f32 %v10482_v47, %v10475_v22 }
 0x7c5   :  { %v9247_v56 = vpop.f32.mrf.mxu1 }
 0x7c6   :  { %v9248_v32 = vadd.f32 %v9247_v56, %v9166_v2  ;;  %v9262_v19 = vadd.f32 %v9912_v45, %v9253_v39 }
 0x7c8   :  { %v9261_v41 = vadd.f32 %v9912_v45, %v9248_v32  ;;  %v9264_v52 = vmax.f32 %v9262_v19, 0.0 }
 0x7ca   :  { %v9263_v55 = vmax.f32 %v9261_v41, 0.0 }
 0x7cc   :  { %10485 = vmatprep.mubr.msk.f32.mxu1 %vm2255_vm8, %v9263_v55 }
 0x7cd   :  { %10486 = vmatmul.mubr.msk.f32.vlgmr.msra.gmra.mxu1 %vm2255_vm8, %v9264_v52  ;;  %vm17178_vm8 = vmmov %vm17177_vm6 }
 0x7ce   :  { %10489 = vmatpush3.msk.msra.mxu1 %vm2520_vm3, %v9354_v44  ;;  %vm9444_vm3 = vcmask 7168  }
 0x88d   :  { %v10487_v0 = vpop.f32.mrf.mxu1 }
 0x88e   :  { %v9349_v59 = vadd.f32 %v10487_v0, %v9913_v25 }
 0x88f   :  { %v9343_v37 = vpop.f32.mrf.mxu1 }
 0x890   :  { %v9344_v8 = vadd.f32 %v9913_v25, %v9343_v37  ;;  %v9353_v18 = vmax.f32 %v9349_v59, 0.0 }
 0x892   :  { %v9352_v38 = vmax.f32 %v9344_v8, 0.0 }
 0x894   :  { %10490 = vmatprep.mubr.msk.f32.mxu1 %vm17177_vm6, %v9352_v38 }
 0x895   :  { %10491 = vmatmul.mubr.msk.f32.vlgmr.msra.gmra.mxu1 %vm17178_vm8, %v9353_v18 }
 0x955   :  { %v10492_v16 = vpop.f32.mrf.mxu1 }
 0x956   :  { %v9441_v3 = vadd.f32 %v10492_v16, %v9916_v40 }
 0x957   :  { %v9435_v57 = vpop.f32.mrf.mxu1 }
 0x958   :  { %9446 = vst.msk [vmem:[%s16297_s2 + $0x8] sm:$0xff] %vm9444_vm3, %v9441_v3  ;;  %v9436_v29 = vadd.f32 %v9916_v40, %v9435_v57 }
 0x95a   :  { %9445 = vst.msk [vmem:[%s16297_s2] sm:$0xff] %vm9444_vm3, %v9436_v29 }

</bundles_post_ra>
